<compile_context>
chip_gen: v6e
topology: v6e:2x2x1
jax: 0.10.0
libtpu: 0.0.40
codegen_flags: <defaults>
</compile_context>

<pallas_src>
import functools

import numpy as np
import jax
import jax.numpy as jnp
from jax.experimental import pallas as pl
from jax.experimental.pallas import tpu as pltpu


def _round_up(x, m):
    return (x + m - 1) // m * m


# ---------------------------------------------------------------------------
# Fused matmul kernel:  act((X @ W) * scale + bias)
#   bf16 operands, f32 accumulation straight into the output block (its block
#   index is independent of k, so it stays VMEM resident across the K axis).
# ---------------------------------------------------------------------------
def _matmul_kernel(x_ref, w_ref, s_ref, b_ref, o_ref, *, act):
    @pl.when(pl.program_id(2) == 0)
    def _():
        o_ref[...] = jnp.zeros_like(o_ref)

    o_ref[...] += jnp.dot(x_ref[...], w_ref[...],
                          preferred_element_type=jnp.float32)

    @pl.when(pl.program_id(2) == pl.num_programs(2) - 1)
    def _():
        y = o_ref[...] * s_ref[...] + b_ref[...]
        if act == "relu":
            y = jnp.maximum(y, 0.0)
        elif act == "sigmoid":
            y = pl.reciprocal(1.0 + jnp.exp(-y), approx=True)
        o_ref[...] = y


def prep_matmul(w, scale=None, bias=None):
    """One-time weight prep: fold, pad to TPU tiles, cast to bf16."""
    K, N = w.shape
    Kp = _round_up(K, 128)
    tn = 256 if N > 128 else 128          # 256-wide N tiles fill v6e/v7x MXU
    Np = _round_up(N, tn)
    wp = jnp.zeros((Kp, Np), jnp.bfloat16).at[:K, :N].set(w.astype(jnp.bfloat16))
    s = jnp.ones((N,), jnp.float32) if scale is None else jnp.asarray(scale, jnp.float32)
    b = jnp.zeros((N,), jnp.float32) if bias is None else jnp.asarray(bias, jnp.float32)
    sp = jnp.zeros((1, Np), jnp.float32).at[0, :N].set(s)
    bp = jnp.zeros((1, Np), jnp.float32).at[0, :N].set(b)
    return (wp, sp, bp)


def fused_matmul(x, wp, sp, bp, *, n_out, act="none"):
    """act((x @ w) * scale + bias) with pre-padded weights and bf16 inputs."""
    M, K = x.shape
    Kp, Np = wp.shape
    tm = min(512, _round_up(M, 8))
    Mp = _round_up(M, tm)
    tn = 256 if Np % 256 == 0 else 128
    tk = next(t for t in (1024, 512, 256, 128) if Kp % t == 0)

    xb = x.astype(jnp.bfloat16)
    if (Mp, Kp) != (M, K):
        xb = jnp.pad(xb, ((0, Mp - M), (0, Kp - K)))

    grid = (Mp // tm, Np // tn, Kp // tk)
    out = pl.pallas_call(
        functools.partial(_matmul_kernel, act=act),
        out_shape=jax.ShapeDtypeStruct((Mp, Np), jnp.float32),
        grid_spec=pltpu.PrefetchScalarGridSpec(
            num_scalar_prefetch=0,
            grid=grid,
            in_specs=[
                pl.BlockSpec((tm, tk), lambda i, j, k: (i, k)),
                pl.BlockSpec((tk, tn), lambda i, j, k: (k, j)),
                pl.BlockSpec((1, tn), lambda i, j, k: (0, j)),
                pl.BlockSpec((1, tn), lambda i, j, k: (0, j)),
            ],
            out_specs=pl.BlockSpec((tm, tn), lambda i, j, k: (i, j)),
        ),
        compiler_params=pltpu.CompilerParams(
            dimension_semantics=("parallel", "parallel", "arbitrary")),
    )(xb, wp, sp, bp)
    return out[:M, :n_out]


# ---------------------------------------------------------------------------
# Fused PSP + APAM attention + gamma blend + conv8 kernel.
# One grid step per batch; everything kept lane-dense with HW on the lane axis
# (inputs (C, HW), output (ncp, HW)).  All dots are standard or contract-last.
# ---------------------------------------------------------------------------
def _apam_conv8_kernel(outT_ref, p_ref, pt_ref, wk_ref, bk_ref, wqT_ref,
                       bq_ref, wgT_ref, bg_ref, w8T_ref, bb_ref, o_ref):
    outT = outT_ref[0]                                               # (C, HW)

    # PSP pooled features in both orientations (tiny matmuls).
    xp = jax.lax.dot_general(p_ref[...], outT, (((1,), (1,)), ((), ())),
                             preferred_element_type=jnp.float32)     # (S, C)
    xpT = jnp.dot(outT, pt_ref[...],
                  preferred_element_type=jnp.float32)                # (C, S)

    # query / key / gamma projections.
    qT = jnp.dot(wqT_ref[...], outT,
                 preferred_element_type=jnp.float32) + bq_ref[...]   # (kd, HW)
    k = jnp.dot(xp, wk_ref[...],
                preferred_element_type=jnp.float32) + bk_ref[...]    # (S, kd)
    gz = jnp.dot(wgT_ref[...], outT,
                 preferred_element_type=jnp.float32) + bg_ref[...]   # (1, HW)
    gamma = pl.reciprocal(1.0 + jnp.exp(-gz), approx=True)           # sigmoid

    # energy^T and softmax over the pooled axis (axis 0).
    energyT = jnp.dot(k, qT, preferred_element_type=jnp.float32)     # (S, HW)
    m = jnp.max(energyT, axis=0, keepdims=True)
    e = jnp.exp(energyT - m)
    attnT = e * pl.reciprocal(jnp.sum(e, axis=0, keepdims=True), approx=True)

    attT = jnp.dot(xpT, attnT, preferred_element_type=jnp.float32)   # (C, HW)
    resT = (1.0 - gamma) * attT + gamma * outT                       # (C, HW)

    # conv8 (top half); bottom half + bias arrive as a per-batch bias column.
    o_ref[0] = (jnp.dot(w8T_ref[...], resT, preferred_element_type=jnp.float32)
                + bb_ref[0])                                         # (ncp, HW)


def apam_conv8_head(outT, apam, batch_bias):
    B, C, HW = outT.shape
    S = apam["p"].shape[0]
    kd = apam["wqT"].shape[0]
    ncp = apam["w8T"].shape[0]
    return pl.pallas_call(
        _apam_conv8_kernel,
        out_shape=jax.ShapeDtypeStruct((B, ncp, HW), jnp.float32),
        grid_spec=pltpu.PrefetchScalarGridSpec(
            num_scalar_prefetch=0,
            grid=(B,),
            in_specs=[
                pl.BlockSpec((1, C, HW), lambda b: (b, 0, 0)),
                pl.BlockSpec((S, HW), lambda b: (0, 0)),
                pl.BlockSpec((HW, S), lambda b: (0, 0)),
                pl.BlockSpec((C, kd), lambda b: (0, 0)),
                pl.BlockSpec((1, kd), lambda b: (0, 0)),
                pl.BlockSpec((kd, C), lambda b: (0, 0)),
                pl.BlockSpec((kd, 1), lambda b: (0, 0)),
                pl.BlockSpec((1, C), lambda b: (0, 0)),
                pl.BlockSpec((1, 1), lambda b: (0, 0)),
                pl.BlockSpec((ncp, C), lambda b: (0, 0)),
                pl.BlockSpec((1, ncp, 1), lambda b: (b, 0, 0)),
            ],
            out_specs=pl.BlockSpec((1, ncp, HW), lambda b: (b, 0, 0)),
        ),
        compiler_params=pltpu.CompilerParams(
            dimension_semantics=("parallel",)),
    )(outT, apam["p"], apam["pt"], apam["wk"], apam["bk"], apam["wqT"],
      apam["bq"], apam["wgT"], apam["bg"], apam["w8T"], batch_bias)


# ---------------------------------------------------------------------------
# Glue: BN folding, im2col, PSP pooling matrix
# ---------------------------------------------------------------------------
def fold_bn(bn, eps=1e-5):
    gamma, beta, mean, var = bn
    scale = gamma / jnp.sqrt(var + eps)
    return scale, beta - mean * scale


def _im2col_dilated(t, rate):
    # TODO(synk): read the 9 taps straight from the padded feature map inside
    # the matmul grid (element-offset index_map) instead of materializing the
    # 9x im2col matrix; for now it is built in bf16 to halve HBM traffic.
    B, H, W, C = t.shape
    xp = jnp.pad(t, ((0, 0), (rate, rate), (rate, rate), (0, 0)))
    taps = [xp[:, ky * rate:ky * rate + H, kx * rate:kx * rate + W, :]
            for ky in range(3) for kx in range(3)]
    return jnp.stack(taps, axis=3).reshape(B * H * W, 9 * C)


def make_psp_matrix(H, W, sizes=(1, 3, 6, 8)):
    """(S, H*W) averaging matrix reproducing AdaptiveAvgPool2d bin boundaries."""
    rows = []
    for n in sizes:
        for i in range(n):
            r0, r1 = (i * H) // n, -((-(i + 1) * H) // n)
            for j in range(n):
                c0, c1 = (j * W) // n, -((-(j + 1) * W) // n)
                m = np.zeros((H, W), np.float32)
                m[r0:r1, c0:c1] = 1.0 / ((r1 - r0) * (c1 - c0))
                rows.append(m.reshape(-1))
    return jnp.asarray(np.stack(rows, axis=0))


# ---------------------------------------------------------------------------
# Parameters (deterministic synthetic init), one-time prep, forward pass
# ---------------------------------------------------------------------------
def init_params(key, in_ch, inter, nclass):
    it = iter(jax.random.split(key, 96))

    def w(shape, s=0.05):
        return jax.random.normal(next(it), shape, jnp.float32) * s

    def bn(c):
        return (1.0 + 0.1 * jax.random.normal(next(it), (c,), jnp.float32),
                0.1 * jax.random.normal(next(it), (c,), jnp.float32),
                0.1 * jax.random.normal(next(it), (c,), jnp.float32),
                1.0 + 0.1 * jnp.abs(jax.random.normal(next(it), (c,), jnp.float32)))

    kd = inter // 8
    p = {}
    p["w_b0"] = w((in_ch, inter)); p["bn_b0"] = bn(inter)
    for name in ("b1", "b2", "b3"):
        p[f"w_{name}a"] = w((in_ch, 512)); p[f"bn_{name}a"] = bn(512)
        p[f"w_{name}b"] = w((inter, 512, 3, 3)); p[f"bn_{name}b"] = bn(inter)
    p["w_p1"] = w((in_ch + 4 * inter, inter)); p["bn_p1"] = bn(inter)
    p["w_p2"] = w((inter, 4)); p["b_p2"] = w((4,))
    p["w_proj"] = w((4 * inter, inter)); p["bn_proj"] = bn(inter)
    p["w_gap"] = w((in_ch, inter)); p["bn_gap"] = bn(inter)
    p["w_se"] = w((inter, inter)); p["b_se"] = w((inter,))
    p["w_q"] = w((inter, kd)); p["b_q"] = w((kd,))
    p["w_k"] = w((inter, kd)); p["b_k"] = w((kd,))
    p["w_g"] = w((inter, 1)); p["b_g"] = w((1,))
    p["w_8"] = w((2 * inter, nclass)); p["b_8"] = w((nclass,))
    p["w_sel"] = w((inter, nclass)); p["b_sel"] = w((nclass,))
    return p


def prepare_params(raw, H, W, psp_sizes=(1, 3, 6, 8)):
    """One-time weight prep: BN fold, bf16 cast, TPU padding, transposes."""
    inter = raw["w_b0"].shape[1]
    kd = raw["w_q"].shape[1]
    nclass = raw["w_8"].shape[1]
    ncp = max(8, _round_up(nclass, 8))
    f32 = jnp.float32

    prep = {}
    # fused [b0 | b1a | b2a | b3a] 1x1 convs (all read x)
    ws, ss, bs = [], [], []
    for wn, bnn in (("w_b0", "bn_b0"), ("w_b1a", "bn_b1a"),
                    ("w_b2a", "bn_b2a"), ("w_b3a", "bn_b3a")):
        s, b = fold_bn(raw[bnn])
        ws.append(raw[wn]); ss.append(s); bs.append(b)
    prep["xconv"] = prep_matmul(jnp.concatenate(ws, axis=1),
                                jnp.concatenate(ss), jnp.concatenate(bs))

    for name in ("b1", "b2", "b3"):
        w = raw[f"w_{name}b"]                          # (Cout, Cin, 3, 3) OIHW
        wmat = jnp.transpose(w, (2, 3, 1, 0)).reshape(-1, w.shape[0])
        prep[name] = prep_matmul(wmat, *fold_bn(raw[f"bn_{name}b"]))

    prep["p1"] = prep_matmul(raw["w_p1"], *fold_bn(raw["bn_p1"]))
    prep["p2"] = prep_matmul(raw["w_p2"], None, raw["b_p2"])
    prep["proj"] = prep_matmul(raw["w_proj"], *fold_bn(raw["bn_proj"]))
    prep["gap"] = prep_matmul(raw["w_gap"], *fold_bn(raw["bn_gap"]))
    prep["se"] = prep_matmul(raw["w_se"], None, raw["b_se"])
    prep["sel"] = prep_matmul(raw["w_sel"], None, raw["b_sel"])

    # conv8 split: top half (out_pam) fused into the APAM kernel,
    # bottom half (broadcast gp feature) becomes a per-batch bias.
    w8 = raw["w_8"].astype(f32)
    prep["w8_bot"] = jnp.zeros((inter, ncp), f32).at[:, :nclass].set(w8[inter:])
    prep["b8"] = jnp.zeros((ncp,), f32).at[:nclass].set(raw["b_8"].astype(f32))

    P = make_psp_matrix(H, W, psp_sizes)               # (S, H*W)
    prep["apam"] = {
        "p": P,
        "pt": jnp.transpose(P),
        "wk": raw["w_k"].astype(f32),
        "bk": raw["b_k"].astype(f32).reshape(1, kd),
        "wqT": jnp.transpose(raw["w_q"]).astype(f32),
        "bq": raw["b_q"].astype(f32).reshape(kd, 1),
        "wgT": jnp.transpose(raw["w_g"]).astype(f32),
        "bg": raw["b_g"].astype(f32).reshape(1, 1),
        "w8T": jnp.zeros((ncp, inter), f32).at[:nclass, :].set(
            jnp.transpose(w8[:inter])),
    }
    return prep


def annl_gsnet_head_forward(prep, x_nchw, *, nclass, atrous_rates=(12, 24, 36)):
    x = jnp.transpose(x_nchw, (0, 2, 3, 1)).astype(jnp.float32)     # NHWC
    B, H, W, Cin = x.shape
    inter = Cin // 4
    HW = H * W
    xf = x.reshape(B * HW, Cin)

    # fused b0 / b1a / b2a / b3a 1x1 convs + BN + ReLU (single pass over x)
    y = fused_matmul(xf, *prep["xconv"], n_out=inter + 3 * 512, act="relu")
    feat0 = y[:, :inter]

    feats = [feat0]
    for idx, rate in enumerate(atrous_rates):
        t = y[:, inter + 512 * idx: inter + 512 * (idx + 1)]
        t = t.astype(jnp.bfloat16).reshape(B, H, W, 512)
        patches = _im2col_dilated(t, rate)                          # (M, 4608)
        feats.append(fused_matmul(patches, *prep[f"b{idx + 1}"],
                                  n_out=inter, act="relu"))

    # psaa attention over the 4 parallel features
    y1 = jnp.concatenate([xf] + feats, axis=-1)
    tpi = fused_matmul(y1, *prep["p1"], n_out=inter, act="relu")
    psaa = fused_matmul(tpi, *prep["p2"], n_out=4, act="sigmoid")   # (M, 4)
    y2 = jnp.concatenate([psaa[:, i:i + 1] * feats[i] for i in range(4)],
                         axis=-1)
    out = fused_matmul(y2, *prep["proj"], n_out=inter, act="relu")  # (M, inter)

    # global-average-pool branch + SE gate
    gp_in = xf.reshape(B, HW, Cin).mean(axis=1)                     # (B, Cin)
    gp = fused_matmul(gp_in, *prep["gap"], n_out=inter, act="relu")
    se = fused_matmul(gp, *prep["se"], n_out=inter, act="sigmoid")

    # SE blend + transpose to lane-dense (B, C, HW) layout (one XLA fusion)
    outT = jnp.transpose(out.reshape(B, HW, inter) * (1.0 + se)[:, None, :],
                         (0, 2, 1))

    # per-batch bias: bottom half of conv8 applied to the broadcast gp feature
    bb = (jnp.dot(gp, prep["w8_bot"]) + prep["b8"])[:, :, None]     # (B, ncp, 1)

    # fused PSP + APAM attention + gamma blend + conv8 (Dropout2d = identity)
    logitsT = apam_conv8_head(outT, prep["apam"], bb)               # (B, ncp, HW)
    logits = logitsT[:, :nclass, :].reshape(B, nclass, H, W)        # NCHW

    # se_loss branch: Linear on squeeze(gap_feat)
    se_logits = fused_matmul(gp, *prep["sel"], n_out=nclass, act="none")
    return logits, se_logits


if __name__ == "__main__":
    key = jax.random.PRNGKey(0)
    kx, kp = jax.random.split(key)

    B, in_ch, H, W = 2, 64, 16, 16        # inter_channels = 16, key_dim = 2
    inter = in_ch // 4
    nclass = 5

    x = jax.random.normal(kx, (B, in_ch, H, W), jnp.float32)
    raw = init_params(kp, in_ch, inter, nclass)
    prep = prepare_params(raw, H, W)      # one-time fold / pad / cast / transpose

    fwd = jax.jit(functools.partial(annl_gsnet_head_forward, nclass=nclass))
    logits, se_logits = fwd(prep, x)
    jax.block_until_ready((logits, se_logits))

    assert logits.shape == (B, nclass, H, W)
    assert se_logits.shape == (B, nclass)
    print("KERNEL_OK")
</pallas_src>

<mosaic_0001>
module attributes {stable_mosaic.version = 11 : i64} {
  func.func @_matmul_kernel(%arg0: i32, %arg1: i32, %arg2: i32, %arg3: memref<512x128xbf16, #tpu.memory_space<vmem>>, %arg4: memref<128x256xbf16, #tpu.memory_space<vmem>>, %arg5: memref<1x256xf32, #tpu.memory_space<vmem>>, %arg6: memref<1x256xf32, #tpu.memory_space<vmem>>, %arg7: memref<512x256xf32, #tpu.memory_space<vmem>>) attributes {dimension_semantics = [#tpu.dimension_semantics<parallel>, #tpu.dimension_semantics<parallel>, #tpu.dimension_semantics<arbitrary>], iteration_bounds = array<i64: 1, 7, 1>, scalar_prefetch = 0 : i64, scratch_operands = 0 : i64, tpu.core_type = #tpu.core_type<tc>, window_params = [{transform_indices = @transform_0, window_bounds = array<i64: 512, 128>}, {transform_indices = @transform_1, window_bounds = array<i64: 128, 256>}, {transform_indices = @transform_2, window_bounds = array<i64: 1, 256>}, {transform_indices = @transform_3, window_bounds = array<i64: 1, 256>}, {transform_indices = @transform_4, window_bounds = array<i64: 512, 256>}]} {
    %c0_i32 = arith.constant 0 : i32
    %0 = arith.cmpi eq, %arg2, %c0_i32 : i32
    %1 = arith.extui %0 : i1 to i32
    %c0_i32_0 = arith.constant 0 : i32
    %2 = arith.cmpi ne, %1, %c0_i32_0 : i32
    scf.if %2 {
      %cst_10 = arith.constant 0.000000e+00 : f32
      %12 = vector.broadcast %cst_10 : f32 to vector<512x256xf32>
      %c0_11 = arith.constant 0 : index
      %c0_12 = arith.constant 0 : index
      %13 = vector.load %arg7[%c0_11, %c0_12] : memref<512x256xf32, #tpu.memory_space<vmem>>, vector<512x256xf32>
      tpu.vector_store %arg7[%c0_11, %c0_12], %12 {strides = array<i32>} : memref<512x256xf32, #tpu.memory_space<vmem>>, vector<512x256xf32>,
    } else {
    }
    %c0 = arith.constant 0 : index
    %c0_1 = arith.constant 0 : index
    %3 = vector.load %arg7[%c0, %c0_1] : memref<512x256xf32, #tpu.memory_space<vmem>>, vector<512x256xf32>
    %c0_2 = arith.constant 0 : index
    %c0_3 = arith.constant 0 : index
    %4 = vector.load %arg3[%c0_2, %c0_3] : memref<512x128xbf16, #tpu.memory_space<vmem>>, vector<512x128xbf16>
    %c0_4 = arith.constant 0 : index
    %c0_5 = arith.constant 0 : index
    %5 = vector.load %arg4[%c0_4, %c0_5] : memref<128x256xbf16, #tpu.memory_space<vmem>>, vector<128x256xbf16>
    %cst = arith.constant dense<0.000000e+00> : vector<512x256xf32>
    %6 = tpu.matmul %4, %5, %cst {dimension_numbers = #tpu.dot_dimension_numbers<[1], [0], [0], [1], [0, 0, 1, 1], [], []>} : vector<512x128xbf16>, vector<128x256xbf16>, vector<512x256xf32> -> vector<512x256xf32>
    %7 = arith.addf %3, %6 : vector<512x256xf32>
    %c0_6 = arith.constant 0 : index
    %c0_7 = arith.constant 0 : index
    %8 = vector.load %arg7[%c0_6, %c0_7] : memref<512x256xf32, #tpu.memory_space<vmem>>, vector<512x256xf32>
    tpu.vector_store %arg7[%c0_6, %c0_7], %7 {strides = array<i32>} : memref<512x256xf32, #tpu.memory_space<vmem>>, vector<512x256xf32>,
    %c0_i32_8 = arith.constant 0 : i32
    %9 = arith.cmpi eq, %arg2, %c0_i32_8 : i32
    %10 = arith.extui %9 : i1 to i32
    %c0_i32_9 = arith.constant 0 : i32
    %11 = arith.cmpi ne, %10, %c0_i32_9 : i32
    scf.if %11 {
      %c0_10 = arith.constant 0 : index
      %c0_11 = arith.constant 0 : index
      %12 = vector.load %arg7[%c0_10, %c0_11] : memref<512x256xf32, #tpu.memory_space<vmem>>, vector<512x256xf32>
      %c0_12 = arith.constant 0 : index
      %c0_13 = arith.constant 0 : index
      %13 = vector.load %arg5[%c0_12, %c0_13] : memref<1x256xf32, #tpu.memory_space<vmem>>, vector<1x256xf32>
      %14 = vector.broadcast %13 : vector<1x256xf32> to vector<512x256xf32>
      %15 = arith.mulf %12, %14 : vector<512x256xf32>
      %c0_14 = arith.constant 0 : index
      %c0_15 = arith.constant 0 : index
      %16 = vector.load %arg6[%c0_14, %c0_15] : memref<1x256xf32, #tpu.memory_space<vmem>>, vector<1x256xf32>
      %17 = vector.broadcast %16 : vector<1x256xf32> to vector<512x256xf32>
      %18 = arith.addf %15, %17 : vector<512x256xf32>
      %cst_16 = arith.constant 0.000000e+00 : f32
      %19 = vector.broadcast %cst_16 : f32 to vector<512x256xf32>
      %20 = arith.maximumf %18, %19 : vector<512x256xf32>
      %c0_17 = arith.constant 0 : index
      %c0_18 = arith.constant 0 : index
      %21 = vector.load %arg7[%c0_17, %c0_18] : memref<512x256xf32, #tpu.memory_space<vmem>>, vector<512x256xf32>
      tpu.vector_store %arg7[%c0_17, %c0_18], %20 {strides = array<i32>} : memref<512x256xf32, #tpu.memory_space<vmem>>, vector<512x256xf32>,
    } else {
    }
    return
  }
  func.func @transform_0(%arg0: i32, %arg1: i32, %arg2: i32) -> (i32, i32) {
    %c0_i32 = arith.constant 0 : i32
    return %arg0, %arg2 : i32, i32
  }
  func.func @transform_1(%arg0: i32, %arg1: i32, %arg2: i32) -> (i32, i32) {
    %c0_i32 = arith.constant 0 : i32
    return %arg2, %arg1 : i32, i32
  }
  func.func @transform_2(%arg0: i32, %arg1: i32, %arg2: i32) -> (i32, i32) {
    %c0_i32 = arith.constant 0 : i32
    %c0_i32_0 = arith.constant 0 : i32
    return %c0_i32, %arg1 : i32, i32
  }
  func.func @transform_3(%arg0: i32, %arg1: i32, %arg2: i32) -> (i32, i32) {
    %c0_i32 = arith.constant 0 : i32
    %c0_i32_0 = arith.constant 0 : i32
    return %c0_i32, %arg1 : i32, i32
  }
  func.func @transform_4(%arg0: i32, %arg1: i32, %arg2: i32) -> (i32, i32) {
    %c0_i32 = arith.constant 0 : i32
    return %arg0, %arg1 : i32, i32
  }
}

module attributes {stable_mosaic.version = 11 : i64} {
  func.func @_matmul_kernel(%arg0: i32, %arg1: i32, %arg2: i32, %arg3: memref<512x512xbf16, #tpu.memory_space<vmem>>, %arg4: memref<512x128xbf16, #tpu.memory_space<vmem>>, %arg5: memref<1x128xf32, #tpu.memory_space<vmem>>, %arg6: memref<1x128xf32, #tpu.memory_space<vmem>>, %arg7: memref<512x128xf32, #tpu.memory_space<vmem>>) attributes {dimension_semantics = [#tpu.dimension_semantics<parallel>, #tpu.dimension_semantics<parallel>, #tpu.dimension_semantics<arbitrary>], iteration_bounds = array<i64: 1, 1, 9>, scalar_prefetch = 0 : i64, scratch_operands = 0 : i64, tpu.core_type = #tpu.core_type<tc>, window_params = [{transform_indices = @transform_0, window_bounds = array<i64: 512, 512>}, {transform_indices = @transform_1, window_bounds = array<i64: 512, 128>}, {transform_indices = @transform_2, window_bounds = array<i64: 1, 128>}, {transform_indices = @transform_3, window_bounds = array<i64: 1, 128>}, {transform_indices = @transform_4, window_bounds = array<i64: 512, 128>}]} {
    %c0_i32 = arith.constant 0 : i32
    %0 = arith.cmpi eq, %arg2, %c0_i32 : i32
    %1 = arith.extui %0 : i1 to i32
    %c0_i32_0 = arith.constant 0 : i32
    %2 = arith.cmpi ne, %1, %c0_i32_0 : i32
    scf.if %2 {
      %cst_9 = arith.constant 0.000000e+00 : f32
      %12 = vector.broadcast %cst_9 : f32 to vector<512x128xf32>
      %c0_10 = arith.constant 0 : index
      %c0_11 = arith.constant 0 : index
      %13 = vector.load %arg7[%c0_10, %c0_11] : memref<512x128xf32, #tpu.memory_space<vmem>>, vector<512x128xf32>
      tpu.vector_store %arg7[%c0_10, %c0_11], %12 {strides = array<i32>} : memref<512x128xf32, #tpu.memory_space<vmem>>, vector<512x128xf32>,
    } else {
    }
    %c0 = arith.constant 0 : index
    %c0_1 = arith.constant 0 : index
    %3 = vector.load %arg7[%c0, %c0_1] : memref<512x128xf32, #tpu.memory_space<vmem>>, vector<512x128xf32>
    %c0_2 = arith.constant 0 : index
    %c0_3 = arith.constant 0 : index
    %4 = vector.load %arg3[%c0_2, %c0_3] : memref<512x512xbf16, #tpu.memory_space<vmem>>, vector<512x512xbf16>
    %c0_4 = arith.constant 0 : index
    %c0_5 = arith.constant 0 : index
    %5 = vector.load %arg4[%c0_4, %c0_5] : memref<512x128xbf16, #tpu.memory_space<vmem>>, vector<512x128xbf16>
    %cst = arith.constant dense<0.000000e+00> : vector<512x128xf32>
    %6 = tpu.matmul %4, %5, %cst {dimension_numbers = #tpu.dot_dimension_numbers<[1], [0], [0], [1], [0, 0, 1, 1], [], []>} : vector<512x512xbf16>, vector<512x128xbf16>, vector<512x128xf32> -> vector<512x128xf32>
    %7 = arith.addf %3, %6 : vector<512x128xf32>
    %c0_6 = arith.constant 0 : index
    %c0_7 = arith.constant 0 : index
    %8 = vector.load %arg7[%c0_6, %c0_7] : memref<512x128xf32, #tpu.memory_space<vmem>>, vector<512x128xf32>
    tpu.vector_store %arg7[%c0_6, %c0_7], %7 {strides = array<i32>} : memref<512x128xf32, #tpu.memory_space<vmem>>, vector<512x128xf32>,
    %c8_i32 = arith.constant 8 : i32
    %9 = arith.cmpi eq, %arg2, %c8_i32 : i32
    %10 = arith.extui %9 : i1 to i32
    %c0_i32_8 = arith.constant 0 : i32
    %11 = arith.cmpi ne, %10, %c0_i32_8 : i32
    scf.if %11 {
      %c0_9 = arith.constant 0 : index
      %c0_10 = arith.constant 0 : index
      %12 = vector.load %arg7[%c0_9, %c0_10] : memref<512x128xf32, #tpu.memory_space<vmem>>, vector<512x128xf32>
      %c0_11 = arith.constant 0 : index
      %c0_12 = arith.constant 0 : index
      %13 = vector.load %arg5[%c0_11, %c0_12] : memref<1x128xf32, #tpu.memory_space<vmem>>, vector<1x128xf32>
      %14 = vector.broadcast %13 : vector<1x128xf32> to vector<512x128xf32>
      %15 = arith.mulf %12, %14 : vector<512x128xf32>
      %c0_13 = arith.constant 0 : index
      %c0_14 = arith.constant 0 : index
      %16 = vector.load %arg6[%c0_13, %c0_14] : memref<1x128xf32, #tpu.memory_space<vmem>>, vector<1x128xf32>
      %17 = vector.broadcast %16 : vector<1x128xf32> to vector<512x128xf32>
      %18 = arith.addf %15, %17 : vector<512x128xf32>
      %cst_15 = arith.constant 0.000000e+00 : f32
      %19 = vector.broadcast %cst_15 : f32 to vector<512x128xf32>
      %20 = arith.maximumf %18, %19 : vector<512x128xf32>
      %c0_16 = arith.constant 0 : index
      %c0_17 = arith.constant 0 : index
      %21 = vector.load %arg7[%c0_16, %c0_17] : memref<512x128xf32, #tpu.memory_space<vmem>>, vector<512x128xf32>
      tpu.vector_store %arg7[%c0_16, %c0_17], %20 {strides = array<i32>} : memref<512x128xf32, #tpu.memory_space<vmem>>, vector<512x128xf32>,
    } else {
    }
    return
  }
  func.func @transform_0(%arg0: i32, %arg1: i32, %arg2: i32) -> (i32, i32) {
    %c0_i32 = arith.constant 0 : i32
    return %arg0, %arg2 : i32, i32
  }
  func.func @transform_1(%arg0: i32, %arg1: i32, %arg2: i32) -> (i32, i32) {
    %c0_i32 = arith.constant 0 : i32
    return %arg2, %arg1 : i32, i32
  }
  func.func @transform_2(%arg0: i32, %arg1: i32, %arg2: i32) -> (i32, i32) {
    %c0_i32 = arith.constant 0 : i32
    %c0_i32_0 = arith.constant 0 : i32
    return %c0_i32, %arg1 : i32, i32
  }
  func.func @transform_3(%arg0: i32, %arg1: i32, %arg2: i32) -> (i32, i32) {
    %c0_i32 = arith.constant 0 : i32
    %c0_i32_0 = arith.constant 0 : i32
    return %c0_i32, %arg1 : i32, i32
  }
  func.func @transform_4(%arg0: i32, %arg1: i32, %arg2: i32) -> (i32, i32) {
    %c0_i32 = arith.constant 0 : i32
    return %arg0, %arg1 : i32, i32
  }
}

module attributes {stable_mosaic.version = 11 : i64} {
  func.func @_matmul_kernel(%arg0: i32, %arg1: i32, %arg2: i32, %arg3: memref<512x128xbf16, #tpu.memory_space<vmem>>, %arg4: memref<128x128xbf16, #tpu.memory_space<vmem>>, %arg5: memref<1x128xf32, #tpu.memory_space<vmem>>, %arg6: memref<1x128xf32, #tpu.memory_space<vmem>>, %arg7: memref<512x128xf32, #tpu.memory_space<vmem>>) attributes {dimension_semantics = [#tpu.dimension_semantics<parallel>, #tpu.dimension_semantics<parallel>, #tpu.dimension_semantics<arbitrary>], iteration_bounds = array<i64: 1, 1, 1>, scalar_prefetch = 0 : i64, scratch_operands = 0 : i64, tpu.core_type = #tpu.core_type<tc>, window_params = [{transform_indices = @transform_0, window_bounds = array<i64: 512, 128>}, {transform_indices = @transform_1, window_bounds = array<i64: 128, 128>}, {transform_indices = @transform_2, window_bounds = array<i64: 1, 128>}, {transform_indices = @transform_3, window_bounds = array<i64: 1, 128>}, {transform_indices = @transform_4, window_bounds = array<i64: 512, 128>}]} {
    %c0_i32 = arith.constant 0 : i32
    %0 = arith.cmpi eq, %arg2, %c0_i32 : i32
    %1 = arith.extui %0 : i1 to i32
    %c0_i32_0 = arith.constant 0 : i32
    %2 = arith.cmpi ne, %1, %c0_i32_0 : i32
    scf.if %2 {
      %cst_10 = arith.constant 0.000000e+00 : f32
      %12 = vector.broadcast %cst_10 : f32 to vector<512x128xf32>
      %c0_11 = arith.constant 0 : index
      %c0_12 = arith.constant 0 : index
      %13 = vector.load %arg7[%c0_11, %c0_12] : memref<512x128xf32, #tpu.memory_space<vmem>>, vector<512x128xf32>
      tpu.vector_store %arg7[%c0_11, %c0_12], %12 {strides = array<i32>} : memref<512x128xf32, #tpu.memory_space<vmem>>, vector<512x128xf32>,
    } else {
    }
    %c0 = arith.constant 0 : index
    %c0_1 = arith.constant 0 : index
    %3 = vector.load %arg7[%c0, %c0_1] : memref<512x128xf32, #tpu.memory_space<vmem>>, vector<512x128xf32>
    %c0_2 = arith.constant 0 : index
    %c0_3 = arith.constant 0 : index
    %4 = vector.load %arg3[%c0_2, %c0_3] : memref<512x128xbf16, #tpu.memory_space<vmem>>, vector<512x128xbf16>
    %c0_4 = arith.constant 0 : index
    %c0_5 = arith.constant 0 : index
    %5 = vector.load %arg4[%c0_4, %c0_5] : memref<128x128xbf16, #tpu.memory_space<vmem>>, vector<128x128xbf16>
    %cst = arith.constant dense<0.000000e+00> : vector<512x128xf32>
    %6 = tpu.matmul %4, %5, %cst {dimension_numbers = #tpu.dot_dimension_numbers<[1], [0], [0], [1], [0, 0, 1, 1], [], []>} : vector<512x128xbf16>, vector<128x128xbf16>, vector<512x128xf32> -> vector<512x128xf32>
    %7 = arith.addf %3, %6 : vector<512x128xf32>
    %c0_6 = arith.constant 0 : index
    %c0_7 = arith.constant 0 : index
    %8 = vector.load %arg7[%c0_6, %c0_7] : memref<512x128xf32, #tpu.memory_space<vmem>>, vector<512x128xf32>
    tpu.vector_store %arg7[%c0_6, %c0_7], %7 {strides = array<i32>} : memref<512x128xf32, #tpu.memory_space<vmem>>, vector<512x128xf32>,
    %c0_i32_8 = arith.constant 0 : i32
    %9 = arith.cmpi eq, %arg2, %c0_i32_8 : i32
    %10 = arith.extui %9 : i1 to i32
    %c0_i32_9 = arith.constant 0 : i32
    %11 = arith.cmpi ne, %10, %c0_i32_9 : i32
    scf.if %11 {
      %c0_10 = arith.constant 0 : index
      %c0_11 = arith.constant 0 : index
      %12 = vector.load %arg7[%c0_10, %c0_11] : memref<512x128xf32, #tpu.memory_space<vmem>>, vector<512x128xf32>
      %c0_12 = arith.constant 0 : index
      %c0_13 = arith.constant 0 : index
      %13 = vector.load %arg5[%c0_12, %c0_13] : memref<1x128xf32, #tpu.memory_space<vmem>>, vector<1x128xf32>
      %14 = vector.broadcast %13 : vector<1x128xf32> to vector<512x128xf32>
      %15 = arith.mulf %12, %14 : vector<512x128xf32>
      %c0_14 = arith.constant 0 : index
      %c0_15 = arith.constant 0 : index
      %16 = vector.load %arg6[%c0_14, %c0_15] : memref<1x128xf32, #tpu.memory_space<vmem>>, vector<1x128xf32>
      %17 = vector.broadcast %16 : vector<1x128xf32> to vector<512x128xf32>
      %18 = arith.addf %15, %17 : vector<512x128xf32>
      %cst_16 = arith.constant 0.000000e+00 : f32
      %19 = vector.broadcast %cst_16 : f32 to vector<512x128xf32>
      %20 = arith.maximumf %18, %19 : vector<512x128xf32>
      %c0_17 = arith.constant 0 : index
      %c0_18 = arith.constant 0 : index
      %21 = vector.load %arg7[%c0_17, %c0_18] : memref<512x128xf32, #tpu.memory_space<vmem>>, vector<512x128xf32>
      tpu.vector_store %arg7[%c0_17, %c0_18], %20 {strides = array<i32>} : memref<512x128xf32, #tpu.memory_space<vmem>>, vector<512x128xf32>,
    } else {
    }
    return
  }
  func.func @transform_0(%arg0: i32, %arg1: i32, %arg2: i32) -> (i32, i32) {
    %c0_i32 = arith.constant 0 : i32
    return %arg0, %arg2 : i32, i32
  }
  func.func @transform_1(%arg0: i32, %arg1: i32, %arg2: i32) -> (i32, i32) {
    %c0_i32 = arith.constant 0 : i32
    return %arg2, %arg1 : i32, i32
  }
  func.func @transform_2(%arg0: i32, %arg1: i32, %arg2: i32) -> (i32, i32) {
    %c0_i32 = arith.constant 0 : i32
    %c0_i32_0 = arith.constant 0 : i32
    return %c0_i32, %arg1 : i32, i32
  }
  func.func @transform_3(%arg0: i32, %arg1: i32, %arg2: i32) -> (i32, i32) {
    %c0_i32 = arith.constant 0 : i32
    %c0_i32_0 = arith.constant 0 : i32
    return %c0_i32, %arg1 : i32, i32
  }
  func.func @transform_4(%arg0: i32, %arg1: i32, %arg2: i32) -> (i32, i32) {
    %c0_i32 = arith.constant 0 : i32
    return %arg0, %arg1 : i32, i32
  }
}

module attributes {stable_mosaic.version = 11 : i64} {
  func.func @_matmul_kernel(%arg0: i32, %arg1: i32, %arg2: i32, %arg3: memref<512x128xbf16, #tpu.memory_space<vmem>>, %arg4: memref<128x128xbf16, #tpu.memory_space<vmem>>, %arg5: memref<1x128xf32, #tpu.memory_space<vmem>>, %arg6: memref<1x128xf32, #tpu.memory_space<vmem>>, %arg7: memref<512x128xf32, #tpu.memory_space<vmem>>) attributes {dimension_semantics = [#tpu.dimension_semantics<parallel>, #tpu.dimension_semantics<parallel>, #tpu.dimension_semantics<arbitrary>], iteration_bounds = array<i64: 1, 1, 1>, scalar_prefetch = 0 : i64, scratch_operands = 0 : i64, tpu.core_type = #tpu.core_type<tc>, window_params = [{transform_indices = @transform_0, window_bounds = array<i64: 512, 128>}, {transform_indices = @transform_1, window_bounds = array<i64: 128, 128>}, {transform_indices = @transform_2, window_bounds = array<i64: 1, 128>}, {transform_indices = @transform_3, window_bounds = array<i64: 1, 128>}, {transform_indices = @transform_4, window_bounds = array<i64: 512, 128>}]} {
    %c0_i32 = arith.constant 0 : i32
    %0 = arith.cmpi eq, %arg2, %c0_i32 : i32
    %1 = arith.extui %0 : i1 to i32
    %c0_i32_0 = arith.constant 0 : i32
    %2 = arith.cmpi ne, %1, %c0_i32_0 : i32
    scf.if %2 {
      %cst_10 = arith.constant 0.000000e+00 : f32
      %12 = vector.broadcast %cst_10 : f32 to vector<512x128xf32>
      %c0_11 = arith.constant 0 : index
      %c0_12 = arith.constant 0 : index
      %13 = vector.load %arg7[%c0_11, %c0_12] : memref<512x128xf32, #tpu.memory_space<vmem>>, vector<512x128xf32>
      tpu.vector_store %arg7[%c0_11, %c0_12], %12 {strides = array<i32>} : memref<512x128xf32, #tpu.memory_space<vmem>>, vector<512x128xf32>,
    } else {
    }
    %c0 = arith.constant 0 : index
    %c0_1 = arith.constant 0 : index
    %3 = vector.load %arg7[%c0, %c0_1] : memref<512x128xf32, #tpu.memory_space<vmem>>, vector<512x128xf32>
    %c0_2 = arith.constant 0 : index
    %c0_3 = arith.constant 0 : index
    %4 = vector.load %arg3[%c0_2, %c0_3] : memref<512x128xbf16, #tpu.memory_space<vmem>>, vector<512x128xbf16>
    %c0_4 = arith.constant 0 : index
    %c0_5 = arith.constant 0 : index
    %5 = vector.load %arg4[%c0_4, %c0_5] : memref<128x128xbf16, #tpu.memory_space<vmem>>, vector<128x128xbf16>
    %cst = arith.constant dense<0.000000e+00> : vector<512x128xf32>
    %6 = tpu.matmul %4, %5, %cst {dimension_numbers = #tpu.dot_dimension_numbers<[1], [0], [0], [1], [0, 0, 1, 1], [], []>} : vector<512x128xbf16>, vector<128x128xbf16>, vector<512x128xf32> -> vector<512x128xf32>
    %7 = arith.addf %3, %6 : vector<512x128xf32>
    %c0_6 = arith.constant 0 : index
    %c0_7 = arith.constant 0 : index
    %8 = vector.load %arg7[%c0_6, %c0_7] : memref<512x128xf32, #tpu.memory_space<vmem>>, vector<512x128xf32>
    tpu.vector_store %arg7[%c0_6, %c0_7], %7 {strides = array<i32>} : memref<512x128xf32, #tpu.memory_space<vmem>>, vector<512x128xf32>,
    %c0_i32_8 = arith.constant 0 : i32
    %9 = arith.cmpi eq, %arg2, %c0_i32_8 : i32
    %10 = arith.extui %9 : i1 to i32
    %c0_i32_9 = arith.constant 0 : i32
    %11 = arith.cmpi ne, %10, %c0_i32_9 : i32
    scf.if %11 {
      %c0_10 = arith.constant 0 : index
      %c0_11 = arith.constant 0 : index
      %12 = vector.load %arg7[%c0_10, %c0_11] : memref<512x128xf32, #tpu.memory_space<vmem>>, vector<512x128xf32>
      %c0_12 = arith.constant 0 : index
      %c0_13 = arith.constant 0 : index
      %13 = vector.load %arg5[%c0_12, %c0_13] : memref<1x128xf32, #tpu.memory_space<vmem>>, vector<1x128xf32>
      %14 = vector.broadcast %13 : vector<1x128xf32> to vector<512x128xf32>
      %15 = arith.mulf %12, %14 : vector<512x128xf32>
      %c0_14 = arith.constant 0 : index
      %c0_15 = arith.constant 0 : index
      %16 = vector.load %arg6[%c0_14, %c0_15] : memref<1x128xf32, #tpu.memory_space<vmem>>, vector<1x128xf32>
      %17 = vector.broadcast %16 : vector<1x128xf32> to vector<512x128xf32>
      %18 = arith.addf %15, %17 : vector<512x128xf32>
      %cst_16 = arith.constant 0.000000e+00 : f32
      %19 = vector.broadcast %cst_16 : f32 to vector<512x128xf32>
      %20 = arith.subf %19, %18 : vector<512x128xf32>
      %21 = math.exp %20 : vector<512x128xf32>
      %cst_17 = arith.constant 1.000000e+00 : f32
      %22 = vector.broadcast %cst_17 : f32 to vector<512x128xf32>
      %23 = arith.addf %22, %21 : vector<512x128xf32>
      %24 = tpu.reciprocal %23 {approx = true} : vector<512x128xf32> -> vector<512x128xf32>
      %c0_18 = arith.constant 0 : index
      %c0_19 = arith.constant 0 : index
      %25 = vector.load %arg7[%c0_18, %c0_19] : memref<512x128xf32, #tpu.memory_space<vmem>>, vector<512x128xf32>
      tpu.vector_store %arg7[%c0_18, %c0_19], %24 {strides = array<i32>} : memref<512x128xf32, #tpu.memory_space<vmem>>, vector<512x128xf32>,
    } else {
    }
    return
  }
  func.func @transform_0(%arg0: i32, %arg1: i32, %arg2: i32) -> (i32, i32) {
    %c0_i32 = arith.constant 0 : i32
    return %arg0, %arg2 : i32, i32
  }
  func.func @transform_1(%arg0: i32, %arg1: i32, %arg2: i32) -> (i32, i32) {
    %c0_i32 = arith.constant 0 : i32
    return %arg2, %arg1 : i32, i32
  }
  func.func @transform_2(%arg0: i32, %arg1: i32, %arg2: i32) -> (i32, i32) {
    %c0_i32 = arith.constant 0 : i32
    %c0_i32_0 = arith.constant 0 : i32
    return %c0_i32, %arg1 : i32, i32
  }
  func.func @transform_3(%arg0: i32, %arg1: i32, %arg2: i32) -> (i32, i32) {
    %c0_i32 = arith.constant 0 : i32
    %c0_i32_0 = arith.constant 0 : i32
    return %c0_i32, %arg1 : i32, i32
  }
  func.func @transform_4(%arg0: i32, %arg1: i32, %arg2: i32) -> (i32, i32) {
    %c0_i32 = arith.constant 0 : i32
    return %arg0, %arg1 : i32, i32
  }
}

module attributes {stable_mosaic.version = 11 : i64} {
  func.func @_matmul_kernel(%arg0: i32, %arg1: i32, %arg2: i32, %arg3: memref<8x128xbf16, #tpu.memory_space<vmem>>, %arg4: memref<128x128xbf16, #tpu.memory_space<vmem>>, %arg5: memref<1x128xf32, #tpu.memory_space<vmem>>, %arg6: memref<1x128xf32, #tpu.memory_space<vmem>>, %arg7: memref<8x128xf32, #tpu.memory_space<vmem>>) attributes {dimension_semantics = [#tpu.dimension_semantics<parallel>, #tpu.dimension_semantics<parallel>, #tpu.dimension_semantics<arbitrary>], iteration_bounds = array<i64: 1, 1, 1>, scalar_prefetch = 0 : i64, scratch_operands = 0 : i64, tpu.core_type = #tpu.core_type<tc>, window_params = [{transform_indices = @transform_0, window_bounds = array<i64: 8, 128>}, {transform_indices = @transform_1, window_bounds = array<i64: 128, 128>}, {transform_indices = @transform_2, window_bounds = array<i64: 1, 128>}, {transform_indices = @transform_3, window_bounds = array<i64: 1, 128>}, {transform_indices = @transform_4, window_bounds = array<i64: 8, 128>}]} {
    %c0_i32 = arith.constant 0 : i32
    %0 = arith.cmpi eq, %arg2, %c0_i32 : i32
    %1 = arith.extui %0 : i1 to i32
    %c0_i32_0 = arith.constant 0 : i32
    %2 = arith.cmpi ne, %1, %c0_i32_0 : i32
    scf.if %2 {
      %cst_10 = arith.constant 0.000000e+00 : f32
      %12 = vector.broadcast %cst_10 : f32 to vector<8x128xf32>
      %c0_11 = arith.constant 0 : index
      %c0_12 = arith.constant 0 : index
      %13 = vector.load %arg7[%c0_11, %c0_12] : memref<8x128xf32, #tpu.memory_space<vmem>>, vector<8x128xf32>
      tpu.vector_store %arg7[%c0_11, %c0_12], %12 {strides = array<i32>} : memref<8x128xf32, #tpu.memory_space<vmem>>, vector<8x128xf32>,
    } else {
    }
    %c0 = arith.constant 0 : index
    %c0_1 = arith.constant 0 : index
    %3 = vector.load %arg7[%c0, %c0_1] : memref<8x128xf32, #tpu.memory_space<vmem>>, vector<8x128xf32>
    %c0_2 = arith.constant 0 : index
    %c0_3 = arith.constant 0 : index
    %4 = vector.load %arg3[%c0_2, %c0_3] : memref<8x128xbf16, #tpu.memory_space<vmem>>, vector<8x128xbf16>
    %c0_4 = arith.constant 0 : index
    %c0_5 = arith.constant 0 : index
    %5 = vector.load %arg4[%c0_4, %c0_5] : memref<128x128xbf16, #tpu.memory_space<vmem>>, vector<128x128xbf16>
    %cst = arith.constant dense<0.000000e+00> : vector<8x128xf32>
    %6 = tpu.matmul %4, %5, %cst {dimension_numbers = #tpu.dot_dimension_numbers<[1], [0], [0], [1], [0, 0, 1, 1], [], []>} : vector<8x128xbf16>, vector<128x128xbf16>, vector<8x128xf32> -> vector<8x128xf32>
    %7 = arith.addf %3, %6 : vector<8x128xf32>
    %c0_6 = arith.constant 0 : index
    %c0_7 = arith.constant 0 : index
    %8 = vector.load %arg7[%c0_6, %c0_7] : memref<8x128xf32, #tpu.memory_space<vmem>>, vector<8x128xf32>
    tpu.vector_store %arg7[%c0_6, %c0_7], %7 {strides = array<i32>} : memref<8x128xf32, #tpu.memory_space<vmem>>, vector<8x128xf32>,
    %c0_i32_8 = arith.constant 0 : i32
    %9 = arith.cmpi eq, %arg2, %c0_i32_8 : i32
    %10 = arith.extui %9 : i1 to i32
    %c0_i32_9 = arith.constant 0 : i32
    %11 = arith.cmpi ne, %10, %c0_i32_9 : i32
    scf.if %11 {
      %c0_10 = arith.constant 0 : index
      %c0_11 = arith.constant 0 : index
      %12 = vector.load %arg7[%c0_10, %c0_11] : memref<8x128xf32, #tpu.memory_space<vmem>>, vector<8x128xf32>
      %c0_12 = arith.constant 0 : index
      %c0_13 = arith.constant 0 : index
      %13 = vector.load %arg5[%c0_12, %c0_13] : memref<1x128xf32, #tpu.memory_space<vmem>>, vector<1x128xf32>
      %14 = vector.broadcast %13 : vector<1x128xf32> to vector<8x128xf32>
      %15 = arith.mulf %12, %14 : vector<8x128xf32>
      %c0_14 = arith.constant 0 : index
      %c0_15 = arith.constant 0 : index
      %16 = vector.load %arg6[%c0_14, %c0_15] : memref<1x128xf32, #tpu.memory_space<vmem>>, vector<1x128xf32>
      %17 = vector.broadcast %16 : vector<1x128xf32> to vector<8x128xf32>
      %18 = arith.addf %15, %17 : vector<8x128xf32>
      %cst_16 = arith.constant 0.000000e+00 : f32
      %19 = vector.broadcast %cst_16 : f32 to vector<8x128xf32>
      %20 = arith.maximumf %18, %19 : vector<8x128xf32>
      %c0_17 = arith.constant 0 : index
      %c0_18 = arith.constant 0 : index
      %21 = vector.load %arg7[%c0_17, %c0_18] : memref<8x128xf32, #tpu.memory_space<vmem>>, vector<8x128xf32>
      tpu.vector_store %arg7[%c0_17, %c0_18], %20 {strides = array<i32>} : memref<8x128xf32, #tpu.memory_space<vmem>>, vector<8x128xf32>,
    } else {
    }
    return
  }
  func.func @transform_0(%arg0: i32, %arg1: i32, %arg2: i32) -> (i32, i32) {
    %c0_i32 = arith.constant 0 : i32
    return %arg0, %arg2 : i32, i32
  }
  func.func @transform_1(%arg0: i32, %arg1: i32, %arg2: i32) -> (i32, i32) {
    %c0_i32 = arith.constant 0 : i32
    return %arg2, %arg1 : i32, i32
  }
  func.func @transform_2(%arg0: i32, %arg1: i32, %arg2: i32) -> (i32, i32) {
    %c0_i32 = arith.constant 0 : i32
    %c0_i32_0 = arith.constant 0 : i32
    return %c0_i32, %arg1 : i32, i32
  }
  func.func @transform_3(%arg0: i32, %arg1: i32, %arg2: i32) -> (i32, i32) {
    %c0_i32 = arith.constant 0 : i32
    %c0_i32_0 = arith.constant 0 : i32
    return %c0_i32, %arg1 : i32, i32
  }
  func.func @transform_4(%arg0: i32, %arg1: i32, %arg2: i32) -> (i32, i32) {
    %c0_i32 = arith.constant 0 : i32
    return %arg0, %arg1 : i32, i32
  }
}

module attributes {stable_mosaic.version = 11 : i64} {
  func.func @_matmul_kernel(%arg0: i32, %arg1: i32, %arg2: i32, %arg3: memref<8x128xbf16, #tpu.memory_space<vmem>>, %arg4: memref<128x128xbf16, #tpu.memory_space<vmem>>, %arg5: memref<1x128xf32, #tpu.memory_space<vmem>>, %arg6: memref<1x128xf32, #tpu.memory_space<vmem>>, %arg7: memref<8x128xf32, #tpu.memory_space<vmem>>) attributes {dimension_semantics = [#tpu.dimension_semantics<parallel>, #tpu.dimension_semantics<parallel>, #tpu.dimension_semantics<arbitrary>], iteration_bounds = array<i64: 1, 1, 1>, scalar_prefetch = 0 : i64, scratch_operands = 0 : i64, tpu.core_type = #tpu.core_type<tc>, window_params = [{transform_indices = @transform_0, window_bounds = array<i64: 8, 128>}, {transform_indices = @transform_1, window_bounds = array<i64: 128, 128>}, {transform_indices = @transform_2, window_bounds = array<i64: 1, 128>}, {transform_indices = @transform_3, window_bounds = array<i64: 1, 128>}, {transform_indices = @transform_4, window_bounds = array<i64: 8, 128>}]} {
    %c0_i32 = arith.constant 0 : i32
    %0 = arith.cmpi eq, %arg2, %c0_i32 : i32
    %1 = arith.extui %0 : i1 to i32
    %c0_i32_0 = arith.constant 0 : i32
    %2 = arith.cmpi ne, %1, %c0_i32_0 : i32
    scf.if %2 {
      %cst_10 = arith.constant 0.000000e+00 : f32
      %12 = vector.broadcast %cst_10 : f32 to vector<8x128xf32>
      %c0_11 = arith.constant 0 : index
      %c0_12 = arith.constant 0 : index
      %13 = vector.load %arg7[%c0_11, %c0_12] : memref<8x128xf32, #tpu.memory_space<vmem>>, vector<8x128xf32>
      tpu.vector_store %arg7[%c0_11, %c0_12], %12 {strides = array<i32>} : memref<8x128xf32, #tpu.memory_space<vmem>>, vector<8x128xf32>,
    } else {
    }
    %c0 = arith.constant 0 : index
    %c0_1 = arith.constant 0 : index
    %3 = vector.load %arg7[%c0, %c0_1] : memref<8x128xf32, #tpu.memory_space<vmem>>, vector<8x128xf32>
    %c0_2 = arith.constant 0 : index
    %c0_3 = arith.constant 0 : index
    %4 = vector.load %arg3[%c0_2, %c0_3] : memref<8x128xbf16, #tpu.memory_space<vmem>>, vector<8x128xbf16>
    %c0_4 = arith.constant 0 : index
    %c0_5 = arith.constant 0 : index
    %5 = vector.load %arg4[%c0_4, %c0_5] : memref<128x128xbf16, #tpu.memory_space<vmem>>, vector<128x128xbf16>
    %cst = arith.constant dense<0.000000e+00> : vector<8x128xf32>
    %6 = tpu.matmul %4, %5, %cst {dimension_numbers = #tpu.dot_dimension_numbers<[1], [0], [0], [1], [0, 0, 1, 1], [], []>} : vector<8x128xbf16>, vector<128x128xbf16>, vector<8x128xf32> -> vector<8x128xf32>
    %7 = arith.addf %3, %6 : vector<8x128xf32>
    %c0_6 = arith.constant 0 : index
    %c0_7 = arith.constant 0 : index
    %8 = vector.load %arg7[%c0_6, %c0_7] : memref<8x128xf32, #tpu.memory_space<vmem>>, vector<8x128xf32>
    tpu.vector_store %arg7[%c0_6, %c0_7], %7 {strides = array<i32>} : memref<8x128xf32, #tpu.memory_space<vmem>>, vector<8x128xf32>,
    %c0_i32_8 = arith.constant 0 : i32
    %9 = arith.cmpi eq, %arg2, %c0_i32_8 : i32
    %10 = arith.extui %9 : i1 to i32
    %c0_i32_9 = arith.constant 0 : i32
    %11 = arith.cmpi ne, %10, %c0_i32_9 : i32
    scf.if %11 {
      %c0_10 = arith.constant 0 : index
      %c0_11 = arith.constant 0 : index
      %12 = vector.load %arg7[%c0_10, %c0_11] : memref<8x128xf32, #tpu.memory_space<vmem>>, vector<8x128xf32>
      %c0_12 = arith.constant 0 : index
      %c0_13 = arith.constant 0 : index
      %13 = vector.load %arg5[%c0_12, %c0_13] : memref<1x128xf32, #tpu.memory_space<vmem>>, vector<1x128xf32>
      %14 = vector.broadcast %13 : vector<1x128xf32> to vector<8x128xf32>
      %15 = arith.mulf %12, %14 : vector<8x128xf32>
      %c0_14 = arith.constant 0 : index
      %c0_15 = arith.constant 0 : index
      %16 = vector.load %arg6[%c0_14, %c0_15] : memref<1x128xf32, #tpu.memory_space<vmem>>, vector<1x128xf32>
      %17 = vector.broadcast %16 : vector<1x128xf32> to vector<8x128xf32>
      %18 = arith.addf %15, %17 : vector<8x128xf32>
      %cst_16 = arith.constant 0.000000e+00 : f32
      %19 = vector.broadcast %cst_16 : f32 to vector<8x128xf32>
      %20 = arith.subf %19, %18 : vector<8x128xf32>
      %21 = math.exp %20 : vector<8x128xf32>
      %cst_17 = arith.constant 1.000000e+00 : f32
      %22 = vector.broadcast %cst_17 : f32 to vector<8x128xf32>
      %23 = arith.addf %22, %21 : vector<8x128xf32>
      %24 = tpu.reciprocal %23 {approx = true} : vector<8x128xf32> -> vector<8x128xf32>
      %c0_18 = arith.constant 0 : index
      %c0_19 = arith.constant 0 : index
      %25 = vector.load %arg7[%c0_18, %c0_19] : memref<8x128xf32, #tpu.memory_space<vmem>>, vector<8x128xf32>
      tpu.vector_store %arg7[%c0_18, %c0_19], %24 {strides = array<i32>} : memref<8x128xf32, #tpu.memory_space<vmem>>, vector<8x128xf32>,
    } else {
    }
    return
  }
  func.func @transform_0(%arg0: i32, %arg1: i32, %arg2: i32) -> (i32, i32) {
    %c0_i32 = arith.constant 0 : i32
    return %arg0, %arg2 : i32, i32
  }
  func.func @transform_1(%arg0: i32, %arg1: i32, %arg2: i32) -> (i32, i32) {
    %c0_i32 = arith.constant 0 : i32
    return %arg2, %arg1 : i32, i32
  }
  func.func @transform_2(%arg0: i32, %arg1: i32, %arg2: i32) -> (i32, i32) {
    %c0_i32 = arith.constant 0 : i32
    %c0_i32_0 = arith.constant 0 : i32
    return %c0_i32, %arg1 : i32, i32
  }
  func.func @transform_3(%arg0: i32, %arg1: i32, %arg2: i32) -> (i32, i32) {
    %c0_i32 = arith.constant 0 : i32
    %c0_i32_0 = arith.constant 0 : i32
    return %c0_i32, %arg1 : i32, i32
  }
  func.func @transform_4(%arg0: i32, %arg1: i32, %arg2: i32) -> (i32, i32) {
    %c0_i32 = arith.constant 0 : i32
    return %arg0, %arg1 : i32, i32
  }
}

module attributes {stable_mosaic.version = 11 : i64} {
  func.func @_matmul_kernel(%arg0: i32, %arg1: i32, %arg2: i32, %arg3: memref<8x128xbf16, #tpu.memory_space<vmem>>, %arg4: memref<128x128xbf16, #tpu.memory_space<vmem>>, %arg5: memref<1x128xf32, #tpu.memory_space<vmem>>, %arg6: memref<1x128xf32, #tpu.memory_space<vmem>>, %arg7: memref<8x128xf32, #tpu.memory_space<vmem>>) attributes {dimension_semantics = [#tpu.dimension_semantics<parallel>, #tpu.dimension_semantics<parallel>, #tpu.dimension_semantics<arbitrary>], iteration_bounds = array<i64: 1, 1, 1>, scalar_prefetch = 0 : i64, scratch_operands = 0 : i64, tpu.core_type = #tpu.core_type<tc>, window_params = [{transform_indices = @transform_0, window_bounds = array<i64: 8, 128>}, {transform_indices = @transform_1, window_bounds = array<i64: 128, 128>}, {transform_indices = @transform_2, window_bounds = array<i64: 1, 128>}, {transform_indices = @transform_3, window_bounds = array<i64: 1, 128>}, {transform_indices = @transform_4, window_bounds = array<i64: 8, 128>}]} {
    %c0_i32 = arith.constant 0 : i32
    %0 = arith.cmpi eq, %arg2, %c0_i32 : i32
    %1 = arith.extui %0 : i1 to i32
    %c0_i32_0 = arith.constant 0 : i32
    %2 = arith.cmpi ne, %1, %c0_i32_0 : i32
    scf.if %2 {
      %cst_10 = arith.constant 0.000000e+00 : f32
      %12 = vector.broadcast %cst_10 : f32 to vector<8x128xf32>
      %c0_11 = arith.constant 0 : index
      %c0_12 = arith.constant 0 : index
      %13 = vector.load %arg7[%c0_11, %c0_12] : memref<8x128xf32, #tpu.memory_space<vmem>>, vector<8x128xf32>
      tpu.vector_store %arg7[%c0_11, %c0_12], %12 {strides = array<i32>} : memref<8x128xf32, #tpu.memory_space<vmem>>, vector<8x128xf32>,
    } else {
    }
    %c0 = arith.constant 0 : index
    %c0_1 = arith.constant 0 : index
    %3 = vector.load %arg7[%c0, %c0_1] : memref<8x128xf32, #tpu.memory_space<vmem>>, vector<8x128xf32>
    %c0_2 = arith.constant 0 : index
    %c0_3 = arith.constant 0 : index
    %4 = vector.load %arg3[%c0_2, %c0_3] : memref<8x128xbf16, #tpu.memory_space<vmem>>, vector<8x128xbf16>
    %c0_4 = arith.constant 0 : index
    %c0_5 = arith.constant 0 : index
    %5 = vector.load %arg4[%c0_4, %c0_5] : memref<128x128xbf16, #tpu.memory_space<vmem>>, vector<128x128xbf16>
    %cst = arith.constant dense<0.000000e+00> : vector<8x128xf32>
    %6 = tpu.matmul %4, %5, %cst {dimension_numbers = #tpu.dot_dimension_numbers<[1], [0], [0], [1], [0, 0, 1, 1], [], []>} : vector<8x128xbf16>, vector<128x128xbf16>, vector<8x128xf32> -> vector<8x128xf32>
    %7 = arith.addf %3, %6 : vector<8x128xf32>
    %c0_6 = arith.constant 0 : index
    %c0_7 = arith.constant 0 : index
    %8 = vector.load %arg7[%c0_6, %c0_7] : memref<8x128xf32, #tpu.memory_space<vmem>>, vector<8x128xf32>
    tpu.vector_store %arg7[%c0_6, %c0_7], %7 {strides = array<i32>} : memref<8x128xf32, #tpu.memory_space<vmem>>, vector<8x128xf32>,
    %c0_i32_8 = arith.constant 0 : i32
    %9 = arith.cmpi eq, %arg2, %c0_i32_8 : i32
    %10 = arith.extui %9 : i1 to i32
    %c0_i32_9 = arith.constant 0 : i32
    %11 = arith.cmpi ne, %10, %c0_i32_9 : i32
    scf.if %11 {
      %c0_10 = arith.constant 0 : index
      %c0_11 = arith.constant 0 : index
      %12 = vector.load %arg7[%c0_10, %c0_11] : memref<8x128xf32, #tpu.memory_space<vmem>>, vector<8x128xf32>
      %c0_12 = arith.constant 0 : index
      %c0_13 = arith.constant 0 : index
      %13 = vector.load %arg5[%c0_12, %c0_13] : memref<1x128xf32, #tpu.memory_space<vmem>>, vector<1x128xf32>
      %14 = vector.broadcast %13 : vector<1x128xf32> to vector<8x128xf32>
      %15 = arith.mulf %12, %14 : vector<8x128xf32>
      %c0_14 = arith.constant 0 : index
      %c0_15 = arith.constant 0 : index
      %16 = vector.load %arg6[%c0_14, %c0_15] : memref<1x128xf32, #tpu.memory_space<vmem>>, vector<1x128xf32>
      %17 = vector.broadcast %16 : vector<1x128xf32> to vector<8x128xf32>
      %18 = arith.addf %15, %17 : vector<8x128xf32>
      %c0_16 = arith.constant 0 : index
      %c0_17 = arith.constant 0 : index
      %19 = vector.load %arg7[%c0_16, %c0_17] : memref<8x128xf32, #tpu.memory_space<vmem>>, vector<8x128xf32>
      tpu.vector_store %arg7[%c0_16, %c0_17], %18 {strides = array<i32>} : memref<8x128xf32, #tpu.memory_space<vmem>>, vector<8x128xf32>,
    } else {
    }
    return
  }
  func.func @transform_0(%arg0: i32, %arg1: i32, %arg2: i32) -> (i32, i32) {
    %c0_i32 = arith.constant 0 : i32
    return %arg0, %arg2 : i32, i32
  }
  func.func @transform_1(%arg0: i32, %arg1: i32, %arg2: i32) -> (i32, i32) {
    %c0_i32 = arith.constant 0 : i32
    return %arg2, %arg1 : i32, i32
  }
  func.func @transform_2(%arg0: i32, %arg1: i32, %arg2: i32) -> (i32, i32) {
    %c0_i32 = arith.constant 0 : i32
    %c0_i32_0 = arith.constant 0 : i32
    return %c0_i32, %arg1 : i32, i32
  }
  func.func @transform_3(%arg0: i32, %arg1: i32, %arg2: i32) -> (i32, i32) {
    %c0_i32 = arith.constant 0 : i32
    %c0_i32_0 = arith.constant 0 : i32
    return %c0_i32, %arg1 : i32, i32
  }
  func.func @transform_4(%arg0: i32, %arg1: i32, %arg2: i32) -> (i32, i32) {
    %c0_i32 = arith.constant 0 : i32
    return %arg0, %arg1 : i32, i32
  }
}

module attributes {stable_mosaic.version = 11 : i64} {
  func.func @_apam_conv8_kernel(%arg0: i32, %arg1: memref<1x16x256xf32, #tpu.memory_space<vmem>>, %arg2: memref<110x256xf32, #tpu.memory_space<vmem>>, %arg3: memref<256x110xf32, #tpu.memory_space<vmem>>, %arg4: memref<16x2xf32, #tpu.memory_space<vmem>>, %arg5: memref<1x2xf32, #tpu.memory_space<vmem>>, %arg6: memref<2x16xf32, #tpu.memory_space<vmem>>, %arg7: memref<2x1xf32, #tpu.memory_space<vmem>>, %arg8: memref<1x16xf32, #tpu.memory_space<vmem>>, %arg9: memref<1x1xf32, #tpu.memory_space<vmem>>, %arg10: memref<8x16xf32, #tpu.memory_space<vmem>>, %arg11: memref<1x8x1xf32, #tpu.memory_space<vmem>>, %arg12: memref<1x8x256xf32, #tpu.memory_space<vmem>>) attributes {dimension_semantics = [#tpu.dimension_semantics<parallel>], iteration_bounds = array<i64: 2>, scalar_prefetch = 0 : i64, scratch_operands = 0 : i64, tpu.core_type = #tpu.core_type<tc>, window_params = [{transform_indices = @transform_0, window_bounds = array<i64: 1, 16, 256>}, {pipeline_mode = #tpu.pipeline_mode<synchronous>, transform_indices = @transform_1, window_bounds = array<i64: 110, 256>}, {pipeline_mode = #tpu.pipeline_mode<synchronous>, transform_indices = @transform_2, window_bounds = array<i64: 256, 110>}, {pipeline_mode = #tpu.pipeline_mode<synchronous>, transform_indices = @transform_3, window_bounds = array<i64: 16, 2>}, {pipeline_mode = #tpu.pipeline_mode<synchronous>, transform_indices = @transform_4, window_bounds = array<i64: 1, 2>}, {pipeline_mode = #tpu.pipeline_mode<synchronous>, transform_indices = @transform_5, window_bounds = array<i64: 2, 16>}, {pipeline_mode = #tpu.pipeline_mode<synchronous>, transform_indices = @transform_6, window_bounds = array<i64: 2, 1>}, {pipeline_mode = #tpu.pipeline_mode<synchronous>, transform_indices = @transform_7, window_bounds = array<i64: 1, 16>}, {pipeline_mode = #tpu.pipeline_mode<synchronous>, transform_indices = @transform_8, window_bounds = array<i64: 1, 1>}, {pipeline_mode = #tpu.pipeline_mode<synchronous>, transform_indices = @transform_9, window_bounds = array<i64: 8, 16>}, {transform_indices = @transform_10, window_bounds = array<i64: 1, 8, 1>}, {transform_indices = @transform_11, window_bounds = array<i64: 1, 8, 256>}]} {
    %c0 = arith.constant 0 : index
    %c0_0 = arith.constant 0 : index
    %c0_1 = arith.constant 0 : index
    %0 = vector.load %arg1[%c0, %c0_0, %c0_1] : memref<1x16x256xf32, #tpu.memory_space<vmem>>, vector<1x16x256xf32>
    %1 = vector.shape_cast %0 : vector<1x16x256xf32> to vector<16x256xf32>
    %c0_2 = arith.constant 0 : index
    %c0_3 = arith.constant 0 : index
    %2 = vector.load %arg2[%c0_2, %c0_3] : memref<110x256xf32, #tpu.memory_space<vmem>>, vector<110x256xf32>
    %cst = arith.constant dense<0.000000e+00> : vector<110x16xf32>
    %3 = tpu.matmul %2, %1, %cst {dimension_numbers = #tpu.dot_dimension_numbers<[1], [1], [0], [0], [0, 0, 1, 0], [], []>} : vector<110x256xf32>, vector<16x256xf32>, vector<110x16xf32> -> vector<110x16xf32>
    %c0_4 = arith.constant 0 : index
    %c0_5 = arith.constant 0 : index
    %4 = vector.load %arg3[%c0_4, %c0_5] : memref<256x110xf32, #tpu.memory_space<vmem>>, vector<256x110xf32>
    %cst_6 = arith.constant dense<0.000000e+00> : vector<16x110xf32>
    %5 = tpu.matmul %1, %4, %cst_6 {dimension_numbers = #tpu.dot_dimension_numbers<[1], [0], [0], [1], [0, 0, 1, 1], [], []>} : vector<16x256xf32>, vector<256x110xf32>, vector<16x110xf32> -> vector<16x110xf32>
    %c0_7 = arith.constant 0 : index
    %c0_8 = arith.constant 0 : index
    %6 = vector.load %arg6[%c0_7, %c0_8] : memref<2x16xf32, #tpu.memory_space<vmem>>, vector<2x16xf32>
    %cst_9 = arith.constant dense<0.000000e+00> : vector<2x256xf32>
    %7 = tpu.matmul %6, %1, %cst_9 {dimension_numbers = #tpu.dot_dimension_numbers<[1], [0], [0], [1], [0, 0, 1, 1], [], []>} : vector<2x16xf32>, vector<16x256xf32>, vector<2x256xf32> -> vector<2x256xf32>
    %c0_10 = arith.constant 0 : index
    %c0_11 = arith.constant 0 : index
    %8 = vector.load %arg7[%c0_10, %c0_11] : memref<2x1xf32, #tpu.memory_space<vmem>>, vector<2x1xf32>
    %9 = vector.broadcast %8 : vector<2x1xf32> to vector<2x256xf32>
    %10 = arith.addf %7, %9 : vector<2x256xf32>
    %c0_12 = arith.constant 0 : index
    %c0_13 = arith.constant 0 : index
    %11 = vector.load %arg4[%c0_12, %c0_13] : memref<16x2xf32, #tpu.memory_space<vmem>>, vector<16x2xf32>
    %cst_14 = arith.constant dense<0.000000e+00> : vector<110x2xf32>
    %12 = tpu.matmul %3, %11, %cst_14 {dimension_numbers = #tpu.dot_dimension_numbers<[1], [0], [0], [1], [0, 0, 1, 1], [], []>} : vector<110x16xf32>, vector<16x2xf32>, vector<110x2xf32> -> vector<110x2xf32>
    %c0_15 = arith.constant 0 : index
    %c0_16 = arith.constant 0 : index
    %13 = vector.load %arg5[%c0_15, %c0_16] : memref<1x2xf32, #tpu.memory_space<vmem>>, vector<1x2xf32>
    %14 = vector.broadcast %13 : vector<1x2xf32> to vector<110x2xf32>
    %15 = arith.addf %12, %14 : vector<110x2xf32>
    %c0_17 = arith.constant 0 : index
    %c0_18 = arith.constant 0 : index
    %16 = vector.load %arg8[%c0_17, %c0_18] : memref<1x16xf32, #tpu.memory_space<vmem>>, vector<1x16xf32>
    %cst_19 = arith.constant dense<0.000000e+00> : vector<1x256xf32>
    %17 = tpu.matmul %16, %1, %cst_19 {dimension_numbers = #tpu.dot_dimension_numbers<[1], [0], [0], [1], [0, 0, 1, 1], [], []>} : vector<1x16xf32>, vector<16x256xf32>, vector<1x256xf32> -> vector<1x256xf32>
    %c0_20 = arith.constant 0 : index
    %c0_21 = arith.constant 0 : index
    %18 = vector.load %arg9[%c0_20, %c0_21] : memref<1x1xf32, #tpu.memory_space<vmem>>, vector<1x1xf32>
    %19 = vector.broadcast %18 : vector<1x1xf32> to vector<1x256xf32>
    %20 = arith.addf %17, %19 : vector<1x256xf32>
    %cst_22 = arith.constant 0.000000e+00 : f32
    %21 = vector.broadcast %cst_22 : f32 to vector<1x256xf32>
    %22 = arith.subf %21, %20 : vector<1x256xf32>
    %23 = math.exp %22 : vector<1x256xf32>
    %cst_23 = arith.constant 1.000000e+00 : f32
    %24 = vector.broadcast %cst_23 : f32 to vector<1x256xf32>
    %25 = arith.addf %24, %23 : vector<1x256xf32>
    %26 = tpu.reciprocal %25 {approx = true} : vector<1x256xf32> -> vector<1x256xf32>
    %cst_24 = arith.constant dense<0.000000e+00> : vector<110x256xf32>
    %27 = tpu.matmul %15, %10, %cst_24 {dimension_numbers = #tpu.dot_dimension_numbers<[1], [0], [0], [1], [0, 0, 1, 1], [], []>} : vector<110x2xf32>, vector<2x256xf32>, vector<110x256xf32> -> vector<110x256xf32>
    %cst_25 = arith.constant dense<0xFF800000> : vector<256xf32>
    %28 = vector.multi_reduction <maximumf>, %27, %cst_25 [0] : vector<110x256xf32> to vector<256xf32>
    %29 = vector.shape_cast %28 : vector<256xf32> to vector<1x256xf32>
    %30 = vector.broadcast %29 : vector<1x256xf32> to vector<110x256xf32>
    %31 = arith.subf %27, %30 : vector<110x256xf32>
    %32 = math.exp %31 : vector<110x256xf32>
    %cst_26 = arith.constant dense<0.000000e+00> : vector<256xf32>
    %33 = vector.multi_reduction <add>, %32, %cst_26 [0] : vector<110x256xf32> to vector<256xf32>
    %34 = vector.shape_cast %33 : vector<256xf32> to vector<1x256xf32>
    %35 = tpu.reciprocal %34 {approx = true} : vector<1x256xf32> -> vector<1x256xf32>
    %36 = vector.broadcast %35 : vector<1x256xf32> to vector<110x256xf32>
    %37 = arith.mulf %32, %36 : vector<110x256xf32>
    %cst_27 = arith.constant dense<0.000000e+00> : vector<16x256xf32>
    %38 = tpu.matmul %5, %37, %cst_27 {dimension_numbers = #tpu.dot_dimension_numbers<[1], [0], [0], [1], [0, 0, 1, 1], [], []>} : vector<16x110xf32>, vector<110x256xf32>, vector<16x256xf32> -> vector<16x256xf32>
    %cst_28 = arith.constant 1.000000e+00 : f32
    %39 = vector.broadcast %cst_28 : f32 to vector<1x256xf32>
    %40 = arith.subf %39, %26 : vector<1x256xf32>
    %41 = vector.broadcast %40 : vector<1x256xf32> to vector<16x256xf32>
    %42 = arith.mulf %41, %38 : vector<16x256xf32>
    %43 = vector.broadcast %26 : vector<1x256xf32> to vector<16x256xf32>
    %44 = arith.mulf %43, %1 : vector<16x256xf32>
    %45 = arith.addf %42, %44 : vector<16x256xf32>
    %c0_29 = arith.constant 0 : index
    %c0_30 = arith.constant 0 : index
    %46 = vector.load %arg10[%c0_29, %c0_30] : memref<8x16xf32, #tpu.memory_space<vmem>>, vector<8x16xf32>
    %cst_31 = arith.constant dense<0.000000e+00> : vector<8x256xf32>
    %47 = tpu.matmul %46, %45, %cst_31 {dimension_numbers = #tpu.dot_dimension_numbers<[1], [0], [0], [1], [0, 0, 1, 1], [], []>} : vector<8x16xf32>, vector<16x256xf32>, vector<8x256xf32> -> vector<8x256xf32>
    %c0_32 = arith.constant 0 : index
    %c0_33 = arith.constant 0 : index
    %c0_34 = arith.constant 0 : index
    %48 = vector.load %arg11[%c0_32, %c0_33, %c0_34] : memref<1x8x1xf32, #tpu.memory_space<vmem>>, vector<1x8x1xf32>
    %49 = vector.shape_cast %48 : vector<1x8x1xf32> to vector<8x1xf32>
    %50 = vector.broadcast %49 : vector<8x1xf32> to vector<8x256xf32>
    %51 = arith.addf %47, %50 : vector<8x256xf32>
    %c0_35 = arith.constant 0 : index
    %c0_36 = arith.constant 0 : index
    %c0_37 = arith.constant 0 : index
    %52 = vector.load %arg12[%c0_35, %c0_36, %c0_37] : memref<1x8x256xf32, #tpu.memory_space<vmem>>, vector<1x8x256xf32>
    %53 = vector.shape_cast %52 : vector<1x8x256xf32> to vector<8x256xf32>
    %54 = vector.shape_cast %51 : vector<8x256xf32> to vector<1x8x256xf32>
    tpu.vector_store %arg12[%c0_35, %c0_36, %c0_37], %54 {strides = array<i32>} : memref<1x8x256xf32, #tpu.memory_space<vmem>>, vector<1x8x256xf32>,
    return
  }
  func.func @transform_0(%arg0: i32) -> (i32, i32, i32) {
    %c0_i32 = arith.constant 0 : i32
    %c0_i32_0 = arith.constant 0 : i32
    %c0_i32_1 = arith.constant 0 : i32
    return %arg0, %c0_i32, %c0_i32_0 : i32, i32, i32
  }
  func.func @transform_1(%arg0: i32) -> (i32, i32) {
    %c0_i32 = arith.constant 0 : i32
    %c0_i32_0 = arith.constant 0 : i32
    %c0_i32_1 = arith.constant 0 : i32
    return %c0_i32, %c0_i32_0 : i32, i32
  }
  func.func @transform_2(%arg0: i32) -> (i32, i32) {
    %c0_i32 = arith.constant 0 : i32
    %c0_i32_0 = arith.constant 0 : i32
    %c0_i32_1 = arith.constant 0 : i32
    return %c0_i32, %c0_i32_0 : i32, i32
  }
  func.func @transform_3(%arg0: i32) -> (i32, i32) {
    %c0_i32 = arith.constant 0 : i32
    %c0_i32_0 = arith.constant 0 : i32
    %c0_i32_1 = arith.constant 0 : i32
    return %c0_i32, %c0_i32_0 : i32, i32
  }
  func.func @transform_4(%arg0: i32) -> (i32, i32) {
    %c0_i32 = arith.constant 0 : i32
    %c0_i32_0 = arith.constant 0 : i32
    %c0_i32_1 = arith.constant 0 : i32
    return %c0_i32, %c0_i32_0 : i32, i32
  }
  func.func @transform_5(%arg0: i32) -> (i32, i32) {
    %c0_i32 = arith.constant 0 : i32
    %c0_i32_0 = arith.constant 0 : i32
    %c0_i32_1 = arith.constant 0 : i32
    return %c0_i32, %c0_i32_0 : i32, i32
  }
  func.func @transform_6(%arg0: i32) -> (i32, i32) {
    %c0_i32 = arith.constant 0 : i32
    %c0_i32_0 = arith.constant 0 : i32
    %c0_i32_1 = arith.constant 0 : i32
    return %c0_i32, %c0_i32_0 : i32, i32
  }
  func.func @transform_7(%arg0: i32) -> (i32, i32) {
    %c0_i32 = arith.constant 0 : i32
    %c0_i32_0 = arith.constant 0 : i32
    %c0_i32_1 = arith.constant 0 : i32
    return %c0_i32, %c0_i32_0 : i32, i32
  }
  func.func @transform_8(%arg0: i32) -> (i32, i32) {
    %c0_i32 = arith.constant 0 : i32
    %c0_i32_0 = arith.constant 0 : i32
    %c0_i32_1 = arith.constant 0 : i32
    return %c0_i32, %c0_i32_0 : i32, i32
  }
  func.func @transform_9(%arg0: i32) -> (i32, i32) {
    %c0_i32 = arith.constant 0 : i32
    %c0_i32_0 = arith.constant 0 : i32
    %c0_i32_1 = arith.constant 0 : i32
    return %c0_i32, %c0_i32_0 : i32, i32
  }
  func.func @transform_10(%arg0: i32) -> (i32, i32, i32) {
    %c0_i32 = arith.constant 0 : i32
    %c0_i32_0 = arith.constant 0 : i32
    %c0_i32_1 = arith.constant 0 : i32
    return %arg0, %c0_i32, %c0_i32_0 : i32, i32, i32
  }
  func.func @transform_11(%arg0: i32) -> (i32, i32, i32) {
    %c0_i32 = arith.constant 0 : i32
    %c0_i32_0 = arith.constant 0 : i32
    %c0_i32_1 = arith.constant 0 : i32
    return %arg0, %c0_i32, %c0_i32_0 : i32, i32, i32
  }
}

</mosaic_0001>

<bundles_post_ra>
// kernel: annl_gsnet_head_forward.11
= control target key start
LH: loop header
LB: loop body
LE: loop exit
PB: predicated region body
PF: predicated region fallthrough
CT: control target
= control target key end

     0   :  { %s4023_s0 = inlined_call_operand.vmem [shape: bf16[512,128], index: 0, kind: input, shape index: {}]   ;;  %s4024_s1 = inlined_call_operand.hbm [shape: bf16[128,1792], index: 1, kind: input, shape index: {}]   ;;  %s4025_s2 = inlined_call_operand.hbm [shape: f32[1,1792], index: 2, kind: input, shape index: {}]   ;;  %s4026_s3 = inlined_call_operand.hbm [shape: f32[1,1792], index: 3, kind: input, shape index: {}]   ;;  %s4027_s4 = inlined_call_operand.vmem [shape: f32[512,1792], index: 4, kind: output, shape index: {}]  }
   0x1   :  { %4029 = sst [smem:[#allocation11_spill]] %s4024_s1 }
   0x2   :  { %9 = vsyncpa [#allocation3], 0 }
   0x3   :  { %11 = vsyncpa [#allocation3 + $0x1], 0 }
   0x4   :  { %12 = vsyncpa [#allocation5], 0 }
   0x5   :  { %14 = vsyncpa [#allocation5 + $0x1], 0  ;;  %s3053_s15 = smov 0   ;;  %s3055_s16 = smov 0  }
   0x6   :  { %s3057_s17 = smov 0   ;;  %s3059_s18 = smov 0  }
   0x7   :  { %s3061_s19 = smov 0   ;;  %s3063_s20 = smov 0  }
   0x8 LB: > { %s3082_s21 = sadd.s32 4294967295, %s3019_s20   ;;  %s35_s22 = sadd.s32 1, %s3015_s19  ;;  %s3019_s20 = sphi %s3063_s20, %s20_s20   ;;  %s3015_s19 = sphi %s3061_s19, %s4042_s19   ;;  %s3011_s18 = sphi %s3059_s18, %s4041_s18   ;;  %s3007_s17 = sphi %s3057_s17, %s4040_s17   ;;  %s3003_s16 = sphi %s3055_s16, %s4039_s16   ;;  %s2999_s15 = sphi %s3053_s15, %s4038_s15  }
   0x9   : > { %p37_p0 = scmp.ge.s32.totalorder %s35_s22, 7  ;;  %s76_s23 = sadd.s32 1, %s3007_s17 }
   0xa   : > { %p83_p1 = scmp.ne.s32.totalorder %s3007_s17, %s3003_s16  ;;  %p84_p2 = scmp.eq.s32.totalorder %s3019_s20, 0 }
   0xb   : > { %s4044_s22 = smov (%p37_p0, %s35_s22), 0  ;;  %p89_p4 = scmp.ne.s32.totalorder %s3003_s16, %s2999_s15 }
   0xc   : > { %4030 = sst [smem:[#allocation10_spill]] %s4044_s22  ;;  %p3091_p3 = por %p84_p2, %p83_p1 }
   0xd   : > { %s72_s25 = ssub.s32 %s3015_s19, %s4044_s22  ;;  %p90_p5 = scmp.eq.s32.totalorder %s3082_s21, 0 }
   0xe   : > { %p74_p6 = scmp.eq.s32.totalorder %s72_s25, 0  ;;  %p167_p7 = scmp.eq.s32.totalorder %s3082_s21, 6 }
   0xf   : > { %p3100_p8 = por %p90_p5, %p89_p4  ;;  %p2771_p10 = scmp.lt.s32.totalorder %s3019_s20, 7 }
  0x10   : > { %s3105_s27 = scalar_select %p74_p6, %s3007_s17, %s76_s23  }
  0x11   : > { %p3107_p9 = por %p167_p7, %p83_p1  ;;  %s3113_s29 = sand.u32 1, %s3007_s17  }
  0x12   : > { %s229_s30 = sand.u32 1, %s3019_s20   ;;  %s2668_s5 = sshll.u32 %s3113_s29, 7 }
  0x13   : > { %p3119_p11 = pnand %p2771_p10, %p3091_p3  ;;  %s209_s7 = scalar_lea.vmem [#allocation2], %s2668_s5 }
  0x14   : > { %s219_s8 = sshll.u32 %s209_s7, 4  ;;  %s2671_s9 = sshll.u32 %s3113_s29, 1  ;;  %s3123_s8 = int_to_ptr.vmem [resolvable:$true] %s219_s8 }
  0x15   : > { %s2736_s10 = sshll.u32 %s3015_s19, 5  ;;  %s233_s14 = scalar_lea.vmem [#allocation4], %s2671_s9 }
  0x16   : > { %s239_s13 = scalar_lea.hbm %s4025_s2, %s2736_s10  ;;  %s241_s15 = sshll.u32 %s233_s14, 4  ;;  %s242_s15 = int_to_ptr.vmem [resolvable:$true] %s241_s15 }
  0x17   : > { %s3135_s25 = scalar_lea.hbm %s4026_s3, %s2736_s10  ;;  %s3137_s22 = scalar_lea.sflag [#allocation5], %s229_s30 }
  0x18   : > { %p2883_p12 = pneg %p3119_p11  ;;  %s2894_s5 = scalar_lea.vmem %s242_s15, 32 }
  0x19   : > { %p2895_p13 = scmp.ne.s32.totalorder %s242_s15, %s2894_s5  ;;  %s3021_s7 = smov [#allocation4]  }
  0x1a   : > { %s2899_s11 = sshll.u32 %s3021_s7, 4  ;;  %s2900_s11 = int_to_ptr.vmem [resolvable:$false] %s2899_s11 }
  0x1b   : > { %p2897_p0 = pnand %p2895_p13, %p2883_p12  ;;  %s2901_s12 = scalar_lea.vmem %s2900_s11, 64 }
  0x1c   : > { %p2902_p2 = scmp.lt.s32.totalorder %s242_s15, %s2900_s11  ;;  %p2903_p3 = scmp.lt.s32.totalorder %s2901_s12, %s2894_s5 }
  0x1d   : > { %p2898_p1 = pneg %p2897_p0 }
  0x1e   : > { %p2904_p4 = por %p2903_p3, %p2902_p2 }
  0x20   : > { %p2905_p5 = pnand %p2904_p4, %p2898_p1 }
  0x22   : > { %2908 = shalt.err (!%p2905_p5)
}
  0x23   : > { %2767 = dma.hbm_to_vmem [thread:$0]  (!%p3119_p11), %s239_s13, 32, %s242_s15, %s3137_s22  }
  0x24   : > { %p2677_p6 = scmp.ge.s32.totalorder %s3019_s20, 1  ;;  %p265_p7 = scmp.lt.s32.totalorder %s3019_s20, 8 }
  0x25   : > { %s2735_s30 = sshll.u32 %s3015_s19, 7  ;;  %s4036_s1 = sld [smem:[#allocation11_spill]] }
  0x26   : > { %p3150_p10 = pnand %p2677_p6, %p265_p7  ;;  %s206_s5 = scalar_lea.sflag [#allocation3], %s3113_s29 }
  0x27   : > { %s2922_s7 = scalar_lea.vmem %s3123_s8, 2048  ;;  %s3022_s11 = smov [#allocation2]  }
  0x28   : > { %p2923_p13 = scmp.ne.s32.totalorder %s3123_s8, %s2922_s7  ;;  %s2927_s13 = sshll.u32 %s3022_s11, 4  ;;  %s2928_s13 = int_to_ptr.vmem [resolvable:$false] %s2927_s13 }
  0x29   : > { %s2929_s15 = scalar_lea.vmem %s2928_s13, 4096  ;;  %p2930_p2 = scmp.lt.s32.totalorder %s3123_s8, %s2928_s13 }
  0x2a   : > { %p2925_p0 = pnand %p2923_p13, %p2883_p12  ;;  %p2931_p3 = scmp.lt.s32.totalorder %s2929_s15, %s2922_s7 }
  0x2b   : > { %s218_s24 = scalar_lea.hbm %s4036_s1, %s2735_s30 }
  0x2c   : > { %p2926_p1 = pneg %p2925_p0  ;;  %p2932_p4 = por %p2931_p3, %p2930_p2 }
  0x2e   : > { %p2933_p5 = pnand %p2932_p4, %p2926_p1 }
  0x30   : > { %2936 = shalt.err (!%p2933_p5)
}
  0x31   : > { %s3023_s12 = smov 896   ;;  %s3024_s30 = smov 128  }
  0x32   : > { %s3025_s14 = smov 8   ;;  %s252_s23 = scalar_lea.vmem [#allocation6], %s2671_s9 }
  0x33   : > { %2764 = dma.hbm_to_vmem [thread:$0]  (!%p3119_p11), %s218_s24, 2048, %s3123_s8, %s206_s5, %s3023_s12, %s3024_s30, %s3025_s14  }
  0x34   : > { %s260_s1 = sshll.u32 %s252_s23, 4  ;;  %s3026_s7 = smov [#allocation6]   ;;  %s261_s1 = int_to_ptr.vmem [resolvable:$true] %s260_s1 }
  0x35   : > { %s2950_s11 = scalar_lea.vmem %s261_s1, 32  ;;  %s2955_s13 = sshll.u32 %s3026_s7, 4  ;;  %s2956_s13 = int_to_ptr.vmem [resolvable:$false] %s2955_s13 }
  0x36   : > { %p2951_p6 = scmp.ne.s32.totalorder %s261_s1, %s2950_s11  ;;  %s2957_s15 = scalar_lea.vmem %s2956_s13, 64 }
  0x37   : > { %p2958_p0 = scmp.lt.s32.totalorder %s261_s1, %s2956_s13  ;;  %p2959_p1 = scmp.lt.s32.totalorder %s2957_s15, %s2950_s11 }
  0x38   : > { %p2953_p7 = pnand %p2951_p6, %p2883_p12 }
  0x39   : > { %p2960_p2 = por %p2959_p1, %p2958_p0 }
  0x3a   : > { %p2954_p13 = pneg %p2953_p7 }
  0x3c   : > { %p2961_p3 = pnand %p2960_p2, %p2954_p13 }
  0x3e   : > { %2964 = shalt.err (!%p2961_p3)
}
  0x3f   : > { %2770 = dma.hbm_to_vmem [thread:$0]  (!%p3119_p11), %s3135_s25, 32, %s261_s1, %s3137_s22  }
  0x40   : > { %269 = sbr.rel (%p3150_p10) target bundleno = 490 (0x1ea), region = 36  ;;  %s3179_s29 = sand.u32 (!%p3150_p10), 1, %s3003_s16  }
  0x41   : > { %s2678_s8 = sshll.u32 (!%p3150_p10), %s3179_s29, 7  ;;  %s272_s9 = scalar_lea.sflag (!%p3150_p10), [#allocation3], %s3179_s29 }
  0x42   : > { %s3183_s24 = scalar_lea.vmem (!%p3150_p10), [#allocation2], %s2678_s8 }
  0x45   : > { %2990 = dma.done.wait (%p3100_p8), %s272_s9, 2048  }
  0x46   : > { %2992 = vsyncadd (%p3100_p8), %s272_s9, 4294965248  ;;  %s280_s1 = sand.u32 1, %s3082_s21   ;;  %s2679_s22 = sshll.u32 %s3179_s29, 1 }
  0x47   : > { %s281_s6 = scalar_lea.sflag [#allocation5], %s280_s1  ;;  %s3193_s25 = scalar_lea.vmem [#allocation4], %s2679_s22 }
  0x48   : > { %2994 = dma.done.wait (%p3100_p8), %s281_s6, 64  }
  0x49   : > { %2996 = vsyncadd (%p3100_p8), %s281_s6, 4294967232  ;;  %v3027_v0 = vmov 0   ;;  %v2825_v1 = vld [vmem:[%s3183_s24 + $0x74] ss:$8 sps:$4 sm:$0xff]   ;;  %v2827_v2 = vld [vmem:[%s3183_s24 + $0x70] ss:$8 sps:$4 sm:$0xff]   ;;  %v1705_v49 = vlaneseq }
  0x4a   : > { %995 = vmatprep.mubr.bf16.mxu0 %v3027_v0  ;;  %1155 = vmatprep.mubr.bf16.mxu1 %v3027_v0  ;;  %v2828_v3 = vld [vmem:[%s3183_s24 + $0x64] ss:$8 sps:$4 sm:$0xff]   ;;  %v2830_v4 = vld [vmem:[%s3183_s24 + $0x60] ss:$8 sps:$4 sm:$0xff]   ;;  %v2831_v5 = vld [vmem:[%s3183_s24 + $0x54] ss:$8 sps:$4 sm:$0xff]  }
  0x4b   : > { %963 = vmatprep.subr.bf16.mxu0 %v2825_v1  ;;  %2739 = vmatprep.subr.bf16.mxu1 %v2825_v1  ;;  %v2833_v6 = vld [vmem:[%s3183_s24 + $0x50] ss:$8 sps:$4 sm:$0xff]   ;;  %v2834_v7 = vld [vmem:[%s3183_s24 + $0x44] ss:$8 sps:$4 sm:$0xff]   ;;  %v2836_v8 = vld [vmem:[%s3183_s24 + $0x40] ss:$8 sps:$4 sm:$0xff]  }
  0x4c   : > { %964 = vmatpush1.bf16.msra.mxu0 %v2827_v2  ;;  %2747 = vmatpush1.bf16.msra.mxu1 %v2827_v2  ;;  %v2837_v9 = vld [vmem:[%s3183_s24 + $0x34] ss:$8 sps:$4 sm:$0xff]   ;;  %v2839_v10 = vld [vmem:[%s3183_s24 + $0x30] ss:$8 sps:$4 sm:$0xff]   ;;  %v2840_v11 = vld [vmem:[%s3183_s24 + $0x24] ss:$8 sps:$4 sm:$0xff]  }
  0x4d   : > { %965 = vmatprep.subr.bf16.mxu0 %v2828_v3  ;;  %2740 = vmatprep.subr.bf16.mxu1 %v2828_v3  ;;  %v2842_v12 = vld [vmem:[%s3183_s24 + $0x20] ss:$8 sps:$4 sm:$0xff]   ;;  %v2843_v13 = vld [vmem:[%s3183_s24 + $0x14] ss:$8 sps:$4 sm:$0xff]   ;;  %v2845_v14 = vld [vmem:[%s3183_s24 + $0x10] ss:$8 sps:$4 sm:$0xff]  }
  0x4e   : > { %v2846_v15 = vld [vmem:[%s3183_s24 + $0x4] ss:$8 sps:$4 sm:$0xff]   ;;  %v2848_v16 = vld [vmem:[%s3183_s24] ss:$8 sps:$4 sm:$0xff]   ;;  %v2853_v21 = vld [vmem:[%s4023_s0 + $0x10] sm:$0xff]   ;;  %v1706_v50 = vshrl.u32 %v1705_v49, 7 }
  0x4f   : > { %v2849_v17 = vld [vmem:[%s4023_s0] sm:$0xff]   ;;  %v2851_v19 = vld [vmem:[%s4023_s0 + $0x8] sm:$0xff]   ;;  %v2854_v22 = vld [vmem:[%s4023_s0 + $0x90] sm:$0xff]   ;;  %s293_s9 = scalar_lea.vmem [#allocation6], %s2679_s22  ;;  %s2681_s24 = sshll.u32 %s3179_s29, 10 }
  0x50   : > { %966 = vmatpush1.bf16.msra.mxu0 %v2830_v4  ;;  %2748 = vmatpush1.bf16.msra.mxu1 %v2830_v4  ;;  %v2850_v18 = vld [vmem:[%s4023_s0 + $0x80] sm:$0xff]   ;;  %v2852_v20 = vld [vmem:[%s4023_s0 + $0x88] sm:$0xff]   ;;  %v2855_v23 = vld [vmem:[%s4023_s0 + $0x18] sm:$0xff]   ;;  %v1707_v51 = vsub.s32 0, %v1706_v50  ;;  %v1711_v53 = vsub.s32 1, %v1706_v50  ;;  %s3365_s29 = scalar_lea.vmem [#allocation7], %s2681_s24 }
  0x51   : > { %967 = vmatprep.subr.bf16.mxu0 %v2831_v5  ;;  %2741 = vmatprep.subr.bf16.mxu1 %v2831_v5  ;;  %v2856_v24 = vld [vmem:[%s4023_s0 + $0x98] sm:$0xff]   ;;  %v2857_v25 = vld [vmem:[%s4023_s0 + $0x20] sm:$0xff]   ;;  %v2859_v27 = vld [vmem:[%s4023_s0 + $0x28] sm:$0xff]   ;;  %s2738_s22 = sshll.u32 (%p3107_p9), %s3011_s18, 4 }
  0x52   : > { %v2858_v26 = vld [vmem:[%s4023_s0 + $0xa0] sm:$0xff]   ;;  %v2860_v28 = vld [vmem:[%s4023_s0 + $0xa8] sm:$0xff]   ;;  %v2861_v29 = vld [vmem:[%s4023_s0 + $0x30] sm:$0xff]   ;;  %s3750_s6 = scalar_lea.vmem (%p3107_p9), %s4027_s4, %s2738_s22 }
  0x53   : > { %v2862_v30 = vld [vmem:[%s4023_s0 + $0xb0] sm:$0xff]   ;;  %v2863_v31 = vld [vmem:[%s4023_s0 + $0x38] sm:$0xff]   ;;  %v2865_v33 = vld [vmem:[%s4023_s0 + $0x40] sm:$0xff]  }
  0x54   : > { %968 = vmatpush1.bf16.msra.mxu0 %v2833_v6  ;;  %2749 = vmatpush1.bf16.msra.mxu1 %v2833_v6  ;;  %v2864_v32 = vld [vmem:[%s4023_s0 + $0xb8] sm:$0xff]   ;;  %v2866_v34 = vld [vmem:[%s4023_s0 + $0xc0] sm:$0xff]   ;;  %v2867_v35 = vld [vmem:[%s4023_s0 + $0x48] sm:$0xff]  }
  0x55   : > { %969 = vmatprep.subr.bf16.mxu0 %v2834_v7  ;;  %2742 = vmatprep.subr.bf16.mxu1 %v2834_v7  ;;  %v2868_v36 = vld [vmem:[%s4023_s0 + $0xc8] sm:$0xff]   ;;  %v2869_v37 = vld [vmem:[%s4023_s0 + $0x50] sm:$0xff]   ;;  %v2871_v39 = vld [vmem:[%s4023_s0 + $0x58] sm:$0xff]  }
  0x56   : > { %v2870_v38 = vld [vmem:[%s4023_s0 + $0xd0] sm:$0xff]   ;;  %v2872_v40 = vld [vmem:[%s4023_s0 + $0xd8] sm:$0xff]   ;;  %v2873_v41 = vld [vmem:[%s4023_s0 + $0x60] sm:$0xff]  }
  0x57   : > { %v2874_v42 = vld [vmem:[%s4023_s0 + $0xe0] sm:$0xff]   ;;  %v2875_v43 = vld [vmem:[%s4023_s0 + $0x68] sm:$0xff]   ;;  %v2877_v45 = vld [vmem:[%s4023_s0 + $0x70] sm:$0xff]  }
  0x58   : > { %970 = vmatpush1.bf16.msra.mxu0 %v2836_v8  ;;  %2750 = vmatpush1.bf16.msra.mxu1 %v2836_v8  ;;  %v2876_v44 = vld [vmem:[%s4023_s0 + $0xe8] sm:$0xff]   ;;  %v2878_v46 = vld [vmem:[%s4023_s0 + $0xf0] sm:$0xff]   ;;  %v2879_v47 = vld [vmem:[%s4023_s0 + $0x78] sm:$0xff]  }
  0x59   : > { %971 = vmatprep.subr.bf16.mxu0 %v2837_v9  ;;  %2743 = vmatprep.subr.bf16.mxu1 %v2837_v9  ;;  %v2880_v48 = vld [vmem:[%s4023_s0 + $0xf8] sm:$0xff]   ;;  %v1703_v52 = vld [vmem:[%s3193_s25] sm:$0x3]  ;;  %v1843_v54 = vld [vmem:[%s293_s9] sm:$0x3] }
  0x5a   : > { %v3346_v55 = vrot.slane %v1703_v52, %v1707_v51  ;;  %v3348_v58 = vrot.slane %v1843_v54, %v1707_v51  ;;  %v3350_v59 = vrot.slane %v1703_v52, %v1711_v53  ;;  %v3352_v61 = vrot.slane %v1843_v54, %v1711_v53 }
  0x5c   : > { %972 = vmatpush1.bf16.msra.mxu0 %v2839_v10  ;;  %2751 = vmatpush1.bf16.msra.mxu1 %v2839_v10 }
  0x5d   : > { %973 = vmatprep.subr.bf16.mxu0 %v2840_v11  ;;  %2744 = vmatprep.subr.bf16.mxu1 %v2840_v11 }
  0x60   : > { %974 = vmatpush1.bf16.msra.mxu0 %v2842_v12  ;;  %2752 = vmatpush1.bf16.msra.mxu1 %v2842_v12 }
  0x61   : > { %975 = vmatprep.subr.bf16.mxu0 %v2843_v13  ;;  %2745 = vmatprep.subr.bf16.mxu1 %v2843_v13 }
  0x64   : > { %976 = vmatpush1.bf16.msra.mxu0 %v2845_v14  ;;  %2753 = vmatpush1.bf16.msra.mxu1 %v2845_v14 }
  0x65   : > { %977 = vmatprep.subr.bf16.mxu0 %v2846_v15  ;;  %2746 = vmatprep.subr.bf16.mxu1 %v2846_v15 }
  0x68   : > { %978 = vmatpush1.bf16.msra.mxu0 %v2848_v16  ;;  %2754 = vmatpush1.bf16.msra.mxu1 %v2848_v16 }
  0x6b   : > { %996 = vmatmul.mubr.bf16.vlgmr.msra.gmra.mxu0 %v2849_v17  ;;  %1156 = vmatmul.mubr.bf16.vlgmr.msra.gmra.mxu1 %v2850_v18 }
  0x6c   : > { %1005 = vmatprep.mubr.bf16.mxu0 %v3027_v0  ;;  %1165 = vmatprep.mubr.bf16.mxu1 %v3027_v0 }
  0x73   : > { %1006 = vmatmul.mubr.bf16.gmra.mxu0 %v2851_v19  ;;  %1166 = vmatmul.mubr.bf16.gmra.mxu1 %v2852_v20 }
  0x74   : > { %1015 = vmatprep.mubr.bf16.mxu0 %v3027_v0  ;;  %1175 = vmatprep.mubr.bf16.mxu1 %v3027_v0 }
  0x7b   : > { %1016 = vmatmul.mubr.bf16.gmra.mxu0 %v2853_v21  ;;  %1176 = vmatmul.mubr.bf16.gmra.mxu1 %v2854_v22 }
  0x7c   : > { %1025 = vmatprep.mubr.bf16.mxu0 %v3027_v0  ;;  %1185 = vmatprep.mubr.bf16.mxu1 %v3027_v0 }
  0x83   : > { %1026 = vmatmul.mubr.bf16.gmra.mxu0 %v2855_v23  ;;  %1186 = vmatmul.mubr.bf16.gmra.mxu1 %v2856_v24 }
  0x84   : > { %1035 = vmatprep.mubr.bf16.mxu0 %v3027_v0  ;;  %1195 = vmatprep.mubr.bf16.mxu1 %v3027_v0 }
  0x8b   : > { %1036 = vmatmul.mubr.bf16.gmra.mxu0 %v2857_v25  ;;  %1196 = vmatmul.mubr.bf16.gmra.mxu1 %v2858_v26 }
  0x8c   : > { %1045 = vmatprep.mubr.bf16.mxu0 %v3027_v0  ;;  %1205 = vmatprep.mubr.bf16.mxu1 %v3027_v0 }
  0x93   : > { %1046 = vmatmul.mubr.bf16.gmra.mxu0 %v2859_v27  ;;  %1206 = vmatmul.mubr.bf16.gmra.mxu1 %v2860_v28 }
  0x94   : > { %1055 = vmatprep.mubr.bf16.mxu0 %v3027_v0  ;;  %1215 = vmatprep.mubr.bf16.mxu1 %v3027_v0 }
  0x9b   : > { %1056 = vmatmul.mubr.bf16.gmra.mxu0 %v2861_v29  ;;  %1216 = vmatmul.mubr.bf16.gmra.mxu1 %v2862_v30 }
  0x9c   : > { %1065 = vmatprep.mubr.bf16.mxu0 %v3027_v0  ;;  %1225 = vmatprep.mubr.bf16.mxu1 %v3027_v0 }
  0xa3   : > { %1066 = vmatmul.mubr.bf16.gmra.mxu0 %v2863_v31  ;;  %1226 = vmatmul.mubr.bf16.gmra.mxu1 %v2864_v32 }
  0xa4   : > { %1075 = vmatprep.mubr.bf16.mxu0 %v3027_v0  ;;  %1235 = vmatprep.mubr.bf16.mxu1 %v3027_v0 }
  0xab   : > { %1076 = vmatmul.mubr.bf16.gmra.mxu0 %v2865_v33  ;;  %1236 = vmatmul.mubr.bf16.gmra.mxu1 %v2866_v34 }
  0xac   : > { %1085 = vmatprep.mubr.bf16.mxu0 %v3027_v0  ;;  %1245 = vmatprep.mubr.bf16.mxu1 %v3027_v0 }
  0xb3   : > { %1086 = vmatmul.mubr.bf16.gmra.mxu0 %v2867_v35  ;;  %1246 = vmatmul.mubr.bf16.gmra.mxu1 %v2868_v36 }
  0xb4   : > { %1095 = vmatprep.mubr.bf16.mxu0 %v3027_v0  ;;  %1255 = vmatprep.mubr.bf16.mxu1 %v3027_v0 }
  0xbb   : > { %1096 = vmatmul.mubr.bf16.gmra.mxu0 %v2869_v37  ;;  %1256 = vmatmul.mubr.bf16.gmra.mxu1 %v2870_v38 }
  0xbc   : > { %1105 = vmatprep.mubr.bf16.mxu0 %v3027_v0  ;;  %1265 = vmatprep.mubr.bf16.mxu1 %v3027_v0 }
  0xc3   : > { %1106 = vmatmul.mubr.bf16.gmra.mxu0 %v2871_v39  ;;  %1266 = vmatmul.mubr.bf16.gmra.mxu1 %v2872_v40 }
  0xc4   : > { %1115 = vmatprep.mubr.bf16.mxu0 %v3027_v0  ;;  %1275 = vmatprep.mubr.bf16.mxu1 %v3027_v0 }
  0xcb   : > { %1116 = vmatmul.mubr.bf16.gmra.mxu0 %v2873_v41  ;;  %1276 = vmatmul.mubr.bf16.gmra.mxu1 %v2874_v42 }
  0xcc   : > { %1125 = vmatprep.mubr.bf16.mxu0 %v3027_v0  ;;  %1285 = vmatprep.mubr.bf16.mxu1 %v3027_v0 }
  0xd3   : > { %1126 = vmatmul.mubr.bf16.gmra.mxu0 %v2875_v43  ;;  %1286 = vmatmul.mubr.bf16.gmra.mxu1 %v2876_v44 }
  0xd4   : > { %1135 = vmatprep.mubr.bf16.mxu0 %v3027_v0  ;;  %1295 = vmatprep.mubr.bf16.mxu1 %v3027_v0 }
  0xdb   : > { %1136 = vmatmul.mubr.bf16.gmra.mxu0 %v2877_v45  ;;  %1296 = vmatmul.mubr.bf16.gmra.mxu1 %v2878_v46 }
  0xdc   : > { %1145 = vmatprep.mubr.bf16.mxu0 %v3027_v0  ;;  %1305 = vmatprep.mubr.bf16.mxu1 %v3027_v0 }
  0xe3   : > { %1146 = vmatmul.mubr.bf16.gmra.mxu0 %v2879_v47  ;;  %1306 = vmatmul.mubr.bf16.gmra.mxu1 %v2880_v48 }
 0x12b   : > { %v997_v56 = vpop.f32.mrf.mxu0  ;;  %v1157_v57 = vpop.f32.mrf.mxu1 }
 0x12c   : > { %v1715_v63 = vmul.f32 %v3346_v55, %v997_v56  ;;  %v1779_v0 = vmul.f32 %v3346_v55, %v1157_v57 }
 0x12d   : > { %v999_v60 = vpop.f32.mrf.mxu0  ;;  %v1159_v62 = vpop.f32.mrf.mxu1 }
 0x12e   : > { %v1855_v3 = vadd.f32 %v3348_v58, %v1715_v63  ;;  %v1919_v4 = vadd.f32 %v3348_v58, %v1779_v0  ;;  %v1716_v5 = vmul.f32 %v3350_v59, %v999_v60  ;;  %v1780_v6 = vmul.f32 %v3350_v59, %v1159_v62 }
 0x12f   : > { %v1001_v1 = vpop.f32.mrf.mxu0  ;;  %v1161_v2 = vpop.f32.mrf.mxu1 }
 0x130   : > { %v1983_v9 = vmax.f32 %v1855_v3, 0.0  ;;  %v2047_v10 = vmax.f32 %v1919_v4, 0.0  ;;  %v1856_v11 = vadd.f32 %v3352_v61, %v1716_v5  ;;  %v1920_v12 = vadd.f32 %v3352_v61, %v1780_v6 }
 0x131   : > { %v1003_v7 = vpop.f32.mrf.mxu0  ;;  %v1163_v8 = vpop.f32.mrf.mxu1  ;;  %v1717_v13 = vmul.f32 %v3346_v55, %v1001_v1  ;;  %v1781_v14 = vmul.f32 %v3346_v55, %v1161_v2 }
 0x132   : > { %2111 = vst [vmem:[%s3365_s29] sm:$0xff] %v1983_v9  ;;  %2175 = vst [vmem:[%s3365_s29 + $0x200] sm:$0xff] %v2047_v10  ;;  %v1984_v17 = vmax.f32 %v1856_v11, 0.0  ;;  %v2048_v18 = vmax.f32 %v1920_v12, 0.0  ;;  %v1718_v21 = vmul.f32 %v3350_v59, %v1003_v7  ;;  %v1782_v22 = vmul.f32 %v3350_v59, %v1163_v8 }
 0x133   : > { %v1007_v15 = vpop.f32.mrf.mxu0  ;;  %v1167_v16 = vpop.f32.mrf.mxu1  ;;  %v1857_v19 = vadd.f32 %v3348_v58, %v1717_v13  ;;  %v1921_v20 = vadd.f32 %v3348_v58, %v1781_v14 }
 0x134   : > { %2112 = vst [vmem:[%s3365_s29 + $0x8] sm:$0xff] %v1984_v17  ;;  %2176 = vst [vmem:[%s3365_s29 + $0x208] sm:$0xff] %v2048_v18  ;;  %v1719_v25 = vmul.f32 %v3346_v55, %v1007_v15  ;;  %v1783_v26 = vmul.f32 %v3346_v55, %v1167_v16  ;;  %v1858_v29 = vadd.f32 %v3352_v61, %v1718_v21 }
 0x135   : > { %v1009_v23 = vpop.f32.mrf.mxu0  ;;  %v1169_v24 = vpop.f32.mrf.mxu1  ;;  %v1985_v27 = vmax.f32 %v1857_v19, 0.0  ;;  %v2049_v28 = vmax.f32 %v1921_v20, 0.0  ;;  %v1922_v30 = vadd.f32 %v3352_v61, %v1782_v22 }
 0x136   : > { %v1859_v33 = vadd.f32 %v3348_v58, %v1719_v25  ;;  %v1923_v34 = vadd.f32 %v3348_v58, %v1783_v26  ;;  %v1720_v35 = vmul.f32 %v3350_v59, %v1009_v23  ;;  %v1784_v36 = vmul.f32 %v3350_v59, %v1169_v24 }
 0x137   : > { %v1011_v31 = vpop.f32.mrf.mxu0  ;;  %v1171_v32 = vpop.f32.mrf.mxu1  ;;  %2113 = vst [vmem:[%s3365_s29 + $0x10] sm:$0xff] %v1985_v27  ;;  %2177 = vst [vmem:[%s3365_s29 + $0x210] sm:$0xff] %v2049_v28  ;;  %v1986_v37 = vmax.f32 %v1858_v29, 0.0  ;;  %v2050_v38 = vmax.f32 %v1922_v30, 0.0 }
 0x138   : > { %v1987_v41 = vmax.f32 %v1859_v33, 0.0  ;;  %v2051_v42 = vmax.f32 %v1923_v34, 0.0  ;;  %v1860_v43 = vadd.f32 %v3352_v61, %v1720_v35  ;;  %v1924_v44 = vadd.f32 %v3352_v61, %v1784_v36 }
 0x139   : > { %v1013_v39 = vpop.f32.mrf.mxu0  ;;  %v1173_v40 = vpop.f32.mrf.mxu1  ;;  %2114 = vst [vmem:[%s3365_s29 + $0x18] sm:$0xff] %v1986_v37  ;;  %2178 = vst [vmem:[%s3365_s29 + $0x218] sm:$0xff] %v2050_v38  ;;  %v1721_v45 = vmul.f32 %v3346_v55, %v1011_v31  ;;  %v1785_v46 = vmul.f32 %v3346_v55, %v1171_v32 }
 0x13a   : > { %2115 = vst [vmem:[%s3365_s29 + $0x20] sm:$0xff] %v1987_v41  ;;  %2179 = vst [vmem:[%s3365_s29 + $0x220] sm:$0xff] %v2051_v42  ;;  %v1988_v49 = vmax.f32 %v1860_v43, 0.0  ;;  %v2052_v50 = vmax.f32 %v1924_v44, 0.0  ;;  %v1722_v53 = vmul.f32 %v3350_v59, %v1013_v39  ;;  %v1786_v54 = vmul.f32 %v3350_v59, %v1173_v40 }
 0x13b   : > { %v1017_v47 = vpop.f32.mrf.mxu0  ;;  %v1177_v48 = vpop.f32.mrf.mxu1  ;;  %v1861_v51 = vadd.f32 %v3348_v58, %v1721_v45  ;;  %v1925_v52 = vadd.f32 %v3348_v58, %v1785_v46 }
 0x13c   : > { %2116 = vst [vmem:[%s3365_s29 + $0x28] sm:$0xff] %v1988_v49  ;;  %2180 = vst [vmem:[%s3365_s29 + $0x228] sm:$0xff] %v2052_v50  ;;  %v1723_v60 = vmul.f32 %v3346_v55, %v1017_v47  ;;  %v1787_v62 = vmul.f32 %v3346_v55, %v1177_v48  ;;  %v1862_v1 = vadd.f32 %v3352_v61, %v1722_v53 }
 0x13d   : > { %v1019_v56 = vpop.f32.mrf.mxu0  ;;  %v1179_v57 = vpop.f32.mrf.mxu1  ;;  %v1989_v63 = vmax.f32 %v1861_v51, 0.0  ;;  %v2053_v0 = vmax.f32 %v1925_v52, 0.0  ;;  %v1926_v2 = vadd.f32 %v3352_v61, %v1786_v54 }
 0x13e   : > { %v1863_v5 = vadd.f32 %v3348_v58, %v1723_v60  ;;  %v1927_v6 = vadd.f32 %v3348_v58, %v1787_v62  ;;  %v1724_v7 = vmul.f32 %v3350_v59, %v1019_v56  ;;  %v1788_v8 = vmul.f32 %v3350_v59, %v1179_v57 }
 0x13f   : > { %v1021_v3 = vpop.f32.mrf.mxu0  ;;  %v1181_v4 = vpop.f32.mrf.mxu1  ;;  %2117 = vst [vmem:[%s3365_s29 + $0x30] sm:$0xff] %v1989_v63  ;;  %2181 = vst [vmem:[%s3365_s29 + $0x230] sm:$0xff] %v2053_v0  ;;  %v1990_v9 = vmax.f32 %v1862_v1, 0.0  ;;  %v2054_v10 = vmax.f32 %v1926_v2, 0.0 }
 0x140   : > { %v1991_v13 = vmax.f32 %v1863_v5, 0.0  ;;  %v2055_v14 = vmax.f32 %v1927_v6, 0.0  ;;  %v1864_v15 = vadd.f32 %v3352_v61, %v1724_v7  ;;  %v1928_v16 = vadd.f32 %v3352_v61, %v1788_v8 }
 0x141   : > { %v1023_v11 = vpop.f32.mrf.mxu0  ;;  %v1183_v12 = vpop.f32.mrf.mxu1  ;;  %2118 = vst [vmem:[%s3365_s29 + $0x38] sm:$0xff] %v1990_v9  ;;  %2182 = vst [vmem:[%s3365_s29 + $0x238] sm:$0xff] %v2054_v10  ;;  %v1725_v17 = vmul.f32 %v3346_v55, %v1021_v3  ;;  %v1789_v18 = vmul.f32 %v3346_v55, %v1181_v4 }
 0x142   : > { %2119 = vst [vmem:[%s3365_s29 + $0x40] sm:$0xff] %v1991_v13  ;;  %2183 = vst [vmem:[%s3365_s29 + $0x240] sm:$0xff] %v2055_v14  ;;  %v1992_v21 = vmax.f32 %v1864_v15, 0.0  ;;  %v2056_v22 = vmax.f32 %v1928_v16, 0.0  ;;  %v1726_v25 = vmul.f32 %v3350_v59, %v1023_v11  ;;  %v1790_v26 = vmul.f32 %v3350_v59, %v1183_v12 }
 0x143   : > { %v1027_v19 = vpop.f32.mrf.mxu0  ;;  %v1187_v20 = vpop.f32.mrf.mxu1  ;;  %v1865_v23 = vadd.f32 %v3348_v58, %v1725_v17  ;;  %v1929_v24 = vadd.f32 %v3348_v58, %v1789_v18 }
 0x144   : > { %2120 = vst [vmem:[%s3365_s29 + $0x48] sm:$0xff] %v1992_v21  ;;  %2184 = vst [vmem:[%s3365_s29 + $0x248] sm:$0xff] %v2056_v22  ;;  %v1727_v29 = vmul.f32 %v3346_v55, %v1027_v19  ;;  %v1791_v30 = vmul.f32 %v3346_v55, %v1187_v20  ;;  %v1866_v33 = vadd.f32 %v3352_v61, %v1726_v25 }
 0x145   : > { %v1029_v27 = vpop.f32.mrf.mxu0  ;;  %v1189_v28 = vpop.f32.mrf.mxu1  ;;  %v1993_v31 = vmax.f32 %v1865_v23, 0.0  ;;  %v2057_v32 = vmax.f32 %v1929_v24, 0.0  ;;  %v1930_v34 = vadd.f32 %v3352_v61, %v1790_v26 }
 0x146   : > { %v1867_v37 = vadd.f32 %v3348_v58, %v1727_v29  ;;  %v1931_v38 = vadd.f32 %v3348_v58, %v1791_v30  ;;  %v1728_v39 = vmul.f32 %v3350_v59, %v1029_v27  ;;  %v1792_v40 = vmul.f32 %v3350_v59, %v1189_v28 }
 0x147   : > { %v1031_v35 = vpop.f32.mrf.mxu0  ;;  %v1191_v36 = vpop.f32.mrf.mxu1  ;;  %2121 = vst [vmem:[%s3365_s29 + $0x50] sm:$0xff] %v1993_v31  ;;  %2185 = vst [vmem:[%s3365_s29 + $0x250] sm:$0xff] %v2057_v32  ;;  %v1994_v41 = vmax.f32 %v1866_v33, 0.0  ;;  %v2058_v42 = vmax.f32 %v1930_v34, 0.0 }
 0x148   : > { %v1995_v45 = vmax.f32 %v1867_v37, 0.0  ;;  %v2059_v46 = vmax.f32 %v1931_v38, 0.0  ;;  %v1868_v47 = vadd.f32 %v3352_v61, %v1728_v39  ;;  %v1932_v48 = vadd.f32 %v3352_v61, %v1792_v40 }
 0x149   : > { %v1033_v43 = vpop.f32.mrf.mxu0  ;;  %v1193_v44 = vpop.f32.mrf.mxu1  ;;  %2122 = vst [vmem:[%s3365_s29 + $0x58] sm:$0xff] %v1994_v41  ;;  %2186 = vst [vmem:[%s3365_s29 + $0x258] sm:$0xff] %v2058_v42  ;;  %v1729_v49 = vmul.f32 %v3346_v55, %v1031_v35  ;;  %v1793_v50 = vmul.f32 %v3346_v55, %v1191_v36 }
 0x14a   : > { %2123 = vst [vmem:[%s3365_s29 + $0x60] sm:$0xff] %v1995_v45  ;;  %2187 = vst [vmem:[%s3365_s29 + $0x260] sm:$0xff] %v2059_v46  ;;  %v1996_v53 = vmax.f32 %v1868_v47, 0.0  ;;  %v2060_v54 = vmax.f32 %v1932_v48, 0.0  ;;  %v1730_v60 = vmul.f32 %v3350_v59, %v1033_v43  ;;  %v1794_v62 = vmul.f32 %v3350_v59, %v1193_v44 }
 0x14b   : > { %v1037_v51 = vpop.f32.mrf.mxu0  ;;  %v1197_v52 = vpop.f32.mrf.mxu1  ;;  %v1869_v56 = vadd.f32 %v3348_v58, %v1729_v49  ;;  %v1933_v57 = vadd.f32 %v3348_v58, %v1793_v50 }
 0x14c   : > { %2124 = vst [vmem:[%s3365_s29 + $0x68] sm:$0xff] %v1996_v53  ;;  %2188 = vst [vmem:[%s3365_s29 + $0x268] sm:$0xff] %v2060_v54  ;;  %v1731_v1 = vmul.f32 %v3346_v55, %v1037_v51  ;;  %v1795_v2 = vmul.f32 %v3346_v55, %v1197_v52  ;;  %v1870_v5 = vadd.f32 %v3352_v61, %v1730_v60 }
 0x14d   : > { %v1039_v63 = vpop.f32.mrf.mxu0  ;;  %v1199_v0 = vpop.f32.mrf.mxu1  ;;  %v1997_v3 = vmax.f32 %v1869_v56, 0.0  ;;  %v2061_v4 = vmax.f32 %v1933_v57, 0.0  ;;  %v1934_v6 = vadd.f32 %v3352_v61, %v1794_v62 }
 0x14e   : > { %v1871_v9 = vadd.f32 %v3348_v58, %v1731_v1  ;;  %v1935_v10 = vadd.f32 %v3348_v58, %v1795_v2  ;;  %v1732_v11 = vmul.f32 %v3350_v59, %v1039_v63  ;;  %v1796_v12 = vmul.f32 %v3350_v59, %v1199_v0 }
 0x14f   : > { %v1041_v7 = vpop.f32.mrf.mxu0  ;;  %v1201_v8 = vpop.f32.mrf.mxu1  ;;  %2125 = vst [vmem:[%s3365_s29 + $0x70] sm:$0xff] %v1997_v3  ;;  %2189 = vst [vmem:[%s3365_s29 + $0x270] sm:$0xff] %v2061_v4  ;;  %v1998_v13 = vmax.f32 %v1870_v5, 0.0  ;;  %v2062_v14 = vmax.f32 %v1934_v6, 0.0 }
 0x150   : > { %v1999_v17 = vmax.f32 %v1871_v9, 0.0  ;;  %v2063_v18 = vmax.f32 %v1935_v10, 0.0  ;;  %v1872_v19 = vadd.f32 %v3352_v61, %v1732_v11  ;;  %v1936_v20 = vadd.f32 %v3352_v61, %v1796_v12 }
 0x151   : > { %v1043_v15 = vpop.f32.mrf.mxu0  ;;  %v1203_v16 = vpop.f32.mrf.mxu1  ;;  %2126 = vst [vmem:[%s3365_s29 + $0x78] sm:$0xff] %v1998_v13  ;;  %2190 = vst [vmem:[%s3365_s29 + $0x278] sm:$0xff] %v2062_v14  ;;  %v1733_v21 = vmul.f32 %v3346_v55, %v1041_v7  ;;  %v1797_v22 = vmul.f32 %v3346_v55, %v1201_v8 }
 0x152   : > { %2127 = vst [vmem:[%s3365_s29 + $0x80] sm:$0xff] %v1999_v17  ;;  %2191 = vst [vmem:[%s3365_s29 + $0x280] sm:$0xff] %v2063_v18  ;;  %v2000_v25 = vmax.f32 %v1872_v19, 0.0  ;;  %v2064_v26 = vmax.f32 %v1936_v20, 0.0  ;;  %v1734_v29 = vmul.f32 %v3350_v59, %v1043_v15  ;;  %v1798_v30 = vmul.f32 %v3350_v59, %v1203_v16 }
 0x153   : > { %v1047_v23 = vpop.f32.mrf.mxu0  ;;  %v1207_v24 = vpop.f32.mrf.mxu1  ;;  %v1873_v27 = vadd.f32 %v3348_v58, %v1733_v21  ;;  %v1937_v28 = vadd.f32 %v3348_v58, %v1797_v22 }
 0x154   : > { %2128 = vst [vmem:[%s3365_s29 + $0x88] sm:$0xff] %v2000_v25  ;;  %2192 = vst [vmem:[%s3365_s29 + $0x288] sm:$0xff] %v2064_v26  ;;  %v1735_v33 = vmul.f32 %v3346_v55, %v1047_v23  ;;  %v1799_v34 = vmul.f32 %v3346_v55, %v1207_v24  ;;  %v1874_v37 = vadd.f32 %v3352_v61, %v1734_v29 }
 0x155   : > { %v1049_v31 = vpop.f32.mrf.mxu0  ;;  %v1209_v32 = vpop.f32.mrf.mxu1  ;;  %v2001_v35 = vmax.f32 %v1873_v27, 0.0  ;;  %v2065_v36 = vmax.f32 %v1937_v28, 0.0  ;;  %v1938_v38 = vadd.f32 %v3352_v61, %v1798_v30 }
 0x156   : > { %v1875_v41 = vadd.f32 %v3348_v58, %v1735_v33  ;;  %v1939_v42 = vadd.f32 %v3348_v58, %v1799_v34  ;;  %v1736_v43 = vmul.f32 %v3350_v59, %v1049_v31  ;;  %v1800_v44 = vmul.f32 %v3350_v59, %v1209_v32 }
 0x157   : > { %v1051_v39 = vpop.f32.mrf.mxu0  ;;  %v1211_v40 = vpop.f32.mrf.mxu1  ;;  %2129 = vst [vmem:[%s3365_s29 + $0x90] sm:$0xff] %v2001_v35  ;;  %2193 = vst [vmem:[%s3365_s29 + $0x290] sm:$0xff] %v2065_v36  ;;  %v2002_v45 = vmax.f32 %v1874_v37, 0.0  ;;  %v2066_v46 = vmax.f32 %v1938_v38, 0.0 }
 0x158   : > { %v2003_v49 = vmax.f32 %v1875_v41, 0.0  ;;  %v2067_v50 = vmax.f32 %v1939_v42, 0.0  ;;  %v1876_v51 = vadd.f32 %v3352_v61, %v1736_v43  ;;  %v1940_v52 = vadd.f32 %v3352_v61, %v1800_v44 }
 0x159   : > { %v1053_v47 = vpop.f32.mrf.mxu0  ;;  %v1213_v48 = vpop.f32.mrf.mxu1  ;;  %2130 = vst [vmem:[%s3365_s29 + $0x98] sm:$0xff] %v2002_v45  ;;  %2194 = vst [vmem:[%s3365_s29 + $0x298] sm:$0xff] %v2066_v46  ;;  %v1737_v53 = vmul.f32 %v3346_v55, %v1051_v39  ;;  %v1801_v54 = vmul.f32 %v3346_v55, %v1211_v40 }
 0x15a   : > { %2131 = vst [vmem:[%s3365_s29 + $0xa0] sm:$0xff] %v2003_v49  ;;  %2195 = vst [vmem:[%s3365_s29 + $0x2a0] sm:$0xff] %v2067_v50  ;;  %v2004_v60 = vmax.f32 %v1876_v51, 0.0  ;;  %v2068_v62 = vmax.f32 %v1940_v52, 0.0  ;;  %v1738_v1 = vmul.f32 %v3350_v59, %v1053_v47  ;;  %v1802_v2 = vmul.f32 %v3350_v59, %v1213_v48 }
 0x15b   : > { %v1057_v56 = vpop.f32.mrf.mxu0  ;;  %v1217_v57 = vpop.f32.mrf.mxu1  ;;  %v1877_v63 = vadd.f32 %v3348_v58, %v1737_v53  ;;  %v1941_v0 = vadd.f32 %v3348_v58, %v1801_v54 }
 0x15c   : > { %2132 = vst [vmem:[%s3365_s29 + $0xa8] sm:$0xff] %v2004_v60  ;;  %2196 = vst [vmem:[%s3365_s29 + $0x2a8] sm:$0xff] %v2068_v62  ;;  %v1739_v5 = vmul.f32 %v3346_v55, %v1057_v56  ;;  %v1803_v6 = vmul.f32 %v3346_v55, %v1217_v57  ;;  %v1878_v9 = vadd.f32 %v3352_v61, %v1738_v1 }
 0x15d   : > { %v1059_v3 = vpop.f32.mrf.mxu0  ;;  %v1219_v4 = vpop.f32.mrf.mxu1  ;;  %v2005_v7 = vmax.f32 %v1877_v63, 0.0  ;;  %v2069_v8 = vmax.f32 %v1941_v0, 0.0  ;;  %v1942_v10 = vadd.f32 %v3352_v61, %v1802_v2 }
 0x15e   : > { %v1879_v13 = vadd.f32 %v3348_v58, %v1739_v5  ;;  %v1943_v14 = vadd.f32 %v3348_v58, %v1803_v6  ;;  %v1740_v15 = vmul.f32 %v3350_v59, %v1059_v3  ;;  %v1804_v16 = vmul.f32 %v3350_v59, %v1219_v4 }
 0x15f   : > { %v1061_v11 = vpop.f32.mrf.mxu0  ;;  %v1221_v12 = vpop.f32.mrf.mxu1  ;;  %2133 = vst [vmem:[%s3365_s29 + $0xb0] sm:$0xff] %v2005_v7  ;;  %2197 = vst [vmem:[%s3365_s29 + $0x2b0] sm:$0xff] %v2069_v8  ;;  %v2006_v17 = vmax.f32 %v1878_v9, 0.0  ;;  %v2070_v18 = vmax.f32 %v1942_v10, 0.0 }
 0x160   : > { %v2007_v21 = vmax.f32 %v1879_v13, 0.0  ;;  %v2071_v22 = vmax.f32 %v1943_v14, 0.0  ;;  %v1880_v23 = vadd.f32 %v3352_v61, %v1740_v15  ;;  %v1944_v24 = vadd.f32 %v3352_v61, %v1804_v16 }
 0x161   : > { %v1063_v19 = vpop.f32.mrf.mxu0  ;;  %v1223_v20 = vpop.f32.mrf.mxu1  ;;  %2134 = vst [vmem:[%s3365_s29 + $0xb8] sm:$0xff] %v2006_v17  ;;  %2198 = vst [vmem:[%s3365_s29 + $0x2b8] sm:$0xff] %v2070_v18  ;;  %v1741_v25 = vmul.f32 %v3346_v55, %v1061_v11  ;;  %v1805_v26 = vmul.f32 %v3346_v55, %v1221_v12 }
 0x162   : > { %2135 = vst [vmem:[%s3365_s29 + $0xc0] sm:$0xff] %v2007_v21  ;;  %2199 = vst [vmem:[%s3365_s29 + $0x2c0] sm:$0xff] %v2071_v22  ;;  %v2008_v29 = vmax.f32 %v1880_v23, 0.0  ;;  %v2072_v30 = vmax.f32 %v1944_v24, 0.0  ;;  %v1742_v33 = vmul.f32 %v3350_v59, %v1063_v19  ;;  %v1806_v34 = vmul.f32 %v3350_v59, %v1223_v20 }
 0x163   : > { %v1067_v27 = vpop.f32.mrf.mxu0  ;;  %v1227_v28 = vpop.f32.mrf.mxu1  ;;  %v1881_v31 = vadd.f32 %v3348_v58, %v1741_v25  ;;  %v1945_v32 = vadd.f32 %v3348_v58, %v1805_v26 }
 0x164   : > { %2136 = vst [vmem:[%s3365_s29 + $0xc8] sm:$0xff] %v2008_v29  ;;  %2200 = vst [vmem:[%s3365_s29 + $0x2c8] sm:$0xff] %v2072_v30  ;;  %v1743_v37 = vmul.f32 %v3346_v55, %v1067_v27  ;;  %v1807_v38 = vmul.f32 %v3346_v55, %v1227_v28  ;;  %v1882_v41 = vadd.f32 %v3352_v61, %v1742_v33 }
 0x165   : > { %v1069_v35 = vpop.f32.mrf.mxu0  ;;  %v1229_v36 = vpop.f32.mrf.mxu1  ;;  %v2009_v39 = vmax.f32 %v1881_v31, 0.0  ;;  %v2073_v40 = vmax.f32 %v1945_v32, 0.0  ;;  %v1946_v42 = vadd.f32 %v3352_v61, %v1806_v34 }
 0x166   : > { %v1883_v45 = vadd.f32 %v3348_v58, %v1743_v37  ;;  %v1947_v46 = vadd.f32 %v3348_v58, %v1807_v38  ;;  %v1744_v47 = vmul.f32 %v3350_v59, %v1069_v35  ;;  %v1808_v48 = vmul.f32 %v3350_v59, %v1229_v36 }
 0x167   : > { %v1071_v43 = vpop.f32.mrf.mxu0  ;;  %v1231_v44 = vpop.f32.mrf.mxu1  ;;  %2137 = vst [vmem:[%s3365_s29 + $0xd0] sm:$0xff] %v2009_v39  ;;  %2201 = vst [vmem:[%s3365_s29 + $0x2d0] sm:$0xff] %v2073_v40  ;;  %v2010_v49 = vmax.f32 %v1882_v41, 0.0  ;;  %v2074_v50 = vmax.f32 %v1946_v42, 0.0 }
 0x168   : > { %v2011_v53 = vmax.f32 %v1883_v45, 0.0  ;;  %v2075_v54 = vmax.f32 %v1947_v46, 0.0  ;;  %v1884_v56 = vadd.f32 %v3352_v61, %v1744_v47  ;;  %v1948_v57 = vadd.f32 %v3352_v61, %v1808_v48 }
 0x169   : > { %v1073_v51 = vpop.f32.mrf.mxu0  ;;  %v1233_v52 = vpop.f32.mrf.mxu1  ;;  %2138 = vst [vmem:[%s3365_s29 + $0xd8] sm:$0xff] %v2010_v49  ;;  %2202 = vst [vmem:[%s3365_s29 + $0x2d8] sm:$0xff] %v2074_v50  ;;  %v1745_v60 = vmul.f32 %v3346_v55, %v1071_v43  ;;  %v1809_v62 = vmul.f32 %v3346_v55, %v1231_v44 }
 0x16a   : > { %2139 = vst [vmem:[%s3365_s29 + $0xe0] sm:$0xff] %v2011_v53  ;;  %2203 = vst [vmem:[%s3365_s29 + $0x2e0] sm:$0xff] %v2075_v54  ;;  %v2012_v1 = vmax.f32 %v1884_v56, 0.0  ;;  %v2076_v2 = vmax.f32 %v1948_v57, 0.0  ;;  %v1746_v5 = vmul.f32 %v3350_v59, %v1073_v51  ;;  %v1810_v6 = vmul.f32 %v3350_v59, %v1233_v52 }
 0x16b   : > { %v1077_v63 = vpop.f32.mrf.mxu0  ;;  %v1237_v0 = vpop.f32.mrf.mxu1  ;;  %v1885_v3 = vadd.f32 %v3348_v58, %v1745_v60  ;;  %v1949_v4 = vadd.f32 %v3348_v58, %v1809_v62 }
 0x16c   : > { %2140 = vst [vmem:[%s3365_s29 + $0xe8] sm:$0xff] %v2012_v1  ;;  %2204 = vst [vmem:[%s3365_s29 + $0x2e8] sm:$0xff] %v2076_v2  ;;  %v1747_v9 = vmul.f32 %v3346_v55, %v1077_v63  ;;  %v1811_v10 = vmul.f32 %v3346_v55, %v1237_v0  ;;  %v1886_v13 = vadd.f32 %v3352_v61, %v1746_v5 }
 0x16d   : > { %v1079_v7 = vpop.f32.mrf.mxu0  ;;  %v1239_v8 = vpop.f32.mrf.mxu1  ;;  %v2013_v11 = vmax.f32 %v1885_v3, 0.0  ;;  %v2077_v12 = vmax.f32 %v1949_v4, 0.0  ;;  %v1950_v14 = vadd.f32 %v3352_v61, %v1810_v6 }
 0x16e   : > { %v1887_v17 = vadd.f32 %v3348_v58, %v1747_v9  ;;  %v1951_v18 = vadd.f32 %v3348_v58, %v1811_v10  ;;  %v1748_v19 = vmul.f32 %v3350_v59, %v1079_v7  ;;  %v1812_v20 = vmul.f32 %v3350_v59, %v1239_v8 }
 0x16f   : > { %v1081_v15 = vpop.f32.mrf.mxu0  ;;  %v1241_v16 = vpop.f32.mrf.mxu1  ;;  %2141 = vst [vmem:[%s3365_s29 + $0xf0] sm:$0xff] %v2013_v11  ;;  %2205 = vst [vmem:[%s3365_s29 + $0x2f0] sm:$0xff] %v2077_v12  ;;  %v2014_v21 = vmax.f32 %v1886_v13, 0.0  ;;  %v2078_v22 = vmax.f32 %v1950_v14, 0.0 }
 0x170   : > { %v2015_v25 = vmax.f32 %v1887_v17, 0.0  ;;  %v2079_v26 = vmax.f32 %v1951_v18, 0.0  ;;  %v1888_v27 = vadd.f32 %v3352_v61, %v1748_v19  ;;  %v1952_v28 = vadd.f32 %v3352_v61, %v1812_v20 }
 0x171   : > { %v1083_v23 = vpop.f32.mrf.mxu0  ;;  %v1243_v24 = vpop.f32.mrf.mxu1  ;;  %2142 = vst [vmem:[%s3365_s29 + $0xf8] sm:$0xff] %v2014_v21  ;;  %2206 = vst [vmem:[%s3365_s29 + $0x2f8] sm:$0xff] %v2078_v22  ;;  %v1749_v29 = vmul.f32 %v3346_v55, %v1081_v15  ;;  %v1813_v30 = vmul.f32 %v3346_v55, %v1241_v16 }
 0x172   : > { %2143 = vst [vmem:[%s3365_s29 + $0x100] sm:$0xff] %v2015_v25  ;;  %2207 = vst [vmem:[%s3365_s29 + $0x300] sm:$0xff] %v2079_v26  ;;  %v2016_v33 = vmax.f32 %v1888_v27, 0.0  ;;  %v2080_v34 = vmax.f32 %v1952_v28, 0.0  ;;  %v1750_v37 = vmul.f32 %v3350_v59, %v1083_v23  ;;  %v1814_v38 = vmul.f32 %v3350_v59, %v1243_v24 }
 0x173   : > { %v1087_v31 = vpop.f32.mrf.mxu0  ;;  %v1247_v32 = vpop.f32.mrf.mxu1  ;;  %v1889_v35 = vadd.f32 %v3348_v58, %v1749_v29  ;;  %v1953_v36 = vadd.f32 %v3348_v58, %v1813_v30 }
 0x174   : > { %2144 = vst [vmem:[%s3365_s29 + $0x108] sm:$0xff] %v2016_v33  ;;  %2208 = vst [vmem:[%s3365_s29 + $0x308] sm:$0xff] %v2080_v34  ;;  %v1751_v41 = vmul.f32 %v3346_v55, %v1087_v31  ;;  %v1815_v42 = vmul.f32 %v3346_v55, %v1247_v32  ;;  %v1890_v45 = vadd.f32 %v3352_v61, %v1750_v37 }
 0x175   : > { %v1089_v39 = vpop.f32.mrf.mxu0  ;;  %v1249_v40 = vpop.f32.mrf.mxu1  ;;  %v2017_v43 = vmax.f32 %v1889_v35, 0.0  ;;  %v2081_v44 = vmax.f32 %v1953_v36, 0.0  ;;  %v1954_v46 = vadd.f32 %v3352_v61, %v1814_v38 }
 0x176   : > { %v1891_v49 = vadd.f32 %v3348_v58, %v1751_v41  ;;  %v1955_v50 = vadd.f32 %v3348_v58, %v1815_v42  ;;  %v1752_v51 = vmul.f32 %v3350_v59, %v1089_v39  ;;  %v1816_v52 = vmul.f32 %v3350_v59, %v1249_v40 }
 0x177   : > { %v1091_v47 = vpop.f32.mrf.mxu0  ;;  %v1251_v48 = vpop.f32.mrf.mxu1  ;;  %2145 = vst [vmem:[%s3365_s29 + $0x110] sm:$0xff] %v2017_v43  ;;  %2209 = vst [vmem:[%s3365_s29 + $0x310] sm:$0xff] %v2081_v44  ;;  %v2018_v53 = vmax.f32 %v1890_v45, 0.0  ;;  %v2082_v54 = vmax.f32 %v1954_v46, 0.0 }
 0x178   : > { %v2019_v60 = vmax.f32 %v1891_v49, 0.0  ;;  %v2083_v62 = vmax.f32 %v1955_v50, 0.0  ;;  %v1892_v63 = vadd.f32 %v3352_v61, %v1752_v51  ;;  %v1956_v0 = vadd.f32 %v3352_v61, %v1816_v52 }
 0x179   : > { %v1093_v56 = vpop.f32.mrf.mxu0  ;;  %v1253_v57 = vpop.f32.mrf.mxu1  ;;  %2146 = vst [vmem:[%s3365_s29 + $0x118] sm:$0xff] %v2018_v53  ;;  %2210 = vst [vmem:[%s3365_s29 + $0x318] sm:$0xff] %v2082_v54  ;;  %v1753_v1 = vmul.f32 %v3346_v55, %v1091_v47  ;;  %v1817_v2 = vmul.f32 %v3346_v55, %v1251_v48 }
 0x17a   : > { %2147 = vst [vmem:[%s3365_s29 + $0x120] sm:$0xff] %v2019_v60  ;;  %2211 = vst [vmem:[%s3365_s29 + $0x320] sm:$0xff] %v2083_v62  ;;  %v2020_v5 = vmax.f32 %v1892_v63, 0.0  ;;  %v2084_v6 = vmax.f32 %v1956_v0, 0.0  ;;  %v1754_v9 = vmul.f32 %v3350_v59, %v1093_v56  ;;  %v1818_v10 = vmul.f32 %v3350_v59, %v1253_v57 }
 0x17b   : > { %v1097_v3 = vpop.f32.mrf.mxu0  ;;  %v1257_v4 = vpop.f32.mrf.mxu1  ;;  %v1893_v7 = vadd.f32 %v3348_v58, %v1753_v1  ;;  %v1957_v8 = vadd.f32 %v3348_v58, %v1817_v2 }
 0x17c   : > { %2148 = vst [vmem:[%s3365_s29 + $0x128] sm:$0xff] %v2020_v5  ;;  %2212 = vst [vmem:[%s3365_s29 + $0x328] sm:$0xff] %v2084_v6  ;;  %v1755_v13 = vmul.f32 %v3346_v55, %v1097_v3  ;;  %v1819_v14 = vmul.f32 %v3346_v55, %v1257_v4  ;;  %v1894_v17 = vadd.f32 %v3352_v61, %v1754_v9 }
 0x17d   : > { %v1099_v11 = vpop.f32.mrf.mxu0  ;;  %v1259_v12 = vpop.f32.mrf.mxu1  ;;  %v2021_v15 = vmax.f32 %v1893_v7, 0.0  ;;  %v2085_v16 = vmax.f32 %v1957_v8, 0.0  ;;  %v1958_v18 = vadd.f32 %v3352_v61, %v1818_v10 }
 0x17e   : > { %v1895_v21 = vadd.f32 %v3348_v58, %v1755_v13  ;;  %v1959_v22 = vadd.f32 %v3348_v58, %v1819_v14  ;;  %v1756_v23 = vmul.f32 %v3350_v59, %v1099_v11  ;;  %v1820_v24 = vmul.f32 %v3350_v59, %v1259_v12 }
 0x17f   : > { %v1101_v19 = vpop.f32.mrf.mxu0  ;;  %v1261_v20 = vpop.f32.mrf.mxu1  ;;  %2149 = vst [vmem:[%s3365_s29 + $0x130] sm:$0xff] %v2021_v15  ;;  %2213 = vst [vmem:[%s3365_s29 + $0x330] sm:$0xff] %v2085_v16  ;;  %v2022_v25 = vmax.f32 %v1894_v17, 0.0  ;;  %v2086_v26 = vmax.f32 %v1958_v18, 0.0 }
 0x180   : > { %v2023_v29 = vmax.f32 %v1895_v21, 0.0  ;;  %v2087_v30 = vmax.f32 %v1959_v22, 0.0  ;;  %v1896_v31 = vadd.f32 %v3352_v61, %v1756_v23  ;;  %v1960_v32 = vadd.f32 %v3352_v61, %v1820_v24 }
 0x181   : > { %v1103_v27 = vpop.f32.mrf.mxu0  ;;  %v1263_v28 = vpop.f32.mrf.mxu1  ;;  %2150 = vst [vmem:[%s3365_s29 + $0x138] sm:$0xff] %v2022_v25  ;;  %2214 = vst [vmem:[%s3365_s29 + $0x338] sm:$0xff] %v2086_v26  ;;  %v1757_v33 = vmul.f32 %v3346_v55, %v1101_v19  ;;  %v1821_v34 = vmul.f32 %v3346_v55, %v1261_v20 }
 0x182   : > { %2151 = vst [vmem:[%s3365_s29 + $0x140] sm:$0xff] %v2023_v29  ;;  %2215 = vst [vmem:[%s3365_s29 + $0x340] sm:$0xff] %v2087_v30  ;;  %v2024_v37 = vmax.f32 %v1896_v31, 0.0  ;;  %v2088_v38 = vmax.f32 %v1960_v32, 0.0  ;;  %v1758_v41 = vmul.f32 %v3350_v59, %v1103_v27  ;;  %v1822_v42 = vmul.f32 %v3350_v59, %v1263_v28 }
 0x183   : > { %v1107_v35 = vpop.f32.mrf.mxu0  ;;  %v1267_v36 = vpop.f32.mrf.mxu1  ;;  %v1897_v39 = vadd.f32 %v3348_v58, %v1757_v33  ;;  %v1961_v40 = vadd.f32 %v3348_v58, %v1821_v34 }
 0x184   : > { %2152 = vst [vmem:[%s3365_s29 + $0x148] sm:$0xff] %v2024_v37  ;;  %2216 = vst [vmem:[%s3365_s29 + $0x348] sm:$0xff] %v2088_v38  ;;  %v1759_v45 = vmul.f32 %v3346_v55, %v1107_v35  ;;  %v1823_v46 = vmul.f32 %v3346_v55, %v1267_v36  ;;  %v1898_v49 = vadd.f32 %v3352_v61, %v1758_v41 }
 0x185   : > { %v1109_v43 = vpop.f32.mrf.mxu0  ;;  %v1269_v44 = vpop.f32.mrf.mxu1  ;;  %v2025_v47 = vmax.f32 %v1897_v39, 0.0  ;;  %v2089_v48 = vmax.f32 %v1961_v40, 0.0  ;;  %v1962_v50 = vadd.f32 %v3352_v61, %v1822_v42 }
 0x186   : > { %v1899_v53 = vadd.f32 %v3348_v58, %v1759_v45  ;;  %v1963_v54 = vadd.f32 %v3348_v58, %v1823_v46  ;;  %v1760_v56 = vmul.f32 %v3350_v59, %v1109_v43  ;;  %v1824_v57 = vmul.f32 %v3350_v59, %v1269_v44 }
 0x187   : > { %v1111_v51 = vpop.f32.mrf.mxu0  ;;  %v1271_v52 = vpop.f32.mrf.mxu1  ;;  %2153 = vst [vmem:[%s3365_s29 + $0x150] sm:$0xff] %v2025_v47  ;;  %2217 = vst [vmem:[%s3365_s29 + $0x350] sm:$0xff] %v2089_v48  ;;  %v2026_v60 = vmax.f32 %v1898_v49, 0.0  ;;  %v2090_v62 = vmax.f32 %v1962_v50, 0.0 }
 0x188   : > { %v2027_v1 = vmax.f32 %v1899_v53, 0.0  ;;  %v2091_v2 = vmax.f32 %v1963_v54, 0.0  ;;  %v1900_v3 = vadd.f32 %v3352_v61, %v1760_v56  ;;  %v1964_v4 = vadd.f32 %v3352_v61, %v1824_v57 }
 0x189   : > { %v1113_v63 = vpop.f32.mrf.mxu0  ;;  %v1273_v0 = vpop.f32.mrf.mxu1  ;;  %2154 = vst [vmem:[%s3365_s29 + $0x158] sm:$0xff] %v2026_v60  ;;  %2218 = vst [vmem:[%s3365_s29 + $0x358] sm:$0xff] %v2090_v62  ;;  %v1761_v5 = vmul.f32 %v3346_v55, %v1111_v51  ;;  %v1825_v6 = vmul.f32 %v3346_v55, %v1271_v52 }
 0x18a   : > { %2155 = vst [vmem:[%s3365_s29 + $0x160] sm:$0xff] %v2027_v1  ;;  %2219 = vst [vmem:[%s3365_s29 + $0x360] sm:$0xff] %v2091_v2  ;;  %v2028_v9 = vmax.f32 %v1900_v3, 0.0  ;;  %v2092_v10 = vmax.f32 %v1964_v4, 0.0  ;;  %v1762_v13 = vmul.f32 %v3350_v59, %v1113_v63  ;;  %v1826_v14 = vmul.f32 %v3350_v59, %v1273_v0 }
 0x18b   : > { %v1117_v7 = vpop.f32.mrf.mxu0  ;;  %v1277_v8 = vpop.f32.mrf.mxu1  ;;  %v1901_v11 = vadd.f32 %v3348_v58, %v1761_v5  ;;  %v1965_v12 = vadd.f32 %v3348_v58, %v1825_v6 }
 0x18c   : > { %2156 = vst [vmem:[%s3365_s29 + $0x168] sm:$0xff] %v2028_v9  ;;  %2220 = vst [vmem:[%s3365_s29 + $0x368] sm:$0xff] %v2092_v10  ;;  %v1763_v17 = vmul.f32 %v3346_v55, %v1117_v7  ;;  %v1827_v18 = vmul.f32 %v3346_v55, %v1277_v8  ;;  %v1902_v21 = vadd.f32 %v3352_v61, %v1762_v13 }
 0x18d   : > { %v1119_v15 = vpop.f32.mrf.mxu0  ;;  %v1279_v16 = vpop.f32.mrf.mxu1  ;;  %v2029_v19 = vmax.f32 %v1901_v11, 0.0  ;;  %v2093_v20 = vmax.f32 %v1965_v12, 0.0  ;;  %v1966_v22 = vadd.f32 %v3352_v61, %v1826_v14 }
 0x18e   : > { %v1903_v25 = vadd.f32 %v3348_v58, %v1763_v17  ;;  %v1967_v26 = vadd.f32 %v3348_v58, %v1827_v18  ;;  %v1764_v27 = vmul.f32 %v3350_v59, %v1119_v15  ;;  %v1828_v28 = vmul.f32 %v3350_v59, %v1279_v16 }
 0x18f   : > { %v1121_v23 = vpop.f32.mrf.mxu0  ;;  %v1281_v24 = vpop.f32.mrf.mxu1  ;;  %2157 = vst [vmem:[%s3365_s29 + $0x170] sm:$0xff] %v2029_v19  ;;  %2221 = vst [vmem:[%s3365_s29 + $0x370] sm:$0xff] %v2093_v20  ;;  %v2030_v29 = vmax.f32 %v1902_v21, 0.0  ;;  %v2094_v30 = vmax.f32 %v1966_v22, 0.0 }
 0x190   : > { %v2031_v33 = vmax.f32 %v1903_v25, 0.0  ;;  %v2095_v34 = vmax.f32 %v1967_v26, 0.0  ;;  %v1904_v35 = vadd.f32 %v3352_v61, %v1764_v27  ;;  %v1968_v36 = vadd.f32 %v3352_v61, %v1828_v28 }
 0x191   : > { %v1123_v31 = vpop.f32.mrf.mxu0  ;;  %v1283_v32 = vpop.f32.mrf.mxu1  ;;  %2158 = vst [vmem:[%s3365_s29 + $0x178] sm:$0xff] %v2030_v29  ;;  %2222 = vst [vmem:[%s3365_s29 + $0x378] sm:$0xff] %v2094_v30  ;;  %v1765_v37 = vmul.f32 %v3346_v55, %v1121_v23  ;;  %v1829_v38 = vmul.f32 %v3346_v55, %v1281_v24 }
 0x192   : > { %2159 = vst [vmem:[%s3365_s29 + $0x180] sm:$0xff] %v2031_v33  ;;  %2223 = vst [vmem:[%s3365_s29 + $0x380] sm:$0xff] %v2095_v34  ;;  %v2032_v41 = vmax.f32 %v1904_v35, 0.0  ;;  %v2096_v42 = vmax.f32 %v1968_v36, 0.0  ;;  %v1766_v45 = vmul.f32 %v3350_v59, %v1123_v31  ;;  %v1830_v46 = vmul.f32 %v3350_v59, %v1283_v32 }
 0x193   : > { %v1127_v39 = vpop.f32.mrf.mxu0  ;;  %v1287_v40 = vpop.f32.mrf.mxu1  ;;  %v1905_v43 = vadd.f32 %v3348_v58, %v1765_v37  ;;  %v1969_v44 = vadd.f32 %v3348_v58, %v1829_v38 }
 0x194   : > { %2160 = vst [vmem:[%s3365_s29 + $0x188] sm:$0xff] %v2032_v41  ;;  %2224 = vst [vmem:[%s3365_s29 + $0x388] sm:$0xff] %v2096_v42  ;;  %v1767_v49 = vmul.f32 %v3346_v55, %v1127_v39  ;;  %v1831_v50 = vmul.f32 %v3346_v55, %v1287_v40  ;;  %v1906_v53 = vadd.f32 %v3352_v61, %v1766_v45 }
 0x195   : > { %v1129_v47 = vpop.f32.mrf.mxu0  ;;  %v1289_v48 = vpop.f32.mrf.mxu1  ;;  %v2033_v51 = vmax.f32 %v1905_v43, 0.0  ;;  %v2097_v52 = vmax.f32 %v1969_v44, 0.0  ;;  %v1970_v54 = vadd.f32 %v3352_v61, %v1830_v46 }
 0x196   : > { %v1907_v60 = vadd.f32 %v3348_v58, %v1767_v49  ;;  %v1971_v62 = vadd.f32 %v3348_v58, %v1831_v50  ;;  %v1768_v63 = vmul.f32 %v3350_v59, %v1129_v47  ;;  %v1832_v0 = vmul.f32 %v3350_v59, %v1289_v48 }
 0x197   : > { %v1131_v56 = vpop.f32.mrf.mxu0  ;;  %v1291_v57 = vpop.f32.mrf.mxu1  ;;  %2161 = vst [vmem:[%s3365_s29 + $0x190] sm:$0xff] %v2033_v51  ;;  %2225 = vst [vmem:[%s3365_s29 + $0x390] sm:$0xff] %v2097_v52  ;;  %v2034_v1 = vmax.f32 %v1906_v53, 0.0  ;;  %v2098_v2 = vmax.f32 %v1970_v54, 0.0 }
 0x198   : > { %v2035_v5 = vmax.f32 %v1907_v60, 0.0  ;;  %v2099_v6 = vmax.f32 %v1971_v62, 0.0  ;;  %v1908_v7 = vadd.f32 %v3352_v61, %v1768_v63  ;;  %v1972_v8 = vadd.f32 %v3352_v61, %v1832_v0 }
 0x199   : > { %v1133_v3 = vpop.f32.mrf.mxu0  ;;  %v1293_v4 = vpop.f32.mrf.mxu1  ;;  %2162 = vst [vmem:[%s3365_s29 + $0x198] sm:$0xff] %v2034_v1  ;;  %2226 = vst [vmem:[%s3365_s29 + $0x398] sm:$0xff] %v2098_v2  ;;  %v1769_v9 = vmul.f32 %v3346_v55, %v1131_v56  ;;  %v1833_v10 = vmul.f32 %v3346_v55, %v1291_v57 }
 0x19a   : > { %2163 = vst [vmem:[%s3365_s29 + $0x1a0] sm:$0xff] %v2035_v5  ;;  %2227 = vst [vmem:[%s3365_s29 + $0x3a0] sm:$0xff] %v2099_v6  ;;  %v2036_v13 = vmax.f32 %v1908_v7, 0.0  ;;  %v2100_v14 = vmax.f32 %v1972_v8, 0.0  ;;  %v1770_v17 = vmul.f32 %v3350_v59, %v1133_v3  ;;  %v1834_v18 = vmul.f32 %v3350_v59, %v1293_v4 }
 0x19b   : > { %v1137_v11 = vpop.f32.mrf.mxu0  ;;  %v1297_v12 = vpop.f32.mrf.mxu1  ;;  %v1909_v15 = vadd.f32 %v3348_v58, %v1769_v9  ;;  %v1973_v16 = vadd.f32 %v3348_v58, %v1833_v10 }
 0x19c   : > { %2164 = vst [vmem:[%s3365_s29 + $0x1a8] sm:$0xff] %v2036_v13  ;;  %2228 = vst [vmem:[%s3365_s29 + $0x3a8] sm:$0xff] %v2100_v14  ;;  %v1771_v21 = vmul.f32 %v3346_v55, %v1137_v11  ;;  %v1835_v22 = vmul.f32 %v3346_v55, %v1297_v12  ;;  %v1910_v25 = vadd.f32 %v3352_v61, %v1770_v17 }
 0x19d   : > { %v1139_v19 = vpop.f32.mrf.mxu0  ;;  %v1299_v20 = vpop.f32.mrf.mxu1  ;;  %v2037_v23 = vmax.f32 %v1909_v15, 0.0  ;;  %v2101_v24 = vmax.f32 %v1973_v16, 0.0  ;;  %v1974_v26 = vadd.f32 %v3352_v61, %v1834_v18 }
 0x19e   : > { %v1911_v29 = vadd.f32 %v3348_v58, %v1771_v21  ;;  %v1975_v30 = vadd.f32 %v3348_v58, %v1835_v22  ;;  %v1772_v31 = vmul.f32 %v3350_v59, %v1139_v19  ;;  %v1836_v32 = vmul.f32 %v3350_v59, %v1299_v20 }
 0x19f   : > { %v1141_v27 = vpop.f32.mrf.mxu0  ;;  %v1301_v28 = vpop.f32.mrf.mxu1  ;;  %2165 = vst [vmem:[%s3365_s29 + $0x1b0] sm:$0xff] %v2037_v23  ;;  %2229 = vst [vmem:[%s3365_s29 + $0x3b0] sm:$0xff] %v2101_v24  ;;  %v2038_v33 = vmax.f32 %v1910_v25, 0.0  ;;  %v2102_v34 = vmax.f32 %v1974_v26, 0.0  ;;  %v2270_v26 = vld [vmem:[%s3365_s29 + $0x18] sm:$0xff] (%p3107_p9) }
 0x1a0   : > { %v2039_v37 = vmax.f32 %v1911_v29, 0.0  ;;  %v2103_v38 = vmax.f32 %v1975_v30, 0.0  ;;  %v1912_v39 = vadd.f32 %v3352_v61, %v1772_v31  ;;  %v1976_v40 = vadd.f32 %v3352_v61, %v1836_v32  ;;  %2271 = vst [vmem:[%s3750_s6 + $0x78] sm:$0xff] (%p3107_p9), %v2270_v26  ;;  %v2276_v29 = vld [vmem:[%s3365_s29 + $0x30] sm:$0xff] (%p3107_p9)  ;;  %v2278_v30 = vld [vmem:[%s3365_s29 + $0x38] sm:$0xff] (%p3107_p9)  ;;  %v2280_v31 = vld [vmem:[%s3365_s29 + $0x40] sm:$0xff] (%p3107_p9) }
 0x1a1   : > { %v1143_v35 = vpop.f32.mrf.mxu0  ;;  %v1303_v36 = vpop.f32.mrf.mxu1  ;;  %2166 = vst [vmem:[%s3365_s29 + $0x1b8] sm:$0xff] %v2038_v33  ;;  %2230 = vst [vmem:[%s3365_s29 + $0x3b8] sm:$0xff] %v2102_v34  ;;  %v1773_v41 = vmul.f32 %v3346_v55, %v1141_v27  ;;  %v1837_v42 = vmul.f32 %v3346_v55, %v1301_v28  ;;  %v2272_v27 = vld [vmem:[%s3365_s29 + $0x20] sm:$0xff] (%p3107_p9)  ;;  %v2274_v28 = vld [vmem:[%s3365_s29 + $0x28] sm:$0xff] (%p3107_p9) }
 0x1a2   : > { %2167 = vst [vmem:[%s3365_s29 + $0x1c0] sm:$0xff] %v2039_v37  ;;  %2231 = vst [vmem:[%s3365_s29 + $0x3c0] sm:$0xff] %v2103_v38  ;;  %v2040_v45 = vmax.f32 %v1912_v39, 0.0  ;;  %v2104_v46 = vmax.f32 %v1976_v40, 0.0  ;;  %v1774_v49 = vmul.f32 %v3350_v59, %v1143_v35  ;;  %v1838_v50 = vmul.f32 %v3350_v59, %v1303_v36  ;;  %v2282_v32 = vld [vmem:[%s3365_s29 + $0x48] sm:$0xff] (%p3107_p9)  ;;  %v2284_v33 = vld [vmem:[%s3365_s29 + $0x50] sm:$0xff] (%p3107_p9) }
 0x1a3   : > { %v1147_v43 = vpop.f32.mrf.mxu0  ;;  %v1307_v44 = vpop.f32.mrf.mxu1  ;;  %v1913_v47 = vadd.f32 %v3348_v58, %v1773_v41  ;;  %v1977_v48 = vadd.f32 %v3348_v58, %v1837_v42  ;;  %2273 = vst [vmem:[%s3750_s6 + $0xe0] sm:$0xff] (%p3107_p9), %v2272_v27  ;;  %2275 = vst [vmem:[%s3750_s6 + $0xe8] sm:$0xff] (%p3107_p9), %v2274_v28  ;;  %v2286_v34 = vld [vmem:[%s3365_s29 + $0x58] sm:$0xff] (%p3107_p9)  ;;  %v2288_v35 = vld [vmem:[%s3365_s29 + $0x60] sm:$0xff] (%p3107_p9) }
 0x1a4   : > { %2168 = vst [vmem:[%s3365_s29 + $0x1c8] sm:$0xff] %v2040_v45  ;;  %2232 = vst [vmem:[%s3365_s29 + $0x3c8] sm:$0xff] %v2104_v46  ;;  %v1775_v53 = vmul.f32 %v3346_v55, %v1147_v43  ;;  %v1839_v54 = vmul.f32 %v3346_v55, %v1307_v44  ;;  %v1914_v60 = vadd.f32 %v3352_v61, %v1774_v49  ;;  %v2290_v36 = vld [vmem:[%s3365_s29 + $0x68] sm:$0xff] (%p3107_p9)  ;;  %v2292_v37 = vld [vmem:[%s3365_s29 + $0x70] sm:$0xff] (%p3107_p9) }
 0x1a5   : > { %v1149_v51 = vpop.f32.mrf.mxu0  ;;  %v1309_v52 = vpop.f32.mrf.mxu1  ;;  %v2041_v56 = vmax.f32 %v1913_v47, 0.0  ;;  %v2105_v57 = vmax.f32 %v1977_v48, 0.0  ;;  %v1978_v62 = vadd.f32 %v3352_v61, %v1838_v50  ;;  %2277 = vst [vmem:[%s3750_s6 + $0x150] sm:$0xff] (%p3107_p9), %v2276_v29  ;;  %2279 = vst [vmem:[%s3750_s6 + $0x158] sm:$0xff] (%p3107_p9), %v2278_v30  ;;  %v2294_v38 = vld [vmem:[%s3365_s29 + $0x78] sm:$0xff] (%p3107_p9)  ;;  %v2296_v39 = vld [vmem:[%s3365_s29 + $0x80] sm:$0xff] (%p3107_p9) }
 0x1a6   : > { %v1915_v1 = vadd.f32 %v3348_v58, %v1775_v53  ;;  %v1979_v2 = vadd.f32 %v3348_v58, %v1839_v54  ;;  %v1776_v3 = vmul.f32 %v3350_v59, %v1149_v51  ;;  %v1840_v4 = vmul.f32 %v3350_v59, %v1309_v52  ;;  %2281 = vst [vmem:[%s3750_s6 + $0x1c0] sm:$0xff] (%p3107_p9), %v2280_v31  ;;  %v2298_v40 = vld [vmem:[%s3365_s29 + $0x88] sm:$0xff] (%p3107_p9)  ;;  %v2300_v41 = vld [vmem:[%s3365_s29 + $0x90] sm:$0xff] (%p3107_p9)  ;;  %v2302_v42 = vld [vmem:[%s3365_s29 + $0x98] sm:$0xff] (%p3107_p9) }
 0x1a7   : > { %v1151_v63 = vpop.f32.mrf.mxu0  ;;  %v1311_v0 = vpop.f32.mrf.mxu1  ;;  %2169 = vst [vmem:[%s3365_s29 + $0x1d0] sm:$0xff] %v2041_v56  ;;  %2233 = vst [vmem:[%s3365_s29 + $0x3d0] sm:$0xff] %v2105_v57  ;;  %v2042_v5 = vmax.f32 %v1914_v60, 0.0  ;;  %v2106_v6 = vmax.f32 %v1978_v62, 0.0  ;;  %v2304_v43 = vld [vmem:[%s3365_s29 + $0xa0] sm:$0xff] (%p3107_p9)  ;;  %v2306_v44 = vld [vmem:[%s3365_s29 + $0xa8] sm:$0xff] (%p3107_p9) }
 0x1a8   : > { %v2043_v9 = vmax.f32 %v1915_v1, 0.0  ;;  %v2107_v10 = vmax.f32 %v1979_v2, 0.0  ;;  %v1916_v11 = vadd.f32 %v3352_v61, %v1776_v3  ;;  %v1980_v12 = vadd.f32 %v3352_v61, %v1840_v4  ;;  %2283 = vst [vmem:[%s3750_s6 + $0x1c8] sm:$0xff] (%p3107_p9), %v2282_v32  ;;  %2285 = vst [vmem:[%s3750_s6 + $0x230] sm:$0xff] (%p3107_p9), %v2284_v33  ;;  %v2308_v45 = vld [vmem:[%s3365_s29 + $0xb0] sm:$0xff] (%p3107_p9)  ;;  %v2310_v46 = vld [vmem:[%s3365_s29 + $0xb8] sm:$0xff] (%p3107_p9) }
 0x1a9   : > { %v1153_v7 = vpop.f32.mrf.mxu0  ;;  %v1313_v8 = vpop.f32.mrf.mxu1  ;;  %2170 = vst [vmem:[%s3365_s29 + $0x1d8] sm:$0xff] %v2042_v5  ;;  %2234 = vst [vmem:[%s3365_s29 + $0x3d8] sm:$0xff] %v2106_v6  ;;  %v1777_v13 = vmul.f32 %v3346_v55, %v1151_v63  ;;  %v1841_v14 = vmul.f32 %v3346_v55, %v1311_v0  ;;  %v2312_v47 = vld [vmem:[%s3365_s29 + $0xc0] sm:$0xff] (%p3107_p9)  ;;  %v2314_v48 = vld [vmem:[%s3365_s29 + $0xc8] sm:$0xff] (%p3107_p9) }
 0x1aa   : > { %2171 = vst [vmem:[%s3365_s29 + $0x1e0] sm:$0xff] %v2043_v9  ;;  %2235 = vst [vmem:[%s3365_s29 + $0x3e0] sm:$0xff] %v2107_v10  ;;  %v2044_v15 = vmax.f32 %v1916_v11, 0.0  ;;  %v2108_v16 = vmax.f32 %v1980_v12, 0.0  ;;  %v1778_v19 = vmul.f32 %v3350_v59, %v1153_v7  ;;  %v1842_v20 = vmul.f32 %v3350_v59, %v1313_v8  ;;  %v2266_v59 = vld [vmem:[%s3365_s29 + $0x8] sm:$0xff] (%p3107_p9)  ;;  %v2316_v49 = vld [vmem:[%s3365_s29 + $0xd0] sm:$0xff] (%p3107_p9) }
 0x1ab   : > { %v1917_v17 = vadd.f32 %v3348_v58, %v1777_v13  ;;  %v1981_v18 = vadd.f32 %v3348_v58, %v1841_v14  ;;  %v2264_v58 = vld [vmem:[%s3365_s29] sm:$0xff] (%p3107_p9)  ;;  %2267 = vst [vmem:[%s3750_s6 + $0x8] sm:$0xff] (%p3107_p9), %v2266_v59  ;;  %2287 = vst [vmem:[%s3750_s6 + $0x238] sm:$0xff] (%p3107_p9), %v2286_v34  ;;  %v2318_v50 = vld [vmem:[%s3365_s29 + $0xd8] sm:$0xff] (%p3107_p9) }
 0x1ac   : > { %2172 = vst [vmem:[%s3365_s29 + $0x1e8] sm:$0xff] %v2044_v15  ;;  %2236 = vst [vmem:[%s3365_s29 + $0x3e8] sm:$0xff] %v2108_v16  ;;  %v1918_v55 = vadd.f32 %v3352_v61, %v1778_v19  ;;  %v1982_v23 = vadd.f32 %v3352_v61, %v1842_v20  ;;  %2245 = sbr.rel (!%p3107_p9) target bundleno = 490 (0x1ea), region = 60  ;;  %v2268_v61 = vld [vmem:[%s3365_s29 + $0x10] sm:$0xff] (%p3107_p9)  ;;  %v2320_v51 = vld [vmem:[%s3365_s29 + $0xe0] sm:$0xff] (%p3107_p9) }
 0x1ad   : > { %v2045_v21 = vmax.f32 %v1917_v17, 0.0  ;;  %v2109_v22 = vmax.f32 %v1981_v18, 0.0  ;;  %2265 = vst [vmem:[%s3750_s6] sm:$0xff] (%p3107_p9), %v2264_v58  ;;  %2269 = vst [vmem:[%s3750_s6 + $0x70] sm:$0xff] (%p3107_p9), %v2268_v61  ;;  %v2322_v52 = vld [vmem:[%s3365_s29 + $0xe8] sm:$0xff] (%p3107_p9)  ;;  %v2324_v53 = vld [vmem:[%s3365_s29 + $0xf0] sm:$0xff] (%p3107_p9) }
 0x1ae   : > { %v2046_v24 = vmax.f32 %v1918_v55, 0.0  ;;  %v2110_v25 = vmax.f32 %v1982_v23, 0.0  ;;  %2289 = vst [vmem:[%s3750_s6 + $0x2a0] sm:$0xff] (%p3107_p9), %v2288_v35  ;;  %2291 = vst [vmem:[%s3750_s6 + $0x2a8] sm:$0xff] (%p3107_p9), %v2290_v36  ;;  %v2326_v54 = vld [vmem:[%s3365_s29 + $0xf8] sm:$0xff] (%p3107_p9)  ;;  %v2328_v56 = vld [vmem:[%s3365_s29 + $0x100] sm:$0xff] (%p3107_p9) }
 0x1af   : > { %2173 = vst [vmem:[%s3365_s29 + $0x1f0] sm:$0xff] %v2045_v21  ;;  %2237 = vst [vmem:[%s3365_s29 + $0x3f0] sm:$0xff] %v2109_v22  ;;  %v2330_v57 = vld [vmem:[%s3365_s29 + $0x108] sm:$0xff] (%p3107_p9)  ;;  %v2332_v60 = vld [vmem:[%s3365_s29 + $0x110] sm:$0xff] (%p3107_p9) }
 0x1b0   : > { %2174 = vst [vmem:[%s3365_s29 + $0x1f8] sm:$0xff] %v2046_v24  ;;  %2238 = vst [vmem:[%s3365_s29 + $0x3f8] sm:$0xff] %v2110_v25  ;;  %v2334_v62 = vld [vmem:[%s3365_s29 + $0x118] sm:$0xff] (%p3107_p9)  ;;  %v2336_v63 = vld [vmem:[%s3365_s29 + $0x120] sm:$0xff] (%p3107_p9) }
 0x1b1   : > { %2293 = vst [vmem:[%s3750_s6 + $0x310] sm:$0xff] %v2292_v37  ;;  %2295 = vst [vmem:[%s3750_s6 + $0x318] sm:$0xff] %v2294_v38  ;;  %v2338_v0 = vld [vmem:[%s3365_s29 + $0x128] sm:$0xff]  ;;  %v2340_v1 = vld [vmem:[%s3365_s29 + $0x130] sm:$0xff] }
 0x1b2   : > { %2297 = vst [vmem:[%s3750_s6 + $0x380] sm:$0xff] %v2296_v39  ;;  %2299 = vst [vmem:[%s3750_s6 + $0x388] sm:$0xff] %v2298_v40  ;;  %v2342_v2 = vld [vmem:[%s3365_s29 + $0x138] sm:$0xff]  ;;  %v2344_v3 = vld [vmem:[%s3365_s29 + $0x140] sm:$0xff] }
 0x1b3   : > { %2301 = vst [vmem:[%s3750_s6 + $0x3f0] sm:$0xff] %v2300_v41  ;;  %2303 = vst [vmem:[%s3750_s6 + $0x3f8] sm:$0xff] %v2302_v42  ;;  %v2346_v4 = vld [vmem:[%s3365_s29 + $0x148] sm:$0xff]  ;;  %v2348_v5 = vld [vmem:[%s3365_s29 + $0x150] sm:$0xff] }
 0x1b4   : > { %2305 = vst [vmem:[%s3750_s6 + $0x460] sm:$0xff] %v2304_v43  ;;  %2307 = vst [vmem:[%s3750_s6 + $0x468] sm:$0xff] %v2306_v44  ;;  %v2350_v6 = vld [vmem:[%s3365_s29 + $0x158] sm:$0xff]  ;;  %v2352_v7 = vld [vmem:[%s3365_s29 + $0x160] sm:$0xff] }
 0x1b5   : > { %2309 = vst [vmem:[%s3750_s6 + $0x4d0] sm:$0xff] %v2308_v45  ;;  %2311 = vst [vmem:[%s3750_s6 + $0x4d8] sm:$0xff] %v2310_v46  ;;  %v2354_v8 = vld [vmem:[%s3365_s29 + $0x168] sm:$0xff]  ;;  %v2356_v9 = vld [vmem:[%s3365_s29 + $0x170] sm:$0xff] }
 0x1b6   : > { %2313 = vst [vmem:[%s3750_s6 + $0x540] sm:$0xff] %v2312_v47  ;;  %2315 = vst [vmem:[%s3750_s6 + $0x548] sm:$0xff] %v2314_v48  ;;  %v2358_v10 = vld [vmem:[%s3365_s29 + $0x178] sm:$0xff]  ;;  %v2360_v11 = vld [vmem:[%s3365_s29 + $0x180] sm:$0xff] }
 0x1b7   : > { %2317 = vst [vmem:[%s3750_s6 + $0x5b0] sm:$0xff] %v2316_v49  ;;  %2319 = vst [vmem:[%s3750_s6 + $0x5b8] sm:$0xff] %v2318_v50  ;;  %v2362_v12 = vld [vmem:[%s3365_s29 + $0x188] sm:$0xff]  ;;  %v2364_v13 = vld [vmem:[%s3365_s29 + $0x190] sm:$0xff] }
 0x1b8   : > { %2321 = vst [vmem:[%s3750_s6 + $0x620] sm:$0xff] %v2320_v51  ;;  %2323 = vst [vmem:[%s3750_s6 + $0x628] sm:$0xff] %v2322_v52  ;;  %v2366_v14 = vld [vmem:[%s3365_s29 + $0x198] sm:$0xff]  ;;  %v2368_v15 = vld [vmem:[%s3365_s29 + $0x1a0] sm:$0xff] }
 0x1b9   : > { %2325 = vst [vmem:[%s3750_s6 + $0x690] sm:$0xff] %v2324_v53  ;;  %2327 = vst [vmem:[%s3750_s6 + $0x698] sm:$0xff] %v2326_v54  ;;  %v2370_v16 = vld [vmem:[%s3365_s29 + $0x1a8] sm:$0xff]  ;;  %v2372_v17 = vld [vmem:[%s3365_s29 + $0x1b0] sm:$0xff] }
 0x1ba   : > { %2329 = vst [vmem:[%s3750_s6 + $0x700] sm:$0xff] %v2328_v56  ;;  %2331 = vst [vmem:[%s3750_s6 + $0x708] sm:$0xff] %v2330_v57  ;;  %v2374_v18 = vld [vmem:[%s3365_s29 + $0x1b8] sm:$0xff]  ;;  %v2376_v19 = vld [vmem:[%s3365_s29 + $0x1c0] sm:$0xff] }
 0x1bb   : > { %2333 = vst [vmem:[%s3750_s6 + $0x770] sm:$0xff] %v2332_v60  ;;  %2335 = vst [vmem:[%s3750_s6 + $0x778] sm:$0xff] %v2334_v62  ;;  %v2378_v20 = vld [vmem:[%s3365_s29 + $0x1c8] sm:$0xff]  ;;  %v2380_v21 = vld [vmem:[%s3365_s29 + $0x1d0] sm:$0xff] }
 0x1bc   : > { %2337 = vst [vmem:[%s3750_s6 + $0x7e0] sm:$0xff] %v2336_v63  ;;  %2339 = vst [vmem:[%s3750_s6 + $0x7e8] sm:$0xff] %v2338_v0  ;;  %v2382_v22 = vld [vmem:[%s3365_s29 + $0x1d8] sm:$0xff]  ;;  %v2384_v55 = vld [vmem:[%s3365_s29 + $0x1e0] sm:$0xff] }
 0x1bd   : > { %2341 = vst [vmem:[%s3750_s6 + $0x850] sm:$0xff] %v2340_v1  ;;  %2343 = vst [vmem:[%s3750_s6 + $0x858] sm:$0xff] %v2342_v2  ;;  %v2386_v23 = vld [vmem:[%s3365_s29 + $0x1e8] sm:$0xff]  ;;  %v2388_v24 = vld [vmem:[%s3365_s29 + $0x1f0] sm:$0xff] }
 0x1be   : > { %2345 = vst [vmem:[%s3750_s6 + $0x8c0] sm:$0xff] %v2344_v3  ;;  %2347 = vst [vmem:[%s3750_s6 + $0x8c8] sm:$0xff] %v2346_v4  ;;  %v2390_v25 = vld [vmem:[%s3365_s29 + $0x1f8] sm:$0xff]  ;;  %v2392_v58 = vld [vmem:[%s3365_s29 + $0x200] sm:$0xff] }
 0x1bf   : > { %2349 = vst [vmem:[%s3750_s6 + $0x930] sm:$0xff] %v2348_v5  ;;  %2351 = vst [vmem:[%s3750_s6 + $0x938] sm:$0xff] %v2350_v6  ;;  %v2394_v59 = vld [vmem:[%s3365_s29 + $0x208] sm:$0xff]  ;;  %v2396_v61 = vld [vmem:[%s3365_s29 + $0x210] sm:$0xff] }
 0x1c0   : > { %2353 = vst [vmem:[%s3750_s6 + $0x9a0] sm:$0xff] %v2352_v7  ;;  %2355 = vst [vmem:[%s3750_s6 + $0x9a8] sm:$0xff] %v2354_v8  ;;  %v2398_v26 = vld [vmem:[%s3365_s29 + $0x218] sm:$0xff]  ;;  %v2400_v27 = vld [vmem:[%s3365_s29 + $0x220] sm:$0xff] }
 0x1c1   : > { %2357 = vst [vmem:[%s3750_s6 + $0xa10] sm:$0xff] %v2356_v9  ;;  %2359 = vst [vmem:[%s3750_s6 + $0xa18] sm:$0xff] %v2358_v10  ;;  %v2402_v28 = vld [vmem:[%s3365_s29 + $0x228] sm:$0xff]  ;;  %v2404_v29 = vld [vmem:[%s3365_s29 + $0x230] sm:$0xff] }
 0x1c2   : > { %2361 = vst [vmem:[%s3750_s6 + $0xa80] sm:$0xff] %v2360_v11  ;;  %2363 = vst [vmem:[%s3750_s6 + $0xa88] sm:$0xff] %v2362_v12  ;;  %v2406_v30 = vld [vmem:[%s3365_s29 + $0x238] sm:$0xff]  ;;  %v2408_v31 = vld [vmem:[%s3365_s29 + $0x240] sm:$0xff] }
 0x1c3   : > { %2365 = vst [vmem:[%s3750_s6 + $0xaf0] sm:$0xff] %v2364_v13  ;;  %2367 = vst [vmem:[%s3750_s6 + $0xaf8] sm:$0xff] %v2366_v14  ;;  %v2410_v32 = vld [vmem:[%s3365_s29 + $0x248] sm:$0xff]  ;;  %v2412_v33 = vld [vmem:[%s3365_s29 + $0x250] sm:$0xff] }
 0x1c4   : > { %2369 = vst [vmem:[%s3750_s6 + $0xb60] sm:$0xff] %v2368_v15  ;;  %2371 = vst [vmem:[%s3750_s6 + $0xb68] sm:$0xff] %v2370_v16  ;;  %v2414_v34 = vld [vmem:[%s3365_s29 + $0x258] sm:$0xff]  ;;  %v2416_v35 = vld [vmem:[%s3365_s29 + $0x260] sm:$0xff] }
 0x1c5   : > { %2373 = vst [vmem:[%s3750_s6 + $0xbd0] sm:$0xff] %v2372_v17  ;;  %2375 = vst [vmem:[%s3750_s6 + $0xbd8] sm:$0xff] %v2374_v18  ;;  %v2418_v36 = vld [vmem:[%s3365_s29 + $0x268] sm:$0xff]  ;;  %v2420_v37 = vld [vmem:[%s3365_s29 + $0x270] sm:$0xff] }
 0x1c6   : > { %2377 = vst [vmem:[%s3750_s6 + $0xc40] sm:$0xff] %v2376_v19  ;;  %2379 = vst [vmem:[%s3750_s6 + $0xc48] sm:$0xff] %v2378_v20  ;;  %v2422_v38 = vld [vmem:[%s3365_s29 + $0x278] sm:$0xff]  ;;  %v2424_v39 = vld [vmem:[%s3365_s29 + $0x280] sm:$0xff] }
 0x1c7   : > { %2381 = vst [vmem:[%s3750_s6 + $0xcb0] sm:$0xff] %v2380_v21  ;;  %2383 = vst [vmem:[%s3750_s6 + $0xcb8] sm:$0xff] %v2382_v22  ;;  %v2426_v40 = vld [vmem:[%s3365_s29 + $0x288] sm:$0xff]  ;;  %v2428_v41 = vld [vmem:[%s3365_s29 + $0x290] sm:$0xff] }
 0x1c8   : > { %2385 = vst [vmem:[%s3750_s6 + $0xd20] sm:$0xff] %v2384_v55  ;;  %2387 = vst [vmem:[%s3750_s6 + $0xd28] sm:$0xff] %v2386_v23  ;;  %v2430_v42 = vld [vmem:[%s3365_s29 + $0x298] sm:$0xff]  ;;  %v2432_v43 = vld [vmem:[%s3365_s29 + $0x2a0] sm:$0xff] }
 0x1c9   : > { %2389 = vst [vmem:[%s3750_s6 + $0xd90] sm:$0xff] %v2388_v24  ;;  %2391 = vst [vmem:[%s3750_s6 + $0xd98] sm:$0xff] %v2390_v25  ;;  %v2434_v44 = vld [vmem:[%s3365_s29 + $0x2a8] sm:$0xff]  ;;  %v2436_v45 = vld [vmem:[%s3365_s29 + $0x2b0] sm:$0xff] }
 0x1ca   : > { %2393 = vst [vmem:[%s3750_s6 + $0xe00] sm:$0xff] %v2392_v58  ;;  %2395 = vst [vmem:[%s3750_s6 + $0xe08] sm:$0xff] %v2394_v59  ;;  %v2438_v46 = vld [vmem:[%s3365_s29 + $0x2b8] sm:$0xff]  ;;  %v2440_v47 = vld [vmem:[%s3365_s29 + $0x2c0] sm:$0xff] }
 0x1cb   : > { %2397 = vst [vmem:[%s3750_s6 + $0xe70] sm:$0xff] %v2396_v61  ;;  %2399 = vst [vmem:[%s3750_s6 + $0xe78] sm:$0xff] %v2398_v26  ;;  %v2442_v48 = vld [vmem:[%s3365_s29 + $0x2c8] sm:$0xff]  ;;  %v2444_v49 = vld [vmem:[%s3365_s29 + $0x2d0] sm:$0xff] }
 0x1cc   : > { %2401 = vst [vmem:[%s3750_s6 + $0xee0] sm:$0xff] %v2400_v27  ;;  %2403 = vst [vmem:[%s3750_s6 + $0xee8] sm:$0xff] %v2402_v28  ;;  %v2446_v50 = vld [vmem:[%s3365_s29 + $0x2d8] sm:$0xff]  ;;  %v2448_v51 = vld [vmem:[%s3365_s29 + $0x2e0] sm:$0xff] }
 0x1cd   : > { %2405 = vst [vmem:[%s3750_s6 + $0xf50] sm:$0xff] %v2404_v29  ;;  %2407 = vst [vmem:[%s3750_s6 + $0xf58] sm:$0xff] %v2406_v30  ;;  %v2450_v52 = vld [vmem:[%s3365_s29 + $0x2e8] sm:$0xff]  ;;  %v2452_v53 = vld [vmem:[%s3365_s29 + $0x2f0] sm:$0xff] }
 0x1ce   : > { %2409 = vst [vmem:[%s3750_s6 + $0xfc0] sm:$0xff] %v2408_v31  ;;  %2411 = vst [vmem:[%s3750_s6 + $0xfc8] sm:$0xff] %v2410_v32  ;;  %v2454_v54 = vld [vmem:[%s3365_s29 + $0x2f8] sm:$0xff]  ;;  %v2456_v56 = vld [vmem:[%s3365_s29 + $0x300] sm:$0xff] }
 0x1cf   : > { %2413 = vst [vmem:[%s3750_s6 + $0x1030] sm:$0xff] %v2412_v33  ;;  %2415 = vst [vmem:[%s3750_s6 + $0x1038] sm:$0xff] %v2414_v34  ;;  %v2458_v57 = vld [vmem:[%s3365_s29 + $0x308] sm:$0xff]  ;;  %v2460_v60 = vld [vmem:[%s3365_s29 + $0x310] sm:$0xff] }
 0x1d0   : > { %2417 = vst [vmem:[%s3750_s6 + $0x10a0] sm:$0xff] %v2416_v35  ;;  %2419 = vst [vmem:[%s3750_s6 + $0x10a8] sm:$0xff] %v2418_v36  ;;  %v2462_v62 = vld [vmem:[%s3365_s29 + $0x318] sm:$0xff]  ;;  %v2464_v63 = vld [vmem:[%s3365_s29 + $0x320] sm:$0xff] }
 0x1d1   : > { %2421 = vst [vmem:[%s3750_s6 + $0x1110] sm:$0xff] %v2420_v37  ;;  %2423 = vst [vmem:[%s3750_s6 + $0x1118] sm:$0xff] %v2422_v38  ;;  %v2466_v0 = vld [vmem:[%s3365_s29 + $0x328] sm:$0xff]  ;;  %v2468_v1 = vld [vmem:[%s3365_s29 + $0x330] sm:$0xff] }
 0x1d2   : > { %2425 = vst [vmem:[%s3750_s6 + $0x1180] sm:$0xff] %v2424_v39  ;;  %2427 = vst [vmem:[%s3750_s6 + $0x1188] sm:$0xff] %v2426_v40  ;;  %v2470_v2 = vld [vmem:[%s3365_s29 + $0x338] sm:$0xff]  ;;  %v2472_v3 = vld [vmem:[%s3365_s29 + $0x340] sm:$0xff] }
 0x1d3   : > { %2429 = vst [vmem:[%s3750_s6 + $0x11f0] sm:$0xff] %v2428_v41  ;;  %2431 = vst [vmem:[%s3750_s6 + $0x11f8] sm:$0xff] %v2430_v42  ;;  %v2474_v4 = vld [vmem:[%s3365_s29 + $0x348] sm:$0xff]  ;;  %v2476_v5 = vld [vmem:[%s3365_s29 + $0x350] sm:$0xff] }
 0x1d4   : > { %2433 = vst [vmem:[%s3750_s6 + $0x1260] sm:$0xff] %v2432_v43  ;;  %2435 = vst [vmem:[%s3750_s6 + $0x1268] sm:$0xff] %v2434_v44  ;;  %v2478_v6 = vld [vmem:[%s3365_s29 + $0x358] sm:$0xff]  ;;  %v2480_v7 = vld [vmem:[%s3365_s29 + $0x360] sm:$0xff] }
 0x1d5   : > { %2437 = vst [vmem:[%s3750_s6 + $0x12d0] sm:$0xff] %v2436_v45  ;;  %2439 = vst [vmem:[%s3750_s6 + $0x12d8] sm:$0xff] %v2438_v46  ;;  %v2482_v8 = vld [vmem:[%s3365_s29 + $0x368] sm:$0xff]  ;;  %v2484_v9 = vld [vmem:[%s3365_s29 + $0x370] sm:$0xff] }
 0x1d6   : > { %2441 = vst [vmem:[%s3750_s6 + $0x1340] sm:$0xff] %v2440_v47  ;;  %2443 = vst [vmem:[%s3750_s6 + $0x1348] sm:$0xff] %v2442_v48  ;;  %v2486_v10 = vld [vmem:[%s3365_s29 + $0x378] sm:$0xff]  ;;  %v2488_v11 = vld [vmem:[%s3365_s29 + $0x380] sm:$0xff] }
 0x1d7   : > { %2445 = vst [vmem:[%s3750_s6 + $0x13b0] sm:$0xff] %v2444_v49  ;;  %2447 = vst [vmem:[%s3750_s6 + $0x13b8] sm:$0xff] %v2446_v50  ;;  %v2490_v12 = vld [vmem:[%s3365_s29 + $0x388] sm:$0xff]  ;;  %v2492_v13 = vld [vmem:[%s3365_s29 + $0x390] sm:$0xff] }
 0x1d8   : > { %2449 = vst [vmem:[%s3750_s6 + $0x1420] sm:$0xff] %v2448_v51  ;;  %2451 = vst [vmem:[%s3750_s6 + $0x1428] sm:$0xff] %v2450_v52  ;;  %v2494_v14 = vld [vmem:[%s3365_s29 + $0x398] sm:$0xff]  ;;  %v2496_v15 = vld [vmem:[%s3365_s29 + $0x3a0] sm:$0xff] }
 0x1d9   : > { %2453 = vst [vmem:[%s3750_s6 + $0x1490] sm:$0xff] %v2452_v53  ;;  %2455 = vst [vmem:[%s3750_s6 + $0x1498] sm:$0xff] %v2454_v54  ;;  %v2498_v16 = vld [vmem:[%s3365_s29 + $0x3a8] sm:$0xff]  ;;  %v2500_v17 = vld [vmem:[%s3365_s29 + $0x3b0] sm:$0xff] }
 0x1da   : > { %2457 = vst [vmem:[%s3750_s6 + $0x1500] sm:$0xff] %v2456_v56  ;;  %2459 = vst [vmem:[%s3750_s6 + $0x1508] sm:$0xff] %v2458_v57  ;;  %v2502_v18 = vld [vmem:[%s3365_s29 + $0x3b8] sm:$0xff]  ;;  %v2504_v19 = vld [vmem:[%s3365_s29 + $0x3c0] sm:$0xff] }
 0x1db   : > { %2461 = vst [vmem:[%s3750_s6 + $0x1570] sm:$0xff] %v2460_v60  ;;  %2463 = vst [vmem:[%s3750_s6 + $0x1578] sm:$0xff] %v2462_v62  ;;  %v2506_v20 = vld [vmem:[%s3365_s29 + $0x3c8] sm:$0xff]  ;;  %v2508_v21 = vld [vmem:[%s3365_s29 + $0x3d0] sm:$0xff] }
 0x1dc   : > { %2465 = vst [vmem:[%s3750_s6 + $0x15e0] sm:$0xff] %v2464_v63  ;;  %2467 = vst [vmem:[%s3750_s6 + $0x15e8] sm:$0xff] %v2466_v0  ;;  %v2510_v22 = vld [vmem:[%s3365_s29 + $0x3d8] sm:$0xff]  ;;  %v2512_v55 = vld [vmem:[%s3365_s29 + $0x3e0] sm:$0xff] }
 0x1dd   : > { %2469 = vst [vmem:[%s3750_s6 + $0x1650] sm:$0xff] %v2468_v1  ;;  %2471 = vst [vmem:[%s3750_s6 + $0x1658] sm:$0xff] %v2470_v2  ;;  %v2514_v23 = vld [vmem:[%s3365_s29 + $0x3e8] sm:$0xff]  ;;  %v2516_v24 = vld [vmem:[%s3365_s29 + $0x3f0] sm:$0xff] }
 0x1de   : > { %2473 = vst [vmem:[%s3750_s6 + $0x16c0] sm:$0xff] %v2472_v3  ;;  %2475 = vst [vmem:[%s3750_s6 + $0x16c8] sm:$0xff] %v2474_v4  ;;  %v2518_v25 = vld [vmem:[%s3365_s29 + $0x3f8] sm:$0xff] }
 0x1df   : > { %2477 = vst [vmem:[%s3750_s6 + $0x1730] sm:$0xff] %v2476_v5  ;;  %2479 = vst [vmem:[%s3750_s6 + $0x1738] sm:$0xff] %v2478_v6 }
 0x1e0   : > { %2481 = vst [vmem:[%s3750_s6 + $0x17a0] sm:$0xff] %v2480_v7  ;;  %2483 = vst [vmem:[%s3750_s6 + $0x17a8] sm:$0xff] %v2482_v8 }
 0x1e1   : > { %2485 = vst [vmem:[%s3750_s6 + $0x1810] sm:$0xff] %v2484_v9  ;;  %2487 = vst [vmem:[%s3750_s6 + $0x1818] sm:$0xff] %v2486_v10 }
 0x1e2   : > { %2489 = vst [vmem:[%s3750_s6 + $0x1880] sm:$0xff] %v2488_v11  ;;  %2491 = vst [vmem:[%s3750_s6 + $0x1888] sm:$0xff] %v2490_v12 }
 0x1e3   : > { %2493 = vst [vmem:[%s3750_s6 + $0x18f0] sm:$0xff] %v2492_v13  ;;  %2495 = vst [vmem:[%s3750_s6 + $0x18f8] sm:$0xff] %v2494_v14 }
 0x1e4   : > { %2497 = vst [vmem:[%s3750_s6 + $0x1960] sm:$0xff] %v2496_v15  ;;  %2499 = vst [vmem:[%s3750_s6 + $0x1968] sm:$0xff] %v2498_v16 }
 0x1e5   : > { %2501 = vst [vmem:[%s3750_s6 + $0x19d0] sm:$0xff] %v2500_v17  ;;  %2503 = vst [vmem:[%s3750_s6 + $0x19d8] sm:$0xff] %v2502_v18 }
 0x1e6   : > { %2505 = vst [vmem:[%s3750_s6 + $0x1a40] sm:$0xff] %v2504_v19  ;;  %2507 = vst [vmem:[%s3750_s6 + $0x1a48] sm:$0xff] %v2506_v20 }
 0x1e7   : > { %2509 = vst [vmem:[%s3750_s6 + $0x1ab0] sm:$0xff] %v2508_v21  ;;  %2511 = vst [vmem:[%s3750_s6 + $0x1ab8] sm:$0xff] %v2510_v22 }
 0x1e8   : > { %2513 = vst [vmem:[%s3750_s6 + $0x1b20] sm:$0xff] %v2512_v55  ;;  %2515 = vst [vmem:[%s3750_s6 + $0x1b28] sm:$0xff] %v2514_v23 }
 0x1e9   : > { %2517 = vst [vmem:[%s3750_s6 + $0x1b90] sm:$0xff] %v2516_v24  ;;  %2519 = vst [vmem:[%s3750_s6 + $0x1b98] sm:$0xff] %v2518_v25 }
 0x1ea PF: > { %s20_s20 = sadd.s32 1, %s3019_s20   ;;  %s4037_s28 = sld [smem:[#allocation10_spill]] }
 0x1eb   : > { %p17_p8 = scmp.ge.s32.totalorder %s20_s20, 9   ;;  %s4038_s15 = smov %s3003_s16 }
 0x1ec   : > { %s4039_s16 = smov %s3007_s17  ;;  %s4040_s17 = smov %s3105_s27 }
 0x1ed   : > { %s4041_s18 = smov %s3015_s19  ;;  %19 = sbr.rel (!%p17_p8) target bundleno = 8 (0x8), region = 134 }
 0x1f0   : > { %s4042_s19 = smov %s4037_s28 }
 0x1f2   :  { %2535 = vsyncpa [#allocation3], 1 }
 0x1f3   :  { %2537 = vsyncpa [#allocation3 + $0x1], 1 }
 0x1f4   :  { %2538 = vsyncpa [#allocation5], 1 }
 0x1f5   :  { %2540 = vsyncpa [#allocation5 + $0x1], 1 }

// kernel: annl_gsnet_head_forward.12
= control target key start
LH: loop header
LB: loop body
LE: loop exit
PB: predicated region body
PF: predicated region fallthrough
CT: control target
= control target key end

     0   :  { %s3406_s15 = smov 0   ;;  %s3408_s16 = smov 0   ;;  %s5091_s0 = inlined_call_operand.vmem [shape: bf16[512,4608], index: 0, kind: input, shape index: {}]   ;;  %s5092_s1 = inlined_call_operand.vmem [shape: bf16[4608,128], index: 1, kind: input, shape index: {}]   ;;  %s5093_s2 = inlined_call_operand.vmem [shape: f32[1,128], index: 2, kind: input, shape index: {}]   ;;  %s5094_s3 = inlined_call_operand.vmem [shape: f32[1,128], index: 3, kind: input, shape index: {}]   ;;  %s5095_s4 = inlined_call_operand.vmem [shape: f32[512,128], index: 4, kind: output, shape index: {}]  }
   0x1   :  { %s3410_s17 = smov 0   ;;  %s3412_s18 = smov 0  }
   0x2   :  { %s3414_s19 = smov 0  }
   0x3 LB: > { %s26_s20 = sadd.s32 1, %s3373_s18  ;;  %p49_p1 = scmp.ne.s32.totalorder %s3365_s16, %s3361_s15  ;;  %s3377_s19 = sphi %s3414_s19, %s14_s19   ;;  %s3373_s18 = sphi %s3412_s18, %s5099_s18   ;;  %s3369_s17 = sphi %s3410_s17, %s5098_s17   ;;  %s3365_s16 = sphi %s3408_s16, %s5097_s16   ;;  %s3361_s15 = sphi %s3406_s15, %s5096_s15  }
   0x4   : > { %p27_p0 = scmp.ge.s32.totalorder %s26_s20, 9  ;;  %p50_p2 = scmp.eq.s32.totalorder %s3377_s19, 0 }
   0x5   : > { %s42_s22 = sadd.s32 1, %s3365_s16  ;;  %p2896_p5 = scmp.ge.s32.totalorder %s3377_s19, 9 }
   0x6   : > { %s5101_s20 = smov (%p27_p0, %s26_s20), 0  ;;  %p51_p3 = por %p50_p2, %p49_p1 }
   0x7   : > { %s38_s21 = ssub.s32 %s3373_s18, %s5101_s20  ;;  %195 = sbr.rel (%p2896_p5) target bundleno = 80 (0x50), region = 24 }
   0x8   : > { %p40_p4 = scmp.eq.s32.totalorder %s38_s21, 0 }
   0xa   : > { %s3441_s23 = scalar_select %p40_p4, %s3365_s16, %s42_s22  }
   0xc   : > { %198 = sbr.rel (!%p51_p3) target bundleno = 80 (0x50), region = 28  ;;  %s200_s24 = sand.u32 (%p51_p3), 1, %s3365_s16  }
   0xd   : > { %s3072_s25 = sshll.u32 (%p51_p3), %s3373_s18, 4  ;;  %s2897_s26 = sshll.u32 (%p51_p3), %s200_s24, 10 }
   0xe   : > { %s3449_s29 = scalar_lea.vmem (%p51_p3), %s5091_s0, %s3072_s25  ;;  %s3454_s30 = scalar_lea.vmem (%p51_p3), [#allocation2], %s2897_s26 }
   0xf   : > { %v221_v0 = vld [vmem:[%s3449_s29] sm:$0xff] (%p51_p3)  ;;  %v223_v1 = vld [vmem:[%s3449_s29 + $0x8] sm:$0xff] (%p51_p3)  ;;  %v225_v2 = vld [vmem:[%s3449_s29 + $0x90] sm:$0xff] (%p51_p3) }
  0x10   : > { %222 = vst [vmem:[%s3454_s30] sm:$0xff] (%p51_p3), %v221_v0  ;;  %224 = vst [vmem:[%s3454_s30 + $0x8] sm:$0xff] (%p51_p3), %v223_v1  ;;  %v227_v3 = vld [vmem:[%s3449_s29 + $0x98] sm:$0xff] (%p51_p3)  ;;  %v229_v4 = vld [vmem:[%s3449_s29 + $0x120] sm:$0xff] (%p51_p3) }
  0x11   : > { %226 = vst [vmem:[%s3454_s30 + $0x10] sm:$0xff] %v225_v2  ;;  %v231_v5 = vld [vmem:[%s3449_s29 + $0x128] sm:$0xff]  ;;  %228 = vst [vmem:[%s3454_s30 + $0x18] sm:$0xff] %v227_v3  ;;  %v233_v6 = vld [vmem:[%s3449_s29 + $0x1b0] sm:$0xff] }
  0x12   : > { %230 = vst [vmem:[%s3454_s30 + $0x20] sm:$0xff] %v229_v4  ;;  %232 = vst [vmem:[%s3454_s30 + $0x28] sm:$0xff] %v231_v5  ;;  %v235_v7 = vld [vmem:[%s3449_s29 + $0x1b8] sm:$0xff]  ;;  %v237_v8 = vld [vmem:[%s3449_s29 + $0x240] sm:$0xff] }
  0x13   : > { %234 = vst [vmem:[%s3454_s30 + $0x30] sm:$0xff] %v233_v6  ;;  %236 = vst [vmem:[%s3454_s30 + $0x38] sm:$0xff] %v235_v7  ;;  %v239_v9 = vld [vmem:[%s3449_s29 + $0x248] sm:$0xff]  ;;  %v241_v10 = vld [vmem:[%s3449_s29 + $0x2d0] sm:$0xff] }
  0x14   : > { %238 = vst [vmem:[%s3454_s30 + $0x40] sm:$0xff] %v237_v8  ;;  %v243_v11 = vld [vmem:[%s3449_s29 + $0x2d8] sm:$0xff]  ;;  %240 = vst [vmem:[%s3454_s30 + $0x48] sm:$0xff] %v239_v9  ;;  %v245_v12 = vld [vmem:[%s3449_s29 + $0x360] sm:$0xff] }
  0x15   : > { %242 = vst [vmem:[%s3454_s30 + $0x50] sm:$0xff] %v241_v10  ;;  %244 = vst [vmem:[%s3454_s30 + $0x58] sm:$0xff] %v243_v11  ;;  %v247_v13 = vld [vmem:[%s3449_s29 + $0x368] sm:$0xff]  ;;  %v249_v14 = vld [vmem:[%s3449_s29 + $0x3f0] sm:$0xff] }
  0x16   : > { %246 = vst [vmem:[%s3454_s30 + $0x60] sm:$0xff] %v245_v12  ;;  %248 = vst [vmem:[%s3454_s30 + $0x68] sm:$0xff] %v247_v13  ;;  %v251_v15 = vld [vmem:[%s3449_s29 + $0x3f8] sm:$0xff]  ;;  %v253_v16 = vld [vmem:[%s3449_s29 + $0x480] sm:$0xff] }
  0x17   : > { %250 = vst [vmem:[%s3454_s30 + $0x70] sm:$0xff] %v249_v14  ;;  %v255_v17 = vld [vmem:[%s3449_s29 + $0x488] sm:$0xff]  ;;  %252 = vst [vmem:[%s3454_s30 + $0x78] sm:$0xff] %v251_v15  ;;  %v257_v18 = vld [vmem:[%s3449_s29 + $0x510] sm:$0xff] }
  0x18   : > { %254 = vst [vmem:[%s3454_s30 + $0x80] sm:$0xff] %v253_v16  ;;  %256 = vst [vmem:[%s3454_s30 + $0x88] sm:$0xff] %v255_v17  ;;  %v259_v19 = vld [vmem:[%s3449_s29 + $0x518] sm:$0xff]  ;;  %v261_v20 = vld [vmem:[%s3449_s29 + $0x5a0] sm:$0xff] }
  0x19   : > { %258 = vst [vmem:[%s3454_s30 + $0x90] sm:$0xff] %v257_v18  ;;  %260 = vst [vmem:[%s3454_s30 + $0x98] sm:$0xff] %v259_v19  ;;  %v263_v21 = vld [vmem:[%s3449_s29 + $0x5a8] sm:$0xff]  ;;  %v265_v22 = vld [vmem:[%s3449_s29 + $0x630] sm:$0xff] }
  0x1a   : > { %262 = vst [vmem:[%s3454_s30 + $0xa0] sm:$0xff] %v261_v20  ;;  %v267_v23 = vld [vmem:[%s3449_s29 + $0x638] sm:$0xff]  ;;  %264 = vst [vmem:[%s3454_s30 + $0xa8] sm:$0xff] %v263_v21  ;;  %v269_v24 = vld [vmem:[%s3449_s29 + $0x6c0] sm:$0xff] }
  0x1b   : > { %266 = vst [vmem:[%s3454_s30 + $0xb0] sm:$0xff] %v265_v22  ;;  %268 = vst [vmem:[%s3454_s30 + $0xb8] sm:$0xff] %v267_v23  ;;  %v271_v25 = vld [vmem:[%s3449_s29 + $0x6c8] sm:$0xff]  ;;  %v273_v26 = vld [vmem:[%s3449_s29 + $0x750] sm:$0xff] }
  0x1c   : > { %270 = vst [vmem:[%s3454_s30 + $0xc0] sm:$0xff] %v269_v24  ;;  %272 = vst [vmem:[%s3454_s30 + $0xc8] sm:$0xff] %v271_v25  ;;  %v275_v27 = vld [vmem:[%s3449_s29 + $0x758] sm:$0xff]  ;;  %v277_v28 = vld [vmem:[%s3449_s29 + $0x7e0] sm:$0xff] }
  0x1d   : > { %274 = vst [vmem:[%s3454_s30 + $0xd0] sm:$0xff] %v273_v26  ;;  %v279_v29 = vld [vmem:[%s3449_s29 + $0x7e8] sm:$0xff]  ;;  %276 = vst [vmem:[%s3454_s30 + $0xd8] sm:$0xff] %v275_v27  ;;  %v281_v30 = vld [vmem:[%s3449_s29 + $0x870] sm:$0xff] }
  0x1e   : > { %278 = vst [vmem:[%s3454_s30 + $0xe0] sm:$0xff] %v277_v28  ;;  %280 = vst [vmem:[%s3454_s30 + $0xe8] sm:$0xff] %v279_v29  ;;  %v283_v31 = vld [vmem:[%s3449_s29 + $0x878] sm:$0xff]  ;;  %v285_v32 = vld [vmem:[%s3449_s29 + $0x900] sm:$0xff] }
  0x1f   : > { %282 = vst [vmem:[%s3454_s30 + $0xf0] sm:$0xff] %v281_v30  ;;  %284 = vst [vmem:[%s3454_s30 + $0xf8] sm:$0xff] %v283_v31  ;;  %v287_v33 = vld [vmem:[%s3449_s29 + $0x908] sm:$0xff]  ;;  %v289_v34 = vld [vmem:[%s3449_s29 + $0x990] sm:$0xff] }
  0x20   : > { %286 = vst [vmem:[%s3454_s30 + $0x100] sm:$0xff] %v285_v32  ;;  %v291_v35 = vld [vmem:[%s3449_s29 + $0x998] sm:$0xff]  ;;  %288 = vst [vmem:[%s3454_s30 + $0x108] sm:$0xff] %v287_v33  ;;  %v293_v36 = vld [vmem:[%s3449_s29 + $0xa20] sm:$0xff] }
  0x21   : > { %290 = vst [vmem:[%s3454_s30 + $0x110] sm:$0xff] %v289_v34  ;;  %292 = vst [vmem:[%s3454_s30 + $0x118] sm:$0xff] %v291_v35  ;;  %v295_v37 = vld [vmem:[%s3449_s29 + $0xa28] sm:$0xff]  ;;  %v297_v38 = vld [vmem:[%s3449_s29 + $0xab0] sm:$0xff] }
  0x22   : > { %294 = vst [vmem:[%s3454_s30 + $0x120] sm:$0xff] %v293_v36  ;;  %296 = vst [vmem:[%s3454_s30 + $0x128] sm:$0xff] %v295_v37  ;;  %v299_v39 = vld [vmem:[%s3449_s29 + $0xab8] sm:$0xff]  ;;  %v301_v40 = vld [vmem:[%s3449_s29 + $0xb40] sm:$0xff] }
  0x23   : > { %298 = vst [vmem:[%s3454_s30 + $0x130] sm:$0xff] %v297_v38  ;;  %v303_v41 = vld [vmem:[%s3449_s29 + $0xb48] sm:$0xff]  ;;  %300 = vst [vmem:[%s3454_s30 + $0x138] sm:$0xff] %v299_v39  ;;  %v305_v42 = vld [vmem:[%s3449_s29 + $0xbd0] sm:$0xff] }
  0x24   : > { %302 = vst [vmem:[%s3454_s30 + $0x140] sm:$0xff] %v301_v40  ;;  %304 = vst [vmem:[%s3454_s30 + $0x148] sm:$0xff] %v303_v41  ;;  %v307_v43 = vld [vmem:[%s3449_s29 + $0xbd8] sm:$0xff]  ;;  %v309_v44 = vld [vmem:[%s3449_s29 + $0xc60] sm:$0xff] }
  0x25   : > { %306 = vst [vmem:[%s3454_s30 + $0x150] sm:$0xff] %v305_v42  ;;  %308 = vst [vmem:[%s3454_s30 + $0x158] sm:$0xff] %v307_v43  ;;  %v311_v45 = vld [vmem:[%s3449_s29 + $0xc68] sm:$0xff]  ;;  %v313_v46 = vld [vmem:[%s3449_s29 + $0xcf0] sm:$0xff] }
  0x26   : > { %310 = vst [vmem:[%s3454_s30 + $0x160] sm:$0xff] %v309_v44  ;;  %v315_v47 = vld [vmem:[%s3449_s29 + $0xcf8] sm:$0xff]  ;;  %312 = vst [vmem:[%s3454_s30 + $0x168] sm:$0xff] %v311_v45  ;;  %v317_v48 = vld [vmem:[%s3449_s29 + $0xd80] sm:$0xff] }
  0x27   : > { %314 = vst [vmem:[%s3454_s30 + $0x170] sm:$0xff] %v313_v46  ;;  %316 = vst [vmem:[%s3454_s30 + $0x178] sm:$0xff] %v315_v47  ;;  %v319_v49 = vld [vmem:[%s3449_s29 + $0xd88] sm:$0xff]  ;;  %v321_v50 = vld [vmem:[%s3449_s29 + $0xe10] sm:$0xff] }
  0x28   : > { %318 = vst [vmem:[%s3454_s30 + $0x180] sm:$0xff] %v317_v48  ;;  %320 = vst [vmem:[%s3454_s30 + $0x188] sm:$0xff] %v319_v49  ;;  %v323_v51 = vld [vmem:[%s3449_s29 + $0xe18] sm:$0xff]  ;;  %v325_v52 = vld [vmem:[%s3449_s29 + $0xea0] sm:$0xff] }
  0x29   : > { %322 = vst [vmem:[%s3454_s30 + $0x190] sm:$0xff] %v321_v50  ;;  %v327_v53 = vld [vmem:[%s3449_s29 + $0xea8] sm:$0xff]  ;;  %324 = vst [vmem:[%s3454_s30 + $0x198] sm:$0xff] %v323_v51  ;;  %v329_v54 = vld [vmem:[%s3449_s29 + $0xf30] sm:$0xff] }
  0x2a   : > { %326 = vst [vmem:[%s3454_s30 + $0x1a0] sm:$0xff] %v325_v52  ;;  %328 = vst [vmem:[%s3454_s30 + $0x1a8] sm:$0xff] %v327_v53  ;;  %v331_v55 = vld [vmem:[%s3449_s29 + $0xf38] sm:$0xff]  ;;  %v333_v56 = vld [vmem:[%s3449_s29 + $0xfc0] sm:$0xff] }
  0x2b   : > { %330 = vst [vmem:[%s3454_s30 + $0x1b0] sm:$0xff] %v329_v54  ;;  %332 = vst [vmem:[%s3454_s30 + $0x1b8] sm:$0xff] %v331_v55  ;;  %v335_v57 = vld [vmem:[%s3449_s29 + $0xfc8] sm:$0xff]  ;;  %v337_v58 = vld [vmem:[%s3449_s29 + $0x1050] sm:$0xff] }
  0x2c   : > { %334 = vst [vmem:[%s3454_s30 + $0x1c0] sm:$0xff] %v333_v56  ;;  %v339_v59 = vld [vmem:[%s3449_s29 + $0x1058] sm:$0xff]  ;;  %336 = vst [vmem:[%s3454_s30 + $0x1c8] sm:$0xff] %v335_v57  ;;  %v341_v60 = vld [vmem:[%s3449_s29 + $0x10e0] sm:$0xff] }
  0x2d   : > { %338 = vst [vmem:[%s3454_s30 + $0x1d0] sm:$0xff] %v337_v58  ;;  %340 = vst [vmem:[%s3454_s30 + $0x1d8] sm:$0xff] %v339_v59  ;;  %v343_v61 = vld [vmem:[%s3449_s29 + $0x10e8] sm:$0xff]  ;;  %v345_v62 = vld [vmem:[%s3449_s29 + $0x1170] sm:$0xff] }
  0x2e   : > { %342 = vst [vmem:[%s3454_s30 + $0x1e0] sm:$0xff] %v341_v60  ;;  %344 = vst [vmem:[%s3454_s30 + $0x1e8] sm:$0xff] %v343_v61  ;;  %v347_v63 = vld [vmem:[%s3449_s29 + $0x1178] sm:$0xff]  ;;  %v349_v0 = vld [vmem:[%s3449_s29 + $0x1200] sm:$0xff] }
  0x2f   : > { %346 = vst [vmem:[%s3454_s30 + $0x1f0] sm:$0xff] %v345_v62  ;;  %v351_v1 = vld [vmem:[%s3449_s29 + $0x1208] sm:$0xff]  ;;  %348 = vst [vmem:[%s3454_s30 + $0x1f8] sm:$0xff] %v347_v63  ;;  %v353_v2 = vld [vmem:[%s3449_s29 + $0x1290] sm:$0xff] }
  0x30   : > { %350 = vst [vmem:[%s3454_s30 + $0x200] sm:$0xff] %v349_v0  ;;  %352 = vst [vmem:[%s3454_s30 + $0x208] sm:$0xff] %v351_v1  ;;  %v355_v3 = vld [vmem:[%s3449_s29 + $0x1298] sm:$0xff]  ;;  %v357_v4 = vld [vmem:[%s3449_s29 + $0x1320] sm:$0xff] }
  0x31   : > { %354 = vst [vmem:[%s3454_s30 + $0x210] sm:$0xff] %v353_v2  ;;  %356 = vst [vmem:[%s3454_s30 + $0x218] sm:$0xff] %v355_v3  ;;  %v359_v5 = vld [vmem:[%s3449_s29 + $0x1328] sm:$0xff]  ;;  %v361_v6 = vld [vmem:[%s3449_s29 + $0x13b0] sm:$0xff] }
  0x32   : > { %358 = vst [vmem:[%s3454_s30 + $0x220] sm:$0xff] %v357_v4  ;;  %v363_v7 = vld [vmem:[%s3449_s29 + $0x13b8] sm:$0xff]  ;;  %360 = vst [vmem:[%s3454_s30 + $0x228] sm:$0xff] %v359_v5  ;;  %v365_v8 = vld [vmem:[%s3449_s29 + $0x1440] sm:$0xff] }
  0x33   : > { %362 = vst [vmem:[%s3454_s30 + $0x230] sm:$0xff] %v361_v6  ;;  %364 = vst [vmem:[%s3454_s30 + $0x238] sm:$0xff] %v363_v7  ;;  %v367_v9 = vld [vmem:[%s3449_s29 + $0x1448] sm:$0xff]  ;;  %v369_v10 = vld [vmem:[%s3449_s29 + $0x14d0] sm:$0xff] }
  0x34   : > { %366 = vst [vmem:[%s3454_s30 + $0x240] sm:$0xff] %v365_v8  ;;  %368 = vst [vmem:[%s3454_s30 + $0x248] sm:$0xff] %v367_v9  ;;  %v371_v11 = vld [vmem:[%s3449_s29 + $0x14d8] sm:$0xff]  ;;  %v373_v12 = vld [vmem:[%s3449_s29 + $0x1560] sm:$0xff] }
  0x35   : > { %370 = vst [vmem:[%s3454_s30 + $0x250] sm:$0xff] %v369_v10  ;;  %v375_v13 = vld [vmem:[%s3449_s29 + $0x1568] sm:$0xff]  ;;  %372 = vst [vmem:[%s3454_s30 + $0x258] sm:$0xff] %v371_v11  ;;  %v377_v14 = vld [vmem:[%s3449_s29 + $0x15f0] sm:$0xff] }
  0x36   : > { %374 = vst [vmem:[%s3454_s30 + $0x260] sm:$0xff] %v373_v12  ;;  %376 = vst [vmem:[%s3454_s30 + $0x268] sm:$0xff] %v375_v13  ;;  %v379_v15 = vld [vmem:[%s3449_s29 + $0x15f8] sm:$0xff]  ;;  %v381_v16 = vld [vmem:[%s3449_s29 + $0x1680] sm:$0xff] }
  0x37   : > { %378 = vst [vmem:[%s3454_s30 + $0x270] sm:$0xff] %v377_v14  ;;  %380 = vst [vmem:[%s3454_s30 + $0x278] sm:$0xff] %v379_v15  ;;  %v383_v17 = vld [vmem:[%s3449_s29 + $0x1688] sm:$0xff]  ;;  %v385_v18 = vld [vmem:[%s3449_s29 + $0x1710] sm:$0xff] }
  0x38   : > { %382 = vst [vmem:[%s3454_s30 + $0x280] sm:$0xff] %v381_v16  ;;  %v387_v19 = vld [vmem:[%s3449_s29 + $0x1718] sm:$0xff]  ;;  %384 = vst [vmem:[%s3454_s30 + $0x288] sm:$0xff] %v383_v17  ;;  %v389_v20 = vld [vmem:[%s3449_s29 + $0x17a0] sm:$0xff] }
  0x39   : > { %386 = vst [vmem:[%s3454_s30 + $0x290] sm:$0xff] %v385_v18  ;;  %388 = vst [vmem:[%s3454_s30 + $0x298] sm:$0xff] %v387_v19  ;;  %v391_v21 = vld [vmem:[%s3449_s29 + $0x17a8] sm:$0xff]  ;;  %v393_v22 = vld [vmem:[%s3449_s29 + $0x1830] sm:$0xff] }
  0x3a   : > { %390 = vst [vmem:[%s3454_s30 + $0x2a0] sm:$0xff] %v389_v20  ;;  %392 = vst [vmem:[%s3454_s30 + $0x2a8] sm:$0xff] %v391_v21  ;;  %v395_v23 = vld [vmem:[%s3449_s29 + $0x1838] sm:$0xff]  ;;  %v397_v24 = vld [vmem:[%s3449_s29 + $0x18c0] sm:$0xff] }
  0x3b   : > { %394 = vst [vmem:[%s3454_s30 + $0x2b0] sm:$0xff] %v393_v22  ;;  %v399_v25 = vld [vmem:[%s3449_s29 + $0x18c8] sm:$0xff]  ;;  %396 = vst [vmem:[%s3454_s30 + $0x2b8] sm:$0xff] %v395_v23  ;;  %v401_v26 = vld [vmem:[%s3449_s29 + $0x1950] sm:$0xff] }
  0x3c   : > { %398 = vst [vmem:[%s3454_s30 + $0x2c0] sm:$0xff] %v397_v24  ;;  %400 = vst [vmem:[%s3454_s30 + $0x2c8] sm:$0xff] %v399_v25  ;;  %v403_v27 = vld [vmem:[%s3449_s29 + $0x1958] sm:$0xff]  ;;  %v405_v28 = vld [vmem:[%s3449_s29 + $0x19e0] sm:$0xff] }
  0x3d   : > { %402 = vst [vmem:[%s3454_s30 + $0x2d0] sm:$0xff] %v401_v26  ;;  %404 = vst [vmem:[%s3454_s30 + $0x2d8] sm:$0xff] %v403_v27  ;;  %v407_v29 = vld [vmem:[%s3449_s29 + $0x19e8] sm:$0xff]  ;;  %v409_v30 = vld [vmem:[%s3449_s29 + $0x1a70] sm:$0xff] }
  0x3e   : > { %406 = vst [vmem:[%s3454_s30 + $0x2e0] sm:$0xff] %v405_v28  ;;  %v411_v31 = vld [vmem:[%s3449_s29 + $0x1a78] sm:$0xff]  ;;  %408 = vst [vmem:[%s3454_s30 + $0x2e8] sm:$0xff] %v407_v29  ;;  %v413_v32 = vld [vmem:[%s3449_s29 + $0x1b00] sm:$0xff] }
  0x3f   : > { %410 = vst [vmem:[%s3454_s30 + $0x2f0] sm:$0xff] %v409_v30  ;;  %412 = vst [vmem:[%s3454_s30 + $0x2f8] sm:$0xff] %v411_v31  ;;  %v415_v33 = vld [vmem:[%s3449_s29 + $0x1b08] sm:$0xff]  ;;  %v417_v34 = vld [vmem:[%s3449_s29 + $0x1b90] sm:$0xff] }
  0x40   : > { %414 = vst [vmem:[%s3454_s30 + $0x300] sm:$0xff] %v413_v32  ;;  %416 = vst [vmem:[%s3454_s30 + $0x308] sm:$0xff] %v415_v33  ;;  %v419_v35 = vld [vmem:[%s3449_s29 + $0x1b98] sm:$0xff]  ;;  %v421_v36 = vld [vmem:[%s3449_s29 + $0x1c20] sm:$0xff] }
  0x41   : > { %418 = vst [vmem:[%s3454_s30 + $0x310] sm:$0xff] %v417_v34  ;;  %v423_v37 = vld [vmem:[%s3449_s29 + $0x1c28] sm:$0xff]  ;;  %420 = vst [vmem:[%s3454_s30 + $0x318] sm:$0xff] %v419_v35  ;;  %v425_v38 = vld [vmem:[%s3449_s29 + $0x1cb0] sm:$0xff] }
  0x42   : > { %422 = vst [vmem:[%s3454_s30 + $0x320] sm:$0xff] %v421_v36  ;;  %424 = vst [vmem:[%s3454_s30 + $0x328] sm:$0xff] %v423_v37  ;;  %v427_v39 = vld [vmem:[%s3449_s29 + $0x1cb8] sm:$0xff]  ;;  %v429_v40 = vld [vmem:[%s3449_s29 + $0x1d40] sm:$0xff] }
  0x43   : > { %426 = vst [vmem:[%s3454_s30 + $0x330] sm:$0xff] %v425_v38  ;;  %428 = vst [vmem:[%s3454_s30 + $0x338] sm:$0xff] %v427_v39  ;;  %v431_v41 = vld [vmem:[%s3449_s29 + $0x1d48] sm:$0xff]  ;;  %v433_v42 = vld [vmem:[%s3449_s29 + $0x1dd0] sm:$0xff] }
  0x44   : > { %430 = vst [vmem:[%s3454_s30 + $0x340] sm:$0xff] %v429_v40  ;;  %v435_v43 = vld [vmem:[%s3449_s29 + $0x1dd8] sm:$0xff]  ;;  %432 = vst [vmem:[%s3454_s30 + $0x348] sm:$0xff] %v431_v41  ;;  %v437_v44 = vld [vmem:[%s3449_s29 + $0x1e60] sm:$0xff] }
  0x45   : > { %434 = vst [vmem:[%s3454_s30 + $0x350] sm:$0xff] %v433_v42  ;;  %436 = vst [vmem:[%s3454_s30 + $0x358] sm:$0xff] %v435_v43  ;;  %v439_v45 = vld [vmem:[%s3449_s29 + $0x1e68] sm:$0xff]  ;;  %v441_v46 = vld [vmem:[%s3449_s29 + $0x1ef0] sm:$0xff] }
  0x46   : > { %438 = vst [vmem:[%s3454_s30 + $0x360] sm:$0xff] %v437_v44  ;;  %440 = vst [vmem:[%s3454_s30 + $0x368] sm:$0xff] %v439_v45  ;;  %v443_v47 = vld [vmem:[%s3449_s29 + $0x1ef8] sm:$0xff]  ;;  %v445_v48 = vld [vmem:[%s3449_s29 + $0x1f80] sm:$0xff] }
  0x47   : > { %442 = vst [vmem:[%s3454_s30 + $0x370] sm:$0xff] %v441_v46  ;;  %v447_v49 = vld [vmem:[%s3449_s29 + $0x1f88] sm:$0xff]  ;;  %444 = vst [vmem:[%s3454_s30 + $0x378] sm:$0xff] %v443_v47  ;;  %v449_v50 = vld [vmem:[%s3449_s29 + $0x2010] sm:$0xff] }
  0x48   : > { %446 = vst [vmem:[%s3454_s30 + $0x380] sm:$0xff] %v445_v48  ;;  %448 = vst [vmem:[%s3454_s30 + $0x388] sm:$0xff] %v447_v49  ;;  %v451_v51 = vld [vmem:[%s3449_s29 + $0x2018] sm:$0xff]  ;;  %v453_v52 = vld [vmem:[%s3449_s29 + $0x20a0] sm:$0xff] }
  0x49   : > { %450 = vst [vmem:[%s3454_s30 + $0x390] sm:$0xff] %v449_v50  ;;  %452 = vst [vmem:[%s3454_s30 + $0x398] sm:$0xff] %v451_v51  ;;  %v455_v53 = vld [vmem:[%s3449_s29 + $0x20a8] sm:$0xff]  ;;  %v457_v54 = vld [vmem:[%s3449_s29 + $0x2130] sm:$0xff] }
  0x4a   : > { %454 = vst [vmem:[%s3454_s30 + $0x3a0] sm:$0xff] %v453_v52  ;;  %v459_v55 = vld [vmem:[%s3449_s29 + $0x2138] sm:$0xff]  ;;  %456 = vst [vmem:[%s3454_s30 + $0x3a8] sm:$0xff] %v455_v53  ;;  %v461_v56 = vld [vmem:[%s3449_s29 + $0x21c0] sm:$0xff] }
  0x4b   : > { %458 = vst [vmem:[%s3454_s30 + $0x3b0] sm:$0xff] %v457_v54  ;;  %460 = vst [vmem:[%s3454_s30 + $0x3b8] sm:$0xff] %v459_v55  ;;  %v463_v57 = vld [vmem:[%s3449_s29 + $0x21c8] sm:$0xff]  ;;  %v465_v58 = vld [vmem:[%s3449_s29 + $0x2250] sm:$0xff] }
  0x4c   : > { %462 = vst [vmem:[%s3454_s30 + $0x3c0] sm:$0xff] %v461_v56  ;;  %464 = vst [vmem:[%s3454_s30 + $0x3c8] sm:$0xff] %v463_v57  ;;  %v467_v59 = vld [vmem:[%s3449_s29 + $0x2258] sm:$0xff]  ;;  %v469_v60 = vld [vmem:[%s3449_s29 + $0x22e0] sm:$0xff] }
  0x4d   : > { %466 = vst [vmem:[%s3454_s30 + $0x3d0] sm:$0xff] %v465_v58  ;;  %v471_v61 = vld [vmem:[%s3449_s29 + $0x22e8] sm:$0xff]  ;;  %468 = vst [vmem:[%s3454_s30 + $0x3d8] sm:$0xff] %v467_v59  ;;  %v473_v62 = vld [vmem:[%s3449_s29 + $0x2370] sm:$0xff] }
  0x4e   : > { %470 = vst [vmem:[%s3454_s30 + $0x3e0] sm:$0xff] %v469_v60  ;;  %472 = vst [vmem:[%s3454_s30 + $0x3e8] sm:$0xff] %v471_v61  ;;  %v475_v63 = vld [vmem:[%s3449_s29 + $0x2378] sm:$0xff] }
  0x4f   : > { %474 = vst [vmem:[%s3454_s30 + $0x3f0] sm:$0xff] %v473_v62  ;;  %476 = vst [vmem:[%s3454_s30 + $0x3f8] sm:$0xff] %v475_v63 }
  0x50 PF: > { %p2900_p6 = scmp.ge.s32.totalorder %s3377_s19, 1  ;;  %p493_p7 = scmp.lt.s32.totalorder %s3377_s19, 10 }
  0x52   : > { %p494_p8 = pnand %p2900_p6, %p493_p7 }
  0x53   : > { %s500_s5 = sand.u32 (!%p494_p8), 1, %s3361_s15   ;;  %s2902_s6 = sshll.u32 (!%p494_p8), %s3369_s17, 6 }
  0x54   : > { %497 = sbr.rel (%p494_p8) target bundleno = 698 (0x2ba), region = 55  ;;  %s2901_s7 = sshll.u32 (!%p494_p8), %s500_s5, 10 }
  0x55   : > { %p545_p9 = scmp.lt.s32.totalorder (!%p494_p8), %s2902_s6, 575  ;;  %s3718_s12 = scalar_lea.vmem (!%p494_p8), [#allocation2], %s2901_s7 }
  0x56   : > { %p2904_p10 = scmp.ne.s32.totalorder (!%p494_p8), %s3369_s17, 0 }
  0x59   : > { %s5103_s6 = smov (!%p545_p9, %s2902_s6), 575  ;;  %572 = sbr.rel (%p2904_p10) target bundleno = 127 (0x7f), region = 63 }
  0x5a   : > { %s2903_s8 = sshll.u32 %s5103_s6, 2 }
  0x5b   : > { %s3716_s11 = scalar_lea.vmem %s5092_s1, %s2903_s8 }
  0x5e   : > { %v3379_v0 = vmov 0.0  }
  0x5f   : > { %573 = vst [vmem:[%s5095_s4] sm:$0xff] %v3379_v0  ;;  %574 = vst [vmem:[%s5095_s4 + $0x8] sm:$0xff] %v3379_v0 }
  0x60   : > { %575 = vst [vmem:[%s5095_s4 + $0x10] sm:$0xff] %v3379_v0  ;;  %576 = vst [vmem:[%s5095_s4 + $0x18] sm:$0xff] %v3379_v0 }
  0x61   : > { %577 = vst [vmem:[%s5095_s4 + $0x20] sm:$0xff] %v3379_v0  ;;  %578 = vst [vmem:[%s5095_s4 + $0x28] sm:$0xff] %v3379_v0 }
  0x62   : > { %579 = vst [vmem:[%s5095_s4 + $0x30] sm:$0xff] %v3379_v0  ;;  %580 = vst [vmem:[%s5095_s4 + $0x38] sm:$0xff] %v3379_v0 }
  0x63   : > { %581 = vst [vmem:[%s5095_s4 + $0x40] sm:$0xff] %v3379_v0  ;;  %582 = vst [vmem:[%s5095_s4 + $0x48] sm:$0xff] %v3379_v0 }
  0x64   : > { %583 = vst [vmem:[%s5095_s4 + $0x50] sm:$0xff] %v3379_v0  ;;  %584 = vst [vmem:[%s5095_s4 + $0x58] sm:$0xff] %v3379_v0 }
  0x65   : > { %585 = vst [vmem:[%s5095_s4 + $0x60] sm:$0xff] %v3379_v0  ;;  %586 = vst [vmem:[%s5095_s4 + $0x68] sm:$0xff] %v3379_v0 }
  0x66   : > { %587 = vst [vmem:[%s5095_s4 + $0x70] sm:$0xff] %v3379_v0  ;;  %588 = vst [vmem:[%s5095_s4 + $0x78] sm:$0xff] %v3379_v0 }
  0x67   : > { %589 = vst [vmem:[%s5095_s4 + $0x80] sm:$0xff] %v3379_v0  ;;  %590 = vst [vmem:[%s5095_s4 + $0x88] sm:$0xff] %v3379_v0 }
  0x68   : > { %591 = vst [vmem:[%s5095_s4 + $0x90] sm:$0xff] %v3379_v0  ;;  %592 = vst [vmem:[%s5095_s4 + $0x98] sm:$0xff] %v3379_v0 }
  0x69   : > { %593 = vst [vmem:[%s5095_s4 + $0xa0] sm:$0xff] %v3379_v0  ;;  %594 = vst [vmem:[%s5095_s4 + $0xa8] sm:$0xff] %v3379_v0 }
  0x6a   : > { %595 = vst [vmem:[%s5095_s4 + $0xb0] sm:$0xff] %v3379_v0  ;;  %596 = vst [vmem:[%s5095_s4 + $0xb8] sm:$0xff] %v3379_v0 }
  0x6b   : > { %597 = vst [vmem:[%s5095_s4 + $0xc0] sm:$0xff] %v3379_v0  ;;  %598 = vst [vmem:[%s5095_s4 + $0xc8] sm:$0xff] %v3379_v0 }
  0x6c   : > { %599 = vst [vmem:[%s5095_s4 + $0xd0] sm:$0xff] %v3379_v0  ;;  %600 = vst [vmem:[%s5095_s4 + $0xd8] sm:$0xff] %v3379_v0 }
  0x6d   : > { %601 = vst [vmem:[%s5095_s4 + $0xe0] sm:$0xff] %v3379_v0  ;;  %602 = vst [vmem:[%s5095_s4 + $0xe8] sm:$0xff] %v3379_v0 }
  0x6e   : > { %603 = vst [vmem:[%s5095_s4 + $0xf0] sm:$0xff] %v3379_v0  ;;  %604 = vst [vmem:[%s5095_s4 + $0xf8] sm:$0xff] %v3379_v0 }
  0x6f   : > { %605 = vst [vmem:[%s5095_s4 + $0x100] sm:$0xff] %v3379_v0  ;;  %606 = vst [vmem:[%s5095_s4 + $0x108] sm:$0xff] %v3379_v0 }
  0x70   : > { %607 = vst [vmem:[%s5095_s4 + $0x110] sm:$0xff] %v3379_v0  ;;  %608 = vst [vmem:[%s5095_s4 + $0x118] sm:$0xff] %v3379_v0 }
  0x71   : > { %609 = vst [vmem:[%s5095_s4 + $0x120] sm:$0xff] %v3379_v0  ;;  %610 = vst [vmem:[%s5095_s4 + $0x128] sm:$0xff] %v3379_v0 }
  0x72   : > { %611 = vst [vmem:[%s5095_s4 + $0x130] sm:$0xff] %v3379_v0  ;;  %612 = vst [vmem:[%s5095_s4 + $0x138] sm:$0xff] %v3379_v0 }
  0x73   : > { %613 = vst [vmem:[%s5095_s4 + $0x140] sm:$0xff] %v3379_v0  ;;  %614 = vst [vmem:[%s5095_s4 + $0x148] sm:$0xff] %v3379_v0 }
  0x74   : > { %615 = vst [vmem:[%s5095_s4 + $0x150] sm:$0xff] %v3379_v0  ;;  %616 = vst [vmem:[%s5095_s4 + $0x158] sm:$0xff] %v3379_v0 }
  0x75   : > { %617 = vst [vmem:[%s5095_s4 + $0x160] sm:$0xff] %v3379_v0  ;;  %618 = vst [vmem:[%s5095_s4 + $0x168] sm:$0xff] %v3379_v0 }
  0x76   : > { %619 = vst [vmem:[%s5095_s4 + $0x170] sm:$0xff] %v3379_v0  ;;  %620 = vst [vmem:[%s5095_s4 + $0x178] sm:$0xff] %v3379_v0 }
  0x77   : > { %621 = vst [vmem:[%s5095_s4 + $0x180] sm:$0xff] %v3379_v0  ;;  %622 = vst [vmem:[%s5095_s4 + $0x188] sm:$0xff] %v3379_v0 }
  0x78   : > { %623 = vst [vmem:[%s5095_s4 + $0x190] sm:$0xff] %v3379_v0  ;;  %624 = vst [vmem:[%s5095_s4 + $0x198] sm:$0xff] %v3379_v0 }
  0x79   : > { %625 = vst [vmem:[%s5095_s4 + $0x1a0] sm:$0xff] %v3379_v0  ;;  %626 = vst [vmem:[%s5095_s4 + $0x1a8] sm:$0xff] %v3379_v0 }
  0x7a   : > { %627 = vst [vmem:[%s5095_s4 + $0x1b0] sm:$0xff] %v3379_v0  ;;  %628 = vst [vmem:[%s5095_s4 + $0x1b8] sm:$0xff] %v3379_v0 }
  0x7b   : > { %629 = vst [vmem:[%s5095_s4 + $0x1c0] sm:$0xff] %v3379_v0  ;;  %630 = vst [vmem:[%s5095_s4 + $0x1c8] sm:$0xff] %v3379_v0 }
  0x7c   : > { %631 = vst [vmem:[%s5095_s4 + $0x1d0] sm:$0xff] %v3379_v0  ;;  %632 = vst [vmem:[%s5095_s4 + $0x1d8] sm:$0xff] %v3379_v0 }
  0x7d   : > { %633 = vst [vmem:[%s5095_s4 + $0x1e0] sm:$0xff] %v3379_v0  ;;  %634 = vst [vmem:[%s5095_s4 + $0x1e8] sm:$0xff] %v3379_v0 }
  0x7e   : > { %635 = vst [vmem:[%s5095_s4 + $0x1f0] sm:$0xff] %v3379_v0  ;;  %636 = vst [vmem:[%s5095_s4 + $0x1f8] sm:$0xff] %v3379_v0 }
  0x7f PF: > { %v3115_v1 = vld [vmem:[%s3716_s11 + $0x38] sm:$0xff]   ;;  %v3380_v2 = vmov 0   ;;  %v3117_v4 = vld [vmem:[%s3716_s11 + $0x30] sm:$0xff]   ;;  %v3119_v6 = vld [vmem:[%s3716_s11 + $0x28] sm:$0xff]   ;;  %p3065_p11 = scmp.ne.s32.totalorder %s3369_s17, 8 }
  0x80   : > { %1725 = vmatprep.subr.bf16.mxu0 %v3380_v2  ;;  %2014 = vmatprep.subr.bf16.mxu1 %v3380_v2  ;;  %v3116_v3 = vld [vmem:[%s3716_s11 + $0xb8] sm:$0xff]   ;;  %v3118_v5 = vld [vmem:[%s3716_s11 + $0xb0] sm:$0xff]   ;;  %v3120_v7 = vld [vmem:[%s3716_s11 + $0xa8] sm:$0xff]  }
  0x81   : > { %1726 = vmatpush1.bf16.msra.mxu0 %v3115_v1  ;;  %2015 = vmatpush1.bf16.msra.mxu1 %v3116_v3  ;;  %v3121_v8 = vld [vmem:[%s3716_s11 + $0x20] sm:$0xff]   ;;  %v3123_v10 = vld [vmem:[%s3716_s11 + $0x18] sm:$0xff]   ;;  %v3125_v12 = vld [vmem:[%s3716_s11 + $0x10] sm:$0xff]  }
  0x82   : > { %1727 = vmatprep.subr.bf16.mxu0 %v3380_v2  ;;  %2016 = vmatprep.subr.bf16.mxu1 %v3380_v2  ;;  %v3122_v9 = vld [vmem:[%s3716_s11 + $0xa0] sm:$0xff]   ;;  %v3124_v11 = vld [vmem:[%s3716_s11 + $0x98] sm:$0xff]   ;;  %v3126_v13 = vld [vmem:[%s3716_s11 + $0x90] sm:$0xff]  }
  0x83   : > { %v3127_v14 = vld [vmem:[%s3716_s11 + $0x8] sm:$0xff]   ;;  %v3129_v16 = vld [vmem:[%s3716_s11] sm:$0xff]   ;;  %v3131_v18 = vld [vmem:[%s3716_s11 + $0x78] sm:$0xff]  }
  0x84   : > { %v3128_v15 = vld [vmem:[%s3716_s11 + $0x88] sm:$0xff]   ;;  %v3130_v17 = vld [vmem:[%s3716_s11 + $0x80] sm:$0xff]   ;;  %v3132_v19 = vld [vmem:[%s3716_s11 + $0xf8] sm:$0xff]  }
  0x85   : > { %1728 = vmatpush1.bf16.msra.mxu0 %v3117_v4  ;;  %2017 = vmatpush1.bf16.msra.mxu1 %v3118_v5  ;;  %v3149_v20 = vld [vmem:[%s3718_s12 + $0x4] ss:$16 sps:$4 sm:$0xff]   ;;  %v3152_v22 = vld [vmem:[%s3718_s12 + $0xc] ss:$16 sps:$4 sm:$0xff]   ;;  %v3147_v36 = vld [vmem:[%s3718_s12] ss:$16 sps:$4 sm:$0xff]  }
  0x86   : > { %1729 = vmatprep.subr.bf16.mxu0 %v3380_v2  ;;  %2018 = vmatprep.subr.bf16.mxu1 %v3380_v2  ;;  %v3133_v21 = vld [vmem:[%s3716_s11 + $0x70] sm:$0xff]   ;;  %v3135_v24 = vld [vmem:[%s3716_s11 + $0x68] sm:$0xff]   ;;  %v3137_v26 = vld [vmem:[%s3716_s11 + $0x60] sm:$0xff]  }
  0x87   : > { %v3134_v23 = vld [vmem:[%s3716_s11 + $0xf0] sm:$0xff]   ;;  %1757 = vmatprep.mubr.bf16.mxu0 %v3149_v20  ;;  %2046 = vmatprep.mubr.bf16.mxu1 %v3152_v22  ;;  %v3136_v25 = vld [vmem:[%s3716_s11 + $0xe8] sm:$0xff]   ;;  %v3138_v27 = vld [vmem:[%s3716_s11 + $0xe0] sm:$0xff]  }
  0x88   : > { %v3139_v28 = vld [vmem:[%s3716_s11 + $0x58] sm:$0xff]   ;;  %v3141_v30 = vld [vmem:[%s3716_s11 + $0x50] sm:$0xff]   ;;  %v3143_v32 = vld [vmem:[%s3716_s11 + $0x48] sm:$0xff]  }
  0x89   : > { %1730 = vmatpush1.bf16.msra.mxu0 %v3119_v6  ;;  %2019 = vmatpush1.bf16.msra.mxu1 %v3120_v7  ;;  %v3140_v29 = vld [vmem:[%s3716_s11 + $0xd8] sm:$0xff]   ;;  %v3142_v31 = vld [vmem:[%s3716_s11 + $0xd0] sm:$0xff]   ;;  %v3144_v33 = vld [vmem:[%s3716_s11 + $0xc8] sm:$0xff]  }
  0x8a   : > { %1731 = vmatprep.subr.bf16.mxu0 %v3380_v2  ;;  %2020 = vmatprep.subr.bf16.mxu1 %v3380_v2  ;;  %v3145_v34 = vld [vmem:[%s3716_s11 + $0x40] sm:$0xff]   ;;  %v3150_v37 = vld [vmem:[%s3718_s12 + $0x8] ss:$16 sps:$4 sm:$0xff]   ;;  %v3155_v39 = vld [vmem:[%s3718_s12 + $0x2c] ss:$16 sps:$4 sm:$0xff]  }
  0x8b   : > { %v3146_v35 = vld [vmem:[%s3716_s11 + $0xc0] sm:$0xff]   ;;  %v3158_v41 = vld [vmem:[%s3718_s12 + $0x28] ss:$16 sps:$4 sm:$0xff]   ;;  %v3161_v43 = vld [vmem:[%s3718_s12 + $0x4c] ss:$16 sps:$4 sm:$0xff]  }
  0x8c   : > { %v3153_v38 = vld [vmem:[%s3718_s12 + $0x24] ss:$16 sps:$4 sm:$0xff]   ;;  %v3157_v40 = vld [vmem:[%s3718_s12 + $0x20] ss:$16 sps:$4 sm:$0xff]   ;;  %v3164_v45 = vld [vmem:[%s3718_s12 + $0x48] ss:$16 sps:$4 sm:$0xff]  }
  0x8d   : > { %1732 = vmatpush1.bf16.msra.mxu0 %v3121_v8  ;;  %2021 = vmatpush1.bf16.msra.mxu1 %v3122_v9  ;;  %v3159_v42 = vld [vmem:[%s3718_s12 + $0x44] ss:$16 sps:$4 sm:$0xff]   ;;  %v3163_v44 = vld [vmem:[%s3718_s12 + $0x40] ss:$16 sps:$4 sm:$0xff]   ;;  %v3167_v47 = vld [vmem:[%s3718_s12 + $0x6c] ss:$16 sps:$4 sm:$0xff]  }
  0x8e   : > { %1733 = vmatprep.subr.bf16.mxu0 %v3380_v2  ;;  %2022 = vmatprep.subr.bf16.mxu1 %v3380_v2  ;;  %v3165_v46 = vld [vmem:[%s3718_s12 + $0x64] ss:$16 sps:$4 sm:$0xff]   ;;  %v3169_v48 = vld [vmem:[%s3718_s12 + $0x60] ss:$16 sps:$4 sm:$0xff]   ;;  %v3170_v49 = vld [vmem:[%s3718_s12 + $0x68] ss:$16 sps:$4 sm:$0xff]  }
  0x8f   : > { %v3171_v50 = vld [vmem:[%s3718_s12 + $0x84] ss:$16 sps:$4 sm:$0xff]   ;;  %v3173_v51 = vld [vmem:[%s3718_s12 + $0x8c] ss:$16 sps:$4 sm:$0xff]   ;;  %v3175_v52 = vld [vmem:[%s3718_s12 + $0x80] ss:$16 sps:$4 sm:$0xff]  }
  0x90   : > { %v3176_v53 = vld [vmem:[%s3718_s12 + $0x88] ss:$16 sps:$4 sm:$0xff]   ;;  %v3177_v54 = vld [vmem:[%s3718_s12 + $0xa4] ss:$16 sps:$4 sm:$0xff]   ;;  %v3179_v55 = vld [vmem:[%s3718_s12 + $0xac] ss:$16 sps:$4 sm:$0xff]  }
  0x91   : > { %1734 = vmatpush1.bf16.msra.mxu0 %v3123_v10  ;;  %2023 = vmatpush1.bf16.msra.mxu1 %v3124_v11  ;;  %v3181_v56 = vld [vmem:[%s3718_s12 + $0xa0] ss:$16 sps:$4 sm:$0xff]   ;;  %v3182_v57 = vld [vmem:[%s3718_s12 + $0xa8] ss:$16 sps:$4 sm:$0xff]   ;;  %v3183_v58 = vld [vmem:[%s3718_s12 + $0xc4] ss:$16 sps:$4 sm:$0xff]  }
  0x92   : > { %1735 = vmatprep.subr.bf16.mxu0 %v3380_v2  ;;  %2024 = vmatprep.subr.bf16.mxu1 %v3380_v2  ;;  %v3185_v59 = vld [vmem:[%s3718_s12 + $0xcc] ss:$16 sps:$4 sm:$0xff]   ;;  %v3187_v60 = vld [vmem:[%s3718_s12 + $0xc0] ss:$16 sps:$4 sm:$0xff]   ;;  %v3188_v61 = vld [vmem:[%s3718_s12 + $0xc8] ss:$16 sps:$4 sm:$0xff]  }
  0x93   : > { %v3189_v62 = vld [vmem:[%s3718_s12 + $0xe4] ss:$16 sps:$4 sm:$0xff]   ;;  %v3191_v63 = vld [vmem:[%s3718_s12 + $0xec] ss:$16 sps:$4 sm:$0xff]   ;;  %v3193_v0 = vld [vmem:[%s3718_s12 + $0xe0] ss:$16 sps:$4 sm:$0xff]  }
  0x94   : > { %v3194_v1 = vld [vmem:[%s3718_s12 + $0xe8] ss:$16 sps:$4 sm:$0xff]   ;;  %v3197_v3 = vld [vmem:[%s3718_s12 + $0x10c] ss:$16 sps:$4 sm:$0xff]   ;;  %v3199_v4 = vld [vmem:[%s3718_s12 + $0x100] ss:$16 sps:$4 sm:$0xff]  }
  0x95   : > { %1736 = vmatpush1.bf16.msra.mxu0 %v3125_v12  ;;  %2025 = vmatpush1.bf16.msra.mxu1 %v3126_v13  ;;  %v3200_v5 = vld [vmem:[%s3718_s12 + $0x108] ss:$16 sps:$4 sm:$0xff]   ;;  %v3201_v6 = vld [vmem:[%s3718_s12 + $0x124] ss:$16 sps:$4 sm:$0xff]   ;;  %v3203_v7 = vld [vmem:[%s3718_s12 + $0x12c] ss:$16 sps:$4 sm:$0xff]  }
  0x96   : > { %1737 = vmatprep.subr.bf16.mxu0 %v3380_v2  ;;  %2026 = vmatprep.subr.bf16.mxu1 %v3380_v2  ;;  %v3205_v8 = vld [vmem:[%s3718_s12 + $0x120] ss:$16 sps:$4 sm:$0xff]   ;;  %v3206_v9 = vld [vmem:[%s3718_s12 + $0x128] ss:$16 sps:$4 sm:$0xff]   ;;  %v3207_v10 = vld [vmem:[%s3718_s12 + $0x144] ss:$16 sps:$4 sm:$0xff]  }
  0x97   : > { %v3209_v11 = vld [vmem:[%s3718_s12 + $0x14c] ss:$16 sps:$4 sm:$0xff]   ;;  %v3211_v12 = vld [vmem:[%s3718_s12 + $0x140] ss:$16 sps:$4 sm:$0xff]   ;;  %v3212_v13 = vld [vmem:[%s3718_s12 + $0x148] ss:$16 sps:$4 sm:$0xff]  }
  0x98   : > { %v3223_v20 = vld [vmem:[%s3718_s12 + $0x180] ss:$16 sps:$4 sm:$0xff]   ;;  %v3225_v22 = vld [vmem:[%s3718_s12 + $0x1a4] ss:$16 sps:$4 sm:$0xff]  }
  0x99   : > { %1738 = vmatpush1.bf16.msra.mxu0 %v3127_v14  ;;  %2027 = vmatpush1.bf16.msra.mxu1 %v3128_v15  ;;  %v3213_v14 = vld [vmem:[%s3718_s12 + $0x164] ss:$16 sps:$4 sm:$0xff]   ;;  %v3215_v15 = vld [vmem:[%s3718_s12 + $0x16c] ss:$16 sps:$4 sm:$0xff]  }
  0x9a   : > { %1739 = vmatprep.subr.bf16.mxu0 %v3380_v2  ;;  %2028 = vmatprep.subr.bf16.mxu1 %v3380_v2 }
  0x9d   : > { %1740 = vmatpush1.bf16.msra.mxu0 %v3129_v16  ;;  %2029 = vmatpush1.bf16.msra.mxu1 %v3130_v17  ;;  %v3217_v16 = vld [vmem:[%s3718_s12 + $0x160] ss:$16 sps:$4 sm:$0xff]   ;;  %v3218_v17 = vld [vmem:[%s3718_s12 + $0x168] ss:$16 sps:$4 sm:$0xff]  }
  0x9e   : > { %1741 = vmatprep.subr.bf16.mxu0 %v3380_v2  ;;  %2030 = vmatprep.subr.bf16.mxu1 %v3380_v2 }
  0xa1   : > { %1742 = vmatpush2.bf16.msra.mxu0 %v3131_v18  ;;  %2031 = vmatpush2.bf16.msra.mxu1 %v3132_v19  ;;  %v3219_v18 = vld [vmem:[%s3718_s12 + $0x184] ss:$16 sps:$4 sm:$0xff]   ;;  %v3221_v19 = vld [vmem:[%s3718_s12 + $0x18c] ss:$16 sps:$4 sm:$0xff]  }
  0xa2   : > { %1743 = vmatprep.subr.bf16.mxu0 %v3380_v2  ;;  %2032 = vmatprep.subr.bf16.mxu1 %v3380_v2 }
  0xa5   : > { %1744 = vmatpush2.bf16.msra.mxu0 %v3133_v21  ;;  %2033 = vmatpush2.bf16.msra.mxu1 %v3134_v23  ;;  %v3224_v21 = vld [vmem:[%s3718_s12 + $0x188] ss:$16 sps:$4 sm:$0xff]   ;;  %v3227_v23 = vld [vmem:[%s3718_s12 + $0x1ac] ss:$16 sps:$4 sm:$0xff]  }
  0xa6   : > { %1745 = vmatprep.subr.bf16.mxu0 %v3380_v2  ;;  %2034 = vmatprep.subr.bf16.mxu1 %v3380_v2 }
  0xa9   : > { %1746 = vmatpush2.bf16.msra.mxu0 %v3135_v24  ;;  %2035 = vmatpush2.bf16.msra.mxu1 %v3136_v25  ;;  %v3229_v24 = vld [vmem:[%s3718_s12 + $0x1a0] ss:$16 sps:$4 sm:$0xff]   ;;  %v3230_v25 = vld [vmem:[%s3718_s12 + $0x1a8] ss:$16 sps:$4 sm:$0xff]  }
  0xaa   : > { %1747 = vmatprep.subr.bf16.mxu0 %v3380_v2  ;;  %2036 = vmatprep.subr.bf16.mxu1 %v3380_v2 }
  0xad   : > { %1748 = vmatpush2.bf16.msra.mxu0 %v3137_v26  ;;  %2037 = vmatpush2.bf16.msra.mxu1 %v3138_v27  ;;  %v3231_v26 = vld [vmem:[%s3718_s12 + $0x1c4] ss:$16 sps:$4 sm:$0xff]   ;;  %v3233_v27 = vld [vmem:[%s3718_s12 + $0x1cc] ss:$16 sps:$4 sm:$0xff]  }
  0xae   : > { %1749 = vmatprep.subr.bf16.mxu0 %v3380_v2  ;;  %2038 = vmatprep.subr.bf16.mxu1 %v3380_v2 }
  0xb1   : > { %1750 = vmatpush2.bf16.msra.mxu0 %v3139_v28  ;;  %2039 = vmatpush2.bf16.msra.mxu1 %v3140_v29  ;;  %v3235_v28 = vld [vmem:[%s3718_s12 + $0x1c0] ss:$16 sps:$4 sm:$0xff]   ;;  %v3236_v29 = vld [vmem:[%s3718_s12 + $0x1c8] ss:$16 sps:$4 sm:$0xff]  }
  0xb2   : > { %1751 = vmatprep.subr.bf16.mxu0 %v3380_v2  ;;  %2040 = vmatprep.subr.bf16.mxu1 %v3380_v2 }
  0xb5   : > { %1752 = vmatpush2.bf16.msra.mxu0 %v3141_v30  ;;  %2041 = vmatpush2.bf16.msra.mxu1 %v3142_v31  ;;  %v3237_v30 = vld [vmem:[%s3718_s12 + $0x1e4] ss:$16 sps:$4 sm:$0xff]   ;;  %v3239_v31 = vld [vmem:[%s3718_s12 + $0x1ec] ss:$16 sps:$4 sm:$0xff]  }
  0xb6   : > { %1753 = vmatprep.subr.bf16.mxu0 %v3380_v2  ;;  %2042 = vmatprep.subr.bf16.mxu1 %v3380_v2 }
  0xb9   : > { %1754 = vmatpush2.bf16.msra.mxu0 %v3143_v32  ;;  %2043 = vmatpush2.bf16.msra.mxu1 %v3144_v33  ;;  %v3241_v32 = vld [vmem:[%s3718_s12 + $0x1e0] ss:$16 sps:$4 sm:$0xff]   ;;  %v3242_v33 = vld [vmem:[%s3718_s12 + $0x1e8] ss:$16 sps:$4 sm:$0xff]  }
  0xba   : > { %1755 = vmatprep.subr.bf16.mxu0 %v3380_v2  ;;  %2044 = vmatprep.subr.bf16.mxu1 %v3380_v2  ;;  %v3195_v2 = vld [vmem:[%s3718_s12 + $0x104] ss:$16 sps:$4 sm:$0xff]  }
  0xbd   : > { %1756 = vmatpush2.bf16.msra.mxu0 %v3145_v34  ;;  %2045 = vmatpush2.bf16.msra.mxu1 %v3146_v35  ;;  %v3243_v34 = vld [vmem:[%s3718_s12 + $0x204] ss:$16 sps:$4 sm:$0xff]   ;;  %v3245_v35 = vld [vmem:[%s3718_s12 + $0x20c] ss:$16 sps:$4 sm:$0xff]  }
  0xc0   : > { %1758 = vmatmul.mubr.bf16.vlgmr.msra.gmra.mxu0 %v3147_v36  ;;  %2047 = vmatmul.mubr.bf16.vlgmr.msra.gmra.mxu1 %v3150_v37  ;;  %v3247_v36 = vld [vmem:[%s3718_s12 + $0x200] ss:$16 sps:$4 sm:$0xff]   ;;  %v3248_v37 = vld [vmem:[%s3718_s12 + $0x208] ss:$16 sps:$4 sm:$0xff]  }
  0xc1   : > { %1765 = vmatprep.mubr.bf16.mxu0 %v3153_v38  ;;  %2054 = vmatprep.mubr.bf16.mxu1 %v3155_v39  ;;  %v3249_v38 = vld [vmem:[%s3718_s12 + $0x224] ss:$16 sps:$4 sm:$0xff]   ;;  %v3251_v39 = vld [vmem:[%s3718_s12 + $0x22c] ss:$16 sps:$4 sm:$0xff]  }
  0xc8   : > { %1766 = vmatmul.mubr.bf16.gmra.mxu0 %v3157_v40  ;;  %2055 = vmatmul.mubr.bf16.gmra.mxu1 %v3158_v41  ;;  %v3253_v40 = vld [vmem:[%s3718_s12 + $0x220] ss:$16 sps:$4 sm:$0xff]   ;;  %v3254_v41 = vld [vmem:[%s3718_s12 + $0x228] ss:$16 sps:$4 sm:$0xff]  }
  0xc9   : > { %1773 = vmatprep.mubr.bf16.mxu0 %v3159_v42  ;;  %2062 = vmatprep.mubr.bf16.mxu1 %v3161_v43  ;;  %v3255_v42 = vld [vmem:[%s3718_s12 + $0x244] ss:$16 sps:$4 sm:$0xff]   ;;  %v3257_v43 = vld [vmem:[%s3718_s12 + $0x24c] ss:$16 sps:$4 sm:$0xff]  }
  0xd0   : > { %1774 = vmatmul.mubr.bf16.gmra.mxu0 %v3163_v44  ;;  %2063 = vmatmul.mubr.bf16.gmra.mxu1 %v3164_v45  ;;  %v3259_v44 = vld [vmem:[%s3718_s12 + $0x240] ss:$16 sps:$4 sm:$0xff]   ;;  %v3260_v45 = vld [vmem:[%s3718_s12 + $0x248] ss:$16 sps:$4 sm:$0xff]  }
  0xd1   : > { %1781 = vmatprep.mubr.bf16.mxu0 %v3165_v46  ;;  %2070 = vmatprep.mubr.bf16.mxu1 %v3167_v47  ;;  %v3261_v46 = vld [vmem:[%s3718_s12 + $0x264] ss:$16 sps:$4 sm:$0xff]   ;;  %v3263_v47 = vld [vmem:[%s3718_s12 + $0x26c] ss:$16 sps:$4 sm:$0xff]  }
  0xd8   : > { %1782 = vmatmul.mubr.bf16.gmra.mxu0 %v3169_v48  ;;  %2071 = vmatmul.mubr.bf16.gmra.mxu1 %v3170_v49  ;;  %v3265_v48 = vld [vmem:[%s3718_s12 + $0x260] ss:$16 sps:$4 sm:$0xff]   ;;  %v3266_v49 = vld [vmem:[%s3718_s12 + $0x268] ss:$16 sps:$4 sm:$0xff]  }
  0xd9   : > { %1789 = vmatprep.mubr.bf16.mxu0 %v3171_v50  ;;  %2078 = vmatprep.mubr.bf16.mxu1 %v3173_v51  ;;  %v3267_v50 = vld [vmem:[%s3718_s12 + $0x284] ss:$16 sps:$4 sm:$0xff]   ;;  %v3269_v51 = vld [vmem:[%s3718_s12 + $0x28c] ss:$16 sps:$4 sm:$0xff]  }
  0xe0   : > { %1790 = vmatmul.mubr.bf16.gmra.mxu0 %v3175_v52  ;;  %2079 = vmatmul.mubr.bf16.gmra.mxu1 %v3176_v53  ;;  %v3271_v52 = vld [vmem:[%s3718_s12 + $0x280] ss:$16 sps:$4 sm:$0xff]   ;;  %v3272_v53 = vld [vmem:[%s3718_s12 + $0x288] ss:$16 sps:$4 sm:$0xff]  }
  0xe1   : > { %1797 = vmatprep.mubr.bf16.mxu0 %v3177_v54  ;;  %2086 = vmatprep.mubr.bf16.mxu1 %v3179_v55  ;;  %v3273_v54 = vld [vmem:[%s3718_s12 + $0x2a4] ss:$16 sps:$4 sm:$0xff]   ;;  %v3275_v55 = vld [vmem:[%s3718_s12 + $0x2ac] ss:$16 sps:$4 sm:$0xff]  }
  0xe8   : > { %1798 = vmatmul.mubr.bf16.gmra.mxu0 %v3181_v56  ;;  %2087 = vmatmul.mubr.bf16.gmra.mxu1 %v3182_v57  ;;  %v3277_v56 = vld [vmem:[%s3718_s12 + $0x2a0] ss:$16 sps:$4 sm:$0xff]   ;;  %v3278_v57 = vld [vmem:[%s3718_s12 + $0x2a8] ss:$16 sps:$4 sm:$0xff]  }
  0xe9   : > { %1805 = vmatprep.mubr.bf16.mxu0 %v3183_v58  ;;  %2094 = vmatprep.mubr.bf16.mxu1 %v3185_v59  ;;  %v3279_v58 = vld [vmem:[%s3718_s12 + $0x2c4] ss:$16 sps:$4 sm:$0xff]   ;;  %v3281_v59 = vld [vmem:[%s3718_s12 + $0x2cc] ss:$16 sps:$4 sm:$0xff]  }
  0xf0   : > { %1806 = vmatmul.mubr.bf16.gmra.mxu0 %v3187_v60  ;;  %2095 = vmatmul.mubr.bf16.gmra.mxu1 %v3188_v61  ;;  %v3283_v60 = vld [vmem:[%s3718_s12 + $0x2c0] ss:$16 sps:$4 sm:$0xff]   ;;  %v3284_v61 = vld [vmem:[%s3718_s12 + $0x2c8] ss:$16 sps:$4 sm:$0xff]  }
  0xf1   : > { %1813 = vmatprep.mubr.bf16.mxu0 %v3189_v62  ;;  %2102 = vmatprep.mubr.bf16.mxu1 %v3191_v63  ;;  %v3285_v62 = vld [vmem:[%s3718_s12 + $0x2e4] ss:$16 sps:$4 sm:$0xff]   ;;  %v3287_v63 = vld [vmem:[%s3718_s12 + $0x2ec] ss:$16 sps:$4 sm:$0xff]  }
  0xf8   : > { %1814 = vmatmul.mubr.bf16.gmra.mxu0 %v3193_v0  ;;  %2103 = vmatmul.mubr.bf16.gmra.mxu1 %v3194_v1  ;;  %v3289_v0 = vld [vmem:[%s3718_s12 + $0x2e0] ss:$16 sps:$4 sm:$0xff]   ;;  %v3290_v1 = vld [vmem:[%s3718_s12 + $0x2e8] ss:$16 sps:$4 sm:$0xff]  }
  0xf9   : > { %1821 = vmatprep.mubr.bf16.mxu0 %v3195_v2  ;;  %2110 = vmatprep.mubr.bf16.mxu1 %v3197_v3  ;;  %v3291_v2 = vld [vmem:[%s3718_s12 + $0x304] ss:$16 sps:$4 sm:$0xff]   ;;  %v3293_v3 = vld [vmem:[%s3718_s12 + $0x30c] ss:$16 sps:$4 sm:$0xff]  }
 0x100   : > { %1822 = vmatmul.mubr.bf16.gmra.mxu0 %v3199_v4  ;;  %2111 = vmatmul.mubr.bf16.gmra.mxu1 %v3200_v5  ;;  %v3295_v4 = vld [vmem:[%s3718_s12 + $0x300] ss:$16 sps:$4 sm:$0xff]   ;;  %v3296_v5 = vld [vmem:[%s3718_s12 + $0x308] ss:$16 sps:$4 sm:$0xff]  }
 0x101   : > { %1829 = vmatprep.mubr.bf16.mxu0 %v3201_v6  ;;  %2118 = vmatprep.mubr.bf16.mxu1 %v3203_v7  ;;  %v3297_v6 = vld [vmem:[%s3718_s12 + $0x324] ss:$16 sps:$4 sm:$0xff]   ;;  %v3299_v7 = vld [vmem:[%s3718_s12 + $0x32c] ss:$16 sps:$4 sm:$0xff]  }
 0x108   : > { %1830 = vmatmul.mubr.bf16.gmra.mxu0 %v3205_v8  ;;  %2119 = vmatmul.mubr.bf16.gmra.mxu1 %v3206_v9  ;;  %v637_v9 = vld [vmem:[%s5095_s4] sm:$0xff] }
 0x109   : > { %1837 = vmatprep.mubr.bf16.mxu0 %v3207_v10  ;;  %2126 = vmatprep.mubr.bf16.mxu1 %v3209_v11 }
 0x110   : > { %1838 = vmatmul.mubr.bf16.gmra.mxu0 %v3211_v12  ;;  %2127 = vmatmul.mubr.bf16.gmra.mxu1 %v3212_v13 }
 0x111   : > { %1845 = vmatprep.mubr.bf16.mxu0 %v3213_v14  ;;  %2134 = vmatprep.mubr.bf16.mxu1 %v3215_v15 }
 0x118   : > { %1846 = vmatmul.mubr.bf16.gmra.mxu0 %v3217_v16  ;;  %2135 = vmatmul.mubr.bf16.gmra.mxu1 %v3218_v17  ;;  %v3301_v16 = vld [vmem:[%s3718_s12 + $0x320] ss:$16 sps:$4 sm:$0xff]   ;;  %v638_v17 = vld [vmem:[%s5095_s4 + $0x8] sm:$0xff] }
 0x119   : > { %1853 = vmatprep.mubr.bf16.mxu0 %v3219_v18  ;;  %2142 = vmatprep.mubr.bf16.mxu1 %v3221_v19  ;;  %v3302_v19 = vld [vmem:[%s3718_s12 + $0x328] ss:$16 sps:$4 sm:$0xff]  }
 0x120   : > { %1854 = vmatmul.mubr.bf16.gmra.mxu0 %v3223_v20  ;;  %2143 = vmatmul.mubr.bf16.gmra.mxu1 %v3224_v21  ;;  %v3303_v20 = vld [vmem:[%s3718_s12 + $0x344] ss:$16 sps:$4 sm:$0xff]  }
 0x121   : > { %1861 = vmatprep.mubr.bf16.mxu0 %v3225_v22  ;;  %2150 = vmatprep.mubr.bf16.mxu1 %v3227_v23  ;;  %v3305_v23 = vld [vmem:[%s3718_s12 + $0x34c] ss:$16 sps:$4 sm:$0xff]  }
 0x128   : > { %1862 = vmatmul.mubr.bf16.gmra.mxu0 %v3229_v24  ;;  %2151 = vmatmul.mubr.bf16.gmra.mxu1 %v3230_v25 }
 0x129   : > { %1869 = vmatprep.mubr.bf16.mxu0 %v3231_v26  ;;  %2158 = vmatprep.mubr.bf16.mxu1 %v3233_v27  ;;  %v639_v27 = vld [vmem:[%s5095_s4 + $0x10] sm:$0xff] }
 0x130   : > { %1870 = vmatmul.mubr.bf16.gmra.mxu0 %v3235_v28  ;;  %2159 = vmatmul.mubr.bf16.gmra.mxu1 %v3236_v29 }
 0x131   : > { %1877 = vmatprep.mubr.bf16.mxu0 %v3237_v30  ;;  %2166 = vmatprep.mubr.bf16.mxu1 %v3239_v31 }
 0x138   : > { %1878 = vmatmul.mubr.bf16.gmra.mxu0 %v3241_v32  ;;  %2167 = vmatmul.mubr.bf16.gmra.mxu1 %v3242_v33 }
 0x139   : > { %1885 = vmatprep.mubr.bf16.mxu0 %v3243_v34  ;;  %2174 = vmatprep.mubr.bf16.mxu1 %v3245_v35  ;;  %v3307_v34 = vld [vmem:[%s3718_s12 + $0x340] ss:$16 sps:$4 sm:$0xff]   ;;  %v640_v35 = vld [vmem:[%s5095_s4 + $0x18] sm:$0xff] }
 0x140   : > { %1886 = vmatmul.mubr.bf16.gmra.mxu0 %v3247_v36  ;;  %2175 = vmatmul.mubr.bf16.gmra.mxu1 %v3248_v37  ;;  %v3308_v37 = vld [vmem:[%s3718_s12 + $0x348] ss:$16 sps:$4 sm:$0xff]  }
 0x141   : > { %1893 = vmatprep.mubr.bf16.mxu0 %v3249_v38  ;;  %2182 = vmatprep.mubr.bf16.mxu1 %v3251_v39  ;;  %v3309_v38 = vld [vmem:[%s3718_s12 + $0x364] ss:$16 sps:$4 sm:$0xff]  }
 0x148   : > { %1894 = vmatmul.mubr.bf16.gmra.mxu0 %v3253_v40  ;;  %2183 = vmatmul.mubr.bf16.gmra.mxu1 %v3254_v41  ;;  %v3311_v41 = vld [vmem:[%s3718_s12 + $0x36c] ss:$16 sps:$4 sm:$0xff]  }
 0x149   : > { %1901 = vmatprep.mubr.bf16.mxu0 %v3255_v42  ;;  %2190 = vmatprep.mubr.bf16.mxu1 %v3257_v43 }
 0x150   : > { %1902 = vmatmul.mubr.bf16.gmra.mxu0 %v3259_v44  ;;  %2191 = vmatmul.mubr.bf16.gmra.mxu1 %v3260_v45  ;;  %v641_v45 = vld [vmem:[%s5095_s4 + $0x20] sm:$0xff] }
 0x151   : > { %1909 = vmatprep.mubr.bf16.mxu0 %v3261_v46  ;;  %2198 = vmatprep.mubr.bf16.mxu1 %v3263_v47 }
 0x158   : > { %1910 = vmatmul.mubr.bf16.gmra.mxu0 %v3265_v48  ;;  %2199 = vmatmul.mubr.bf16.gmra.mxu1 %v3266_v49 }
 0x159   : > { %1917 = vmatprep.mubr.bf16.mxu0 %v3267_v50  ;;  %2206 = vmatprep.mubr.bf16.mxu1 %v3269_v51 }
 0x160   : > { %1918 = vmatmul.mubr.bf16.gmra.mxu0 %v3271_v52  ;;  %2207 = vmatmul.mubr.bf16.gmra.mxu1 %v3272_v53  ;;  %v3313_v52 = vld [vmem:[%s3718_s12 + $0x360] ss:$16 sps:$4 sm:$0xff]   ;;  %v642_v53 = vld [vmem:[%s5095_s4 + $0x28] sm:$0xff] }
 0x161   : > { %1925 = vmatprep.mubr.bf16.mxu0 %v3273_v54  ;;  %2214 = vmatprep.mubr.bf16.mxu1 %v3275_v55  ;;  %v3314_v55 = vld [vmem:[%s3718_s12 + $0x368] ss:$16 sps:$4 sm:$0xff]  }
 0x168   : > { %1926 = vmatmul.mubr.bf16.gmra.mxu0 %v3277_v56  ;;  %2215 = vmatmul.mubr.bf16.gmra.mxu1 %v3278_v57  ;;  %v3317_v56 = vld [vmem:[%s3718_s12 + $0x384] ss:$16 sps:$4 sm:$0xff]  }
 0x169   : > { %1933 = vmatprep.mubr.bf16.mxu0 %v3279_v58  ;;  %2222 = vmatprep.mubr.bf16.mxu1 %v3281_v59  ;;  %v3320_v59 = vld [vmem:[%s3718_s12 + $0x38c] ss:$16 sps:$4 sm:$0xff]  }
 0x170   : > { %1934 = vmatmul.mubr.bf16.gmra.mxu0 %v3283_v60  ;;  %2223 = vmatmul.mubr.bf16.gmra.mxu1 %v3284_v61 }
 0x171   : > { %1941 = vmatprep.mubr.bf16.mxu0 %v3285_v62  ;;  %2230 = vmatprep.mubr.bf16.mxu1 %v3287_v63  ;;  %v643_v63 = vld [vmem:[%s5095_s4 + $0x30] sm:$0xff] }
 0x178   : > { %1942 = vmatmul.mubr.bf16.gmra.mxu0 %v3289_v0  ;;  %2231 = vmatmul.mubr.bf16.gmra.mxu1 %v3290_v1 }
 0x179   : > { %1949 = vmatprep.mubr.bf16.mxu0 %v3291_v2  ;;  %2238 = vmatprep.mubr.bf16.mxu1 %v3293_v3 }
 0x180   : > { %v1759_v8 = vpop.f32.mrf.mxu0  ;;  %1950 = vmatmul.mubr.bf16.gmra.mxu0 %v3295_v4  ;;  %v2048_v10 = vpop.f32.mrf.mxu1  ;;  %2239 = vmatmul.mubr.bf16.gmra.mxu1 %v3296_v5 }
 0x181   : > { %1957 = vmatprep.mubr.bf16.mxu0 %v3297_v6  ;;  %v2049_v11 = vadd.f32 %v2048_v10, %v1759_v8  ;;  %2246 = vmatprep.mubr.bf16.mxu1 %v3299_v7  ;;  %v3315_v6 = vld [vmem:[%s3718_s12 + $0x380] ss:$16 sps:$4 sm:$0xff]   ;;  %v644_v7 = vld [vmem:[%s5095_s4 + $0x38] sm:$0xff]  ;;  %v3323_v10 = vld [vmem:[%s3718_s12 + $0x3a4] ss:$16 sps:$4 sm:$0xff]  }
 0x182   : > { %v1761_v12 = vpop.f32.mrf.mxu0  ;;  %v2050_v13 = vpop.f32.mrf.mxu1 }
 0x183   : > { %v2303_v14 = vadd.f32 %v2049_v11, %v637_v9  ;;  %v3318_v9 = vld [vmem:[%s3718_s12 + $0x388] ss:$16 sps:$4 sm:$0xff]   ;;  %v3326_v13 = vld [vmem:[%s3718_s12 + $0x3ac] ss:$16 sps:$4 sm:$0xff]  }
 0x184   : > { %v1762_v15 = vpop.f32.mrf.mxu0  ;;  %v2051_v18 = vpop.f32.mrf.mxu1 }
 0x185   : > { %2367 = vst [vmem:[%s5095_s4] sm:$0xff] %v2303_v14  ;;  %v2052_v21 = vadd.f32 %v2051_v18, %v1762_v15 }
 0x186   : > { %v1764_v22 = vpop.f32.mrf.mxu0  ;;  %v2053_v24 = vpop.f32.mrf.mxu1 }
 0x187   : > { %v2304_v25 = vadd.f32 %v2052_v21, %v638_v17  ;;  %v645_v17 = vld [vmem:[%s5095_s4 + $0x40] sm:$0xff] }
 0x188   : > { %v1767_v26 = vpop.f32.mrf.mxu0  ;;  %1958 = vmatmul.mubr.bf16.gmra.mxu0 %v3301_v16  ;;  %v2056_v28 = vpop.f32.mrf.mxu1  ;;  %2247 = vmatmul.mubr.bf16.gmra.mxu1 %v3302_v19  ;;  %v3321_v24 = vld [vmem:[%s3718_s12 + $0x3a0] ss:$16 sps:$4 sm:$0xff]  }
 0x189   : > { %1965 = vmatprep.mubr.bf16.mxu0 %v3303_v20  ;;  %2368 = vst [vmem:[%s5095_s4 + $0x8] sm:$0xff] %v2304_v25  ;;  %v2057_v29 = vadd.f32 %v2056_v28, %v1767_v26  ;;  %2254 = vmatprep.mubr.bf16.mxu1 %v3305_v23  ;;  %v646_v25 = vld [vmem:[%s5095_s4 + $0x48] sm:$0xff]  ;;  %v3329_v28 = vld [vmem:[%s3718_s12 + $0x3c4] ss:$16 sps:$4 sm:$0xff]  }
 0x18a   : > { %v1769_v30 = vpop.f32.mrf.mxu0  ;;  %v2058_v31 = vpop.f32.mrf.mxu1 }
 0x18b   : > { %v2305_v32 = vadd.f32 %v2057_v29, %v639_v27  ;;  %v3324_v27 = vld [vmem:[%s3718_s12 + $0x3a8] ss:$16 sps:$4 sm:$0xff]   ;;  %v3332_v31 = vld [vmem:[%s3718_s12 + $0x3cc] ss:$16 sps:$4 sm:$0xff]  }
 0x18c   : > { %v1770_v33 = vpop.f32.mrf.mxu0  ;;  %v2059_v36 = vpop.f32.mrf.mxu1 }
 0x18d   : > { %2369 = vst [vmem:[%s5095_s4 + $0x10] sm:$0xff] %v2305_v32  ;;  %v2060_v39 = vadd.f32 %v2059_v36, %v1770_v33 }
 0x18e   : > { %v1772_v40 = vpop.f32.mrf.mxu0  ;;  %v2061_v42 = vpop.f32.mrf.mxu1 }
 0x18f   : > { %v2306_v43 = vadd.f32 %v2060_v39, %v640_v35  ;;  %v647_v35 = vld [vmem:[%s5095_s4 + $0x50] sm:$0xff] }
 0x190   : > { %v1775_v44 = vpop.f32.mrf.mxu0  ;;  %1966 = vmatmul.mubr.bf16.gmra.mxu0 %v3307_v34  ;;  %v2064_v46 = vpop.f32.mrf.mxu1  ;;  %2255 = vmatmul.mubr.bf16.gmra.mxu1 %v3308_v37  ;;  %v3327_v42 = vld [vmem:[%s3718_s12 + $0x3c0] ss:$16 sps:$4 sm:$0xff]  }
 0x191   : > { %1973 = vmatprep.mubr.bf16.mxu0 %v3309_v38  ;;  %2370 = vst [vmem:[%s5095_s4 + $0x18] sm:$0xff] %v2306_v43  ;;  %v2065_v47 = vadd.f32 %v2064_v46, %v1775_v44  ;;  %2262 = vmatprep.mubr.bf16.mxu1 %v3311_v41  ;;  %v648_v43 = vld [vmem:[%s5095_s4 + $0x58] sm:$0xff]  ;;  %v3335_v46 = vld [vmem:[%s3718_s12 + $0x3e4] ss:$16 sps:$4 sm:$0xff]  }
 0x192   : > { %v1777_v48 = vpop.f32.mrf.mxu0  ;;  %v2066_v49 = vpop.f32.mrf.mxu1 }
 0x193   : > { %v2307_v50 = vadd.f32 %v2065_v47, %v641_v45  ;;  %v3330_v45 = vld [vmem:[%s3718_s12 + $0x3c8] ss:$16 sps:$4 sm:$0xff]   ;;  %v3338_v49 = vld [vmem:[%s3718_s12 + $0x3ec] ss:$16 sps:$4 sm:$0xff]  }
 0x194   : > { %v1778_v51 = vpop.f32.mrf.mxu0  ;;  %v2067_v54 = vpop.f32.mrf.mxu1 }
 0x195   : > { %2371 = vst [vmem:[%s5095_s4 + $0x20] sm:$0xff] %v2307_v50  ;;  %v2068_v57 = vadd.f32 %v2067_v54, %v1778_v51 }
 0x196   : > { %v1780_v58 = vpop.f32.mrf.mxu0  ;;  %v2069_v60 = vpop.f32.mrf.mxu1 }
 0x197   : > { %v2308_v61 = vadd.f32 %v2068_v57, %v642_v53  ;;  %v649_v53 = vld [vmem:[%s5095_s4 + $0x60] sm:$0xff] }
 0x198   : > { %v1783_v62 = vpop.f32.mrf.mxu0  ;;  %1974 = vmatmul.mubr.bf16.gmra.mxu0 %v3313_v52  ;;  %v2072_v0 = vpop.f32.mrf.mxu1  ;;  %2263 = vmatmul.mubr.bf16.gmra.mxu1 %v3314_v55  ;;  %v3333_v60 = vld [vmem:[%s3718_s12 + $0x3e0] ss:$16 sps:$4 sm:$0xff]  }
 0x199   : > { %1981 = vmatprep.mubr.bf16.mxu0 %v3317_v56  ;;  %2372 = vst [vmem:[%s5095_s4 + $0x28] sm:$0xff] %v2308_v61  ;;  %v2073_v1 = vadd.f32 %v2072_v0, %v1783_v62  ;;  %2270 = vmatprep.mubr.bf16.mxu1 %v3320_v59  ;;  %v650_v61 = vld [vmem:[%s5095_s4 + $0x68] sm:$0xff] }
 0x19a   : > { %v1785_v2 = vpop.f32.mrf.mxu0  ;;  %v2074_v3 = vpop.f32.mrf.mxu1 }
 0x19b   : > { %v2309_v4 = vadd.f32 %v2073_v1, %v643_v63  ;;  %v3336_v63 = vld [vmem:[%s3718_s12 + $0x3e8] ss:$16 sps:$4 sm:$0xff]  }
 0x19c   : > { %v1786_v5 = vpop.f32.mrf.mxu0  ;;  %v2075_v8 = vpop.f32.mrf.mxu1 }
 0x19d   : > { %2373 = vst [vmem:[%s5095_s4 + $0x30] sm:$0xff] %v2309_v4  ;;  %v2076_v11 = vadd.f32 %v2075_v8, %v1786_v5  ;;  %v651_v5 = vld [vmem:[%s5095_s4 + $0x70] sm:$0xff] }
 0x19e   : > { %v1788_v12 = vpop.f32.mrf.mxu0  ;;  %v2077_v14 = vpop.f32.mrf.mxu1 }
 0x19f   : > { %v2310_v15 = vadd.f32 %v2076_v11, %v644_v7  ;;  %v652_v12 = vld [vmem:[%s5095_s4 + $0x78] sm:$0xff] }
 0x1a0   : > { %v1791_v16 = vpop.f32.mrf.mxu0  ;;  %1982 = vmatmul.mubr.bf16.gmra.mxu0 %v3315_v6  ;;  %v2080_v18 = vpop.f32.mrf.mxu1  ;;  %2271 = vmatmul.mubr.bf16.gmra.mxu1 %v3318_v9 }
 0x1a1   : > { %1989 = vmatprep.mubr.bf16.mxu0 %v3323_v10  ;;  %2374 = vst [vmem:[%s5095_s4 + $0x38] sm:$0xff] %v2310_v15  ;;  %v2081_v19 = vadd.f32 %v2080_v18, %v1791_v16  ;;  %2278 = vmatprep.mubr.bf16.mxu1 %v3326_v13 }
 0x1a2   : > { %v1793_v20 = vpop.f32.mrf.mxu0  ;;  %v2082_v21 = vpop.f32.mrf.mxu1 }
 0x1a3   : > { %v2311_v22 = vadd.f32 %v2081_v19, %v645_v17  ;;  %v653_v19 = vld [vmem:[%s5095_s4 + $0x80] sm:$0xff] }
 0x1a4   : > { %v1794_v23 = vpop.f32.mrf.mxu0  ;;  %v2083_v26 = vpop.f32.mrf.mxu1 }
 0x1a5   : > { %2375 = vst [vmem:[%s5095_s4 + $0x40] sm:$0xff] %v2311_v22  ;;  %v2084_v29 = vadd.f32 %v2083_v26, %v1794_v23  ;;  %v654_v26 = vld [vmem:[%s5095_s4 + $0x88] sm:$0xff] }
 0x1a6   : > { %v1796_v30 = vpop.f32.mrf.mxu0  ;;  %v2085_v32 = vpop.f32.mrf.mxu1 }
 0x1a7   : > { %v2312_v33 = vadd.f32 %v2084_v29, %v646_v25 }
 0x1a8   : > { %v1799_v34 = vpop.f32.mrf.mxu0  ;;  %1990 = vmatmul.mubr.bf16.gmra.mxu0 %v3321_v24  ;;  %v2088_v36 = vpop.f32.mrf.mxu1  ;;  %2279 = vmatmul.mubr.bf16.gmra.mxu1 %v3324_v27 }
 0x1a9   : > { %1997 = vmatprep.mubr.bf16.mxu0 %v3329_v28  ;;  %2376 = vst [vmem:[%s5095_s4 + $0x48] sm:$0xff] %v2312_v33  ;;  %v2089_v37 = vadd.f32 %v2088_v36, %v1799_v34  ;;  %2286 = vmatprep.mubr.bf16.mxu1 %v3332_v31  ;;  %v655_v33 = vld [vmem:[%s5095_s4 + $0x90] sm:$0xff] }
 0x1aa   : > { %v1801_v38 = vpop.f32.mrf.mxu0  ;;  %v2090_v39 = vpop.f32.mrf.mxu1 }
 0x1ab   : > { %v2313_v40 = vadd.f32 %v2089_v37, %v647_v35 }
 0x1ac   : > { %v1802_v41 = vpop.f32.mrf.mxu0  ;;  %v2091_v44 = vpop.f32.mrf.mxu1 }
 0x1ad   : > { %2377 = vst [vmem:[%s5095_s4 + $0x50] sm:$0xff] %v2313_v40  ;;  %v2092_v47 = vadd.f32 %v2091_v44, %v1802_v41  ;;  %v656_v40 = vld [vmem:[%s5095_s4 + $0x98] sm:$0xff] }
 0x1ae   : > { %v1804_v48 = vpop.f32.mrf.mxu0  ;;  %v2093_v50 = vpop.f32.mrf.mxu1 }
 0x1af   : > { %v2314_v51 = vadd.f32 %v2092_v47, %v648_v43  ;;  %v657_v47 = vld [vmem:[%s5095_s4 + $0xa0] sm:$0xff] }
 0x1b0   : > { %v1807_v52 = vpop.f32.mrf.mxu0  ;;  %1998 = vmatmul.mubr.bf16.gmra.mxu0 %v3327_v42  ;;  %v2096_v54 = vpop.f32.mrf.mxu1  ;;  %2287 = vmatmul.mubr.bf16.gmra.mxu1 %v3330_v45 }
 0x1b1   : > { %2005 = vmatprep.mubr.bf16.mxu0 %v3335_v46  ;;  %2378 = vst [vmem:[%s5095_s4 + $0x58] sm:$0xff] %v2314_v51  ;;  %v2097_v55 = vadd.f32 %v2096_v54, %v1807_v52  ;;  %2294 = vmatprep.mubr.bf16.mxu1 %v3338_v49  ;;  %v658_v54 = vld [vmem:[%s5095_s4 + $0xa8] sm:$0xff] }
 0x1b2   : > { %v1809_v56 = vpop.f32.mrf.mxu0  ;;  %v2098_v57 = vpop.f32.mrf.mxu1 }
 0x1b3   : > { %v2315_v58 = vadd.f32 %v2097_v55, %v649_v53 }
 0x1b4   : > { %v1810_v59 = vpop.f32.mrf.mxu0  ;;  %v2099_v62 = vpop.f32.mrf.mxu1 }
 0x1b5   : > { %2379 = vst [vmem:[%s5095_s4 + $0x60] sm:$0xff] %v2315_v58  ;;  %v2100_v0 = vadd.f32 %v2099_v62, %v1810_v59 }
 0x1b6   : > { %v1812_v1 = vpop.f32.mrf.mxu0  ;;  %v2101_v2 = vpop.f32.mrf.mxu1 }
 0x1b7   : > { %v2316_v3 = vadd.f32 %v2100_v0, %v650_v61  ;;  %v659_v61 = vld [vmem:[%s5095_s4 + $0xb0] sm:$0xff] }
 0x1b8   : > { %v1815_v4 = vpop.f32.mrf.mxu0  ;;  %2006 = vmatmul.mubr.bf16.gmra.mxu0 %v3333_v60  ;;  %v2104_v6 = vpop.f32.mrf.mxu1  ;;  %2295 = vmatmul.mubr.bf16.gmra.mxu1 %v3336_v63 }
 0x1b9   : > { %2380 = vst [vmem:[%s5095_s4 + $0x68] sm:$0xff] %v2316_v3  ;;  %v2105_v7 = vadd.f32 %v2104_v6, %v1815_v4  ;;  %v660_v4 = vld [vmem:[%s5095_s4 + $0xb8] sm:$0xff] }
 0x1ba   : > { %v1817_v8 = vpop.f32.mrf.mxu0  ;;  %v2106_v9 = vpop.f32.mrf.mxu1 }
 0x1bb   : > { %v2317_v10 = vadd.f32 %v2105_v7, %v651_v5 }
 0x1bc   : > { %v1818_v11 = vpop.f32.mrf.mxu0  ;;  %v2107_v13 = vpop.f32.mrf.mxu1 }
 0x1bd   : > { %2381 = vst [vmem:[%s5095_s4 + $0x70] sm:$0xff] %v2317_v10  ;;  %v2108_v14 = vadd.f32 %v2107_v13, %v1818_v11  ;;  %v661_v11 = vld [vmem:[%s5095_s4 + $0xc0] sm:$0xff] }
 0x1be   : > { %v1820_v15 = vpop.f32.mrf.mxu0  ;;  %v2109_v16 = vpop.f32.mrf.mxu1 }
 0x1bf   : > { %v2318_v17 = vadd.f32 %v2108_v14, %v652_v12 }
 0x1c0   : > { %v1823_v18 = vpop.f32.mrf.mxu0  ;;  %v2112_v20 = vpop.f32.mrf.mxu1 }
 0x1c1   : > { %2382 = vst [vmem:[%s5095_s4 + $0x78] sm:$0xff] %v2318_v17  ;;  %v2113_v21 = vadd.f32 %v2112_v20, %v1823_v18  ;;  %v662_v18 = vld [vmem:[%s5095_s4 + $0xc8] sm:$0xff] }
 0x1c2   : > { %v1825_v22 = vpop.f32.mrf.mxu0  ;;  %v2114_v23 = vpop.f32.mrf.mxu1 }
 0x1c3   : > { %v2319_v24 = vadd.f32 %v2113_v21, %v653_v19 }
 0x1c4   : > { %v1826_v25 = vpop.f32.mrf.mxu0  ;;  %v2115_v27 = vpop.f32.mrf.mxu1 }
 0x1c5   : > { %2383 = vst [vmem:[%s5095_s4 + $0x80] sm:$0xff] %v2319_v24  ;;  %v2116_v28 = vadd.f32 %v2115_v27, %v1826_v25  ;;  %v663_v25 = vld [vmem:[%s5095_s4 + $0xd0] sm:$0xff] }
 0x1c6   : > { %v1828_v29 = vpop.f32.mrf.mxu0  ;;  %v2117_v30 = vpop.f32.mrf.mxu1 }
 0x1c7   : > { %v2320_v31 = vadd.f32 %v2116_v28, %v654_v26 }
 0x1c8   : > { %v1831_v32 = vpop.f32.mrf.mxu0  ;;  %v2120_v34 = vpop.f32.mrf.mxu1 }
 0x1c9   : > { %2384 = vst [vmem:[%s5095_s4 + $0x88] sm:$0xff] %v2320_v31  ;;  %v2121_v35 = vadd.f32 %v2120_v34, %v1831_v32  ;;  %v664_v32 = vld [vmem:[%s5095_s4 + $0xd8] sm:$0xff] }
 0x1ca   : > { %v1833_v36 = vpop.f32.mrf.mxu0  ;;  %v2122_v37 = vpop.f32.mrf.mxu1 }
 0x1cb   : > { %v2321_v38 = vadd.f32 %v2121_v35, %v655_v33 }
 0x1cc   : > { %v1834_v39 = vpop.f32.mrf.mxu0  ;;  %v2123_v41 = vpop.f32.mrf.mxu1 }
 0x1cd   : > { %2385 = vst [vmem:[%s5095_s4 + $0x90] sm:$0xff] %v2321_v38  ;;  %v2124_v42 = vadd.f32 %v2123_v41, %v1834_v39  ;;  %v665_v39 = vld [vmem:[%s5095_s4 + $0xe0] sm:$0xff] }
 0x1ce   : > { %v1836_v43 = vpop.f32.mrf.mxu0  ;;  %v2125_v44 = vpop.f32.mrf.mxu1 }
 0x1cf   : > { %v2322_v45 = vadd.f32 %v2124_v42, %v656_v40 }
 0x1d0   : > { %v1839_v46 = vpop.f32.mrf.mxu0  ;;  %v2128_v48 = vpop.f32.mrf.mxu1 }
 0x1d1   : > { %2386 = vst [vmem:[%s5095_s4 + $0x98] sm:$0xff] %v2322_v45  ;;  %v2129_v49 = vadd.f32 %v2128_v48, %v1839_v46  ;;  %v666_v46 = vld [vmem:[%s5095_s4 + $0xe8] sm:$0xff] }
 0x1d2   : > { %v1841_v50 = vpop.f32.mrf.mxu0  ;;  %v2130_v51 = vpop.f32.mrf.mxu1 }
 0x1d3   : > { %v2323_v52 = vadd.f32 %v2129_v49, %v657_v47 }
 0x1d4   : > { %v1842_v53 = vpop.f32.mrf.mxu0  ;;  %v2131_v55 = vpop.f32.mrf.mxu1 }
 0x1d5   : > { %2387 = vst [vmem:[%s5095_s4 + $0xa0] sm:$0xff] %v2323_v52  ;;  %v2132_v56 = vadd.f32 %v2131_v55, %v1842_v53  ;;  %v667_v53 = vld [vmem:[%s5095_s4 + $0xf0] sm:$0xff] }
 0x1d6   : > { %v1844_v57 = vpop.f32.mrf.mxu0  ;;  %v2133_v58 = vpop.f32.mrf.mxu1 }
 0x1d7   : > { %v2324_v59 = vadd.f32 %v2132_v56, %v658_v54 }
 0x1d8   : > { %v1847_v60 = vpop.f32.mrf.mxu0  ;;  %v2136_v62 = vpop.f32.mrf.mxu1 }
 0x1d9   : > { %2388 = vst [vmem:[%s5095_s4 + $0xa8] sm:$0xff] %v2324_v59  ;;  %v2137_v63 = vadd.f32 %v2136_v62, %v1847_v60  ;;  %v668_v60 = vld [vmem:[%s5095_s4 + $0xf8] sm:$0xff] }
 0x1da   : > { %v1849_v0 = vpop.f32.mrf.mxu0  ;;  %v2138_v1 = vpop.f32.mrf.mxu1 }
 0x1db   : > { %v2325_v2 = vadd.f32 %v2137_v63, %v659_v61 }
 0x1dc   : > { %v1850_v3 = vpop.f32.mrf.mxu0  ;;  %v2139_v5 = vpop.f32.mrf.mxu1 }
 0x1dd   : > { %2389 = vst [vmem:[%s5095_s4 + $0xb0] sm:$0xff] %v2325_v2  ;;  %v2140_v6 = vadd.f32 %v2139_v5, %v1850_v3  ;;  %v669_v3 = vld [vmem:[%s5095_s4 + $0x100] sm:$0xff] }
 0x1de   : > { %v1852_v7 = vpop.f32.mrf.mxu0  ;;  %v2141_v8 = vpop.f32.mrf.mxu1 }
 0x1df   : > { %v2326_v9 = vadd.f32 %v2140_v6, %v660_v4 }
 0x1e0   : > { %v1855_v10 = vpop.f32.mrf.mxu0  ;;  %v2144_v12 = vpop.f32.mrf.mxu1 }
 0x1e1   : > { %2390 = vst [vmem:[%s5095_s4 + $0xb8] sm:$0xff] %v2326_v9  ;;  %v2145_v13 = vadd.f32 %v2144_v12, %v1855_v10  ;;  %v670_v10 = vld [vmem:[%s5095_s4 + $0x108] sm:$0xff] }
 0x1e2   : > { %v1857_v14 = vpop.f32.mrf.mxu0  ;;  %v2146_v15 = vpop.f32.mrf.mxu1 }
 0x1e3   : > { %v2327_v16 = vadd.f32 %v2145_v13, %v661_v11 }
 0x1e4   : > { %v1858_v17 = vpop.f32.mrf.mxu0  ;;  %v2147_v19 = vpop.f32.mrf.mxu1 }
 0x1e5   : > { %2391 = vst [vmem:[%s5095_s4 + $0xc0] sm:$0xff] %v2327_v16  ;;  %v2148_v20 = vadd.f32 %v2147_v19, %v1858_v17  ;;  %v671_v17 = vld [vmem:[%s5095_s4 + $0x110] sm:$0xff] }
 0x1e6   : > { %v1860_v21 = vpop.f32.mrf.mxu0  ;;  %v2149_v22 = vpop.f32.mrf.mxu1 }
 0x1e7   : > { %v2328_v23 = vadd.f32 %v2148_v20, %v662_v18 }
 0x1e8   : > { %v1863_v24 = vpop.f32.mrf.mxu0  ;;  %v2152_v26 = vpop.f32.mrf.mxu1 }
 0x1e9   : > { %2392 = vst [vmem:[%s5095_s4 + $0xc8] sm:$0xff] %v2328_v23  ;;  %v2153_v27 = vadd.f32 %v2152_v26, %v1863_v24  ;;  %v672_v24 = vld [vmem:[%s5095_s4 + $0x118] sm:$0xff] }
 0x1ea   : > { %v1865_v28 = vpop.f32.mrf.mxu0  ;;  %v2154_v29 = vpop.f32.mrf.mxu1 }
 0x1eb   : > { %v2329_v30 = vadd.f32 %v2153_v27, %v663_v25 }
 0x1ec   : > { %v1866_v31 = vpop.f32.mrf.mxu0  ;;  %v2155_v33 = vpop.f32.mrf.mxu1 }
 0x1ed   : > { %2393 = vst [vmem:[%s5095_s4 + $0xd0] sm:$0xff] %v2329_v30  ;;  %v2156_v34 = vadd.f32 %v2155_v33, %v1866_v31  ;;  %v673_v31 = vld [vmem:[%s5095_s4 + $0x120] sm:$0xff] }
 0x1ee   : > { %v1868_v35 = vpop.f32.mrf.mxu0  ;;  %v2157_v36 = vpop.f32.mrf.mxu1 }
 0x1ef   : > { %v2330_v37 = vadd.f32 %v2156_v34, %v664_v32 }
 0x1f0   : > { %v1871_v38 = vpop.f32.mrf.mxu0  ;;  %v2160_v40 = vpop.f32.mrf.mxu1 }
 0x1f1   : > { %2394 = vst [vmem:[%s5095_s4 + $0xd8] sm:$0xff] %v2330_v37  ;;  %v2161_v41 = vadd.f32 %v2160_v40, %v1871_v38  ;;  %v674_v38 = vld [vmem:[%s5095_s4 + $0x128] sm:$0xff] }
 0x1f2   : > { %v1873_v42 = vpop.f32.mrf.mxu0  ;;  %v2162_v43 = vpop.f32.mrf.mxu1 }
 0x1f3   : > { %v2331_v44 = vadd.f32 %v2161_v41, %v665_v39 }
 0x1f4   : > { %v1874_v45 = vpop.f32.mrf.mxu0  ;;  %v2163_v47 = vpop.f32.mrf.mxu1 }
 0x1f5   : > { %2395 = vst [vmem:[%s5095_s4 + $0xe0] sm:$0xff] %v2331_v44  ;;  %v2164_v48 = vadd.f32 %v2163_v47, %v1874_v45  ;;  %v675_v45 = vld [vmem:[%s5095_s4 + $0x130] sm:$0xff] }
 0x1f6   : > { %v1876_v49 = vpop.f32.mrf.mxu0  ;;  %v2165_v50 = vpop.f32.mrf.mxu1 }
 0x1f7   : > { %v2332_v51 = vadd.f32 %v2164_v48, %v666_v46 }
 0x1f8   : > { %v1879_v52 = vpop.f32.mrf.mxu0  ;;  %v2168_v54 = vpop.f32.mrf.mxu1 }
 0x1f9   : > { %2396 = vst [vmem:[%s5095_s4 + $0xe8] sm:$0xff] %v2332_v51  ;;  %v2169_v55 = vadd.f32 %v2168_v54, %v1879_v52  ;;  %v676_v52 = vld [vmem:[%s5095_s4 + $0x138] sm:$0xff] }
 0x1fa   : > { %v1881_v56 = vpop.f32.mrf.mxu0  ;;  %v2170_v57 = vpop.f32.mrf.mxu1 }
 0x1fb   : > { %v2333_v58 = vadd.f32 %v2169_v55, %v667_v53 }
 0x1fc   : > { %v1882_v59 = vpop.f32.mrf.mxu0  ;;  %v2171_v61 = vpop.f32.mrf.mxu1 }
 0x1fd   : > { %2397 = vst [vmem:[%s5095_s4 + $0xf0] sm:$0xff] %v2333_v58  ;;  %v2172_v62 = vadd.f32 %v2171_v61, %v1882_v59  ;;  %v677_v59 = vld [vmem:[%s5095_s4 + $0x140] sm:$0xff] }
 0x1fe   : > { %v1884_v63 = vpop.f32.mrf.mxu0  ;;  %v2173_v0 = vpop.f32.mrf.mxu1 }
 0x1ff   : > { %v2334_v1 = vadd.f32 %v2172_v62, %v668_v60 }
 0x200   : > { %v1887_v2 = vpop.f32.mrf.mxu0  ;;  %v2176_v4 = vpop.f32.mrf.mxu1 }
 0x201   : > { %2398 = vst [vmem:[%s5095_s4 + $0xf8] sm:$0xff] %v2334_v1  ;;  %v2177_v5 = vadd.f32 %v2176_v4, %v1887_v2  ;;  %v678_v2 = vld [vmem:[%s5095_s4 + $0x148] sm:$0xff] }
 0x202   : > { %v1889_v6 = vpop.f32.mrf.mxu0  ;;  %v2178_v7 = vpop.f32.mrf.mxu1 }
 0x203   : > { %v2335_v8 = vadd.f32 %v2177_v5, %v669_v3 }
 0x204   : > { %v1890_v9 = vpop.f32.mrf.mxu0  ;;  %v2179_v11 = vpop.f32.mrf.mxu1 }
 0x205   : > { %2399 = vst [vmem:[%s5095_s4 + $0x100] sm:$0xff] %v2335_v8  ;;  %v2180_v12 = vadd.f32 %v2179_v11, %v1890_v9  ;;  %v679_v9 = vld [vmem:[%s5095_s4 + $0x150] sm:$0xff] }
 0x206   : > { %v1892_v13 = vpop.f32.mrf.mxu0  ;;  %v2181_v14 = vpop.f32.mrf.mxu1 }
 0x207   : > { %v2336_v15 = vadd.f32 %v2180_v12, %v670_v10 }
 0x208   : > { %v1895_v16 = vpop.f32.mrf.mxu0  ;;  %v2184_v18 = vpop.f32.mrf.mxu1 }
 0x209   : > { %2400 = vst [vmem:[%s5095_s4 + $0x108] sm:$0xff] %v2336_v15  ;;  %v2185_v19 = vadd.f32 %v2184_v18, %v1895_v16  ;;  %v680_v16 = vld [vmem:[%s5095_s4 + $0x158] sm:$0xff] }
 0x20a   : > { %v1897_v20 = vpop.f32.mrf.mxu0  ;;  %v2186_v21 = vpop.f32.mrf.mxu1 }
 0x20b   : > { %v2337_v22 = vadd.f32 %v2185_v19, %v671_v17 }
 0x20c   : > { %v1898_v23 = vpop.f32.mrf.mxu0  ;;  %v2187_v25 = vpop.f32.mrf.mxu1 }
 0x20d   : > { %2401 = vst [vmem:[%s5095_s4 + $0x110] sm:$0xff] %v2337_v22  ;;  %v2188_v26 = vadd.f32 %v2187_v25, %v1898_v23  ;;  %v681_v23 = vld [vmem:[%s5095_s4 + $0x160] sm:$0xff] }
 0x20e   : > { %v1900_v27 = vpop.f32.mrf.mxu0  ;;  %v2189_v28 = vpop.f32.mrf.mxu1 }
 0x20f   : > { %v2338_v29 = vadd.f32 %v2188_v26, %v672_v24 }
 0x210   : > { %v1903_v30 = vpop.f32.mrf.mxu0  ;;  %v2192_v32 = vpop.f32.mrf.mxu1 }
 0x211   : > { %2402 = vst [vmem:[%s5095_s4 + $0x118] sm:$0xff] %v2338_v29  ;;  %v2193_v33 = vadd.f32 %v2192_v32, %v1903_v30  ;;  %v682_v30 = vld [vmem:[%s5095_s4 + $0x168] sm:$0xff] }
 0x212   : > { %v1905_v34 = vpop.f32.mrf.mxu0  ;;  %v2194_v35 = vpop.f32.mrf.mxu1 }
 0x213   : > { %v2339_v36 = vadd.f32 %v2193_v33, %v673_v31 }
 0x214   : > { %v1906_v37 = vpop.f32.mrf.mxu0  ;;  %v2195_v39 = vpop.f32.mrf.mxu1 }
 0x215   : > { %2403 = vst [vmem:[%s5095_s4 + $0x120] sm:$0xff] %v2339_v36  ;;  %v2196_v40 = vadd.f32 %v2195_v39, %v1906_v37  ;;  %v683_v37 = vld [vmem:[%s5095_s4 + $0x170] sm:$0xff] }
 0x216   : > { %v1908_v41 = vpop.f32.mrf.mxu0  ;;  %v2197_v42 = vpop.f32.mrf.mxu1 }
 0x217   : > { %v2340_v43 = vadd.f32 %v2196_v40, %v674_v38 }
 0x218   : > { %v1911_v44 = vpop.f32.mrf.mxu0  ;;  %v2200_v46 = vpop.f32.mrf.mxu1 }
 0x219   : > { %2404 = vst [vmem:[%s5095_s4 + $0x128] sm:$0xff] %v2340_v43  ;;  %v2201_v47 = vadd.f32 %v2200_v46, %v1911_v44  ;;  %v684_v44 = vld [vmem:[%s5095_s4 + $0x178] sm:$0xff] }
 0x21a   : > { %v1913_v48 = vpop.f32.mrf.mxu0  ;;  %v2202_v49 = vpop.f32.mrf.mxu1 }
 0x21b   : > { %v2341_v50 = vadd.f32 %v2201_v47, %v675_v45 }
 0x21c   : > { %v1914_v51 = vpop.f32.mrf.mxu0  ;;  %v2203_v53 = vpop.f32.mrf.mxu1 }
 0x21d   : > { %2405 = vst [vmem:[%s5095_s4 + $0x130] sm:$0xff] %v2341_v50  ;;  %v2204_v54 = vadd.f32 %v2203_v53, %v1914_v51  ;;  %v685_v51 = vld [vmem:[%s5095_s4 + $0x180] sm:$0xff] }
 0x21e   : > { %v1916_v55 = vpop.f32.mrf.mxu0  ;;  %v2205_v56 = vpop.f32.mrf.mxu1 }
 0x21f   : > { %v2342_v57 = vadd.f32 %v2204_v54, %v676_v52 }
 0x220   : > { %v1919_v58 = vpop.f32.mrf.mxu0  ;;  %v2208_v60 = vpop.f32.mrf.mxu1 }
 0x221   : > { %2406 = vst [vmem:[%s5095_s4 + $0x138] sm:$0xff] %v2342_v57  ;;  %v2209_v61 = vadd.f32 %v2208_v60, %v1919_v58  ;;  %v686_v58 = vld [vmem:[%s5095_s4 + $0x188] sm:$0xff] }
 0x222   : > { %v1921_v62 = vpop.f32.mrf.mxu0  ;;  %v2210_v63 = vpop.f32.mrf.mxu1 }
 0x223   : > { %v2343_v0 = vadd.f32 %v2209_v61, %v677_v59 }
 0x224   : > { %v1922_v1 = vpop.f32.mrf.mxu0  ;;  %v2211_v3 = vpop.f32.mrf.mxu1 }
 0x225   : > { %2407 = vst [vmem:[%s5095_s4 + $0x140] sm:$0xff] %v2343_v0  ;;  %v2212_v4 = vadd.f32 %v2211_v3, %v1922_v1  ;;  %v687_v1 = vld [vmem:[%s5095_s4 + $0x190] sm:$0xff] }
 0x226   : > { %v1924_v5 = vpop.f32.mrf.mxu0  ;;  %v2213_v6 = vpop.f32.mrf.mxu1 }
 0x227   : > { %v2344_v7 = vadd.f32 %v2212_v4, %v678_v2 }
 0x228   : > { %v1927_v8 = vpop.f32.mrf.mxu0  ;;  %v2216_v10 = vpop.f32.mrf.mxu1 }
 0x229   : > { %2408 = vst [vmem:[%s5095_s4 + $0x148] sm:$0xff] %v2344_v7  ;;  %v2217_v11 = vadd.f32 %v2216_v10, %v1927_v8  ;;  %v688_v8 = vld [vmem:[%s5095_s4 + $0x198] sm:$0xff] }
 0x22a   : > { %v1929_v12 = vpop.f32.mrf.mxu0  ;;  %v2218_v13 = vpop.f32.mrf.mxu1 }
 0x22b   : > { %v2345_v14 = vadd.f32 %v2217_v11, %v679_v9 }
 0x22c   : > { %v1930_v15 = vpop.f32.mrf.mxu0  ;;  %v2219_v17 = vpop.f32.mrf.mxu1 }
 0x22d   : > { %2409 = vst [vmem:[%s5095_s4 + $0x150] sm:$0xff] %v2345_v14  ;;  %v2220_v18 = vadd.f32 %v2219_v17, %v1930_v15  ;;  %v689_v15 = vld [vmem:[%s5095_s4 + $0x1a0] sm:$0xff] }
 0x22e   : > { %v1932_v19 = vpop.f32.mrf.mxu0  ;;  %v2221_v20 = vpop.f32.mrf.mxu1 }
 0x22f   : > { %v2346_v21 = vadd.f32 %v2220_v18, %v680_v16 }
 0x230   : > { %v1935_v22 = vpop.f32.mrf.mxu0  ;;  %v2224_v24 = vpop.f32.mrf.mxu1 }
 0x231   : > { %2410 = vst [vmem:[%s5095_s4 + $0x158] sm:$0xff] %v2346_v21  ;;  %v2225_v25 = vadd.f32 %v2224_v24, %v1935_v22  ;;  %v690_v22 = vld [vmem:[%s5095_s4 + $0x1a8] sm:$0xff] }
 0x232   : > { %v1937_v26 = vpop.f32.mrf.mxu0  ;;  %v2226_v27 = vpop.f32.mrf.mxu1 }
 0x233   : > { %v2347_v28 = vadd.f32 %v2225_v25, %v681_v23 }
 0x234   : > { %v1938_v29 = vpop.f32.mrf.mxu0  ;;  %v2227_v31 = vpop.f32.mrf.mxu1 }
 0x235   : > { %2411 = vst [vmem:[%s5095_s4 + $0x160] sm:$0xff] %v2347_v28  ;;  %v2228_v32 = vadd.f32 %v2227_v31, %v1938_v29  ;;  %v691_v29 = vld [vmem:[%s5095_s4 + $0x1b0] sm:$0xff] }
 0x236   : > { %v1940_v33 = vpop.f32.mrf.mxu0  ;;  %v2229_v34 = vpop.f32.mrf.mxu1 }
 0x237   : > { %v2348_v35 = vadd.f32 %v2228_v32, %v682_v30 }
 0x238   : > { %v1943_v36 = vpop.f32.mrf.mxu0  ;;  %v2232_v38 = vpop.f32.mrf.mxu1 }
 0x239   : > { %2412 = vst [vmem:[%s5095_s4 + $0x168] sm:$0xff] %v2348_v35  ;;  %v2233_v39 = vadd.f32 %v2232_v38, %v1943_v36  ;;  %v692_v36 = vld [vmem:[%s5095_s4 + $0x1b8] sm:$0xff] }
 0x23a   : > { %v1945_v40 = vpop.f32.mrf.mxu0  ;;  %v2234_v41 = vpop.f32.mrf.mxu1 }
 0x23b   : > { %v2349_v42 = vadd.f32 %v2233_v39, %v683_v37 }
 0x23c   : > { %v1946_v43 = vpop.f32.mrf.mxu0  ;;  %v2235_v45 = vpop.f32.mrf.mxu1 }
 0x23d   : > { %2413 = vst [vmem:[%s5095_s4 + $0x170] sm:$0xff] %v2349_v42  ;;  %v2236_v46 = vadd.f32 %v2235_v45, %v1946_v43  ;;  %v693_v43 = vld [vmem:[%s5095_s4 + $0x1c0] sm:$0xff] }
 0x23e   : > { %v1948_v47 = vpop.f32.mrf.mxu0  ;;  %v2237_v48 = vpop.f32.mrf.mxu1 }
 0x23f   : > { %v2350_v49 = vadd.f32 %v2236_v46, %v684_v44 }
 0x240   : > { %v1951_v50 = vpop.f32.mrf.mxu0  ;;  %v2240_v52 = vpop.f32.mrf.mxu1 }
 0x241   : > { %2414 = vst [vmem:[%s5095_s4 + $0x178] sm:$0xff] %v2350_v49  ;;  %v2241_v53 = vadd.f32 %v2240_v52, %v1951_v50  ;;  %v694_v50 = vld [vmem:[%s5095_s4 + $0x1c8] sm:$0xff] }
 0x242   : > { %v1953_v54 = vpop.f32.mrf.mxu0  ;;  %v2242_v55 = vpop.f32.mrf.mxu1 }
 0x243   : > { %v2351_v56 = vadd.f32 %v2241_v53, %v685_v51 }
 0x244   : > { %v1954_v57 = vpop.f32.mrf.mxu0  ;;  %v2243_v59 = vpop.f32.mrf.mxu1 }
 0x245   : > { %2415 = vst [vmem:[%s5095_s4 + $0x180] sm:$0xff] %v2351_v56  ;;  %v2244_v60 = vadd.f32 %v2243_v59, %v1954_v57  ;;  %v695_v57 = vld [vmem:[%s5095_s4 + $0x1d0] sm:$0xff] }
 0x246   : > { %v1956_v61 = vpop.f32.mrf.mxu0  ;;  %v2245_v62 = vpop.f32.mrf.mxu1 }
 0x247   : > { %v2352_v63 = vadd.f32 %v2244_v60, %v686_v58 }
 0x248   : > { %v1959_v0 = vpop.f32.mrf.mxu0  ;;  %v2248_v2 = vpop.f32.mrf.mxu1 }
 0x249   : > { %2416 = vst [vmem:[%s5095_s4 + $0x188] sm:$0xff] %v2352_v63  ;;  %v2249_v3 = vadd.f32 %v2248_v2, %v1959_v0  ;;  %v696_v0 = vld [vmem:[%s5095_s4 + $0x1d8] sm:$0xff] }
 0x24a   : > { %v1961_v4 = vpop.f32.mrf.mxu0  ;;  %v2250_v5 = vpop.f32.mrf.mxu1 }
 0x24b   : > { %v2353_v6 = vadd.f32 %v2249_v3, %v687_v1 }
 0x24c   : > { %v1962_v7 = vpop.f32.mrf.mxu0  ;;  %v2251_v9 = vpop.f32.mrf.mxu1 }
 0x24d   : > { %2417 = vst [vmem:[%s5095_s4 + $0x190] sm:$0xff] %v2353_v6  ;;  %v2252_v10 = vadd.f32 %v2251_v9, %v1962_v7  ;;  %v697_v7 = vld [vmem:[%s5095_s4 + $0x1e0] sm:$0xff] }
 0x24e   : > { %v1964_v11 = vpop.f32.mrf.mxu0  ;;  %v2253_v12 = vpop.f32.mrf.mxu1 }
 0x24f   : > { %v2354_v13 = vadd.f32 %v2252_v10, %v688_v8 }
 0x250   : > { %v1967_v14 = vpop.f32.mrf.mxu0  ;;  %v2256_v16 = vpop.f32.mrf.mxu1 }
 0x251   : > { %2418 = vst [vmem:[%s5095_s4 + $0x198] sm:$0xff] %v2354_v13  ;;  %v2257_v17 = vadd.f32 %v2256_v16, %v1967_v14  ;;  %v698_v14 = vld [vmem:[%s5095_s4 + $0x1e8] sm:$0xff] }
 0x252   : > { %v1969_v18 = vpop.f32.mrf.mxu0  ;;  %v2258_v19 = vpop.f32.mrf.mxu1 }
 0x253   : > { %v2355_v20 = vadd.f32 %v2257_v17, %v689_v15 }
 0x254   : > { %v1970_v21 = vpop.f32.mrf.mxu0  ;;  %v2259_v23 = vpop.f32.mrf.mxu1 }
 0x255   : > { %2419 = vst [vmem:[%s5095_s4 + $0x1a0] sm:$0xff] %v2355_v20  ;;  %v2260_v24 = vadd.f32 %v2259_v23, %v1970_v21  ;;  %v699_v21 = vld [vmem:[%s5095_s4 + $0x1f0] sm:$0xff] }
 0x256   : > { %v1972_v25 = vpop.f32.mrf.mxu0  ;;  %v2261_v26 = vpop.f32.mrf.mxu1 }
 0x257   : > { %v2356_v27 = vadd.f32 %v2260_v24, %v690_v22 }
 0x258   : > { %v1975_v28 = vpop.f32.mrf.mxu0  ;;  %v2264_v30 = vpop.f32.mrf.mxu1 }
 0x259   : > { %2420 = vst [vmem:[%s5095_s4 + $0x1a8] sm:$0xff] %v2356_v27  ;;  %v2265_v31 = vadd.f32 %v2264_v30, %v1975_v28  ;;  %v700_v28 = vld [vmem:[%s5095_s4 + $0x1f8] sm:$0xff] }
 0x25a   : > { %v1977_v32 = vpop.f32.mrf.mxu0  ;;  %v2266_v33 = vpop.f32.mrf.mxu1 }
 0x25b   : > { %v2357_v34 = vadd.f32 %v2265_v31, %v691_v29 }
 0x25c   : > { %v1978_v35 = vpop.f32.mrf.mxu0  ;;  %v2267_v37 = vpop.f32.mrf.mxu1 }
 0x25d   : > { %2421 = vst [vmem:[%s5095_s4 + $0x1b0] sm:$0xff] %v2357_v34  ;;  %v2268_v38 = vadd.f32 %v2267_v37, %v1978_v35 }
 0x25e   : > { %v1980_v39 = vpop.f32.mrf.mxu0  ;;  %v2269_v40 = vpop.f32.mrf.mxu1 }
 0x25f   : > { %v2358_v41 = vadd.f32 %v2268_v38, %v692_v36 }
 0x260   : > { %v1983_v42 = vpop.f32.mrf.mxu0  ;;  %v2272_v44 = vpop.f32.mrf.mxu1 }
 0x261   : > { %2422 = vst [vmem:[%s5095_s4 + $0x1b8] sm:$0xff] %v2358_v41  ;;  %v2273_v45 = vadd.f32 %v2272_v44, %v1983_v42 }
 0x262   : > { %v1985_v46 = vpop.f32.mrf.mxu0  ;;  %v2274_v47 = vpop.f32.mrf.mxu1 }
 0x263   : > { %v2359_v48 = vadd.f32 %v2273_v45, %v693_v43 }
 0x264   : > { %v1986_v49 = vpop.f32.mrf.mxu0  ;;  %v2275_v51 = vpop.f32.mrf.mxu1 }
 0x265   : > { %2423 = vst [vmem:[%s5095_s4 + $0x1c0] sm:$0xff] %v2359_v48  ;;  %v2276_v52 = vadd.f32 %v2275_v51, %v1986_v49 }
 0x266   : > { %v1988_v53 = vpop.f32.mrf.mxu0  ;;  %v2277_v54 = vpop.f32.mrf.mxu1 }
 0x267   : > { %v2360_v55 = vadd.f32 %v2276_v52, %v694_v50 }
 0x268   : > { %v1991_v56 = vpop.f32.mrf.mxu0  ;;  %v2280_v58 = vpop.f32.mrf.mxu1 }
 0x269   : > { %2424 = vst [vmem:[%s5095_s4 + $0x1c8] sm:$0xff] %v2360_v55  ;;  %v2281_v59 = vadd.f32 %v2280_v58, %v1991_v56 }
 0x26a   : > { %v1993_v60 = vpop.f32.mrf.mxu0  ;;  %v2282_v61 = vpop.f32.mrf.mxu1 }
 0x26b   : > { %v2361_v62 = vadd.f32 %v2281_v59, %v695_v57 }
 0x26c   : > { %v1994_v63 = vpop.f32.mrf.mxu0  ;;  %v2283_v1 = vpop.f32.mrf.mxu1 }
 0x26d   : > { %2425 = vst [vmem:[%s5095_s4 + $0x1d0] sm:$0xff] %v2361_v62  ;;  %v2284_v2 = vadd.f32 %v2283_v1, %v1994_v63 }
 0x26e   : > { %v1996_v3 = vpop.f32.mrf.mxu0  ;;  %v2285_v4 = vpop.f32.mrf.mxu1 }
 0x26f   : > { %v2362_v5 = vadd.f32 %v2284_v2, %v696_v0 }
 0x270   : > { %v1999_v6 = vpop.f32.mrf.mxu0  ;;  %v2288_v8 = vpop.f32.mrf.mxu1 }
 0x271   : > { %2426 = vst [vmem:[%s5095_s4 + $0x1d8] sm:$0xff] %v2362_v5  ;;  %v2289_v9 = vadd.f32 %v2288_v8, %v1999_v6 }
 0x272   : > { %v2001_v10 = vpop.f32.mrf.mxu0  ;;  %v2290_v11 = vpop.f32.mrf.mxu1 }
 0x273   : > { %v2363_v12 = vadd.f32 %v2289_v9, %v697_v7 }
 0x274   : > { %v2002_v13 = vpop.f32.mrf.mxu0  ;;  %v2291_v15 = vpop.f32.mrf.mxu1 }
 0x275   : > { %2427 = vst [vmem:[%s5095_s4 + $0x1e0] sm:$0xff] %v2363_v12  ;;  %v2292_v16 = vadd.f32 %v2291_v15, %v2002_v13 }
 0x276   : > { %v2004_v17 = vpop.f32.mrf.mxu0  ;;  %v2293_v18 = vpop.f32.mrf.mxu1 }
 0x277   : > { %v2364_v19 = vadd.f32 %v2292_v16, %v698_v14 }
 0x278   : > { %v2007_v20 = vpop.f32.mrf.mxu0  ;;  %v2296_v22 = vpop.f32.mrf.mxu1 }
 0x279   : > { %2428 = vst [vmem:[%s5095_s4 + $0x1e8] sm:$0xff] %v2364_v19  ;;  %v2297_v23 = vadd.f32 %v2296_v22, %v2007_v20 }
 0x27a   : > { %v2009_v24 = vpop.f32.mrf.mxu0  ;;  %v2298_v25 = vpop.f32.mrf.mxu1 }
 0x27b   : > { %v2365_v26 = vadd.f32 %v2297_v23, %v699_v21 }
 0x27c   : > { %v2010_v27 = vpop.f32.mrf.mxu0  ;;  %v2299_v29 = vpop.f32.mrf.mxu1 }
 0x27d   : > { %2429 = vst [vmem:[%s5095_s4 + $0x1f0] sm:$0xff] %v2365_v26  ;;  %v2300_v30 = vadd.f32 %v2299_v29, %v2010_v27  ;;  %2434 = sbr.rel (%p3065_p11) target bundleno = 698 (0x2ba), region = 67 }
 0x27e   : > { %v2012_v31 = vpop.f32.mrf.mxu0  ;;  %v2301_v32 = vpop.f32.mrf.mxu1 }
 0x27f   : > { %v2366_v33 = vadd.f32 %v2300_v30, %v700_v28 }
 0x281   : > { %2430 = vst [vmem:[%s5095_s4 + $0x1f8] sm:$0xff] %v2366_v33 }
 0x282   : > { %v2435_v34 = vld [vmem:[%s5095_s4] sm:$0xff]  ;;  %v2436_v38 = vld [vmem:[%s5095_s4 + $0x8] sm:$0xff]  ;;  %v2437_v39 = vld [vmem:[%s5095_s4 + $0x10] sm:$0xff] }
 0x283   : > { %v4560_v35 = vld [vmem:[%s5093_s2] ss:$0 sm:$0xff]  ;;  %v2438_v40 = vld [vmem:[%s5095_s4 + $0x18] sm:$0xff]  ;;  %v2440_v45 = vld [vmem:[%s5095_s4 + $0x28] sm:$0xff] }
 0x284   : > { %v4565_v36 = vld [vmem:[%s5094_s3] ss:$0 sm:$0xff]  ;;  %v2506_v37 = vmul.f32 %v4560_v35, %v2435_v34  ;;  %v2507_v41 = vmul.f32 %v4560_v35, %v2436_v38  ;;  %v2508_v42 = vmul.f32 %v4560_v35, %v2437_v39  ;;  %v2509_v43 = vmul.f32 %v4560_v35, %v2438_v40  ;;  %v2441_v46 = vld [vmem:[%s5095_s4 + $0x30] sm:$0xff]  ;;  %v2442_v51 = vld [vmem:[%s5095_s4 + $0x38] sm:$0xff] }
 0x285   : > { %v2439_v44 = vld [vmem:[%s5095_s4 + $0x20] sm:$0xff]  ;;  %v2511_v49 = vmul.f32 %v4560_v35, %v2440_v45  ;;  %v2512_v50 = vmul.f32 %v4560_v35, %v2441_v46  ;;  %v2513_v55 = vmul.f32 %v4560_v35, %v2442_v51  ;;  %v2444_v61 = vld [vmem:[%s5095_s4 + $0x48] sm:$0xff]  ;;  %v2445_v62 = vld [vmem:[%s5095_s4 + $0x50] sm:$0xff] }
 0x286   : > { %v2577_v47 = vadd.f32 %v4565_v36, %v2506_v37  ;;  %v2510_v48 = vmul.f32 %v4560_v35, %v2439_v44  ;;  %v2578_v52 = vadd.f32 %v4565_v36, %v2507_v41  ;;  %v2579_v53 = vadd.f32 %v4565_v36, %v2508_v42  ;;  %v2443_v56 = vld [vmem:[%s5095_s4 + $0x40] sm:$0xff]  ;;  %v2446_v63 = vld [vmem:[%s5095_s4 + $0x58] sm:$0xff]  ;;  %v2448_v5 = vld [vmem:[%s5095_s4 + $0x68] sm:$0xff] }
 0x287   : > { %v2580_v54 = vadd.f32 %v4565_v36, %v2509_v43  ;;  %v2582_v59 = vadd.f32 %v4565_v36, %v2511_v49  ;;  %v2583_v60 = vadd.f32 %v4565_v36, %v2512_v50  ;;  %v2584_v3 = vadd.f32 %v4565_v36, %v2513_v55  ;;  %v2447_v4 = vld [vmem:[%s5095_s4 + $0x60] sm:$0xff]  ;;  %v2449_v6 = vld [vmem:[%s5095_s4 + $0x70] sm:$0xff]  ;;  %v2450_v11 = vld [vmem:[%s5095_s4 + $0x78] sm:$0xff] }
 0x288   : > { %v2641_v57 = vmax.f32 %v2577_v47, 0.0  ;;  %v2581_v58 = vadd.f32 %v4565_v36, %v2510_v48  ;;  %v2642_v0 = vmax.f32 %v2578_v52, 0.0  ;;  %v2643_v1 = vmax.f32 %v2579_v53, 0.0  ;;  %v2451_v24 = vld [vmem:[%s5095_s4 + $0x80] sm:$0xff]  ;;  %v2452_v29 = vld [vmem:[%s5095_s4 + $0x88] sm:$0xff]  ;;  %v2453_v30 = vld [vmem:[%s5095_s4 + $0x90] sm:$0xff] }
 0x289   : > { %v2644_v2 = vmax.f32 %v2580_v54, 0.0  ;;  %v2646_v8 = vmax.f32 %v2582_v59, 0.0  ;;  %v2647_v9 = vmax.f32 %v2583_v60, 0.0  ;;  %v2514_v10 = vmul.f32 %v4560_v35, %v2443_v56  ;;  %v2454_v31 = vld [vmem:[%s5095_s4 + $0x98] sm:$0xff]  ;;  %v2455_v38 = vld [vmem:[%s5095_s4 + $0xa0] sm:$0xff]  ;;  %v2456_v39 = vld [vmem:[%s5095_s4 + $0xa8] sm:$0xff] }
 0x28a   : > { %2705 = vst [vmem:[%s5095_s4] sm:$0xff] %v2641_v57  ;;  %v2645_v7 = vmax.f32 %v2581_v58, 0.0  ;;  %2706 = vst [vmem:[%s5095_s4 + $0x8] sm:$0xff] %v2642_v0  ;;  %v2648_v12 = vmax.f32 %v2584_v3, 0.0  ;;  %v2515_v13 = vmul.f32 %v4560_v35, %v2444_v61  ;;  %v2516_v14 = vmul.f32 %v4560_v35, %v2445_v62  ;;  %v2457_v40 = vld [vmem:[%s5095_s4 + $0xb0] sm:$0xff]  ;;  %v2458_v45 = vld [vmem:[%s5095_s4 + $0xb8] sm:$0xff] }
 0x28b   : > { %2707 = vst [vmem:[%s5095_s4 + $0x10] sm:$0xff] %v2643_v1  ;;  %2708 = vst [vmem:[%s5095_s4 + $0x18] sm:$0xff] %v2644_v2  ;;  %v2517_v15 = vmul.f32 %v4560_v35, %v2446_v63  ;;  %v2585_v16 = vadd.f32 %v4565_v36, %v2514_v10  ;;  %v2518_v17 = vmul.f32 %v4560_v35, %v2447_v4  ;;  %v2459_v58 = vld [vmem:[%s5095_s4 + $0xc0] sm:$0xff]  ;;  %v2460_v63 = vld [vmem:[%s5095_s4 + $0xc8] sm:$0xff] }
 0x28c   : > { %2709 = vst [vmem:[%s5095_s4 + $0x20] sm:$0xff] %v2645_v7  ;;  %2710 = vst [vmem:[%s5095_s4 + $0x28] sm:$0xff] %v2646_v8  ;;  %v2519_v18 = vmul.f32 %v4560_v35, %v2448_v5  ;;  %v2520_v19 = vmul.f32 %v4560_v35, %v2449_v6  ;;  %v2586_v20 = vadd.f32 %v4565_v36, %v2515_v13  ;;  %v2461_v0 = vld [vmem:[%s5095_s4 + $0xd0] sm:$0xff]  ;;  %v2462_v1 = vld [vmem:[%s5095_s4 + $0xd8] sm:$0xff] }
 0x28d   : > { %2711 = vst [vmem:[%s5095_s4 + $0x30] sm:$0xff] %v2647_v9  ;;  %2712 = vst [vmem:[%s5095_s4 + $0x38] sm:$0xff] %v2648_v12  ;;  %v2587_v21 = vadd.f32 %v4565_v36, %v2516_v14  ;;  %v2588_v22 = vadd.f32 %v4565_v36, %v2517_v15  ;;  %v2521_v23 = vmul.f32 %v4560_v35, %v2450_v11  ;;  %v2649_v25 = vmax.f32 %v2585_v16, 0.0  ;;  %v2463_v6 = vld [vmem:[%s5095_s4 + $0xe0] sm:$0xff]  ;;  %v2464_v7 = vld [vmem:[%s5095_s4 + $0xe8] sm:$0xff] }
 0x28e   : > { %v2589_v26 = vadd.f32 %v4565_v36, %v2518_v17  ;;  %v2590_v27 = vadd.f32 %v4565_v36, %v2519_v18  ;;  %v2591_v28 = vadd.f32 %v4565_v36, %v2520_v19  ;;  %v2650_v32 = vmax.f32 %v2586_v20, 0.0  ;;  %v2465_v8 = vld [vmem:[%s5095_s4 + $0xf0] sm:$0xff]  ;;  %v2466_v13 = vld [vmem:[%s5095_s4 + $0xf8] sm:$0xff] }
 0x28f   : > { %v2651_v33 = vmax.f32 %v2587_v21, 0.0  ;;  %v2652_v34 = vmax.f32 %v2588_v22, 0.0  ;;  %v2592_v37 = vadd.f32 %v4565_v36, %v2521_v23  ;;  %2713 = vst [vmem:[%s5095_s4 + $0x40] sm:$0xff] %v2649_v25  ;;  %v2522_v44 = vmul.f32 %v4560_v35, %v2451_v24 }
 0x290   : > { %v2653_v41 = vmax.f32 %v2589_v26, 0.0  ;;  %v2654_v42 = vmax.f32 %v2590_v27, 0.0  ;;  %v2655_v43 = vmax.f32 %v2591_v28, 0.0  ;;  %2714 = vst [vmem:[%s5095_s4 + $0x48] sm:$0xff] %v2650_v32  ;;  %v2523_v47 = vmul.f32 %v4560_v35, %v2452_v29  ;;  %v2467_v26 = vld [vmem:[%s5095_s4 + $0x100] sm:$0xff]  ;;  %v2469_v32 = vld [vmem:[%s5095_s4 + $0x110] sm:$0xff] }
 0x291   : > { %2715 = vst [vmem:[%s5095_s4 + $0x50] sm:$0xff] %v2651_v33  ;;  %2716 = vst [vmem:[%s5095_s4 + $0x58] sm:$0xff] %v2652_v34  ;;  %v2656_v46 = vmax.f32 %v2592_v37, 0.0  ;;  %v2524_v48 = vmul.f32 %v4560_v35, %v2453_v30  ;;  %v2525_v49 = vmul.f32 %v4560_v35, %v2454_v31  ;;  %v2593_v50 = vadd.f32 %v4565_v36, %v2522_v44  ;;  %v2468_v31 = vld [vmem:[%s5095_s4 + $0x108] sm:$0xff]  ;;  %v2470_v33 = vld [vmem:[%s5095_s4 + $0x118] sm:$0xff] }
 0x292   : > { %2717 = vst [vmem:[%s5095_s4 + $0x60] sm:$0xff] %v2653_v41  ;;  %2718 = vst [vmem:[%s5095_s4 + $0x68] sm:$0xff] %v2654_v42  ;;  %v2526_v51 = vmul.f32 %v4560_v35, %v2455_v38  ;;  %v2527_v52 = vmul.f32 %v4560_v35, %v2456_v39  ;;  %v2528_v53 = vmul.f32 %v4560_v35, %v2457_v40  ;;  %v2471_v40 = vld [vmem:[%s5095_s4 + $0x120] sm:$0xff]  ;;  %v2472_v41 = vld [vmem:[%s5095_s4 + $0x128] sm:$0xff] }
 0x293   : > { %2719 = vst [vmem:[%s5095_s4 + $0x70] sm:$0xff] %v2655_v43  ;;  %2720 = vst [vmem:[%s5095_s4 + $0x78] sm:$0xff] %v2656_v46  ;;  %v2594_v54 = vadd.f32 %v4565_v36, %v2523_v47  ;;  %v2595_v55 = vadd.f32 %v4565_v36, %v2524_v48  ;;  %v2596_v56 = vadd.f32 %v4565_v36, %v2525_v49  ;;  %v2657_v59 = vmax.f32 %v2593_v50, 0.0  ;;  %v2473_v42 = vld [vmem:[%s5095_s4 + $0x130] sm:$0xff]  ;;  %v2474_v47 = vld [vmem:[%s5095_s4 + $0x138] sm:$0xff] }
 0x294   : > { %v2529_v57 = vmul.f32 %v4560_v35, %v2458_v45  ;;  %v2597_v60 = vadd.f32 %v4565_v36, %v2526_v51  ;;  %v2598_v61 = vadd.f32 %v4565_v36, %v2527_v52  ;;  %v2599_v62 = vadd.f32 %v4565_v36, %v2528_v53 }
 0x295   : > { %v2658_v2 = vmax.f32 %v2594_v54, 0.0  ;;  %v2659_v3 = vmax.f32 %v2595_v55, 0.0  ;;  %v2660_v4 = vmax.f32 %v2596_v56, 0.0  ;;  %2721 = vst [vmem:[%s5095_s4 + $0x80] sm:$0xff] %v2657_v59  ;;  %v2530_v12 = vmul.f32 %v4560_v35, %v2459_v58 }
 0x296   : > { %v2600_v5 = vadd.f32 %v4565_v36, %v2529_v57  ;;  %v2661_v9 = vmax.f32 %v2597_v60, 0.0  ;;  %v2662_v10 = vmax.f32 %v2598_v61, 0.0  ;;  %v2663_v11 = vmax.f32 %v2599_v62, 0.0  ;;  %v2475_v60 = vld [vmem:[%s5095_s4 + $0x140] sm:$0xff] }
 0x297   : > { %2722 = vst [vmem:[%s5095_s4 + $0x88] sm:$0xff] %v2658_v2  ;;  %2723 = vst [vmem:[%s5095_s4 + $0x90] sm:$0xff] %v2659_v3  ;;  %v2531_v15 = vmul.f32 %v4560_v35, %v2460_v63  ;;  %v2532_v16 = vmul.f32 %v4560_v35, %v2461_v0  ;;  %v2533_v17 = vmul.f32 %v4560_v35, %v2462_v1  ;;  %v2476_v1 = vld [vmem:[%s5095_s4 + $0x148] sm:$0xff]  ;;  %v2477_v2 = vld [vmem:[%s5095_s4 + $0x150] sm:$0xff] }
 0x298   : > { %2724 = vst [vmem:[%s5095_s4 + $0x98] sm:$0xff] %v2660_v4  ;;  %v2664_v14 = vmax.f32 %v2600_v5, 0.0  ;;  %2725 = vst [vmem:[%s5095_s4 + $0xa0] sm:$0xff] %v2661_v9  ;;  %v2601_v18 = vadd.f32 %v4565_v36, %v2530_v12  ;;  %v2534_v19 = vmul.f32 %v4560_v35, %v2463_v6  ;;  %v2535_v20 = vmul.f32 %v4560_v35, %v2464_v7  ;;  %v2478_v3 = vld [vmem:[%s5095_s4 + $0x158] sm:$0xff]  ;;  %v2480_v9 = vld [vmem:[%s5095_s4 + $0x168] sm:$0xff] }
 0x299   : > { %2726 = vst [vmem:[%s5095_s4 + $0xa8] sm:$0xff] %v2662_v10  ;;  %2727 = vst [vmem:[%s5095_s4 + $0xb0] sm:$0xff] %v2663_v11  ;;  %v2536_v21 = vmul.f32 %v4560_v35, %v2465_v8  ;;  %v2602_v22 = vadd.f32 %v4565_v36, %v2531_v15  ;;  %v2603_v23 = vadd.f32 %v4565_v36, %v2532_v16  ;;  %v2479_v8 = vld [vmem:[%s5095_s4 + $0x160] sm:$0xff]  ;;  %v2481_v10 = vld [vmem:[%s5095_s4 + $0x170] sm:$0xff] }
 0x29a   : > { %2728 = vst [vmem:[%s5095_s4 + $0xb8] sm:$0xff] %v2664_v14  ;;  %v2604_v24 = vadd.f32 %v4565_v36, %v2533_v17  ;;  %v2537_v25 = vmul.f32 %v4560_v35, %v2466_v13  ;;  %v2665_v27 = vmax.f32 %v2601_v18, 0.0  ;;  %v2605_v28 = vadd.f32 %v4565_v36, %v2534_v19  ;;  %v2482_v15 = vld [vmem:[%s5095_s4 + $0x178] sm:$0xff] }
 0x29b   : > { %v2606_v29 = vadd.f32 %v4565_v36, %v2535_v20  ;;  %v2607_v30 = vadd.f32 %v4565_v36, %v2536_v21  ;;  %v2666_v34 = vmax.f32 %v2602_v22, 0.0  ;;  %v2667_v37 = vmax.f32 %v2603_v23, 0.0 }
 0x29c   : > { %v2668_v38 = vmax.f32 %v2604_v24, 0.0  ;;  %v2608_v39 = vadd.f32 %v4565_v36, %v2537_v25  ;;  %2729 = vst [vmem:[%s5095_s4 + $0xc0] sm:$0xff] %v2665_v27  ;;  %v2669_v43 = vmax.f32 %v2605_v28, 0.0  ;;  %v2538_v46 = vmul.f32 %v4560_v35, %v2467_v26  ;;  %v2483_v28 = vld [vmem:[%s5095_s4 + $0x180] sm:$0xff] }
 0x29d   : > { %v2670_v44 = vmax.f32 %v2606_v29, 0.0  ;;  %v2671_v45 = vmax.f32 %v2607_v30, 0.0  ;;  %2730 = vst [vmem:[%s5095_s4 + $0xc8] sm:$0xff] %v2666_v34  ;;  %2731 = vst [vmem:[%s5095_s4 + $0xd0] sm:$0xff] %v2667_v37  ;;  %v2539_v49 = vmul.f32 %v4560_v35, %v2468_v31  ;;  %v2540_v50 = vmul.f32 %v4560_v35, %v2469_v32  ;;  %v2485_v34 = vld [vmem:[%s5095_s4 + $0x190] sm:$0xff]  ;;  %v2486_v37 = vld [vmem:[%s5095_s4 + $0x198] sm:$0xff] }
 0x29e   : > { %2732 = vst [vmem:[%s5095_s4 + $0xd8] sm:$0xff] %v2668_v38  ;;  %v2672_v48 = vmax.f32 %v2608_v39, 0.0  ;;  %v2541_v51 = vmul.f32 %v4560_v35, %v2470_v33  ;;  %2733 = vst [vmem:[%s5095_s4 + $0xe0] sm:$0xff] %v2669_v43  ;;  %v2609_v52 = vadd.f32 %v4565_v36, %v2538_v46  ;;  %v2542_v53 = vmul.f32 %v4560_v35, %v2471_v40  ;;  %v2484_v33 = vld [vmem:[%s5095_s4 + $0x188] sm:$0xff] }
 0x29f   : > { %2734 = vst [vmem:[%s5095_s4 + $0xe8] sm:$0xff] %v2670_v44  ;;  %2735 = vst [vmem:[%s5095_s4 + $0xf0] sm:$0xff] %v2671_v45  ;;  %v2543_v54 = vmul.f32 %v4560_v35, %v2472_v41  ;;  %v2544_v55 = vmul.f32 %v4560_v35, %v2473_v42  ;;  %v2610_v56 = vadd.f32 %v4565_v36, %v2539_v49  ;;  %v2487_v42 = vld [vmem:[%s5095_s4 + $0x1a0] sm:$0xff]  ;;  %v2488_v43 = vld [vmem:[%s5095_s4 + $0x1a8] sm:$0xff] }
 0x2a0   : > { %2736 = vst [vmem:[%s5095_s4 + $0xf8] sm:$0xff] %v2672_v48  ;;  %v2611_v57 = vadd.f32 %v4565_v36, %v2540_v50  ;;  %v2612_v58 = vadd.f32 %v4565_v36, %v2541_v51  ;;  %v2545_v59 = vmul.f32 %v4560_v35, %v2474_v47  ;;  %v2673_v61 = vmax.f32 %v2609_v52, 0.0  ;;  %v2489_v44 = vld [vmem:[%s5095_s4 + $0x1b0] sm:$0xff]  ;;  %v2490_v49 = vld [vmem:[%s5095_s4 + $0x1b8] sm:$0xff] }
 0x2a1   : > { %v2613_v62 = vadd.f32 %v4565_v36, %v2542_v53  ;;  %v2614_v63 = vadd.f32 %v4565_v36, %v2543_v54  ;;  %v2615_v0 = vadd.f32 %v4565_v36, %v2544_v55  ;;  %v2674_v4 = vmax.f32 %v2610_v56, 0.0 }
 0x2a2   : > { %v2675_v5 = vmax.f32 %v2611_v57, 0.0  ;;  %v2676_v6 = vmax.f32 %v2612_v58, 0.0  ;;  %v2616_v7 = vadd.f32 %v4565_v36, %v2545_v59  ;;  %2737 = vst [vmem:[%s5095_s4 + $0x100] sm:$0xff] %v2673_v61  ;;  %v2546_v14 = vmul.f32 %v4560_v35, %v2475_v60 }
 0x2a3   : > { %v2677_v11 = vmax.f32 %v2613_v62, 0.0  ;;  %v2678_v12 = vmax.f32 %v2614_v63, 0.0  ;;  %v2679_v13 = vmax.f32 %v2615_v0, 0.0  ;;  %2738 = vst [vmem:[%s5095_s4 + $0x108] sm:$0xff] %v2674_v4  ;;  %v2547_v17 = vmul.f32 %v4560_v35, %v2476_v1  ;;  %v2491_v62 = vld [vmem:[%s5095_s4 + $0x1c0] sm:$0xff]  ;;  %v2493_v4 = vld [vmem:[%s5095_s4 + $0x1d0] sm:$0xff] }
 0x2a4   : > { %2739 = vst [vmem:[%s5095_s4 + $0x110] sm:$0xff] %v2675_v5  ;;  %2740 = vst [vmem:[%s5095_s4 + $0x118] sm:$0xff] %v2676_v6  ;;  %v2680_v16 = vmax.f32 %v2616_v7, 0.0  ;;  %v2548_v18 = vmul.f32 %v4560_v35, %v2477_v2  ;;  %v2549_v19 = vmul.f32 %v4560_v35, %v2478_v3  ;;  %v2617_v20 = vadd.f32 %v4565_v36, %v2546_v14  ;;  %v2492_v3 = vld [vmem:[%s5095_s4 + $0x1c8] sm:$0xff]  ;;  %v2494_v5 = vld [vmem:[%s5095_s4 + $0x1d8] sm:$0xff] }
 0x2a5   : > { %2741 = vst [vmem:[%s5095_s4 + $0x120] sm:$0xff] %v2677_v11  ;;  %2742 = vst [vmem:[%s5095_s4 + $0x128] sm:$0xff] %v2678_v12  ;;  %v2550_v21 = vmul.f32 %v4560_v35, %v2479_v8  ;;  %v2551_v22 = vmul.f32 %v4560_v35, %v2480_v9  ;;  %v2552_v23 = vmul.f32 %v4560_v35, %v2481_v10  ;;  %v2495_v10 = vld [vmem:[%s5095_s4 + $0x1e0] sm:$0xff]  ;;  %v2496_v11 = vld [vmem:[%s5095_s4 + $0x1e8] sm:$0xff] }
 0x2a6   : > { %2743 = vst [vmem:[%s5095_s4 + $0x130] sm:$0xff] %v2679_v13  ;;  %2744 = vst [vmem:[%s5095_s4 + $0x138] sm:$0xff] %v2680_v16  ;;  %v2618_v24 = vadd.f32 %v4565_v36, %v2547_v17  ;;  %v2619_v25 = vadd.f32 %v4565_v36, %v2548_v18  ;;  %v2620_v26 = vadd.f32 %v4565_v36, %v2549_v19  ;;  %v2681_v29 = vmax.f32 %v2617_v20, 0.0  ;;  %v2497_v12 = vld [vmem:[%s5095_s4 + $0x1f0] sm:$0xff]  ;;  %v2498_v17 = vld [vmem:[%s5095_s4 + $0x1f8] sm:$0xff] }
 0x2a7   : > { %v2553_v27 = vmul.f32 %v4560_v35, %v2482_v15  ;;  %v2621_v30 = vadd.f32 %v4565_v36, %v2550_v21  ;;  %v2622_v31 = vadd.f32 %v4565_v36, %v2551_v22  ;;  %v2623_v32 = vadd.f32 %v4565_v36, %v2552_v23 }
 0x2a8   : > { %v2682_v38 = vmax.f32 %v2618_v24, 0.0  ;;  %v2683_v39 = vmax.f32 %v2619_v25, 0.0  ;;  %v2684_v40 = vmax.f32 %v2620_v26, 0.0  ;;  %2745 = vst [vmem:[%s5095_s4 + $0x140] sm:$0xff] %v2681_v29  ;;  %v2554_v48 = vmul.f32 %v4560_v35, %v2483_v28 }
 0x2a9   : > { %v2624_v41 = vadd.f32 %v4565_v36, %v2553_v27  ;;  %v2685_v45 = vmax.f32 %v2621_v30, 0.0  ;;  %v2686_v46 = vmax.f32 %v2622_v31, 0.0  ;;  %v2687_v47 = vmax.f32 %v2623_v32, 0.0 }
 0x2aa   : > { %2746 = vst [vmem:[%s5095_s4 + $0x148] sm:$0xff] %v2682_v38  ;;  %2747 = vst [vmem:[%s5095_s4 + $0x150] sm:$0xff] %v2683_v39  ;;  %v2555_v51 = vmul.f32 %v4560_v35, %v2484_v33  ;;  %v2556_v52 = vmul.f32 %v4560_v35, %v2485_v34  ;;  %v2557_v53 = vmul.f32 %v4560_v35, %v2486_v37 }
 0x2ab   : > { %2748 = vst [vmem:[%s5095_s4 + $0x158] sm:$0xff] %v2684_v40  ;;  %v2688_v50 = vmax.f32 %v2624_v41, 0.0  ;;  %2749 = vst [vmem:[%s5095_s4 + $0x160] sm:$0xff] %v2685_v45  ;;  %v2625_v54 = vadd.f32 %v4565_v36, %v2554_v48  ;;  %v2558_v55 = vmul.f32 %v4560_v35, %v2487_v42  ;;  %v2559_v56 = vmul.f32 %v4560_v35, %v2488_v43 }
 0x2ac   : > { %2750 = vst [vmem:[%s5095_s4 + $0x168] sm:$0xff] %v2686_v46  ;;  %2751 = vst [vmem:[%s5095_s4 + $0x170] sm:$0xff] %v2687_v47  ;;  %v2560_v57 = vmul.f32 %v4560_v35, %v2489_v44  ;;  %v2626_v58 = vadd.f32 %v4565_v36, %v2555_v51  ;;  %v2627_v59 = vadd.f32 %v4565_v36, %v2556_v52 }
 0x2ad   : > { %2752 = vst [vmem:[%s5095_s4 + $0x178] sm:$0xff] %v2688_v50  ;;  %v2628_v60 = vadd.f32 %v4565_v36, %v2557_v53  ;;  %v2561_v61 = vmul.f32 %v4560_v35, %v2490_v49  ;;  %v2689_v63 = vmax.f32 %v2625_v54, 0.0  ;;  %v2629_v0 = vadd.f32 %v4565_v36, %v2558_v55 }
 0x2ae   : > { %v2630_v1 = vadd.f32 %v4565_v36, %v2559_v56  ;;  %v2631_v2 = vadd.f32 %v4565_v36, %v2560_v57  ;;  %v2690_v6 = vmax.f32 %v2626_v58, 0.0  ;;  %v2691_v7 = vmax.f32 %v2627_v59, 0.0 }
 0x2af   : > { %v2692_v8 = vmax.f32 %v2628_v60, 0.0  ;;  %v2632_v9 = vadd.f32 %v4565_v36, %v2561_v61  ;;  %2753 = vst [vmem:[%s5095_s4 + $0x180] sm:$0xff] %v2689_v63  ;;  %v2693_v13 = vmax.f32 %v2629_v0, 0.0  ;;  %v2562_v16 = vmul.f32 %v4560_v35, %v2491_v62 }
 0x2b0   : > { %v2694_v14 = vmax.f32 %v2630_v1, 0.0  ;;  %v2695_v15 = vmax.f32 %v2631_v2, 0.0  ;;  %2754 = vst [vmem:[%s5095_s4 + $0x188] sm:$0xff] %v2690_v6  ;;  %2755 = vst [vmem:[%s5095_s4 + $0x190] sm:$0xff] %v2691_v7  ;;  %v2563_v19 = vmul.f32 %v4560_v35, %v2492_v3  ;;  %v2564_v20 = vmul.f32 %v4560_v35, %v2493_v4 }
 0x2b1   : > { %2756 = vst [vmem:[%s5095_s4 + $0x198] sm:$0xff] %v2692_v8  ;;  %v2696_v18 = vmax.f32 %v2632_v9, 0.0  ;;  %v2565_v21 = vmul.f32 %v4560_v35, %v2494_v5  ;;  %2757 = vst [vmem:[%s5095_s4 + $0x1a0] sm:$0xff] %v2693_v13  ;;  %v2633_v22 = vadd.f32 %v4565_v36, %v2562_v16  ;;  %v2566_v23 = vmul.f32 %v4560_v35, %v2495_v10 }
 0x2b2   : > { %2758 = vst [vmem:[%s5095_s4 + $0x1a8] sm:$0xff] %v2694_v14  ;;  %2759 = vst [vmem:[%s5095_s4 + $0x1b0] sm:$0xff] %v2695_v15  ;;  %v2567_v24 = vmul.f32 %v4560_v35, %v2496_v11  ;;  %v2568_v25 = vmul.f32 %v4560_v35, %v2497_v12  ;;  %v2634_v26 = vadd.f32 %v4565_v36, %v2563_v19 }
 0x2b3   : > { %2760 = vst [vmem:[%s5095_s4 + $0x1b8] sm:$0xff] %v2696_v18  ;;  %v2635_v27 = vadd.f32 %v4565_v36, %v2564_v20  ;;  %v2636_v28 = vadd.f32 %v4565_v36, %v2565_v21  ;;  %v2569_v29 = vmul.f32 %v4560_v35, %v2498_v17  ;;  %v2697_v30 = vmax.f32 %v2633_v22, 0.0 }
 0x2b4   : > { %v2637_v31 = vadd.f32 %v4565_v36, %v2566_v23  ;;  %v2638_v32 = vadd.f32 %v4565_v36, %v2567_v24  ;;  %v2639_v33 = vadd.f32 %v4565_v36, %v2568_v25  ;;  %v2698_v34 = vmax.f32 %v2634_v26, 0.0 }
 0x2b5   : > { %v2699_v37 = vmax.f32 %v2635_v27, 0.0  ;;  %v2700_v38 = vmax.f32 %v2636_v28, 0.0  ;;  %v2640_v39 = vadd.f32 %v4565_v36, %v2569_v29  ;;  %2761 = vst [vmem:[%s5095_s4 + $0x1c0] sm:$0xff] %v2697_v30 }
 0x2b6   : > { %v2701_v40 = vmax.f32 %v2637_v31, 0.0  ;;  %v2702_v41 = vmax.f32 %v2638_v32, 0.0  ;;  %v2703_v42 = vmax.f32 %v2639_v33, 0.0  ;;  %2762 = vst [vmem:[%s5095_s4 + $0x1c8] sm:$0xff] %v2698_v34 }
 0x2b7   : > { %2763 = vst [vmem:[%s5095_s4 + $0x1d0] sm:$0xff] %v2699_v37  ;;  %2764 = vst [vmem:[%s5095_s4 + $0x1d8] sm:$0xff] %v2700_v38  ;;  %v2704_v35 = vmax.f32 %v2640_v39, 0.0 }
 0x2b8   : > { %2765 = vst [vmem:[%s5095_s4 + $0x1e0] sm:$0xff] %v2701_v40  ;;  %2766 = vst [vmem:[%s5095_s4 + $0x1e8] sm:$0xff] %v2702_v41 }
 0x2b9   : > { %2767 = vst [vmem:[%s5095_s4 + $0x1f0] sm:$0xff] %v2703_v42  ;;  %2768 = vst [vmem:[%s5095_s4 + $0x1f8] sm:$0xff] %v2704_v35 }
 0x2ba PF: > { %s14_s19 = sadd.s32 1, %s3377_s19   ;;  %s5096_s15 = smov %s3365_s16 }
 0x2bb   : > { %p11_p12 = scmp.ge.s32.totalorder %s14_s19, 11   ;;  %s5097_s16 = smov %s3441_s23 }
 0x2bc   : > { %s5098_s17 = smov %s3373_s18  ;;  %s5099_s18 = smov %s5101_s20 }
 0x2bd   :  { %13 = sbr.rel (!%p11_p12) target bundleno = 3 (0x3), region = 111 }

// kernel: annl_gsnet_head_forward.15
= control target key start
LH: loop header
LB: loop body
LE: loop exit
PB: predicated region body
PF: predicated region fallthrough
CT: control target
= control target key end

     0   :  { %s1922_s1 = inlined_call_operand.vmem [shape: bf16[128,128], index: 1, kind: input, shape index: {}]   ;;  %s1923_s0 = inlined_call_operand.vmem [shape: bf16[512,128], index: 0, kind: input, shape index: {}]   ;;  %s1924_s2 = inlined_call_operand.vmem [shape: f32[1,128], index: 2, kind: input, shape index: {}]   ;;  %s1925_s3 = inlined_call_operand.vmem [shape: f32[1,128], index: 3, kind: input, shape index: {}]   ;;  %s1926_s4 = inlined_call_operand.vmem [shape: f32[512,128], index: 4, kind: output, shape index: {}]  }
   0x1   :  { %v1407_v0 = vld [vmem:[%s1922_s1 + $0x38] sm:$0xff]   ;;  %v1408_v1 = vld [vmem:[%s1922_s1 + $0x30] sm:$0xff]   ;;  %v1409_v2 = vld [vmem:[%s1922_s1 + $0x28] sm:$0xff]  }
   0x2   :  { %1310 = vmatprep.subr.bf16.mxu0 %v1407_v0  ;;  %1390 = vmatprep.subr.bf16.mxu1 %v1407_v0  ;;  %v1410_v3 = vld [vmem:[%s1922_s1 + $0x20] sm:$0xff]   ;;  %v1411_v6 = vld [vmem:[%s1922_s1 + $0x18] sm:$0xff]   ;;  %v1412_v7 = vld [vmem:[%s1922_s1 + $0x10] sm:$0xff]  }
   0x3   :  { %1311 = vmatpush3.bf16.msra.mxu0 %v1407_v0  ;;  %1398 = vmatpush3.bf16.msra.mxu1 %v1407_v0  ;;  %v1415_v4 = vld [vmem:[%s1923_s0] sm:$0xff]   ;;  %v1413_v8 = vld [vmem:[%s1922_s1 + $0x8] sm:$0xff]   ;;  %v1419_v12 = vld [vmem:[%s1923_s0 + $0x10] sm:$0xff]  }
   0x4   :  { %1312 = vmatprep.subr.bf16.mxu0 %v1408_v1  ;;  %1391 = vmatprep.subr.bf16.mxu1 %v1408_v1  ;;  %v1416_v5 = vld [vmem:[%s1923_s0 + $0x80] sm:$0xff]   ;;  %v1417_v10 = vld [vmem:[%s1923_s0 + $0x8] sm:$0xff]   ;;  %v1420_v13 = vld [vmem:[%s1923_s0 + $0x90] sm:$0xff]  }
   0x5   :  { %1326 = vmatprep.mubr.bf16.mxu0 %v1415_v4  ;;  %1358 = vmatprep.mubr.bf16.mxu1 %v1416_v5  ;;  %v1414_v9 = vld [vmem:[%s1922_s1] sm:$0xff]   ;;  %v1418_v11 = vld [vmem:[%s1923_s0 + $0x88] sm:$0xff]   ;;  %v1421_v14 = vld [vmem:[%s1923_s0 + $0x18] sm:$0xff]  }
   0x6   :  { %v1422_v15 = vld [vmem:[%s1923_s0 + $0x98] sm:$0xff]   ;;  %v1423_v16 = vld [vmem:[%s1923_s0 + $0x20] sm:$0xff]   ;;  %v1425_v18 = vld [vmem:[%s1923_s0 + $0x28] sm:$0xff]  }
   0x7   :  { %1313 = vmatpush3.bf16.msra.mxu0 %v1408_v1  ;;  %1399 = vmatpush3.bf16.msra.mxu1 %v1408_v1  ;;  %v1424_v17 = vld [vmem:[%s1923_s0 + $0xa0] sm:$0xff]   ;;  %v1426_v19 = vld [vmem:[%s1923_s0 + $0xa8] sm:$0xff]   ;;  %v1427_v20 = vld [vmem:[%s1923_s0 + $0x30] sm:$0xff]  }
   0x8   :  { %1314 = vmatprep.subr.bf16.mxu0 %v1409_v2  ;;  %1392 = vmatprep.subr.bf16.mxu1 %v1409_v2  ;;  %v1428_v21 = vld [vmem:[%s1923_s0 + $0xb0] sm:$0xff]   ;;  %v1429_v22 = vld [vmem:[%s1923_s0 + $0x38] sm:$0xff]   ;;  %v1431_v24 = vld [vmem:[%s1923_s0 + $0x40] sm:$0xff]  }
   0x9   :  { %v1430_v23 = vld [vmem:[%s1923_s0 + $0xb8] sm:$0xff]   ;;  %v1432_v25 = vld [vmem:[%s1923_s0 + $0xc0] sm:$0xff]   ;;  %v1433_v26 = vld [vmem:[%s1923_s0 + $0x48] sm:$0xff]  }
   0xa   :  { %v1434_v27 = vld [vmem:[%s1923_s0 + $0xc8] sm:$0xff]   ;;  %v1435_v28 = vld [vmem:[%s1923_s0 + $0x50] sm:$0xff]   ;;  %v1437_v30 = vld [vmem:[%s1923_s0 + $0x58] sm:$0xff]  }
   0xb   :  { %1315 = vmatpush3.bf16.msra.mxu0 %v1409_v2  ;;  %1400 = vmatpush3.bf16.msra.mxu1 %v1409_v2  ;;  %v1436_v29 = vld [vmem:[%s1923_s0 + $0xd0] sm:$0xff]   ;;  %v1438_v31 = vld [vmem:[%s1923_s0 + $0xd8] sm:$0xff]   ;;  %v1439_v32 = vld [vmem:[%s1923_s0 + $0x60] sm:$0xff]  }
   0xc   :  { %1316 = vmatprep.subr.bf16.mxu0 %v1410_v3  ;;  %1393 = vmatprep.subr.bf16.mxu1 %v1410_v3  ;;  %v1440_v33 = vld [vmem:[%s1923_s0 + $0xe0] sm:$0xff]   ;;  %v1441_v34 = vld [vmem:[%s1923_s0 + $0x68] sm:$0xff]   ;;  %v1443_v36 = vld [vmem:[%s1923_s0 + $0x70] sm:$0xff]  }
   0xd   :  { %v1442_v35 = vld [vmem:[%s1923_s0 + $0xe8] sm:$0xff]   ;;  %v1444_v37 = vld [vmem:[%s1923_s0 + $0xf0] sm:$0xff]   ;;  %v1445_v38 = vld [vmem:[%s1923_s0 + $0x78] sm:$0xff]  }
   0xe   :  { %v1446_v39 = vld [vmem:[%s1923_s0 + $0xf8] sm:$0xff]   ;;  %v1595_v41 = vld [vmem:[%s1924_s2] ss:$0 sm:$0xff] }
   0xf   :  { %1317 = vmatpush3.bf16.msra.mxu0 %v1410_v3  ;;  %1401 = vmatpush3.bf16.msra.mxu1 %v1410_v3  ;;  %v1600_v43 = vld [vmem:[%s1925_s3] ss:$0 sm:$0xff] }
  0x10   :  { %1318 = vmatprep.subr.bf16.mxu0 %v1411_v6  ;;  %1394 = vmatprep.subr.bf16.mxu1 %v1411_v6 }
  0x13   :  { %1319 = vmatpush3.bf16.msra.mxu0 %v1411_v6  ;;  %1402 = vmatpush3.bf16.msra.mxu1 %v1411_v6 }
  0x14   :  { %1320 = vmatprep.subr.bf16.mxu0 %v1412_v7  ;;  %1395 = vmatprep.subr.bf16.mxu1 %v1412_v7 }
  0x17   :  { %1321 = vmatpush3.bf16.msra.mxu0 %v1412_v7  ;;  %1403 = vmatpush3.bf16.msra.mxu1 %v1412_v7 }
  0x18   :  { %1322 = vmatprep.subr.bf16.mxu0 %v1413_v8  ;;  %1396 = vmatprep.subr.bf16.mxu1 %v1413_v8 }
  0x1b   :  { %1323 = vmatpush3.bf16.msra.mxu0 %v1413_v8  ;;  %1404 = vmatpush3.bf16.msra.mxu1 %v1413_v8 }
  0x1c   :  { %1324 = vmatprep.subr.bf16.mxu0 %v1414_v9  ;;  %1397 = vmatprep.subr.bf16.mxu1 %v1414_v9 }
  0x1f   :  { %1325 = vmatpush3.bf16.msra.mxu0 %v1414_v9  ;;  %1405 = vmatpush3.bf16.msra.mxu1 %v1414_v9 }
  0x22   :  { %1327 = vmatmul.mubr.bf16.vlgmr.msra.gmra.mxu0 %v1417_v10  ;;  %1359 = vmatmul.mubr.bf16.vlgmr.msra.gmra.mxu1 %v1418_v11 }
  0x23   :  { %1330 = vmatprep.mubr.bf16.mxu0 %v1419_v12  ;;  %1362 = vmatprep.mubr.bf16.mxu1 %v1420_v13 }
  0x2a   :  { %1331 = vmatmul.mubr.bf16.gmra.mxu0 %v1421_v14  ;;  %1363 = vmatmul.mubr.bf16.gmra.mxu1 %v1422_v15 }
  0x2b   :  { %1334 = vmatprep.mubr.bf16.mxu0 %v1423_v16  ;;  %1366 = vmatprep.mubr.bf16.mxu1 %v1424_v17 }
  0x32   :  { %1335 = vmatmul.mubr.bf16.gmra.mxu0 %v1425_v18  ;;  %1367 = vmatmul.mubr.bf16.gmra.mxu1 %v1426_v19 }
  0x33   :  { %1338 = vmatprep.mubr.bf16.mxu0 %v1427_v20  ;;  %1370 = vmatprep.mubr.bf16.mxu1 %v1428_v21 }
  0x3a   :  { %1339 = vmatmul.mubr.bf16.gmra.mxu0 %v1429_v22  ;;  %1371 = vmatmul.mubr.bf16.gmra.mxu1 %v1430_v23 }
  0x3b   :  { %1342 = vmatprep.mubr.bf16.mxu0 %v1431_v24  ;;  %1374 = vmatprep.mubr.bf16.mxu1 %v1432_v25 }
  0x42   :  { %1343 = vmatmul.mubr.bf16.gmra.mxu0 %v1433_v26  ;;  %1375 = vmatmul.mubr.bf16.gmra.mxu1 %v1434_v27 }
  0x43   :  { %1346 = vmatprep.mubr.bf16.mxu0 %v1435_v28  ;;  %1378 = vmatprep.mubr.bf16.mxu1 %v1436_v29 }
  0x4a   :  { %1347 = vmatmul.mubr.bf16.gmra.mxu0 %v1437_v30  ;;  %1379 = vmatmul.mubr.bf16.gmra.mxu1 %v1438_v31 }
  0x4b   :  { %1350 = vmatprep.mubr.bf16.mxu0 %v1439_v32  ;;  %1382 = vmatprep.mubr.bf16.mxu1 %v1440_v33 }
  0x52   :  { %1351 = vmatmul.mubr.bf16.gmra.mxu0 %v1441_v34  ;;  %1383 = vmatmul.mubr.bf16.gmra.mxu1 %v1442_v35 }
  0x53   :  { %1354 = vmatprep.mubr.bf16.mxu0 %v1443_v36  ;;  %1386 = vmatprep.mubr.bf16.mxu1 %v1444_v37 }
  0x5a   :  { %1355 = vmatmul.mubr.bf16.gmra.mxu0 %v1445_v38  ;;  %1387 = vmatmul.mubr.bf16.gmra.mxu1 %v1446_v39 }
  0xe2   :  { %v1328_v40 = vpop.f32.mrf.mxu0  ;;  %v1360_v42 = vpop.f32.mrf.mxu1 }
  0xe3   :  { %v963_v46 = vmul.f32 %v1328_v40, %v1595_v41  ;;  %v995_v47 = vmul.f32 %v1360_v42, %v1595_v41 }
  0xe4   :  { %v504_v44 = vpop.f32.mrf.mxu0  ;;  %v632_v45 = vpop.f32.mrf.mxu1 }
  0xe5   :  { %v1034_v50 = vadd.f32 %v1600_v43, %v963_v46  ;;  %v1066_v51 = vadd.f32 %v1600_v43, %v995_v47  ;;  %v961_v52 = vmul.f32 %v1595_v41, %v504_v44  ;;  %v993_v53 = vmul.f32 %v1595_v41, %v632_v45 }
  0xe6   :  { %v1329_v48 = vpop.f32.mrf.mxu0  ;;  %v1361_v49 = vpop.f32.mrf.mxu1 }
  0xe7   :  { %v1098_v56 = vmax.f32 %v1034_v50, 0.0  ;;  %v1130_v57 = vmax.f32 %v1066_v51, 0.0  ;;  %v1032_v58 = vadd.f32 %v1600_v43, %v961_v52  ;;  %v1064_v59 = vadd.f32 %v1600_v43, %v993_v53 }
  0xe8   :  { %v507_v54 = vpop.f32.mrf.mxu0  ;;  %v635_v55 = vpop.f32.mrf.mxu1  ;;  %v964_v60 = vmul.f32 %v1329_v48, %v1595_v41  ;;  %v996_v61 = vmul.f32 %v1361_v49, %v1595_v41 }
  0xe9   :  { %1162 = vst [vmem:[%s1926_s4 + $0x10] sm:$0xff] %v1098_v56  ;;  %1194 = vst [vmem:[%s1926_s4 + $0x110] sm:$0xff] %v1130_v57  ;;  %v1096_v0 = vmax.f32 %v1032_v58, 0.0  ;;  %v1128_v1 = vmax.f32 %v1064_v59, 0.0  ;;  %v962_v4 = vmul.f32 %v1595_v41, %v507_v54  ;;  %v994_v5 = vmul.f32 %v1595_v41, %v635_v55 }
  0xea   :  { %v1332_v62 = vpop.f32.mrf.mxu0  ;;  %v1364_v63 = vpop.f32.mrf.mxu1  ;;  %v1035_v2 = vadd.f32 %v1600_v43, %v964_v60  ;;  %v1067_v3 = vadd.f32 %v1600_v43, %v996_v61 }
  0xeb   :  { %1160 = vst [vmem:[%s1926_s4] sm:$0xff] %v1096_v0  ;;  %1192 = vst [vmem:[%s1926_s4 + $0x100] sm:$0xff] %v1128_v1  ;;  %v967_v8 = vmul.f32 %v1332_v62, %v1595_v41  ;;  %v999_v9 = vmul.f32 %v1364_v63, %v1595_v41  ;;  %v1033_v12 = vadd.f32 %v1600_v43, %v962_v4 }
  0xec   :  { %v520_v6 = vpop.f32.mrf.mxu0  ;;  %v648_v7 = vpop.f32.mrf.mxu1  ;;  %v1099_v10 = vmax.f32 %v1035_v2, 0.0  ;;  %v1131_v11 = vmax.f32 %v1067_v3, 0.0  ;;  %v1065_v13 = vadd.f32 %v1600_v43, %v994_v5 }
  0xed   :  { %v1038_v16 = vadd.f32 %v1600_v43, %v967_v8  ;;  %v1070_v17 = vadd.f32 %v1600_v43, %v999_v9  ;;  %v965_v18 = vmul.f32 %v1595_v41, %v520_v6  ;;  %v997_v19 = vmul.f32 %v1595_v41, %v648_v7 }
  0xee   :  { %v1333_v14 = vpop.f32.mrf.mxu0  ;;  %v1365_v15 = vpop.f32.mrf.mxu1  ;;  %1163 = vst [vmem:[%s1926_s4 + $0x18] sm:$0xff] %v1099_v10  ;;  %1195 = vst [vmem:[%s1926_s4 + $0x118] sm:$0xff] %v1131_v11  ;;  %v1097_v20 = vmax.f32 %v1033_v12, 0.0  ;;  %v1129_v21 = vmax.f32 %v1065_v13, 0.0 }
  0xef   :  { %v1102_v24 = vmax.f32 %v1038_v16, 0.0  ;;  %v1134_v25 = vmax.f32 %v1070_v17, 0.0  ;;  %v1036_v26 = vadd.f32 %v1600_v43, %v965_v18  ;;  %v1068_v27 = vadd.f32 %v1600_v43, %v997_v19 }
  0xf0   :  { %v523_v22 = vpop.f32.mrf.mxu0  ;;  %v651_v23 = vpop.f32.mrf.mxu1  ;;  %1161 = vst [vmem:[%s1926_s4 + $0x8] sm:$0xff] %v1097_v20  ;;  %1193 = vst [vmem:[%s1926_s4 + $0x108] sm:$0xff] %v1129_v21  ;;  %v968_v28 = vmul.f32 %v1333_v14, %v1595_v41  ;;  %v1000_v29 = vmul.f32 %v1365_v15, %v1595_v41 }
  0xf1   :  { %1166 = vst [vmem:[%s1926_s4 + $0x30] sm:$0xff] %v1102_v24  ;;  %1198 = vst [vmem:[%s1926_s4 + $0x130] sm:$0xff] %v1134_v25  ;;  %v1100_v32 = vmax.f32 %v1036_v26, 0.0  ;;  %v1132_v33 = vmax.f32 %v1068_v27, 0.0  ;;  %v966_v36 = vmul.f32 %v1595_v41, %v523_v22  ;;  %v998_v37 = vmul.f32 %v1595_v41, %v651_v23 }
  0xf2   :  { %v1336_v30 = vpop.f32.mrf.mxu0  ;;  %v1368_v31 = vpop.f32.mrf.mxu1  ;;  %v1039_v34 = vadd.f32 %v1600_v43, %v968_v28  ;;  %v1071_v35 = vadd.f32 %v1600_v43, %v1000_v29 }
  0xf3   :  { %1164 = vst [vmem:[%s1926_s4 + $0x20] sm:$0xff] %v1100_v32  ;;  %1196 = vst [vmem:[%s1926_s4 + $0x120] sm:$0xff] %v1132_v33  ;;  %v971_v40 = vmul.f32 %v1336_v30, %v1595_v41  ;;  %v1003_v42 = vmul.f32 %v1368_v31, %v1595_v41  ;;  %v1037_v46 = vadd.f32 %v1600_v43, %v966_v36 }
  0xf4   :  { %v536_v38 = vpop.f32.mrf.mxu0  ;;  %v664_v39 = vpop.f32.mrf.mxu1  ;;  %v1103_v44 = vmax.f32 %v1039_v34, 0.0  ;;  %v1135_v45 = vmax.f32 %v1071_v35, 0.0  ;;  %v1069_v47 = vadd.f32 %v1600_v43, %v998_v37 }
  0xf5   :  { %v1042_v50 = vadd.f32 %v1600_v43, %v971_v40  ;;  %v1074_v51 = vadd.f32 %v1600_v43, %v1003_v42  ;;  %v969_v52 = vmul.f32 %v1595_v41, %v536_v38  ;;  %v1001_v53 = vmul.f32 %v1595_v41, %v664_v39 }
  0xf6   :  { %v1337_v48 = vpop.f32.mrf.mxu0  ;;  %v1369_v49 = vpop.f32.mrf.mxu1  ;;  %1167 = vst [vmem:[%s1926_s4 + $0x38] sm:$0xff] %v1103_v44  ;;  %1199 = vst [vmem:[%s1926_s4 + $0x138] sm:$0xff] %v1135_v45  ;;  %v1101_v54 = vmax.f32 %v1037_v46, 0.0  ;;  %v1133_v55 = vmax.f32 %v1069_v47, 0.0 }
  0xf7   :  { %v1106_v58 = vmax.f32 %v1042_v50, 0.0  ;;  %v1138_v59 = vmax.f32 %v1074_v51, 0.0  ;;  %v1040_v60 = vadd.f32 %v1600_v43, %v969_v52  ;;  %v1072_v61 = vadd.f32 %v1600_v43, %v1001_v53 }
  0xf8   :  { %v539_v56 = vpop.f32.mrf.mxu0  ;;  %v667_v57 = vpop.f32.mrf.mxu1  ;;  %1165 = vst [vmem:[%s1926_s4 + $0x28] sm:$0xff] %v1101_v54  ;;  %1197 = vst [vmem:[%s1926_s4 + $0x128] sm:$0xff] %v1133_v55  ;;  %v972_v62 = vmul.f32 %v1337_v48, %v1595_v41  ;;  %v1004_v63 = vmul.f32 %v1369_v49, %v1595_v41 }
  0xf9   :  { %1170 = vst [vmem:[%s1926_s4 + $0x50] sm:$0xff] %v1106_v58  ;;  %1202 = vst [vmem:[%s1926_s4 + $0x150] sm:$0xff] %v1138_v59  ;;  %v1104_v2 = vmax.f32 %v1040_v60, 0.0  ;;  %v1136_v3 = vmax.f32 %v1072_v61, 0.0  ;;  %v970_v6 = vmul.f32 %v1595_v41, %v539_v56  ;;  %v1002_v7 = vmul.f32 %v1595_v41, %v667_v57 }
  0xfa   :  { %v1340_v0 = vpop.f32.mrf.mxu0  ;;  %v1372_v1 = vpop.f32.mrf.mxu1  ;;  %v1043_v4 = vadd.f32 %v1600_v43, %v972_v62  ;;  %v1075_v5 = vadd.f32 %v1600_v43, %v1004_v63 }
  0xfb   :  { %1168 = vst [vmem:[%s1926_s4 + $0x40] sm:$0xff] %v1104_v2  ;;  %1200 = vst [vmem:[%s1926_s4 + $0x140] sm:$0xff] %v1136_v3  ;;  %v975_v10 = vmul.f32 %v1340_v0, %v1595_v41  ;;  %v1007_v11 = vmul.f32 %v1372_v1, %v1595_v41  ;;  %v1041_v14 = vadd.f32 %v1600_v43, %v970_v6 }
  0xfc   :  { %v552_v8 = vpop.f32.mrf.mxu0  ;;  %v680_v9 = vpop.f32.mrf.mxu1  ;;  %v1107_v12 = vmax.f32 %v1043_v4, 0.0  ;;  %v1139_v13 = vmax.f32 %v1075_v5, 0.0  ;;  %v1073_v15 = vadd.f32 %v1600_v43, %v1002_v7 }
  0xfd   :  { %v1046_v18 = vadd.f32 %v1600_v43, %v975_v10  ;;  %v1078_v19 = vadd.f32 %v1600_v43, %v1007_v11  ;;  %v973_v20 = vmul.f32 %v1595_v41, %v552_v8  ;;  %v1005_v21 = vmul.f32 %v1595_v41, %v680_v9 }
  0xfe   :  { %v1341_v16 = vpop.f32.mrf.mxu0  ;;  %v1373_v17 = vpop.f32.mrf.mxu1  ;;  %1171 = vst [vmem:[%s1926_s4 + $0x58] sm:$0xff] %v1107_v12  ;;  %1203 = vst [vmem:[%s1926_s4 + $0x158] sm:$0xff] %v1139_v13  ;;  %v1105_v22 = vmax.f32 %v1041_v14, 0.0  ;;  %v1137_v23 = vmax.f32 %v1073_v15, 0.0 }
  0xff   :  { %v1110_v26 = vmax.f32 %v1046_v18, 0.0  ;;  %v1142_v27 = vmax.f32 %v1078_v19, 0.0  ;;  %v1044_v28 = vadd.f32 %v1600_v43, %v973_v20  ;;  %v1076_v29 = vadd.f32 %v1600_v43, %v1005_v21 }
 0x100   :  { %v555_v24 = vpop.f32.mrf.mxu0  ;;  %v683_v25 = vpop.f32.mrf.mxu1  ;;  %1169 = vst [vmem:[%s1926_s4 + $0x48] sm:$0xff] %v1105_v22  ;;  %1201 = vst [vmem:[%s1926_s4 + $0x148] sm:$0xff] %v1137_v23  ;;  %v976_v30 = vmul.f32 %v1341_v16, %v1595_v41  ;;  %v1008_v31 = vmul.f32 %v1373_v17, %v1595_v41 }
 0x101   :  { %1174 = vst [vmem:[%s1926_s4 + $0x70] sm:$0xff] %v1110_v26  ;;  %1206 = vst [vmem:[%s1926_s4 + $0x170] sm:$0xff] %v1142_v27  ;;  %v1108_v34 = vmax.f32 %v1044_v28, 0.0  ;;  %v1140_v35 = vmax.f32 %v1076_v29, 0.0  ;;  %v974_v38 = vmul.f32 %v1595_v41, %v555_v24  ;;  %v1006_v39 = vmul.f32 %v1595_v41, %v683_v25 }
 0x102   :  { %v1344_v32 = vpop.f32.mrf.mxu0  ;;  %v1376_v33 = vpop.f32.mrf.mxu1  ;;  %v1047_v36 = vadd.f32 %v1600_v43, %v976_v30  ;;  %v1079_v37 = vadd.f32 %v1600_v43, %v1008_v31 }
 0x103   :  { %1172 = vst [vmem:[%s1926_s4 + $0x60] sm:$0xff] %v1108_v34  ;;  %1204 = vst [vmem:[%s1926_s4 + $0x160] sm:$0xff] %v1140_v35  ;;  %v979_v44 = vmul.f32 %v1344_v32, %v1595_v41  ;;  %v1011_v45 = vmul.f32 %v1376_v33, %v1595_v41  ;;  %v1045_v48 = vadd.f32 %v1600_v43, %v974_v38 }
 0x104   :  { %v568_v40 = vpop.f32.mrf.mxu0  ;;  %v696_v42 = vpop.f32.mrf.mxu1  ;;  %v1111_v46 = vmax.f32 %v1047_v36, 0.0  ;;  %v1143_v47 = vmax.f32 %v1079_v37, 0.0  ;;  %v1077_v49 = vadd.f32 %v1600_v43, %v1006_v39 }
 0x105   :  { %v1050_v52 = vadd.f32 %v1600_v43, %v979_v44  ;;  %v1082_v53 = vadd.f32 %v1600_v43, %v1011_v45  ;;  %v977_v54 = vmul.f32 %v1595_v41, %v568_v40  ;;  %v1009_v55 = vmul.f32 %v1595_v41, %v696_v42 }
 0x106   :  { %v1345_v50 = vpop.f32.mrf.mxu0  ;;  %v1377_v51 = vpop.f32.mrf.mxu1  ;;  %1175 = vst [vmem:[%s1926_s4 + $0x78] sm:$0xff] %v1111_v46  ;;  %1207 = vst [vmem:[%s1926_s4 + $0x178] sm:$0xff] %v1143_v47  ;;  %v1109_v56 = vmax.f32 %v1045_v48, 0.0  ;;  %v1141_v57 = vmax.f32 %v1077_v49, 0.0 }
 0x107   :  { %v1114_v60 = vmax.f32 %v1050_v52, 0.0  ;;  %v1146_v61 = vmax.f32 %v1082_v53, 0.0  ;;  %v1048_v62 = vadd.f32 %v1600_v43, %v977_v54  ;;  %v1080_v63 = vadd.f32 %v1600_v43, %v1009_v55 }
 0x108   :  { %v571_v58 = vpop.f32.mrf.mxu0  ;;  %v699_v59 = vpop.f32.mrf.mxu1  ;;  %1173 = vst [vmem:[%s1926_s4 + $0x68] sm:$0xff] %v1109_v56  ;;  %1205 = vst [vmem:[%s1926_s4 + $0x168] sm:$0xff] %v1141_v57  ;;  %v980_v0 = vmul.f32 %v1345_v50, %v1595_v41  ;;  %v1012_v1 = vmul.f32 %v1377_v51, %v1595_v41 }
 0x109   :  { %1178 = vst [vmem:[%s1926_s4 + $0x90] sm:$0xff] %v1114_v60  ;;  %1210 = vst [vmem:[%s1926_s4 + $0x190] sm:$0xff] %v1146_v61  ;;  %v1112_v4 = vmax.f32 %v1048_v62, 0.0  ;;  %v1144_v5 = vmax.f32 %v1080_v63, 0.0  ;;  %v978_v8 = vmul.f32 %v1595_v41, %v571_v58  ;;  %v1010_v9 = vmul.f32 %v1595_v41, %v699_v59 }
 0x10a   :  { %v1348_v2 = vpop.f32.mrf.mxu0  ;;  %v1380_v3 = vpop.f32.mrf.mxu1  ;;  %v1051_v6 = vadd.f32 %v1600_v43, %v980_v0  ;;  %v1083_v7 = vadd.f32 %v1600_v43, %v1012_v1 }
 0x10b   :  { %1176 = vst [vmem:[%s1926_s4 + $0x80] sm:$0xff] %v1112_v4  ;;  %1208 = vst [vmem:[%s1926_s4 + $0x180] sm:$0xff] %v1144_v5  ;;  %v983_v12 = vmul.f32 %v1348_v2, %v1595_v41  ;;  %v1015_v13 = vmul.f32 %v1380_v3, %v1595_v41  ;;  %v1049_v16 = vadd.f32 %v1600_v43, %v978_v8 }
 0x10c   :  { %v584_v10 = vpop.f32.mrf.mxu0  ;;  %v712_v11 = vpop.f32.mrf.mxu1  ;;  %v1115_v14 = vmax.f32 %v1051_v6, 0.0  ;;  %v1147_v15 = vmax.f32 %v1083_v7, 0.0  ;;  %v1081_v17 = vadd.f32 %v1600_v43, %v1010_v9 }
 0x10d   :  { %v1054_v20 = vadd.f32 %v1600_v43, %v983_v12  ;;  %v1086_v21 = vadd.f32 %v1600_v43, %v1015_v13  ;;  %v981_v22 = vmul.f32 %v1595_v41, %v584_v10  ;;  %v1013_v23 = vmul.f32 %v1595_v41, %v712_v11 }
 0x10e   :  { %v1349_v18 = vpop.f32.mrf.mxu0  ;;  %v1381_v19 = vpop.f32.mrf.mxu1  ;;  %1179 = vst [vmem:[%s1926_s4 + $0x98] sm:$0xff] %v1115_v14  ;;  %1211 = vst [vmem:[%s1926_s4 + $0x198] sm:$0xff] %v1147_v15  ;;  %v1113_v24 = vmax.f32 %v1049_v16, 0.0  ;;  %v1145_v25 = vmax.f32 %v1081_v17, 0.0 }
 0x10f   :  { %v1118_v28 = vmax.f32 %v1054_v20, 0.0  ;;  %v1150_v29 = vmax.f32 %v1086_v21, 0.0  ;;  %v1052_v30 = vadd.f32 %v1600_v43, %v981_v22  ;;  %v1084_v31 = vadd.f32 %v1600_v43, %v1013_v23 }
 0x110   :  { %v587_v26 = vpop.f32.mrf.mxu0  ;;  %v715_v27 = vpop.f32.mrf.mxu1  ;;  %1177 = vst [vmem:[%s1926_s4 + $0x88] sm:$0xff] %v1113_v24  ;;  %1209 = vst [vmem:[%s1926_s4 + $0x188] sm:$0xff] %v1145_v25  ;;  %v984_v32 = vmul.f32 %v1349_v18, %v1595_v41  ;;  %v1016_v33 = vmul.f32 %v1381_v19, %v1595_v41 }
 0x111   :  { %1182 = vst [vmem:[%s1926_s4 + $0xb0] sm:$0xff] %v1118_v28  ;;  %1214 = vst [vmem:[%s1926_s4 + $0x1b0] sm:$0xff] %v1150_v29  ;;  %v1116_v36 = vmax.f32 %v1052_v30, 0.0  ;;  %v1148_v37 = vmax.f32 %v1084_v31, 0.0  ;;  %v982_v40 = vmul.f32 %v1595_v41, %v587_v26  ;;  %v1014_v42 = vmul.f32 %v1595_v41, %v715_v27 }
 0x112   :  { %v1352_v34 = vpop.f32.mrf.mxu0  ;;  %v1384_v35 = vpop.f32.mrf.mxu1  ;;  %v1055_v38 = vadd.f32 %v1600_v43, %v984_v32  ;;  %v1087_v39 = vadd.f32 %v1600_v43, %v1016_v33 }
 0x113   :  { %1180 = vst [vmem:[%s1926_s4 + $0xa0] sm:$0xff] %v1116_v36  ;;  %1212 = vst [vmem:[%s1926_s4 + $0x1a0] sm:$0xff] %v1148_v37  ;;  %v987_v46 = vmul.f32 %v1352_v34, %v1595_v41  ;;  %v1019_v47 = vmul.f32 %v1384_v35, %v1595_v41  ;;  %v1053_v50 = vadd.f32 %v1600_v43, %v982_v40 }
 0x114   :  { %v600_v44 = vpop.f32.mrf.mxu0  ;;  %v728_v45 = vpop.f32.mrf.mxu1  ;;  %v1119_v48 = vmax.f32 %v1055_v38, 0.0  ;;  %v1151_v49 = vmax.f32 %v1087_v39, 0.0  ;;  %v1085_v51 = vadd.f32 %v1600_v43, %v1014_v42 }
 0x115   :  { %v1058_v54 = vadd.f32 %v1600_v43, %v987_v46  ;;  %v1090_v55 = vadd.f32 %v1600_v43, %v1019_v47  ;;  %v985_v56 = vmul.f32 %v1595_v41, %v600_v44  ;;  %v1017_v57 = vmul.f32 %v1595_v41, %v728_v45 }
 0x116   :  { %v1353_v52 = vpop.f32.mrf.mxu0  ;;  %v1385_v53 = vpop.f32.mrf.mxu1  ;;  %1183 = vst [vmem:[%s1926_s4 + $0xb8] sm:$0xff] %v1119_v48  ;;  %1215 = vst [vmem:[%s1926_s4 + $0x1b8] sm:$0xff] %v1151_v49  ;;  %v1117_v58 = vmax.f32 %v1053_v50, 0.0  ;;  %v1149_v59 = vmax.f32 %v1085_v51, 0.0 }
 0x117   :  { %v1122_v62 = vmax.f32 %v1058_v54, 0.0  ;;  %v1154_v63 = vmax.f32 %v1090_v55, 0.0  ;;  %v1056_v0 = vadd.f32 %v1600_v43, %v985_v56  ;;  %v1088_v1 = vadd.f32 %v1600_v43, %v1017_v57 }
 0x118   :  { %v603_v60 = vpop.f32.mrf.mxu0  ;;  %v731_v61 = vpop.f32.mrf.mxu1  ;;  %1181 = vst [vmem:[%s1926_s4 + $0xa8] sm:$0xff] %v1117_v58  ;;  %1213 = vst [vmem:[%s1926_s4 + $0x1a8] sm:$0xff] %v1149_v59  ;;  %v988_v2 = vmul.f32 %v1353_v52, %v1595_v41  ;;  %v1020_v3 = vmul.f32 %v1385_v53, %v1595_v41 }
 0x119   :  { %1186 = vst [vmem:[%s1926_s4 + $0xd0] sm:$0xff] %v1122_v62  ;;  %1218 = vst [vmem:[%s1926_s4 + $0x1d0] sm:$0xff] %v1154_v63  ;;  %v1120_v6 = vmax.f32 %v1056_v0, 0.0  ;;  %v1152_v7 = vmax.f32 %v1088_v1, 0.0  ;;  %v986_v10 = vmul.f32 %v1595_v41, %v603_v60  ;;  %v1018_v11 = vmul.f32 %v1595_v41, %v731_v61 }
 0x11a   :  { %v1356_v4 = vpop.f32.mrf.mxu0  ;;  %v1388_v5 = vpop.f32.mrf.mxu1  ;;  %v1059_v8 = vadd.f32 %v1600_v43, %v988_v2  ;;  %v1091_v9 = vadd.f32 %v1600_v43, %v1020_v3 }
 0x11b   :  { %1184 = vst [vmem:[%s1926_s4 + $0xc0] sm:$0xff] %v1120_v6  ;;  %1216 = vst [vmem:[%s1926_s4 + $0x1c0] sm:$0xff] %v1152_v7  ;;  %v991_v14 = vmul.f32 %v1356_v4, %v1595_v41  ;;  %v1023_v15 = vmul.f32 %v1388_v5, %v1595_v41  ;;  %v1057_v18 = vadd.f32 %v1600_v43, %v986_v10 }
 0x11c   :  { %v616_v12 = vpop.f32.mrf.mxu0  ;;  %v744_v13 = vpop.f32.mrf.mxu1  ;;  %v1123_v16 = vmax.f32 %v1059_v8, 0.0  ;;  %v1155_v17 = vmax.f32 %v1091_v9, 0.0  ;;  %v1089_v19 = vadd.f32 %v1600_v43, %v1018_v11 }
 0x11d   :  { %v1062_v22 = vadd.f32 %v1600_v43, %v991_v14  ;;  %v1094_v23 = vadd.f32 %v1600_v43, %v1023_v15  ;;  %v989_v24 = vmul.f32 %v1595_v41, %v616_v12  ;;  %v1021_v25 = vmul.f32 %v1595_v41, %v744_v13 }
 0x11e   :  { %v1357_v20 = vpop.f32.mrf.mxu0  ;;  %v1389_v21 = vpop.f32.mrf.mxu1  ;;  %1187 = vst [vmem:[%s1926_s4 + $0xd8] sm:$0xff] %v1123_v16  ;;  %1219 = vst [vmem:[%s1926_s4 + $0x1d8] sm:$0xff] %v1155_v17  ;;  %v1121_v26 = vmax.f32 %v1057_v18, 0.0  ;;  %v1153_v27 = vmax.f32 %v1089_v19, 0.0 }
 0x11f   :  { %v1126_v30 = vmax.f32 %v1062_v22, 0.0  ;;  %v1158_v31 = vmax.f32 %v1094_v23, 0.0  ;;  %v1060_v32 = vadd.f32 %v1600_v43, %v989_v24  ;;  %v1092_v33 = vadd.f32 %v1600_v43, %v1021_v25 }
 0x120   :  { %v619_v28 = vpop.f32.mrf.mxu0  ;;  %v747_v29 = vpop.f32.mrf.mxu1  ;;  %1185 = vst [vmem:[%s1926_s4 + $0xc8] sm:$0xff] %v1121_v26  ;;  %1217 = vst [vmem:[%s1926_s4 + $0x1c8] sm:$0xff] %v1153_v27  ;;  %v992_v34 = vmul.f32 %v1357_v20, %v1595_v41  ;;  %v1024_v35 = vmul.f32 %v1389_v21, %v1595_v41 }
 0x121   :  { %1190 = vst [vmem:[%s1926_s4 + $0xf0] sm:$0xff] %v1126_v30  ;;  %1222 = vst [vmem:[%s1926_s4 + $0x1f0] sm:$0xff] %v1158_v31  ;;  %v1124_v36 = vmax.f32 %v1060_v32, 0.0  ;;  %v1156_v37 = vmax.f32 %v1092_v33, 0.0  ;;  %v990_v40 = vmul.f32 %v1595_v41, %v619_v28  ;;  %v1022_v42 = vmul.f32 %v1595_v41, %v747_v29 }
 0x122   :  { %v1063_v38 = vadd.f32 %v1600_v43, %v992_v34  ;;  %v1095_v39 = vadd.f32 %v1600_v43, %v1024_v35 }
 0x123   :  { %1188 = vst [vmem:[%s1926_s4 + $0xe0] sm:$0xff] %v1124_v36  ;;  %1220 = vst [vmem:[%s1926_s4 + $0x1e0] sm:$0xff] %v1156_v37  ;;  %v1061_v46 = vadd.f32 %v1600_v43, %v990_v40  ;;  %v1093_v47 = vadd.f32 %v1600_v43, %v1022_v42 }
 0x124   :  { %v1127_v44 = vmax.f32 %v1063_v38, 0.0  ;;  %v1159_v45 = vmax.f32 %v1095_v39, 0.0 }
 0x125   :  { %v1125_v41 = vmax.f32 %v1061_v46, 0.0  ;;  %v1157_v48 = vmax.f32 %v1093_v47, 0.0 }
 0x126   :  { %1191 = vst [vmem:[%s1926_s4 + $0xf8] sm:$0xff] %v1127_v44  ;;  %1223 = vst [vmem:[%s1926_s4 + $0x1f8] sm:$0xff] %v1159_v45 }
 0x127   :  { %1189 = vst [vmem:[%s1926_s4 + $0xe8] sm:$0xff] %v1125_v41  ;;  %1221 = vst [vmem:[%s1926_s4 + $0x1e8] sm:$0xff] %v1157_v48 }

// kernel: annl_gsnet_head_forward.16
= control target key start
LH: loop header
LB: loop body
LE: loop exit
PB: predicated region body
PF: predicated region fallthrough
CT: control target
= control target key end

     0   :  { %s2464_s1 = inlined_call_operand.vmem [shape: bf16[128,128], index: 1, kind: input, shape index: {}]   ;;  %s2465_s0 = inlined_call_operand.vmem [shape: bf16[512,128], index: 0, kind: input, shape index: {}]   ;;  %s2466_s2 = inlined_call_operand.vmem [shape: f32[1,128], index: 2, kind: input, shape index: {}]   ;;  %s2467_s3 = inlined_call_operand.vmem [shape: f32[1,128], index: 3, kind: input, shape index: {}]   ;;  %s2468_s4 = inlined_call_operand.vmem [shape: f32[512,128], index: 4, kind: output, shape index: {}]  }
   0x1   :  { %v1663_v0 = vld [vmem:[%s2464_s1 + $0x38] sm:$0xff]   ;;  %v1664_v1 = vld [vmem:[%s2464_s1 + $0x30] sm:$0xff]   ;;  %v1665_v2 = vld [vmem:[%s2464_s1 + $0x28] sm:$0xff]  }
   0x2   :  { %1566 = vmatprep.subr.bf16.mxu0 %v1663_v0  ;;  %1646 = vmatprep.subr.bf16.mxu1 %v1663_v0  ;;  %v1666_v3 = vld [vmem:[%s2464_s1 + $0x20] sm:$0xff]   ;;  %v1667_v6 = vld [vmem:[%s2464_s1 + $0x18] sm:$0xff]   ;;  %v1668_v7 = vld [vmem:[%s2464_s1 + $0x10] sm:$0xff]  }
   0x3   :  { %1567 = vmatpush3.bf16.msra.mxu0 %v1663_v0  ;;  %1654 = vmatpush3.bf16.msra.mxu1 %v1663_v0  ;;  %v1671_v4 = vld [vmem:[%s2465_s0] sm:$0xff]   ;;  %v1669_v8 = vld [vmem:[%s2464_s1 + $0x8] sm:$0xff]   ;;  %v1675_v12 = vld [vmem:[%s2465_s0 + $0x10] sm:$0xff]  }
   0x4   :  { %1568 = vmatprep.subr.bf16.mxu0 %v1664_v1  ;;  %1647 = vmatprep.subr.bf16.mxu1 %v1664_v1  ;;  %v1672_v5 = vld [vmem:[%s2465_s0 + $0x80] sm:$0xff]   ;;  %v1673_v10 = vld [vmem:[%s2465_s0 + $0x8] sm:$0xff]   ;;  %v1676_v13 = vld [vmem:[%s2465_s0 + $0x90] sm:$0xff]  }
   0x5   :  { %1582 = vmatprep.mubr.bf16.mxu0 %v1671_v4  ;;  %1614 = vmatprep.mubr.bf16.mxu1 %v1672_v5  ;;  %v1670_v9 = vld [vmem:[%s2464_s1] sm:$0xff]   ;;  %v1674_v11 = vld [vmem:[%s2465_s0 + $0x88] sm:$0xff]   ;;  %v1677_v14 = vld [vmem:[%s2465_s0 + $0x18] sm:$0xff]  }
   0x6   :  { %v1678_v15 = vld [vmem:[%s2465_s0 + $0x98] sm:$0xff]   ;;  %v1679_v16 = vld [vmem:[%s2465_s0 + $0x20] sm:$0xff]   ;;  %v1681_v18 = vld [vmem:[%s2465_s0 + $0x28] sm:$0xff]  }
   0x7   :  { %1569 = vmatpush3.bf16.msra.mxu0 %v1664_v1  ;;  %1655 = vmatpush3.bf16.msra.mxu1 %v1664_v1  ;;  %v1680_v17 = vld [vmem:[%s2465_s0 + $0xa0] sm:$0xff]   ;;  %v1682_v19 = vld [vmem:[%s2465_s0 + $0xa8] sm:$0xff]   ;;  %v1683_v20 = vld [vmem:[%s2465_s0 + $0x30] sm:$0xff]  }
   0x8   :  { %1570 = vmatprep.subr.bf16.mxu0 %v1665_v2  ;;  %1648 = vmatprep.subr.bf16.mxu1 %v1665_v2  ;;  %v1684_v21 = vld [vmem:[%s2465_s0 + $0xb0] sm:$0xff]   ;;  %v1685_v22 = vld [vmem:[%s2465_s0 + $0x38] sm:$0xff]   ;;  %v1687_v24 = vld [vmem:[%s2465_s0 + $0x40] sm:$0xff]  }
   0x9   :  { %v1686_v23 = vld [vmem:[%s2465_s0 + $0xb8] sm:$0xff]   ;;  %v1688_v25 = vld [vmem:[%s2465_s0 + $0xc0] sm:$0xff]   ;;  %v1689_v26 = vld [vmem:[%s2465_s0 + $0x48] sm:$0xff]  }
   0xa   :  { %v1690_v27 = vld [vmem:[%s2465_s0 + $0xc8] sm:$0xff]   ;;  %v1691_v28 = vld [vmem:[%s2465_s0 + $0x50] sm:$0xff]   ;;  %v1693_v30 = vld [vmem:[%s2465_s0 + $0x58] sm:$0xff]  }
   0xb   :  { %1571 = vmatpush3.bf16.msra.mxu0 %v1665_v2  ;;  %1656 = vmatpush3.bf16.msra.mxu1 %v1665_v2  ;;  %v1692_v29 = vld [vmem:[%s2465_s0 + $0xd0] sm:$0xff]   ;;  %v1694_v31 = vld [vmem:[%s2465_s0 + $0xd8] sm:$0xff]   ;;  %v1695_v32 = vld [vmem:[%s2465_s0 + $0x60] sm:$0xff]  }
   0xc   :  { %1572 = vmatprep.subr.bf16.mxu0 %v1666_v3  ;;  %1649 = vmatprep.subr.bf16.mxu1 %v1666_v3  ;;  %v1696_v33 = vld [vmem:[%s2465_s0 + $0xe0] sm:$0xff]   ;;  %v1697_v34 = vld [vmem:[%s2465_s0 + $0x68] sm:$0xff]   ;;  %v1699_v36 = vld [vmem:[%s2465_s0 + $0x70] sm:$0xff]  }
   0xd   :  { %v1698_v35 = vld [vmem:[%s2465_s0 + $0xe8] sm:$0xff]   ;;  %v1700_v37 = vld [vmem:[%s2465_s0 + $0xf0] sm:$0xff]   ;;  %v1701_v38 = vld [vmem:[%s2465_s0 + $0x78] sm:$0xff]  }
   0xe   :  { %v1702_v39 = vld [vmem:[%s2465_s0 + $0xf8] sm:$0xff]   ;;  %v2109_v41 = vld [vmem:[%s2466_s2] ss:$0 sm:$0xff] }
   0xf   :  { %1573 = vmatpush3.bf16.msra.mxu0 %v1666_v3  ;;  %1657 = vmatpush3.bf16.msra.mxu1 %v1666_v3  ;;  %v2114_v43 = vld [vmem:[%s2467_s3] ss:$0 sm:$0xff] }
  0x10   :  { %1574 = vmatprep.subr.bf16.mxu0 %v1667_v6  ;;  %1650 = vmatprep.subr.bf16.mxu1 %v1667_v6 }
  0x13   :  { %1575 = vmatpush3.bf16.msra.mxu0 %v1667_v6  ;;  %1658 = vmatpush3.bf16.msra.mxu1 %v1667_v6 }
  0x14   :  { %1576 = vmatprep.subr.bf16.mxu0 %v1668_v7  ;;  %1651 = vmatprep.subr.bf16.mxu1 %v1668_v7 }
  0x17   :  { %1577 = vmatpush3.bf16.msra.mxu0 %v1668_v7  ;;  %1659 = vmatpush3.bf16.msra.mxu1 %v1668_v7 }
  0x18   :  { %1578 = vmatprep.subr.bf16.mxu0 %v1669_v8  ;;  %1652 = vmatprep.subr.bf16.mxu1 %v1669_v8 }
  0x1b   :  { %1579 = vmatpush3.bf16.msra.mxu0 %v1669_v8  ;;  %1660 = vmatpush3.bf16.msra.mxu1 %v1669_v8 }
  0x1c   :  { %1580 = vmatprep.subr.bf16.mxu0 %v1670_v9  ;;  %1653 = vmatprep.subr.bf16.mxu1 %v1670_v9 }
  0x1f   :  { %1581 = vmatpush3.bf16.msra.mxu0 %v1670_v9  ;;  %1661 = vmatpush3.bf16.msra.mxu1 %v1670_v9 }
  0x22   :  { %1583 = vmatmul.mubr.bf16.vlgmr.msra.gmra.mxu0 %v1673_v10  ;;  %1615 = vmatmul.mubr.bf16.vlgmr.msra.gmra.mxu1 %v1674_v11 }
  0x23   :  { %1586 = vmatprep.mubr.bf16.mxu0 %v1675_v12  ;;  %1618 = vmatprep.mubr.bf16.mxu1 %v1676_v13 }
  0x2a   :  { %1587 = vmatmul.mubr.bf16.gmra.mxu0 %v1677_v14  ;;  %1619 = vmatmul.mubr.bf16.gmra.mxu1 %v1678_v15 }
  0x2b   :  { %1590 = vmatprep.mubr.bf16.mxu0 %v1679_v16  ;;  %1622 = vmatprep.mubr.bf16.mxu1 %v1680_v17 }
  0x32   :  { %1591 = vmatmul.mubr.bf16.gmra.mxu0 %v1681_v18  ;;  %1623 = vmatmul.mubr.bf16.gmra.mxu1 %v1682_v19 }
  0x33   :  { %1594 = vmatprep.mubr.bf16.mxu0 %v1683_v20  ;;  %1626 = vmatprep.mubr.bf16.mxu1 %v1684_v21 }
  0x3a   :  { %1595 = vmatmul.mubr.bf16.gmra.mxu0 %v1685_v22  ;;  %1627 = vmatmul.mubr.bf16.gmra.mxu1 %v1686_v23 }
  0x3b   :  { %1598 = vmatprep.mubr.bf16.mxu0 %v1687_v24  ;;  %1630 = vmatprep.mubr.bf16.mxu1 %v1688_v25 }
  0x42   :  { %1599 = vmatmul.mubr.bf16.gmra.mxu0 %v1689_v26  ;;  %1631 = vmatmul.mubr.bf16.gmra.mxu1 %v1690_v27 }
  0x43   :  { %1602 = vmatprep.mubr.bf16.mxu0 %v1691_v28  ;;  %1634 = vmatprep.mubr.bf16.mxu1 %v1692_v29 }
  0x4a   :  { %1603 = vmatmul.mubr.bf16.gmra.mxu0 %v1693_v30  ;;  %1635 = vmatmul.mubr.bf16.gmra.mxu1 %v1694_v31 }
  0x4b   :  { %1606 = vmatprep.mubr.bf16.mxu0 %v1695_v32  ;;  %1638 = vmatprep.mubr.bf16.mxu1 %v1696_v33 }
  0x52   :  { %1607 = vmatmul.mubr.bf16.gmra.mxu0 %v1697_v34  ;;  %1639 = vmatmul.mubr.bf16.gmra.mxu1 %v1698_v35 }
  0x53   :  { %1610 = vmatprep.mubr.bf16.mxu0 %v1699_v36  ;;  %1642 = vmatprep.mubr.bf16.mxu1 %v1700_v37 }
  0x5a   :  { %1611 = vmatmul.mubr.bf16.gmra.mxu0 %v1701_v38  ;;  %1643 = vmatmul.mubr.bf16.gmra.mxu1 %v1702_v39 }
  0xe2   :  { %v1584_v40 = vpop.f32.mrf.mxu0  ;;  %v1616_v42 = vpop.f32.mrf.mxu1 }
  0xe3   :  { %v963_v46 = vmul.f32 %v1584_v40, %v2109_v41  ;;  %v995_v47 = vmul.f32 %v1616_v42, %v2109_v41 }
  0xe4   :  { %v504_v44 = vpop.f32.mrf.mxu0  ;;  %v632_v45 = vpop.f32.mrf.mxu1 }
  0xe5   :  { %v1034_v50 = vadd.f32 %v2114_v43, %v963_v46  ;;  %v1066_v51 = vadd.f32 %v2114_v43, %v995_v47  ;;  %v961_v52 = vmul.f32 %v2109_v41, %v504_v44  ;;  %v993_v53 = vmul.f32 %v2109_v41, %v632_v45 }
  0xe6   :  { %v1585_v48 = vpop.f32.mrf.mxu0  ;;  %v1617_v49 = vpop.f32.mrf.mxu1 }
  0xe7   :  { %v1098_v56 = vsub.f32 0.0, %v1034_v50  ;;  %v1130_v57 = vsub.f32 0.0, %v1066_v51  ;;  %v1032_v58 = vadd.f32 %v2114_v43, %v961_v52  ;;  %v1064_v59 = vadd.f32 %v2114_v43, %v993_v53 }
  0xe8   :  { %v507_v54 = vpop.f32.mrf.mxu0  ;;  %v635_v55 = vpop.f32.mrf.mxu1  ;;  %v964_v60 = vmul.f32 %v1585_v48, %v2109_v41  ;;  %v996_v61 = vmul.f32 %v1617_v49, %v2109_v41 }
  0xe9   :  { %v1164_v0 = vmul.f32 1.442695, %v1098_v56  ;;  %v1228_v1 = vmul.f32 1.442695, %v1130_v57  ;;  %v1096_v2 = vsub.f32 0.0, %v1032_v58  ;;  %v1128_v3 = vsub.f32 0.0, %v1064_v59 }
  0xea   :  { %v1588_v62 = vpop.f32.mrf.mxu0  ;;  %v1620_v63 = vpop.f32.mrf.mxu1  ;;  %v1035_v4 = vadd.f32 %v2114_v43, %v964_v60  ;;  %v1067_v5 = vadd.f32 %v2114_v43, %v996_v61  ;;  %v962_v6 = vmul.f32 %v2109_v41, %v507_v54  ;;  %v994_v7 = vmul.f32 %v2109_v41, %v635_v55 }
  0xeb   :  { %1703 = vpow2.f32 %v1164_v0  ;;  %v1160_v10 = vmul.f32 1.442695, %v1096_v2  ;;  %v1224_v11 = vmul.f32 1.442695, %v1128_v3  ;;  %v967_v17 = vmul.f32 %v1588_v62, %v2109_v41 }
  0xec   :  { %v520_v8 = vpop.f32.mrf.mxu0  ;;  %v648_v9 = vpop.f32.mrf.mxu1  ;;  %1705 = vpow2.f32 %v1228_v1  ;;  %v1099_v12 = vsub.f32 0.0, %v1035_v4  ;;  %v1131_v13 = vsub.f32 0.0, %v1067_v5  ;;  %v1033_v14 = vadd.f32 %v2114_v43, %v962_v6 }
  0xed   :  { %1707 = vpow2.f32 %v1160_v10  ;;  %v1065_v16 = vadd.f32 %v2114_v43, %v994_v7  ;;  %v1038_v23 = vadd.f32 %v2114_v43, %v967_v17  ;;  %v999_v24 = vmul.f32 %v1620_v63, %v2109_v41 }
  0xee   :  { %v1589_v15 = vpop.f32.mrf.mxu0  ;;  %v1621_v18 = vpop.f32.mrf.mxu1  ;;  %1709 = vpow2.f32 %v1224_v11  ;;  %v1166_v19 = vmul.f32 1.442695, %v1099_v12  ;;  %v1230_v20 = vmul.f32 1.442695, %v1131_v13  ;;  %v1097_v21 = vsub.f32 0.0, %v1033_v14 }
  0xef   :  { %v1129_v22 = vsub.f32 0.0, %v1065_v16  ;;  %v1102_v28 = vsub.f32 0.0, %v1038_v23  ;;  %v1070_v29 = vadd.f32 %v2114_v43, %v999_v24  ;;  %v965_v31 = vmul.f32 %v2109_v41, %v520_v8 }
  0xf0   :  { %1711 = vpow2.f32 %v1166_v19  ;;  %v1162_v25 = vmul.f32 1.442695, %v1097_v21  ;;  %v523_v26 = vpop.f32.mrf.mxu0  ;;  %v651_v30 = vpop.f32.mrf.mxu1  ;;  %v997_v32 = vmul.f32 %v2109_v41, %v648_v9  ;;  %v968_v33 = vmul.f32 %v1589_v15, %v2109_v41 }
  0xf1   :  { %1713 = vpow2.f32 %v1230_v20  ;;  %v1226_v27 = vmul.f32 1.442695, %v1129_v22  ;;  %v1172_v34 = vmul.f32 1.442695, %v1102_v28  ;;  %v1134_v35 = vsub.f32 0.0, %v1070_v29 }
  0xf2   :  { %1715 = vpow2.f32 %v1162_v25  ;;  %v1036_v36 = vadd.f32 %v2114_v43, %v965_v31  ;;  %v1068_v37 = vadd.f32 %v2114_v43, %v997_v32  ;;  %v1039_v38 = vadd.f32 %v2114_v43, %v968_v33  ;;  %v1592_v39 = vpop.f32.mrf.mxu0  ;;  %v1624_v44 = vpop.f32.mrf.mxu1 }
  0xf3   :  { %1717 = vpow2.f32 %v1226_v27  ;;  %v1236_v40 = vmul.f32 1.442695, %v1134_v35  ;;  %v1000_v42 = vmul.f32 %v1621_v18, %v2109_v41  ;;  %v966_v48 = vmul.f32 %v2109_v41, %v523_v26 }
  0xf4   :  { %1719 = vpow2.f32 %v1172_v34  ;;  %v1100_v45 = vsub.f32 0.0, %v1036_v36  ;;  %v1132_v46 = vsub.f32 0.0, %v1068_v37  ;;  %v1103_v47 = vsub.f32 0.0, %v1039_v38  ;;  %v536_v56 = vpop.f32.mrf.mxu0  ;;  %v664_v62 = vpop.f32.mrf.mxu1 }
  0xf5   :  { %1721 = vpow2.f32 %v1236_v40  ;;  %v1071_v49 = vadd.f32 %v2114_v43, %v1000_v42  ;;  %v998_v50 = vmul.f32 %v2109_v41, %v651_v30  ;;  %v1037_v55 = vadd.f32 %v2114_v43, %v966_v48 }
  0xf6   :  { %v1168_v52 = vmul.f32 1.442695, %v1100_v45  ;;  %v1232_v53 = vmul.f32 1.442695, %v1132_v46  ;;  %v1174_v54 = vmul.f32 1.442695, %v1103_v47  ;;  %v971_v61 = vmul.f32 %v1592_v39, %v2109_v41  ;;  %v1593_v9 = vpop.f32.mrf.mxu0  ;;  %v1625_v13 = vpop.f32.mrf.mxu1 }
  0xf7   :  { %v1135_v59 = vsub.f32 0.0, %v1071_v49  ;;  %v1069_v60 = vadd.f32 %v2114_v43, %v998_v50  ;;  %v1101_v1 = vsub.f32 0.0, %v1037_v55  ;;  %v1003_v12 = vmul.f32 %v1624_v44, %v2109_v41 }
  0xf8   :  { %v1704_v51 = vpop.eup %1703  ;;  %1723 = vpow2.f32 %v1168_v52  ;;  %v1042_v8 = vadd.f32 %v2114_v43, %v971_v61  ;;  %v969_v20 = vmul.f32 %v2109_v41, %v536_v56  ;;  %v1001_v24 = vmul.f32 %v2109_v41, %v664_v62  ;;  %v539_v25 = vpop.f32.mrf.mxu0 }
  0xf9   :  { %v1706_v57 = vpop.eup %1705  ;;  %v1290_v58 = vadd.f32 1.0, %v1704_v51  ;;  %v1238_v4 = vmul.f32 1.442695, %v1135_v59  ;;  %v1133_v5 = vsub.f32 0.0, %v1069_v60  ;;  %v1170_v7 = vmul.f32 1.442695, %v1101_v1  ;;  %v667_v29 = vpop.f32.mrf.mxu1 }
  0xfa   :  { %v1708_v63 = vpop.eup %1707  ;;  %v1322_v0 = vadd.f32 1.0, %v1706_v57  ;;  %v1106_v16 = vsub.f32 0.0, %v1042_v8  ;;  %v1074_v19 = vadd.f32 %v2114_v43, %v1003_v12  ;;  %v1040_v28 = vadd.f32 %v2114_v43, %v969_v20  ;;  %v1596_v39 = vpop.f32.mrf.mxu0 }
  0xfb   :  { %v1710_v2 = vpop.eup %1709  ;;  %1725 = vrcp.f32 %v1290_v58  ;;  %v1288_v3 = vadd.f32 1.0, %v1708_v63  ;;  %v1234_v11 = vmul.f32 1.442695, %v1133_v5  ;;  %v1072_v31 = vadd.f32 %v2114_v43, %v1001_v24  ;;  %v1628_v44 = vpop.f32.mrf.mxu1 }
  0xfc   :  { %1727 = vrcp.f32 %v1322_v0  ;;  %v1320_v6 = vadd.f32 1.0, %v1710_v2  ;;  %v1180_v23 = vmul.f32 1.442695, %v1106_v16  ;;  %v1138_v27 = vsub.f32 0.0, %v1074_v19 }
  0xfd   :  { %v1712_v10 = vpop.eup %1711  ;;  %1729 = vrcp.f32 %v1288_v3  ;;  %v1104_v34 = vsub.f32 0.0, %v1040_v28  ;;  %v1136_v36 = vsub.f32 0.0, %v1072_v31  ;;  %v972_v37 = vmul.f32 %v1593_v9, %v2109_v41  ;;  %v680_v59 = vpop.f32.mrf.mxu1 }
  0xfe   :  { %v1714_v14 = vpop.eup %1713  ;;  %1731 = vrcp.f32 %v1320_v6  ;;  %v1291_v15 = vadd.f32 1.0, %v1712_v10  ;;  %v1244_v33 = vmul.f32 1.442695, %v1138_v27  ;;  %v1004_v38 = vmul.f32 %v1625_v13, %v2109_v41 }
  0xff   :  { %v1716_v17 = vpop.eup %1715  ;;  %v1323_v18 = vadd.f32 1.0, %v1714_v14  ;;  %1733 = vpow2.f32 %v1232_v53  ;;  %v1176_v42 = vmul.f32 1.442695, %v1104_v34  ;;  %v1240_v45 = vmul.f32 1.442695, %v1136_v36  ;;  %v1629_v14 = vpop.f32.mrf.mxu1 }
 0x100   :  { %v1718_v21 = vpop.eup %1717  ;;  %1735 = vrcp.f32 %v1291_v15  ;;  %v1289_v22 = vadd.f32 1.0, %v1716_v17  ;;  %v1043_v46 = vadd.f32 %v2114_v43, %v972_v37  ;;  %v1075_v47 = vadd.f32 %v2114_v43, %v1004_v38 }
 0x101   :  { %1737 = vrcp.f32 %v1323_v18  ;;  %v1321_v26 = vadd.f32 1.0, %v1718_v21  ;;  %v1720_v30 = vpop.eup %1719  ;;  %v970_v49 = vmul.f32 %v2109_v41, %v539_v25  ;;  %v1002_v57 = vmul.f32 %v2109_v41, %v667_v29 }
 0x102   :  { %1739 = vrcp.f32 %v1289_v22  ;;  %v1294_v32 = vadd.f32 1.0, %v1720_v30  ;;  %v1722_v35 = vpop.eup %1721  ;;  %v1107_v52 = vsub.f32 0.0, %v1043_v46  ;;  %v1139_v53 = vsub.f32 0.0, %v1075_v47  ;;  %v683_v30 = vpop.f32.mrf.mxu1 }
 0x103   :  { %1741 = vrcp.f32 %v1321_v26  ;;  %v1326_v40 = vadd.f32 1.0, %v1722_v35  ;;  %v1041_v56 = vadd.f32 %v2114_v43, %v970_v49  ;;  %v975_v58 = vmul.f32 %v1596_v39, %v2109_v41 }
 0x104   :  { %1743 = vpow2.f32 %v1174_v54  ;;  %v552_v54 = vpop.f32.mrf.mxu0  ;;  %v1182_v61 = vmul.f32 1.442695, %v1107_v52  ;;  %v1246_v62 = vmul.f32 1.442695, %v1139_v53  ;;  %v1073_v1 = vadd.f32 %v2114_v43, %v1002_v57 }
 0x105   :  { %1745 = vrcp.f32 %v1294_v32  ;;  %v1724_v48 = vpop.eup %1723  ;;  %v1105_v0 = vsub.f32 0.0, %v1041_v56  ;;  %v1046_v2 = vadd.f32 %v2114_v43, %v975_v58  ;;  %v973_v13 = vmul.f32 %v2109_v41, %v552_v54 }
 0x106   :  { %1747 = vpow2.f32 %v1238_v4  ;;  %v1292_v51 = vadd.f32 1.0, %v1724_v48  ;;  %v1007_v4 = vmul.f32 %v1628_v44, %v2109_v41  ;;  %v1597_v5 = vpop.f32.mrf.mxu0  ;;  %v1137_v9 = vsub.f32 0.0, %v1073_v1  ;;  %v1632_v48 = vpop.f32.mrf.mxu1 }
 0x107   :  { %1749 = vrcp.f32 %v1326_v40  ;;  %v1178_v8 = vmul.f32 1.442695, %v1105_v0  ;;  %v1005_v17 = vmul.f32 %v2109_v41, %v680_v59  ;;  %v1044_v21 = vadd.f32 %v2114_v43, %v973_v13 }
 0x108   :  { %v1726_v50 = vpop.eup %1725  ;;  %1751 = vpow2.f32 %v1170_v7  ;;  %v1078_v12 = vadd.f32 %v2114_v43, %v1007_v4  ;;  %v1242_v16 = vmul.f32 1.442695, %v1137_v9  ;;  %v555_v22 = vpop.f32.mrf.mxu0  ;;  %v976_v25 = vmul.f32 %v1597_v5, %v2109_v41 }
 0x109   :  { %v1728_v55 = vpop.eup %1727  ;;  %1418 = vst [vmem:[%s2468_s4 + $0x10] sm:$0xff] %v1726_v50  ;;  %1753 = vpow2.f32 %v1234_v11  ;;  %v1110_v11 = vsub.f32 0.0, %v1046_v2  ;;  %v1076_v24 = vadd.f32 %v2114_v43, %v1005_v17  ;;  %v1108_v29 = vsub.f32 0.0, %v1044_v21  ;;  %v696_v0 = vpop.f32.mrf.mxu1 }
 0x10a   :  { %v1730_v60 = vpop.eup %1729  ;;  %1450 = vst [vmem:[%s2468_s4 + $0x110] sm:$0xff] %v1728_v55  ;;  %1755 = vrcp.f32 %v1292_v51  ;;  %v1142_v20 = vsub.f32 0.0, %v1078_v12  ;;  %v1008_v34 = vmul.f32 %v1629_v14, %v2109_v41  ;;  %v1600_v38 = vpop.f32.mrf.mxu0  ;;  %v974_v47 = vmul.f32 %v2109_v41, %v555_v22 }
 0x10b   :  { %v1732_v63 = vpop.eup %1731  ;;  %1416 = vst [vmem:[%s2468_s4] sm:$0xff] %v1730_v60  ;;  %1757 = vpow2.f32 %v1180_v23  ;;  %v1188_v19 = vmul.f32 1.442695, %v1110_v11  ;;  %v1140_v32 = vsub.f32 0.0, %v1076_v24  ;;  %v1184_v37 = vmul.f32 1.442695, %v1108_v29 }
 0x10c   :  { %v1734_v3 = vpop.eup %1733  ;;  %1448 = vst [vmem:[%s2468_s4 + $0x100] sm:$0xff] %v1732_v63  ;;  %1759 = vpow2.f32 %v1244_v33  ;;  %v1252_v28 = vmul.f32 1.442695, %v1142_v20  ;;  %v1047_v33 = vadd.f32 %v2114_v43, %v976_v25  ;;  %v1079_v44 = vadd.f32 %v2114_v43, %v1008_v34  ;;  %v568_v56 = vpop.f32.mrf.mxu0 }
 0x10d   :  { %v1736_v6 = vpop.eup %1735  ;;  %v1324_v7 = vadd.f32 1.0, %v1734_v3  ;;  %1761 = vpow2.f32 %v1176_v42  ;;  %v1248_v40 = vmul.f32 1.442695, %v1140_v32  ;;  %v1045_v54 = vadd.f32 %v2114_v43, %v974_v47 }
 0x10e   :  { %v1738_v10 = vpop.eup %1737  ;;  %1419 = vst [vmem:[%s2468_s4 + $0x18] sm:$0xff] %v1736_v6  ;;  %1763 = vpow2.f32 %v1240_v45  ;;  %v1111_v42 = vsub.f32 0.0, %v1047_v33  ;;  %v1143_v52 = vsub.f32 0.0, %v1079_v44  ;;  %v1006_v55 = vmul.f32 %v2109_v41, %v683_v30  ;;  %v1601_v9 = vpop.f32.mrf.mxu0 }
 0x10f   :  { %v1740_v15 = vpop.eup %1739  ;;  %1451 = vst [vmem:[%s2468_s4 + $0x118] sm:$0xff] %v1738_v10  ;;  %1765 = vrcp.f32 %v1324_v7  ;;  %v979_v3 = vmul.f32 %v1600_v38, %v2109_v41  ;;  %v1011_v4 = vmul.f32 %v1632_v48, %v2109_v41  ;;  %v1009_v24 = vmul.f32 %v2109_v41, %v696_v0 }
 0x110   :  { %v1742_v18 = vpop.eup %1741  ;;  %1417 = vst [vmem:[%s2468_s4 + $0x8] sm:$0xff] %v1740_v15  ;;  %1767 = vpow2.f32 %v1182_v61  ;;  %v2207_v51 = vmul.f32 1.442695, %v1111_v42  ;;  %v2214_v59 = vmul.f32 1.442695, %v1143_v52  ;;  %v1077_v63 = vadd.f32 %v2114_v43, %v1006_v55  ;;  %v571_v25 = vpop.f32.mrf.mxu0 }
 0x111   :  { %v1744_v23 = vpop.eup %1743  ;;  %1449 = vst [vmem:[%s2468_s4 + $0x108] sm:$0xff] %v1742_v18  ;;  %1769 = vpow2.f32 %v1246_v62  ;;  %v1109_v62 = vsub.f32 0.0, %v1045_v54  ;;  %v1050_v11 = vadd.f32 %v2114_v43, %v979_v3  ;;  %v1082_v12 = vadd.f32 %v2114_v43, %v1011_v4 }
 0x112   :  { %v1746_v26 = vpop.eup %1745  ;;  %v1295_v27 = vadd.f32 1.0, %v1744_v23  ;;  %1771 = vpow2.f32 %v1178_v8  ;;  %v1141_v8 = vsub.f32 0.0, %v1077_v63  ;;  %v977_v23 = vmul.f32 %v2109_v41, %v568_v56 }
 0x113   :  { %v1748_v31 = vpop.eup %1747  ;;  %1422 = vst [vmem:[%s2468_s4 + $0x30] sm:$0xff] %v1746_v26  ;;  %1773 = vpow2.f32 %v1242_v16  ;;  %v2219_v7 = vmul.f32 1.442695, %v1109_v62  ;;  %v1633_v16 = vpop.f32.mrf.mxu1  ;;  %v1146_v20 = vsub.f32 0.0, %v1082_v12  ;;  %v1080_v32 = vadd.f32 %v2114_v43, %v1009_v24 }
 0x114   :  { %v1750_v35 = vpop.eup %1749  ;;  %1775 = vrcp.f32 %v1295_v27  ;;  %v1327_v36 = vadd.f32 1.0, %v1748_v31  ;;  %v1250_v15 = vmul.f32 1.442695, %v1141_v8  ;;  %v1048_v31 = vadd.f32 %v2114_v43, %v977_v23 }
 0x115   :  { %v1752_v39 = vpop.eup %1751  ;;  %1454 = vst [vmem:[%s2468_s4 + $0x130] sm:$0xff] %v1750_v35  ;;  %1777 = vpow2.f32 %v1188_v19  ;;  %v1114_v19 = vsub.f32 0.0, %v1050_v11  ;;  %v1260_v29 = vmul.f32 1.442695, %v1146_v20  ;;  %v699_v33 = vpop.f32.mrf.mxu1  ;;  %v1144_v38 = vsub.f32 0.0, %v1080_v32 }
 0x116   :  { %v1754_v45 = vpop.eup %1753  ;;  %1779 = vrcp.f32 %v1327_v36  ;;  %v1293_v46 = vadd.f32 1.0, %v1752_v39  ;;  %v980_v39 = vmul.f32 %v1601_v9, %v2109_v41  ;;  %v1010_v62 = vmul.f32 %v2109_v41, %v699_v33 }
 0x117   :  { %v1756_v49 = vpop.eup %1755  ;;  %v1325_v50 = vadd.f32 1.0, %v1754_v45  ;;  %1781 = vpow2.f32 %v1252_v28  ;;  %v1196_v28 = vmul.f32 1.442695, %v1114_v19  ;;  %v1012_v45 = vmul.f32 %v1633_v16, %v2109_v41 }
 0x118   :  { %v1758_v53 = vpop.eup %1757  ;;  %1420 = vst [vmem:[%s2468_s4 + $0x20] sm:$0xff] %v1756_v49  ;;  %1783 = vrcp.f32 %v1293_v46  ;;  %v978_v46 = vmul.f32 %v2109_v41, %v571_v25  ;;  %v1256_v49 = vmul.f32 1.442695, %v1144_v38 }
 0x119   :  { %v1760_v57 = vpop.eup %1759  ;;  %1785 = vrcp.f32 %v1325_v50  ;;  %v1298_v58 = vadd.f32 1.0, %v1758_v53  ;;  %v1051_v50 = vadd.f32 %v2114_v43, %v980_v39  ;;  %v1083_v53 = vadd.f32 %v2114_v43, %v1012_v45 }
 0x11a   :  { %v1762_v60 = vpop.eup %1761  ;;  %v1330_v61 = vadd.f32 1.0, %v1760_v57  ;;  %1787 = vpow2.f32 %v1184_v37  ;;  %v1112_v37 = vsub.f32 0.0, %v1048_v31  ;;  %v1049_v54 = vadd.f32 %v2114_v43, %v978_v46 }
 0x11b   :  { %v1764_v1 = vpop.eup %1763  ;;  %1789 = vrcp.f32 %v1298_v58  ;;  %v1296_v2 = vadd.f32 1.0, %v1762_v60  ;;  %v1115_v57 = vsub.f32 0.0, %v1051_v50  ;;  %v1147_v60 = vsub.f32 0.0, %v1083_v53 }
 0x11c   :  { %v1766_v5 = vpop.eup %1765  ;;  %1791 = vrcp.f32 %v1330_v61  ;;  %v1328_v6 = vadd.f32 1.0, %v1764_v1  ;;  %v1192_v48 = vmul.f32 1.442695, %v1112_v37  ;;  %v1113_v61 = vsub.f32 0.0, %v1049_v54 }
 0x11d   :  { %v1768_v10 = vpop.eup %1767  ;;  %1452 = vst [vmem:[%s2468_s4 + $0x120] sm:$0xff] %v1766_v5  ;;  %1793 = vrcp.f32 %v1296_v2  ;;  %v1198_v0 = vmul.f32 1.442695, %v1115_v57  ;;  %v1262_v4 = vmul.f32 1.442695, %v1147_v60 }
 0x11e   :  { %v1770_v13 = vpop.eup %1769  ;;  %1795 = vrcp.f32 %v1328_v6  ;;  %v1299_v14 = vadd.f32 1.0, %v1768_v10  ;;  %v1194_v5 = vmul.f32 1.442695, %v1113_v61  ;;  %v1081_v6 = vadd.f32 %v2114_v43, %v1010_v62 }
 0x11f   :  { %v1772_v17 = vpop.eup %1771  ;;  %v1331_v18 = vadd.f32 1.0, %v1770_v13  ;;  %1797 = vpow2.f32 %v1248_v40  ;;  %v1604_v40 = vpop.f32.mrf.mxu0 }
 0x120   :  { %v1774_v21 = vpop.eup %1773  ;;  %1799 = vrcp.f32 %v1299_v14  ;;  %v1297_v22 = vadd.f32 1.0, %v1772_v17  ;;  %v983_v1 = vmul.f32 %v1604_v40, %v2109_v41  ;;  %v1145_v13 = vsub.f32 0.0, %v1081_v6 }
 0x121   :  { %v1776_v26 = vpop.eup %1775  ;;  %1801 = vrcp.f32 %v1331_v18  ;;  %v1329_v27 = vadd.f32 1.0, %v1774_v21  ;;  %v584_v58 = vpop.f32.mrf.mxu0 }
 0x122   :  { %v1778_v30 = vpop.eup %1777  ;;  %1423 = vst [vmem:[%s2468_s4 + $0x38] sm:$0xff] %v1776_v26  ;;  %1803 = vrcp.f32 %v1297_v22  ;;  %v1054_v8 = vadd.f32 %v2114_v43, %v983_v1  ;;  %v981_v17 = vmul.f32 %v2109_v41, %v584_v58  ;;  %v1258_v20 = vmul.f32 1.442695, %v1145_v13 }
 0x123   :  { %v1780_v34 = vpop.eup %1779  ;;  %1805 = vrcp.f32 %v1329_v27  ;;  %v1302_v35 = vadd.f32 1.0, %v1778_v30  ;;  %v1605_v10 = vpop.f32.mrf.mxu0 }
 0x124   :  { %v1782_v36 = vpop.eup %1781  ;;  %1455 = vst [vmem:[%s2468_s4 + $0x138] sm:$0xff] %v1780_v34  ;;  %1807 = vpow2.f32 %v2207_v51  ;;  %v1636_v51 = vpop.f32.mrf.mxu1  ;;  %v1052_v25 = vadd.f32 %v2114_v43, %v981_v17 }
 0x125   :  { %v1784_v42 = vpop.eup %1783  ;;  %1809 = vrcp.f32 %v1302_v35  ;;  %v1334_v44 = vadd.f32 1.0, %v1782_v36  ;;  %v1015_v9 = vmul.f32 %v1636_v51, %v2109_v41  ;;  %v587_v26 = vpop.f32.mrf.mxu0 }
 0x126   :  { %v1786_v47 = vpop.eup %1785  ;;  %1421 = vst [vmem:[%s2468_s4 + $0x28] sm:$0xff] %v1784_v42  ;;  %1811 = vpow2.f32 %v2214_v59  ;;  %v712_v2 = vpop.f32.mrf.mxu1  ;;  %v1116_v33 = vsub.f32 0.0, %v1052_v25  ;;  %v982_v51 = vmul.f32 %v2109_v41, %v587_v26  ;;  %v2318_v26 = vld [vmem:[%s2466_s2] ss:$0 sm:$0xff] }
 0x127   :  { %v1788_v52 = vpop.eup %1787  ;;  %1453 = vst [vmem:[%s2468_s4 + $0x128] sm:$0xff] %v1786_v47  ;;  %1813 = vrcp.f32 %v1334_v44  ;;  %v1086_v16 = vadd.f32 %v2114_v43, %v1015_v9  ;;  %v1013_v21 = vmul.f32 %v2109_v41, %v712_v2  ;;  %v1608_v44 = vpop.f32.mrf.mxu0 }
 0x128   :  { %v1790_v55 = vpop.eup %1789  ;;  %v1300_v56 = vadd.f32 1.0, %v1788_v52  ;;  %1815 = vpow2.f32 %v2219_v7  ;;  %v1637_v18 = vpop.f32.mrf.mxu1  ;;  %v1200_v42 = vmul.f32 1.442695, %v1116_v33  ;;  %v1053_v58 = vadd.f32 %v2114_v43, %v982_v51 }
 0x129   :  { %v1792_v59 = vpop.eup %1791  ;;  %1426 = vst [vmem:[%s2468_s4 + $0x50] sm:$0xff] %v1790_v55  ;;  %1817 = vpow2.f32 %v1250_v15  ;;  %v1118_v15 = vsub.f32 0.0, %v1054_v8  ;;  %v1150_v24 = vsub.f32 0.0, %v1086_v16  ;;  %v1016_v38 = vmul.f32 %v1637_v18, %v2109_v41  ;;  %v600_v60 = vpop.f32.mrf.mxu0 }
 0x12a   :  { %v1794_v63 = vpop.eup %1793  ;;  %1458 = vst [vmem:[%s2468_s4 + $0x150] sm:$0xff] %v1792_v59  ;;  %1819 = vrcp.f32 %v1300_v56  ;;  %v715_v34 = vpop.f32.mrf.mxu1  ;;  %v1117_v2 = vsub.f32 0.0, %v1053_v58 }
 0x12b   :  { %v1796_v3 = vpop.eup %1795  ;;  %1424 = vst [vmem:[%s2468_s4 + $0x40] sm:$0xff] %v1794_v63  ;;  %1821 = vpow2.f32 %v1196_v28  ;;  %v1204_v23 = vmul.f32 1.442695, %v1118_v15  ;;  %v1084_v28 = vadd.f32 %v2114_v43, %v1013_v21  ;;  %v1268_v32 = vmul.f32 1.442695, %v1150_v24  ;;  %v1609_v13 = vpop.f32.mrf.mxu0 }
 0x12c   :  { %v1798_v7 = vpop.eup %1797  ;;  %1456 = vst [vmem:[%s2468_s4 + $0x140] sm:$0xff] %v1796_v3  ;;  %1823 = vpow2.f32 %v1260_v29  ;;  %v984_v29 = vmul.f32 %v1605_v10, %v2109_v41  ;;  %v1640_v52 = vpop.f32.mrf.mxu1  ;;  %v1014_v59 = vmul.f32 %v2109_v41, %v715_v34  ;;  %v2328_v34 = vld [vmem:[%s2467_s3] ss:$0 sm:$0xff] }
 0x12d   :  { %v1800_v11 = vpop.eup %1799  ;;  %v1332_v12 = vadd.f32 1.0, %v1798_v7  ;;  %1825 = vpow2.f32 %v1192_v48  ;;  %v1148_v36 = vsub.f32 0.0, %v1084_v28  ;;  %v1087_v48 = vadd.f32 %v2114_v43, %v1016_v38  ;;  %v603_v28 = vpop.f32.mrf.mxu0 }
 0x12e   :  { %v1802_v14 = vpop.eup %1801  ;;  %1427 = vst [vmem:[%s2468_s4 + $0x58] sm:$0xff] %v1800_v11  ;;  %1827 = vpow2.f32 %v1256_v49  ;;  %v1055_v37 = vadd.f32 %v2114_v43, %v984_v29  ;;  %v1085_v3 = vadd.f32 %v2114_v43, %v1014_v59  ;;  %v987_v7 = vmul.f32 %v1608_v44, %v2109_v41 }
 0x12f   :  { %v1804_v19 = vpop.eup %1803  ;;  %1459 = vst [vmem:[%s2468_s4 + $0x158] sm:$0xff] %v1802_v14  ;;  %1829 = vrcp.f32 %v1332_v12  ;;  %v1264_v46 = vmul.f32 1.442695, %v1148_v36  ;;  %v1151_v56 = vsub.f32 0.0, %v1087_v48  ;;  %v1019_v8 = vmul.f32 %v1640_v52, %v2109_v41 }
 0x130   :  { %v1806_v22 = vpop.eup %1805  ;;  %1425 = vst [vmem:[%s2468_s4 + $0x48] sm:$0xff] %v1804_v19  ;;  %1831 = vpow2.f32 %v1198_v0  ;;  %v1119_v47 = vsub.f32 0.0, %v1055_v37  ;;  %v2308_v11 = vmul.f32 1.442695, %v1117_v2  ;;  %v1149_v12 = vsub.f32 0.0, %v1085_v3 }
 0x131   :  { %v1808_v27 = vpop.eup %1807  ;;  %1457 = vst [vmem:[%s2468_s4 + $0x148] sm:$0xff] %v1806_v22  ;;  %1833 = vpow2.f32 %v1262_v4  ;;  %v2303_v63 = vmul.f32 1.442695, %v1151_v56  ;;  %v728_v4 = vpop.f32.mrf.mxu1  ;;  %v1058_v15 = vadd.f32 %v2114_v43, %v987_v7  ;;  %v1090_v16 = vadd.f32 %v2114_v43, %v1019_v8 }
 0x132   :  { %v1810_v30 = vpop.eup %1809  ;;  %v1303_v31 = vadd.f32 1.0, %v1808_v27  ;;  %1835 = vpow2.f32 %v1194_v5  ;;  %v2296_v55 = vmul.f32 1.442695, %v1119_v47  ;;  %v1266_v18 = vmul.f32 1.442695, %v1149_v12 }
 0x133   :  { %v1812_v35 = vpop.eup %1811  ;;  %1430 = vst [vmem:[%s2468_s4 + $0x70] sm:$0xff] %v1810_v30  ;;  %1837 = vpow2.f32 %v1258_v20  ;;  %v1641_v19 = vpop.f32.mrf.mxu1  ;;  %v1122_v22 = vsub.f32 0.0, %v1058_v15  ;;  %v985_v43 = vmul.f32 %v2318_v26, %v600_v60  ;;  %v1017_v27 = vmul.f32 %v2318_v26, %v728_v4 }
 0x134   :  { %v1814_v39 = vpop.eup %1813  ;;  %1839 = vrcp.f32 %v1303_v31  ;;  %v1335_v40 = vadd.f32 1.0, %v1812_v35  ;;  %v1020_v48 = vmul.f32 %v2318_v26, %v1641_v19 }
 0x135   :  { %v1816_v45 = vpop.eup %1815  ;;  %1462 = vst [vmem:[%s2468_s4 + $0x170] sm:$0xff] %v1814_v39  ;;  %1841 = vpow2.f32 %v1204_v23  ;;  %v1154_v23 = vsub.f32 0.0, %v1090_v16  ;;  %v1212_v31 = vmul.f32 1.442695, %v1122_v22  ;;  %v1056_v35 = vadd.f32 %v2328_v34, %v985_v43  ;;  %v731_v37 = vpop.f32.mrf.mxu1 }
 0x136   :  { %v1818_v49 = vpop.eup %1817  ;;  %1843 = vrcp.f32 %v1335_v40  ;;  %v1301_v50 = vadd.f32 1.0, %v1816_v45  ;;  %v1088_v36 = vadd.f32 %v2328_v34, %v1017_v27  ;;  %v988_v45 = vmul.f32 %v2318_v26, %v1609_v13 }
 0x137   :  { %v1820_v53 = vpop.eup %1819  ;;  %v1333_v54 = vadd.f32 1.0, %v1818_v49  ;;  %1845 = vpow2.f32 %v1268_v32  ;;  %v1276_v32 = vmul.f32 1.442695, %v1154_v23  ;;  %v986_v49 = vmul.f32 %v2318_v26, %v603_v28 }
 0x138   :  { %v1822_v57 = vpop.eup %1821  ;;  %1428 = vst [vmem:[%s2468_s4 + $0x60] sm:$0xff] %v1820_v53  ;;  %1847 = vrcp.f32 %v1301_v50  ;;  %v1152_v44 = vsub.f32 0.0, %v1088_v36  ;;  %v1612_v50 = vpop.f32.mrf.mxu0 }
 0x139   :  { %v1824_v61 = vpop.eup %1823  ;;  %1849 = vrcp.f32 %v1333_v54  ;;  %v1306_v62 = vadd.f32 1.0, %v1822_v57  ;;  %v1059_v54 = vadd.f32 %v2328_v34, %v988_v45  ;;  %v1091_v57 = vadd.f32 %v2328_v34, %v1020_v48 }
 0x13a   :  { %v1826_v0 = vpop.eup %1825  ;;  %v1338_v1 = vadd.f32 1.0, %v1824_v61  ;;  %1851 = vpow2.f32 %v1200_v42  ;;  %v1120_v42 = vsub.f32 0.0, %v1056_v35  ;;  %v1272_v53 = vmul.f32 1.442695, %v1152_v44  ;;  %v616_v2 = vpop.f32.mrf.mxu0 }
 0x13b   :  { %v1828_v5 = vpop.eup %1827  ;;  %1853 = vrcp.f32 %v1306_v62  ;;  %v1304_v6 = vadd.f32 1.0, %v1826_v0  ;;  %v1057_v58 = vadd.f32 %v2328_v34, %v986_v49  ;;  %v1123_v61 = vsub.f32 0.0, %v1059_v54 }
 0x13c   :  { %v1830_v9 = vpop.eup %1829  ;;  %1855 = vrcp.f32 %v1338_v1  ;;  %v1336_v10 = vadd.f32 1.0, %v1828_v5  ;;  %v1208_v52 = vmul.f32 1.442695, %v1120_v42  ;;  %v1018_v1 = vmul.f32 %v2318_v26, %v731_v37 }
 0x13d   :  { %v1832_v14 = vpop.eup %1831  ;;  %1460 = vst [vmem:[%s2468_s4 + $0x160] sm:$0xff] %v1830_v9  ;;  %1857 = vrcp.f32 %v1304_v6  ;;  %v1121_v0 = vsub.f32 0.0, %v1057_v58  ;;  %v1214_v4 = vmul.f32 1.442695, %v1123_v61  ;;  %v991_v5 = vmul.f32 %v2318_v26, %v1612_v50 }
 0x13e   :  { %v1834_v17 = vpop.eup %1833  ;;  %1859 = vrcp.f32 %v1336_v10  ;;  %v1307_v41 = vadd.f32 1.0, %v1832_v14  ;;  %v1089_v10 = vadd.f32 %v2328_v34, %v1018_v1 }
 0x13f   :  { %v1836_v20 = vpop.eup %1835  ;;  %v1339_v21 = vadd.f32 1.0, %v1834_v17  ;;  %1861 = vpow2.f32 %v1264_v46  ;;  %v1210_v9 = vmul.f32 1.442695, %v1121_v0  ;;  %v1062_v12 = vadd.f32 %v2328_v34, %v991_v5  ;;  %v1613_v17 = vpop.f32.mrf.mxu0 }
 0x140   :  { %v1838_v24 = vpop.eup %1837  ;;  %1863 = vrcp.f32 %v1307_v41  ;;  %v1305_v25 = vadd.f32 1.0, %v1836_v20  ;;  %v1153_v16 = vsub.f32 0.0, %v1089_v10  ;;  %v989_v20 = vmul.f32 %v2318_v26, %v616_v2 }
 0x141   :  { %v1840_v29 = vpop.eup %1839  ;;  %1865 = vrcp.f32 %v1339_v21  ;;  %v1337_v30 = vadd.f32 1.0, %v1838_v24  ;;  %v992_v42 = vmul.f32 %v2318_v26, %v1613_v17 }
 0x142   :  { %v1842_v33 = vpop.eup %1841  ;;  %1431 = vst [vmem:[%s2468_s4 + $0x78] sm:$0xff] %v1840_v29  ;;  %1867 = vrcp.f32 %v1305_v25  ;;  %v1274_v23 = vmul.f32 1.442695, %v1153_v16  ;;  %v1060_v27 = vadd.f32 %v2328_v34, %v989_v20 }
 0x143   :  { %v1844_v38 = vpop.eup %1843  ;;  %1869 = vrcp.f32 %v1337_v30  ;;  %v1310_v39 = vadd.f32 1.0, %v1842_v33  ;;  %v619_v30 = vpop.f32.mrf.mxu0 }
 0x144   :  { %v1846_v40 = vpop.eup %1845  ;;  %1463 = vst [vmem:[%s2468_s4 + $0x178] sm:$0xff] %v1844_v38  ;;  %1871 = vpow2.f32 %v2296_v55  ;;  %v1644_v55 = vpop.f32.mrf.mxu1  ;;  %v1124_v33 = vsub.f32 0.0, %v1060_v27  ;;  %v990_v54 = vmul.f32 %v2318_v26, %v619_v30 }
 0x145   :  { %v1848_v46 = vpop.eup %1847  ;;  %1873 = vrcp.f32 %v1310_v39  ;;  %v1342_v47 = vadd.f32 1.0, %v1846_v40  ;;  %v1023_v13 = vmul.f32 %v2318_v26, %v1644_v55 }
 0x146   :  { %v1850_v51 = vpop.eup %1849  ;;  %1429 = vst [vmem:[%s2468_s4 + $0x68] sm:$0xff] %v1848_v46  ;;  %1875 = vpow2.f32 %v2303_v63  ;;  %v1155_v63 = vsub.f32 0.0, %v1091_v57  ;;  %v744_v6 = vpop.f32.mrf.mxu1  ;;  %v1216_v48 = vmul.f32 1.442695, %v1124_v33 }
 0x147   :  { %v1852_v56 = vpop.eup %1851  ;;  %1461 = vst [vmem:[%s2468_s4 + $0x168] sm:$0xff] %v1850_v51  ;;  %1877 = vrcp.f32 %v1342_v47  ;;  %v1094_v19 = vadd.f32 %v2328_v34, %v1023_v13  ;;  %v1021_v24 = vmul.f32 %v2318_v26, %v744_v6 }
 0x148   :  { %v1854_v59 = vpop.eup %1853  ;;  %v1308_v60 = vadd.f32 1.0, %v1852_v56  ;;  %1879 = vpow2.f32 %v2308_v11  ;;  %v1278_v8 = vmul.f32 1.442695, %v1155_v63  ;;  %v1645_v21 = vpop.f32.mrf.mxu1 }
 0x149   :  { %v1856_v62 = vpop.eup %1855  ;;  %1434 = vst [vmem:[%s2468_s4 + $0x90] sm:$0xff] %v1854_v59  ;;  %1881 = vpow2.f32 %v1266_v18  ;;  %v1126_v18 = vsub.f32 0.0, %v1062_v12  ;;  %v1158_v43 = vsub.f32 0.0, %v1094_v19  ;;  %v1092_v37 = vadd.f32 %v2328_v34, %v1021_v24 }
 0x14a   :  { %v1858_v3 = vpop.eup %1857  ;;  %1466 = vst [vmem:[%s2468_s4 + $0x190] sm:$0xff] %v1856_v62  ;;  %1883 = vrcp.f32 %v1308_v60  ;;  %v747_v38 = vpop.f32.mrf.mxu1  ;;  %v1024_v45 = vmul.f32 %v2318_v26, %v1645_v21 }
 0x14b   :  { %v1860_v7 = vpop.eup %1859  ;;  %1432 = vst [vmem:[%s2468_s4 + $0x80] sm:$0xff] %v1858_v3  ;;  %1885 = vpow2.f32 %v1212_v31  ;;  %v1220_v29 = vmul.f32 1.442695, %v1126_v18  ;;  %v1284_v36 = vmul.f32 1.442695, %v1158_v43  ;;  %v1156_v51 = vsub.f32 0.0, %v1092_v37 }
 0x14c   :  { %v1862_v11 = vpop.eup %1861  ;;  %1464 = vst [vmem:[%s2468_s4 + $0x180] sm:$0xff] %v1860_v7  ;;  %1887 = vpow2.f32 %v1276_v32  ;;  %v1022_v57 = vmul.f32 %v2318_v26, %v747_v38  ;;  %v1095_v60 = vadd.f32 %v2328_v34, %v1024_v45  ;;  %v1061_v3 = vadd.f32 %v2328_v34, %v990_v54 }
 0x14d   :  { %v1864_v14 = vpop.eup %1863  ;;  %v1340_v15 = vadd.f32 1.0, %v1862_v11  ;;  %1889 = vpow2.f32 %v1208_v52  ;;  %v1280_v63 = vmul.f32 1.442695, %v1156_v51 }
 0x14e   :  { %v1866_v41 = vpop.eup %1865  ;;  %1435 = vst [vmem:[%s2468_s4 + $0x98] sm:$0xff] %v1864_v14  ;;  %1891 = vpow2.f32 %v1272_v53  ;;  %v1063_v53 = vadd.f32 %v2328_v34, %v992_v42  ;;  %v1093_v26 = vadd.f32 %v2328_v34, %v1022_v57  ;;  %v1159_v7 = vsub.f32 0.0, %v1095_v60 }
 0x14f   :  { %v1868_v22 = vpop.eup %1867  ;;  %1467 = vst [vmem:[%s2468_s4 + $0x198] sm:$0xff] %v1866_v41  ;;  %1893 = vrcp.f32 %v1340_v15  ;;  %v1125_v13 = vsub.f32 0.0, %v1061_v3 }
 0x150   :  { %v1870_v25 = vpop.eup %1869  ;;  %1433 = vst [vmem:[%s2468_s4 + $0x88] sm:$0xff] %v1868_v22  ;;  %1895 = vpow2.f32 %v1214_v4  ;;  %v1127_v2 = vsub.f32 0.0, %v1063_v53  ;;  %v1157_v16 = vsub.f32 0.0, %v1093_v26  ;;  %v1286_v34 = vmul.f32 1.442695, %v1159_v7 }
 0x151   :  { %v1872_v28 = vpop.eup %1871  ;;  %1465 = vst [vmem:[%s2468_s4 + $0x188] sm:$0xff] %v1870_v25  ;;  %1897 = vpow2.f32 %v1278_v8  ;;  %v1218_v20 = vmul.f32 1.442695, %v1125_v13 }
 0x152   :  { %v1874_v31 = vpop.eup %1873  ;;  %v1311_v32 = vadd.f32 1.0, %v1872_v28  ;;  %1899 = vpow2.f32 %v1210_v9  ;;  %v1222_v12 = vmul.f32 1.442695, %v1127_v2 }
 0x153   :  { %v1876_v35 = vpop.eup %1875  ;;  %1438 = vst [vmem:[%s2468_s4 + $0xb0] sm:$0xff] %v1874_v31  ;;  %1901 = vpow2.f32 %v1274_v23  ;;  %v1282_v23 = vmul.f32 1.442695, %v1157_v16 }
 0x154   :  { %v1878_v39 = vpop.eup %1877  ;;  %1903 = vrcp.f32 %v1311_v32  ;;  %v1343_v40 = vadd.f32 1.0, %v1876_v35 }
 0x155   :  { %v1880_v44 = vpop.eup %1879  ;;  %1470 = vst [vmem:[%s2468_s4 + $0x1b0] sm:$0xff] %v1878_v39  ;;  %1905 = vpow2.f32 %v1220_v29 }
 0x156   :  { %v1882_v46 = vpop.eup %1881  ;;  %1907 = vrcp.f32 %v1343_v40  ;;  %v1309_v47 = vadd.f32 1.0, %v1880_v44 }
 0x157   :  { %v1884_v49 = vpop.eup %1883  ;;  %v1341_v50 = vadd.f32 1.0, %v1882_v46  ;;  %1909 = vpow2.f32 %v1284_v36 }
 0x158   :  { %v1886_v52 = vpop.eup %1885  ;;  %1436 = vst [vmem:[%s2468_s4 + $0xa0] sm:$0xff] %v1884_v49  ;;  %1911 = vrcp.f32 %v1309_v47 }
 0x159   :  { %v1888_v55 = vpop.eup %1887  ;;  %1913 = vrcp.f32 %v1341_v50  ;;  %v1314_v56 = vadd.f32 1.0, %v1886_v52 }
 0x15a   :  { %v1890_v58 = vpop.eup %1889  ;;  %v1346_v59 = vadd.f32 1.0, %v1888_v55  ;;  %1915 = vpow2.f32 %v1216_v48 }
 0x15b   :  { %v1892_v61 = vpop.eup %1891  ;;  %1917 = vrcp.f32 %v1314_v56  ;;  %v1312_v62 = vadd.f32 1.0, %v1890_v58 }
 0x15c   :  { %v1894_v0 = vpop.eup %1893  ;;  %1919 = vrcp.f32 %v1346_v59  ;;  %v1344_v1 = vadd.f32 1.0, %v1892_v61 }
 0x15d   :  { %v1896_v4 = vpop.eup %1895  ;;  %1468 = vst [vmem:[%s2468_s4 + $0x1a0] sm:$0xff] %v1894_v0  ;;  %1921 = vrcp.f32 %v1312_v62 }
 0x15e   :  { %v1898_v5 = vpop.eup %1897  ;;  %1923 = vrcp.f32 %v1344_v1  ;;  %v1315_v6 = vadd.f32 1.0, %v1896_v4 }
 0x15f   :  { %v1900_v8 = vpop.eup %1899  ;;  %v1347_v9 = vadd.f32 1.0, %v1898_v5  ;;  %1925 = vpow2.f32 %v1280_v63 }
 0x160   :  { %v1902_v10 = vpop.eup %1901  ;;  %1927 = vrcp.f32 %v1315_v6  ;;  %v1313_v11 = vadd.f32 1.0, %v1900_v8 }
 0x161   :  { %v1904_v14 = vpop.eup %1903  ;;  %1929 = vrcp.f32 %v1347_v9  ;;  %v1345_v15 = vadd.f32 1.0, %v1902_v10 }
 0x162   :  { %v1906_v17 = vpop.eup %1905  ;;  %1439 = vst [vmem:[%s2468_s4 + $0xb8] sm:$0xff] %v1904_v14  ;;  %1931 = vrcp.f32 %v1313_v11 }
 0x163   :  { %v1908_v41 = vpop.eup %1907  ;;  %1933 = vrcp.f32 %v1345_v15  ;;  %v1318_v18 = vadd.f32 1.0, %v1906_v17 }
 0x164   :  { %v1910_v19 = vpop.eup %1909  ;;  %1471 = vst [vmem:[%s2468_s4 + $0x1b8] sm:$0xff] %v1908_v41  ;;  %1935 = vpow2.f32 %v1222_v12 }
 0x165   :  { %v1912_v21 = vpop.eup %1911  ;;  %1937 = vrcp.f32 %v1318_v18  ;;  %v1350_v22 = vadd.f32 1.0, %v1910_v19 }
 0x166   :  { %v1914_v24 = vpop.eup %1913  ;;  %1437 = vst [vmem:[%s2468_s4 + $0xa8] sm:$0xff] %v1912_v21  ;;  %1939 = vpow2.f32 %v1286_v34 }
 0x167   :  { %v1916_v25 = vpop.eup %1915  ;;  %1469 = vst [vmem:[%s2468_s4 + $0x1a8] sm:$0xff] %v1914_v24  ;;  %1941 = vrcp.f32 %v1350_v22 }
 0x168   :  { %v1918_v43 = vpop.eup %1917  ;;  %v1316_v27 = vadd.f32 1.0, %v1916_v25  ;;  %1943 = vpow2.f32 %v1218_v20 }
 0x169   :  { %v1920_v28 = vpop.eup %1919  ;;  %1442 = vst [vmem:[%s2468_s4 + $0xd0] sm:$0xff] %v1918_v43  ;;  %1945 = vpow2.f32 %v1282_v23 }
 0x16a   :  { %v1922_v29 = vpop.eup %1921  ;;  %1474 = vst [vmem:[%s2468_s4 + $0x1d0] sm:$0xff] %v1920_v28  ;;  %1947 = vrcp.f32 %v1316_v27 }
 0x16b   :  { %v1924_v30 = vpop.eup %1923  ;;  %1440 = vst [vmem:[%s2468_s4 + $0xc0] sm:$0xff] %v1922_v29 }
 0x16c   :  { %v1926_v31 = vpop.eup %1925  ;;  %1472 = vst [vmem:[%s2468_s4 + $0x1c0] sm:$0xff] %v1924_v30 }
 0x16d   :  { %v1928_v32 = vpop.eup %1927  ;;  %v1348_v33 = vadd.f32 1.0, %v1926_v31 }
 0x16e   :  { %v1930_v35 = vpop.eup %1929  ;;  %1443 = vst [vmem:[%s2468_s4 + $0xd8] sm:$0xff] %v1928_v32 }
 0x16f   :  { %v1932_v36 = vpop.eup %1931  ;;  %1475 = vst [vmem:[%s2468_s4 + $0x1d8] sm:$0xff] %v1930_v35  ;;  %1949 = vrcp.f32 %v1348_v33 }
 0x170   :  { %v1934_v37 = vpop.eup %1933  ;;  %1441 = vst [vmem:[%s2468_s4 + $0xc8] sm:$0xff] %v1932_v36 }
 0x171   :  { %v1936_v38 = vpop.eup %1935  ;;  %1473 = vst [vmem:[%s2468_s4 + $0x1c8] sm:$0xff] %v1934_v37 }
 0x172   :  { %v1938_v39 = vpop.eup %1937  ;;  %v1319_v40 = vadd.f32 1.0, %v1936_v38 }
 0x173   :  { %v1940_v42 = vpop.eup %1939  ;;  %1446 = vst [vmem:[%s2468_s4 + $0xf0] sm:$0xff] %v1938_v39 }
 0x174   :  { %v1942_v44 = vpop.eup %1941  ;;  %1951 = vrcp.f32 %v1319_v40  ;;  %v1351_v45 = vadd.f32 1.0, %v1940_v42 }
 0x175   :  { %v1944_v46 = vpop.eup %1943  ;;  %1478 = vst [vmem:[%s2468_s4 + $0x1f0] sm:$0xff] %v1942_v44 }
 0x176   :  { %v1946_v47 = vpop.eup %1945  ;;  %1953 = vrcp.f32 %v1351_v45  ;;  %v1317_v48 = vadd.f32 1.0, %v1944_v46 }
 0x177   :  { %v1948_v49 = vpop.eup %1947  ;;  %v1349_v50 = vadd.f32 1.0, %v1946_v47 }
 0x178   :  { %1444 = vst [vmem:[%s2468_s4 + $0xe0] sm:$0xff] %v1948_v49  ;;  %1955 = vrcp.f32 %v1317_v48 }
 0x179   :  { %1957 = vrcp.f32 %v1349_v50 }
 0x17c   :  { %v1950_v51 = vpop.eup %1949 }
 0x17d   :  { %1476 = vst [vmem:[%s2468_s4 + $0x1e0] sm:$0xff] %v1950_v51 }
 0x181   :  { %v1952_v52 = vpop.eup %1951 }
 0x182   :  { %1447 = vst [vmem:[%s2468_s4 + $0xf8] sm:$0xff] %v1952_v52 }
 0x183   :  { %v1954_v53 = vpop.eup %1953 }
 0x184   :  { %1479 = vst [vmem:[%s2468_s4 + $0x1f8] sm:$0xff] %v1954_v53 }
 0x185   :  { %v1956_v54 = vpop.eup %1955 }
 0x186   :  { %v1958_v55 = vpop.eup %1957  ;;  %1445 = vst [vmem:[%s2468_s4 + $0xe8] sm:$0xff] %v1956_v54 }
 0x187   :  { %1477 = vst [vmem:[%s2468_s4 + $0x1e8] sm:$0xff] %v1958_v55 }

// kernel: annl_gsnet_head_forward.18
= control target key start
LH: loop header
LB: loop body
LE: loop exit
PB: predicated region body
PF: predicated region fallthrough
CT: control target
= control target key end

     0   :  { %v206_v0 = vmov 0.0   ;;  %vm207_vm0 = vmmov 0   ;;  %s269_s1 = inlined_call_operand.vmem [shape: bf16[128,128], index: 1, kind: input, shape index: {}]   ;;  %s270_s0 = inlined_call_operand.vmem [shape: bf16[8,128], index: 0, kind: input, shape index: {}]   ;;  %s271_s2 = inlined_call_operand.vmem [shape: f32[1,128], index: 2, kind: input, shape index: {}]   ;;  %s272_s3 = inlined_call_operand.vmem [shape: f32[1,128], index: 3, kind: input, shape index: {}]   ;;  %s273_s4 = inlined_call_operand.vmem [shape: f32[8,128], index: 4, kind: output, shape index: {}]  }
   0x1   :  { %176 = vmatprep.subr.bf16.mxu0 %v206_v0  ;;  %v198_v1 = vld [vmem:[%s269_s1 + $0x38] sm:$0xff]   ;;  %192 = vmatprep.mubr.msk.bf16.mxu0 %vm207_vm0, %v206_v0  ;;  %v199_v2 = vld [vmem:[%s269_s1 + $0x30] sm:$0xff]   ;;  %v200_v3 = vld [vmem:[%s269_s1 + $0x28] sm:$0xff]  }
   0x2   :  { %177 = vmatpush3.bf16.msra.mxu0 %v198_v1  ;;  %v201_v4 = vld [vmem:[%s269_s1 + $0x20] sm:$0xff]   ;;  %v202_v5 = vld [vmem:[%s269_s1 + $0x18] sm:$0xff]   ;;  %v203_v6 = vld [vmem:[%s269_s1 + $0x10] sm:$0xff]  }
   0x3   :  { %178 = vmatprep.subr.bf16.mxu0 %v206_v0  ;;  %v204_v7 = vld [vmem:[%s269_s1 + $0x8] sm:$0xff]   ;;  %v205_v8 = vld [vmem:[%s269_s1] sm:$0xff]  }
   0x4   :  { %v24_v9 = vld [vmem:[%s270_s0] sm:$0xf] }
   0x5   :  { %v165_v11 = vld [vmem:[%s271_s2] ss:$0 sm:$0xff] }
   0x6   :  { %179 = vmatpush3.bf16.msra.mxu0 %v199_v2  ;;  %v166_v12 = vld [vmem:[%s272_s3] ss:$0 sm:$0xff] }
   0x7   :  { %180 = vmatprep.subr.bf16.mxu0 %v206_v0 }
   0xa   :  { %181 = vmatpush3.bf16.msra.mxu0 %v200_v3 }
   0xb   :  { %182 = vmatprep.subr.bf16.mxu0 %v206_v0 }
   0xe   :  { %183 = vmatpush3.bf16.msra.mxu0 %v201_v4 }
   0xf   :  { %184 = vmatprep.subr.bf16.mxu0 %v206_v0 }
  0x12   :  { %185 = vmatpush3.bf16.msra.mxu0 %v202_v5 }
  0x13   :  { %186 = vmatprep.subr.bf16.mxu0 %v206_v0 }
  0x16   :  { %187 = vmatpush3.bf16.msra.mxu0 %v203_v6 }
  0x17   :  { %188 = vmatprep.subr.bf16.mxu0 %v206_v0 }
  0x1a   :  { %189 = vmatpush3.bf16.msra.mxu0 %v204_v7 }
  0x1b   :  { %190 = vmatprep.subr.bf16.mxu0 %v206_v0 }
  0x1e   :  { %191 = vmatpush3.bf16.msra.mxu0 %v205_v8 }
  0x21   :  { %193 = vmatmul.mubr.bf16.vlgmr.msra.gmra.mxu0 %v24_v9 }
  0xe1   :  { %v123_v10 = vpop.f32.mrf.mxu0 }
  0xe2   :  { %v142_v14 = vmul.f32 %v165_v11, %v123_v10 }
  0xe3   :  { %v194_v13 = vpop.f32.mrf.mxu0 }
  0xe4   :  { %v150_v16 = vadd.f32 %v166_v12, %v142_v14 }
  0xe5   :  { %v126_v15 = vpop.f32.mrf.mxu0 }
  0xe6   :  { %v151_v18 = vmax.f32 %v150_v16, 0.0 }
  0xe7   :  { %v195_v17 = vpop.f32.mrf.mxu0 }
  0xe8   :  { %152 = vst [vmem:[%s273_s4] sm:$0xff] %v151_v18 }

// kernel: annl_gsnet_head_forward.19
= control target key start
LH: loop header
LB: loop body
LE: loop exit
PB: predicated region body
PF: predicated region fallthrough
CT: control target
= control target key end

     0   :  { %v214_v0 = vmov 0.0   ;;  %vm215_vm0 = vmmov 0   ;;  %s277_s1 = inlined_call_operand.vmem [shape: bf16[128,128], index: 1, kind: input, shape index: {}]   ;;  %s278_s0 = inlined_call_operand.vmem [shape: bf16[8,128], index: 0, kind: input, shape index: {}]   ;;  %s279_s2 = inlined_call_operand.vmem [shape: f32[1,128], index: 2, kind: input, shape index: {}]   ;;  %s280_s3 = inlined_call_operand.vmem [shape: f32[1,128], index: 3, kind: input, shape index: {}]   ;;  %s281_s4 = inlined_call_operand.vmem [shape: f32[8,128], index: 4, kind: output, shape index: {}]  }
   0x1   :  { %180 = vmatprep.subr.bf16.mxu0 %v214_v0  ;;  %v202_v1 = vld [vmem:[%s277_s1 + $0x38] sm:$0xff]   ;;  %196 = vmatprep.mubr.msk.bf16.mxu0 %vm215_vm0, %v214_v0  ;;  %v203_v2 = vld [vmem:[%s277_s1 + $0x30] sm:$0xff]   ;;  %v204_v3 = vld [vmem:[%s277_s1 + $0x28] sm:$0xff]  }
   0x2   :  { %181 = vmatpush3.bf16.msra.mxu0 %v202_v1  ;;  %v205_v4 = vld [vmem:[%s277_s1 + $0x20] sm:$0xff]   ;;  %v206_v5 = vld [vmem:[%s277_s1 + $0x18] sm:$0xff]   ;;  %v207_v6 = vld [vmem:[%s277_s1 + $0x10] sm:$0xff]  }
   0x3   :  { %182 = vmatprep.subr.bf16.mxu0 %v214_v0  ;;  %v208_v7 = vld [vmem:[%s277_s1 + $0x8] sm:$0xff]   ;;  %v209_v8 = vld [vmem:[%s277_s1] sm:$0xff]  }
   0x4   :  { %v24_v9 = vld [vmem:[%s278_s0] sm:$0xf] }
   0x5   :  { %v169_v11 = vld [vmem:[%s279_s2] ss:$0 sm:$0xff] }
   0x6   :  { %183 = vmatpush3.bf16.msra.mxu0 %v203_v2  ;;  %v170_v12 = vld [vmem:[%s280_s3] ss:$0 sm:$0xff] }
   0x7   :  { %184 = vmatprep.subr.bf16.mxu0 %v214_v0 }
   0xa   :  { %185 = vmatpush3.bf16.msra.mxu0 %v204_v3 }
   0xb   :  { %186 = vmatprep.subr.bf16.mxu0 %v214_v0 }
   0xe   :  { %187 = vmatpush3.bf16.msra.mxu0 %v205_v4 }
   0xf   :  { %188 = vmatprep.subr.bf16.mxu0 %v214_v0 }
  0x12   :  { %189 = vmatpush3.bf16.msra.mxu0 %v206_v5 }
  0x13   :  { %190 = vmatprep.subr.bf16.mxu0 %v214_v0 }
  0x16   :  { %191 = vmatpush3.bf16.msra.mxu0 %v207_v6 }
  0x17   :  { %192 = vmatprep.subr.bf16.mxu0 %v214_v0 }
  0x1a   :  { %193 = vmatpush3.bf16.msra.mxu0 %v208_v7 }
  0x1b   :  { %194 = vmatprep.subr.bf16.mxu0 %v214_v0 }
  0x1e   :  { %195 = vmatpush3.bf16.msra.mxu0 %v209_v8 }
  0x21   :  { %197 = vmatmul.mubr.bf16.vlgmr.msra.gmra.mxu0 %v24_v9 }
  0xe1   :  { %v123_v10 = vpop.f32.mrf.mxu0 }
  0xe2   :  { %v142_v14 = vmul.f32 %v169_v11, %v123_v10 }
  0xe3   :  { %v198_v13 = vpop.f32.mrf.mxu0 }
  0xe4   :  { %v150_v16 = vadd.f32 %v170_v12, %v142_v14 }
  0xe5   :  { %v126_v15 = vpop.f32.mrf.mxu0 }
  0xe6   :  { %v151_v18 = vsub.f32 0.0, %v150_v16 }
  0xe7   :  { %v199_v17 = vpop.f32.mrf.mxu0 }
  0xe8   :  { %v152_v19 = vmul.f32 1.442695, %v151_v18 }
  0xea   :  { %210 = vpow2.f32 %v152_v19 }
  0xf7   :  { %v211_v20 = vpop.eup %210 }
  0xf8   :  { %v154_v21 = vadd.f32 1.0, %v211_v20 }
  0xfa   :  { %212 = vrcp.f32 %v154_v21 }
 0x107   :  { %v213_v22 = vpop.eup %212 }
 0x108   :  { %156 = vst [vmem:[%s281_s4] sm:$0xff] %v213_v22 }

// kernel: annl_gsnet_head_forward.21
= control target key start
LH: loop header
LB: loop body
LE: loop exit
PB: predicated region body
PF: predicated region fallthrough
CT: control target
= control target key end

     0   :  { %v205_v0 = vmov 0.0   ;;  %vm206_vm0 = vmmov 0   ;;  %s268_s1 = inlined_call_operand.vmem [shape: bf16[128,128], index: 1, kind: input, shape index: {}]   ;;  %s269_s0 = inlined_call_operand.vmem [shape: bf16[8,128], index: 0, kind: input, shape index: {}]   ;;  %s270_s2 = inlined_call_operand.vmem [shape: f32[1,128], index: 2, kind: input, shape index: {}]   ;;  %s271_s3 = inlined_call_operand.vmem [shape: f32[1,128], index: 3, kind: input, shape index: {}]   ;;  %s272_s4 = inlined_call_operand.vmem [shape: f32[8,128], index: 4, kind: output, shape index: {}]  }
   0x1   :  { %175 = vmatprep.subr.bf16.mxu0 %v205_v0  ;;  %v197_v1 = vld [vmem:[%s268_s1 + $0x38] sm:$0xff]   ;;  %191 = vmatprep.mubr.msk.bf16.mxu0 %vm206_vm0, %v205_v0  ;;  %v198_v2 = vld [vmem:[%s268_s1 + $0x30] sm:$0xff]   ;;  %v199_v3 = vld [vmem:[%s268_s1 + $0x28] sm:$0xff]  }
   0x2   :  { %176 = vmatpush3.bf16.msra.mxu0 %v197_v1  ;;  %v200_v4 = vld [vmem:[%s268_s1 + $0x20] sm:$0xff]   ;;  %v201_v5 = vld [vmem:[%s268_s1 + $0x18] sm:$0xff]   ;;  %v202_v6 = vld [vmem:[%s268_s1 + $0x10] sm:$0xff]  }
   0x3   :  { %177 = vmatprep.subr.bf16.mxu0 %v205_v0  ;;  %v203_v7 = vld [vmem:[%s268_s1 + $0x8] sm:$0xff]   ;;  %v204_v8 = vld [vmem:[%s268_s1] sm:$0xff]  }
   0x4   :  { %v24_v9 = vld [vmem:[%s269_s0] sm:$0xf] }
   0x5   :  { %v164_v11 = vld [vmem:[%s270_s2] ss:$0 sm:$0xff] }
   0x6   :  { %178 = vmatpush3.bf16.msra.mxu0 %v198_v2  ;;  %v165_v12 = vld [vmem:[%s271_s3] ss:$0 sm:$0xff] }
   0x7   :  { %179 = vmatprep.subr.bf16.mxu0 %v205_v0 }
   0xa   :  { %180 = vmatpush3.bf16.msra.mxu0 %v199_v3 }
   0xb   :  { %181 = vmatprep.subr.bf16.mxu0 %v205_v0 }
   0xe   :  { %182 = vmatpush3.bf16.msra.mxu0 %v200_v4 }
   0xf   :  { %183 = vmatprep.subr.bf16.mxu0 %v205_v0 }
  0x12   :  { %184 = vmatpush3.bf16.msra.mxu0 %v201_v5 }
  0x13   :  { %185 = vmatprep.subr.bf16.mxu0 %v205_v0 }
  0x16   :  { %186 = vmatpush3.bf16.msra.mxu0 %v202_v6 }
  0x17   :  { %187 = vmatprep.subr.bf16.mxu0 %v205_v0 }
  0x1a   :  { %188 = vmatpush3.bf16.msra.mxu0 %v203_v7 }
  0x1b   :  { %189 = vmatprep.subr.bf16.mxu0 %v205_v0 }
  0x1e   :  { %190 = vmatpush3.bf16.msra.mxu0 %v204_v8 }
  0x21   :  { %192 = vmatmul.mubr.bf16.vlgmr.msra.gmra.mxu0 %v24_v9 }
  0xe1   :  { %v123_v10 = vpop.f32.mrf.mxu0 }
  0xe2   :  { %v142_v14 = vmul.f32 %v164_v11, %v123_v10 }
  0xe3   :  { %v193_v13 = vpop.f32.mrf.mxu0 }
  0xe4   :  { %v150_v16 = vadd.f32 %v165_v12, %v142_v14 }
  0xe5   :  { %v126_v15 = vpop.f32.mrf.mxu0 }
  0xe6   :  { %151 = vst [vmem:[%s272_s4] sm:$0xff] %v150_v16 }
  0xe7   :  { %v194_v17 = vpop.f32.mrf.mxu0 }

// kernel: annl_gsnet_head_forward.20
= control target key start
LH: loop header
LB: loop body
LE: loop exit
PB: predicated region body
PF: predicated region fallthrough
CT: control target
= control target key end

     0   :  { %s1999_s19 = smov 0   ;;  %s2547_s0 = inlined_call_operand.vmem [shape: f32[2,16,256], index: 0, kind: input, shape index: {}]   ;;  %s2548_s1 = inlined_call_operand.vmem [shape: f32[110,256], index: 1, kind: input, shape index: {}]   ;;  %s2549_s2 = inlined_call_operand.vmem [shape: f32[256,110], index: 2, kind: input, shape index: {}]   ;;  %s2550_s3 = inlined_call_operand.vmem [shape: f32[16,2], index: 3, kind: input, shape index: {}]   ;;  %s2551_s4 = inlined_call_operand.vmem [shape: f32[1,2], index: 4, kind: input, shape index: {}]   ;;  %s2552_s5 = inlined_call_operand.vmem [shape: f32[2,16], index: 5, kind: input, shape index: {}]   ;;  %s2553_s6 = inlined_call_operand.vmem [shape: f32[2,1], index: 6, kind: input, shape index: {}]   ;;  %s2554_s7 = inlined_call_operand.vmem [shape: f32[1,16], index: 7, kind: input, shape index: {}]   ;;  %s2555_s8 = inlined_call_operand.<no memory space> [shape: f32[1,1], index: 8, kind: input, shape index: {}]   ;;  %s2556_s9 = inlined_call_operand.vmem [shape: f32[8,16], index: 9, kind: input, shape index: {}]   ;;  %s2557_s10 = inlined_call_operand.vmem [shape: f32[2,8,1], index: 10, kind: input, shape index: {}]   ;;  %s2558_s11 = inlined_call_operand.vmem [shape: f32[2,8,256], index: 11, kind: output, shape index: {}]  }
   0x1   :  { %v16_v0 = vstv %s2555_s8 }
   0x2   :  { %17 = vst [vmem:[#allocation2] sm:$0x1] %v16_v0 }
   0x3 LB: > { %s1707_s20 = sadd.s32 4294967295, %s1932_s19   ;;  %p1711_p0 = scmp.ge.s32.totalorder %s1932_s19, 1  ;;  %s1932_s19 = sphi %s1999_s19, %s23_s19  }
   0x4   : > { %p348_p1 = scmp.lt.s32.totalorder %s1932_s19, 3 }
   0x6   : > { %p349_p2 = pnand %p1711_p0, %p348_p1 }
   0x7   : > { %p392_p3 = scmp.lt.s32.totalorder (!%p349_p2), %s1707_s20, 1 }
   0x8   : > { %352 = sbr.rel (%p349_p2) target bundleno = 1197 (0x4ad), region = 64 }
   0xd   : > { %v411_v1 = vld [vmem:[%s2548_s1 + $0x8] sm:$0xff]  ;;  %s2560_s20 = smov (!%p392_p3, %s1707_s20), 1  ;;  %v604_v7 = vld [vmem:[%s2549_s2 + $0xf8] sm:$0xff]  ;;  %v410_v8 = vld [vmem:[%s2548_s1] sm:$0xff]  ;;  %v1934_v48 = vmov 0.0   ;;  %vm687_vm0 = vcmask 130048  }
   0xe   : > { %502 = vmatprep.mubr.f32.mxu0 %v411_v1  ;;  %s1757_s8 = sshll.u32 %s2560_s20, 5  ;;  %v423_v2 = vld [vmem:[%s2548_s1 + $0x68] sm:$0xff]  ;;  %v422_v9 = vld [vmem:[%s2548_s1 + $0x60] sm:$0xff]  ;;  %v413_v10 = vld [vmem:[%s2548_s1 + $0x18] sm:$0xff]  ;;  %vm1086_vm1 = vcmask 1041408   ;;  %vm1043_vm2 = vcmask 15360  }
   0xf   : > { %s2019_s27 = scalar_lea.vmem %s2547_s0, %s1757_s8  ;;  %532 = vmatprep.mubr.f32.mxu1 %v423_v2  ;;  %v425_v11 = vld [vmem:[%s2548_s1 + $0x78] sm:$0xff]  ;;  %v603_v13 = vld [vmem:[%s2549_s2 + $0xf0] sm:$0xff]  ;;  %v415_v16 = vld [vmem:[%s2548_s1 + $0x28] sm:$0xff]  ;;  %vm1253_vm3 = vcmask 1045504   ;;  %vm1437_vm4 = vcmask 900096   ;;  %s1714_s18 = sshll.u32 %s2560_s20, 3 }
  0x10   : > { %v2022_v3 = vld [vmem:[%s2019_s27 + $0x18] sm:$0xff]  ;;  %v2025_v4 = vld [vmem:[%s2019_s27 + $0x10] sm:$0xff]  ;;  %v2028_v5 = vld [vmem:[%s2019_s27 + $0x8] sm:$0xff]  ;;  %s400_s8 = scalar_lea.vmem %s2557_s10, %s1714_s18  ;;  %s1758_s25 = sshll.u32 %s2560_s20, 4 }
  0x11   : > { %466 = vmatprep.subr.mxu0 %v2022_v3  ;;  %1838 = vmatprep.subr.mxu1 %v2022_v3  ;;  %v2036_v6 = vld [vmem:[%s2019_s27] sm:$0xff]  ;;  %v588_v12 = vld [vmem:[%s2549_s2 + $0x78] sm:$0xff]  ;;  %v412_v14 = vld [vmem:[%s2548_s1 + $0x10] sm:$0xff] }
  0x12   : > { %467 = vmatpush1.xpose.msra.mxu0 %v2025_v4  ;;  %1840 = vmatpush1.xpose.msra.mxu1 %v2025_v4  ;;  %v424_v15 = vld [vmem:[%s2548_s1 + $0x70] sm:$0xff]  ;;  %v427_v17 = vld [vmem:[%s2548_s1 + $0x88] sm:$0xff]  ;;  %v414_v20 = vld [vmem:[%s2548_s1 + $0x20] sm:$0xff] }
  0x13   : > { %468 = vmatprep.subr.mxu0 %v2028_v5  ;;  %1839 = vmatprep.subr.mxu1 %v2028_v5  ;;  %v587_v18 = vld [vmem:[%s2549_s2 + $0x70] sm:$0xff]  ;;  %v602_v19 = vld [vmem:[%s2549_s2 + $0xe8] sm:$0xff]  ;;  %v426_v21 = vld [vmem:[%s2548_s1 + $0x80] sm:$0xff] }
  0x14   : > { %v417_v22 = vld [vmem:[%s2548_s1 + $0x38] sm:$0xff]  ;;  %v586_v24 = vld [vmem:[%s2549_s2 + $0x68] sm:$0xff]  ;;  %v601_v25 = vld [vmem:[%s2549_s2 + $0xe0] sm:$0xff] }
  0x15   : > { %v429_v23 = vld [vmem:[%s2548_s1 + $0x98] sm:$0xff]  ;;  %v416_v26 = vld [vmem:[%s2548_s1 + $0x30] sm:$0xff]  ;;  %v419_v28 = vld [vmem:[%s2548_s1 + $0x48] sm:$0xff] }
  0x16   : > { %469 = vmatpush1.xpose.msra.mxu0 %v2036_v6  ;;  %1841 = vmatpush1.xpose.msra.mxu1 %v2036_v6  ;;  %v428_v27 = vld [vmem:[%s2548_s1 + $0x90] sm:$0xff]  ;;  %v431_v29 = vld [vmem:[%s2548_s1 + $0xa8] sm:$0xff]  ;;  %v585_v30 = vld [vmem:[%s2549_s2 + $0x60] sm:$0xff] }
  0x17   : > { %1759 = vmatprep.subr.mxu1 %v604_v7  ;;  %990 = vmatprep.subr.mxu0 %v2022_v3  ;;  %v600_v31 = vld [vmem:[%s2549_s2 + $0xd8] sm:$0xff]  ;;  %v418_v32 = vld [vmem:[%s2548_s1 + $0x40] sm:$0xff]  ;;  %v599_v37 = vld [vmem:[%s2549_s2 + $0xd0] sm:$0xff]  ;;  %v1935_v7 = vmov 0  }
  0x18   : > { %v430_v33 = vld [vmem:[%s2548_s1 + $0xa0] sm:$0xff]  ;;  %v421_v34 = vld [vmem:[%s2548_s1 + $0x58] sm:$0xff]  ;;  %v420_v38 = vld [vmem:[%s2548_s1 + $0x50] sm:$0xff]  ;;  %1852 = vset.pattern.permute.xlu0 %v1935_v7  ;;  %1853 = vset.pattern.permute.xlu1 %v1935_v7 }
  0x19   : > { %503 = vmatmul.mubr.f32.vlgmr.msra.gmra.mxu0 %v410_v8  ;;  %533 = vmatmul.mubr.f32.vlgmr.msra.gmra.mxu1 %v422_v9  ;;  %v433_v35 = vld [vmem:[%s2548_s1 + $0xb8] sm:$0xff]  ;;  %v432_v39 = vld [vmem:[%s2548_s1 + $0xb0] sm:$0xff]  ;;  %v435_v40 = vld [vmem:[%s2548_s1 + $0xc8] sm:$0xff] }
  0x1a   : > { %507 = vmatprep.mubr.f32.mxu0 %v413_v10  ;;  %537 = vmatprep.mubr.f32.mxu1 %v425_v11  ;;  %v584_v36 = vld [vmem:[%s2549_s2 + $0x58] sm:$0xff]  ;;  %v583_v41 = vld [vmem:[%s2549_s2 + $0x50] sm:$0xff]  ;;  %v598_v42 = vld [vmem:[%s2549_s2 + $0xc8] sm:$0xff] }
  0x1b   : > { %1760 = vmatpush3.msra.mxu1 %v588_v12  ;;  %991 = vmatpush1.msra.mxu0 %v2025_v4  ;;  %v582_v43 = vld [vmem:[%s2549_s2 + $0x48] sm:$0xff]  ;;  %v434_v44 = vld [vmem:[%s2548_s1 + $0xc0] sm:$0xff]  ;;  %v437_v46 = vld [vmem:[%s2548_s1 + $0xd8] sm:$0x3f] }
  0x1c   : > { %1761 = vmatprep.subr.mxu1 %v603_v13  ;;  %992 = vmatprep.subr.mxu0 %v2028_v5  ;;  %v597_v45 = vld [vmem:[%s2549_s2 + $0xc0] sm:$0xff]  ;;  %v596_v49 = vld [vmem:[%s2549_s2 + $0xb8] sm:$0xff]  ;;  %v436_v51 = vld [vmem:[%s2548_s1 + $0xd0] sm:$0x3f] }
  0x1d   : > { %508 = vmatmul.mubr.f32.gmra.mxu0 %v412_v14  ;;  %538 = vmatmul.mubr.f32.gmra.mxu1 %v424_v15  ;;  %v581_v47 = vld [vmem:[%s2549_s2 + $0x40] sm:$0xff]  ;;  %v580_v50 = vld [vmem:[%s2549_s2 + $0x38] sm:$0xff]  ;;  %v595_v52 = vld [vmem:[%s2549_s2 + $0xb0] sm:$0xff] }
  0x1e   : > { %512 = vmatprep.mubr.f32.mxu0 %v415_v16  ;;  %542 = vmatprep.mubr.f32.mxu1 %v427_v17  ;;  %v579_v53 = vld [vmem:[%s2549_s2 + $0x30] sm:$0xff]  ;;  %v594_v54 = vld [vmem:[%s2549_s2 + $0xa8] sm:$0xff]  ;;  %v593_v56 = vld [vmem:[%s2549_s2 + $0xa0] sm:$0xff] }
  0x1f   : > { %1762 = vmatpush3.msra.mxu1 %v587_v18  ;;  %993 = vmatpush1.msra.mxu0 %v2036_v6  ;;  %v578_v55 = vld [vmem:[%s2549_s2 + $0x28] sm:$0xff]  ;;  %v577_v57 = vld [vmem:[%s2549_s2 + $0x20] sm:$0xff]  ;;  %v592_v58 = vld [vmem:[%s2549_s2 + $0x98] sm:$0xff] }
  0x20   : > { %1763 = vmatprep.subr.mxu1 %v602_v19  ;;  %v576_v59 = vld [vmem:[%s2549_s2 + $0x18] sm:$0xff]  ;;  %v591_v60 = vld [vmem:[%s2549_s2 + $0x90] sm:$0xff]  ;;  %v590_v62 = vld [vmem:[%s2549_s2 + $0x88] sm:$0xff] }
  0x21   : > { %513 = vmatmul.mubr.f32.gmra.mxu0 %v414_v20  ;;  %543 = vmatmul.mubr.f32.gmra.mxu1 %v426_v21  ;;  %v575_v61 = vld [vmem:[%s2549_s2 + $0x10] sm:$0xff]  ;;  %v574_v63 = vld [vmem:[%s2549_s2 + $0x8] sm:$0xff]  ;;  %v589_v0 = vld [vmem:[%s2549_s2 + $0x80] sm:$0xff] }
  0x22   : > { %517 = vmatprep.mubr.f32.mxu0 %v417_v22  ;;  %547 = vmatprep.mubr.f32.mxu1 %v429_v23  ;;  %v573_v1 = vld [vmem:[%s2549_s2] sm:$0xff] }
  0x23   : > { %1764 = vmatpush3.msra.mxu1 %v586_v24  ;;  %v680_v2 = vld [vmem:[%s2552_s5] sm:$0x3] }
  0x24   : > { %1765 = vmatprep.subr.mxu1 %v601_v25  ;;  %v949_v8 = vld [vmem:[#allocation2] sm:$0x1] }
  0x25   : > { %518 = vmatmul.mubr.f32.gmra.mxu0 %v416_v26  ;;  %548 = vmatmul.mubr.f32.gmra.mxu1 %v428_v27 }
  0x26   : > { %522 = vmatprep.mubr.f32.mxu0 %v419_v28  ;;  %552 = vmatprep.mubr.f32.mxu1 %v431_v29 }
  0x27   : > { %1766 = vmatpush3.msra.mxu1 %v585_v30 }
  0x28   : > { %1767 = vmatprep.subr.mxu1 %v600_v31 }
  0x29   : > { %523 = vmatmul.mubr.f32.gmra.mxu0 %v418_v32  ;;  %553 = vmatmul.mubr.f32.gmra.mxu1 %v430_v33 }
  0x2a   : > { %527 = vmatprep.mubr.f32.mxu0 %v421_v34  ;;  %557 = vmatprep.mubr.f32.mxu1 %v433_v35 }
  0x2b   : > { %1768 = vmatpush3.msra.mxu1 %v584_v36 }
  0x2c   : > { %1769 = vmatprep.subr.mxu1 %v599_v37 }
  0x2d   : > { %528 = vmatmul.mubr.f32.gmra.mxu0 %v420_v38  ;;  %558 = vmatmul.mubr.f32.gmra.mxu1 %v432_v39 }
  0x2e   : > { %562 = vmatprep.mubr.f32.mxu1 %v435_v40  ;;  %1770 = vmatpush3.msra.mxu1 %v583_v41 }
  0x2f   : > { %1771 = vmatprep.subr.mxu1 %v598_v42  ;;  %1026 = vmatprep.mubr.f32.mxu0 %v1934_v48 }
  0x30   : > { %1772 = vmatpush3.msra.mxu1 %v582_v43 }
  0x31   : > { %563 = vmatmul.mubr.f32.gmra.mxu1 %v434_v44  ;;  %1773 = vmatprep.subr.mxu1 %v597_v45 }
  0x32   : > { %567 = vmatprep.mubr.f32.mxu1 %v437_v46  ;;  %1774 = vmatpush3.msra.mxu1 %v581_v47 }
  0x33   : > { %1775 = vmatprep.subr.mxu1 %v596_v49 }
  0x34   : > { %1776 = vmatpush3.msra.mxu1 %v580_v50  ;;  %v1718_v50 = vld [vmem:[%s2551_s4] ss:$0 sm:$0xff] }
  0x35   : > { %568 = vmatmul.mubr.f32.gmra.mxu1 %v436_v51  ;;  %1777 = vmatprep.subr.mxu1 %v595_v52 }
  0x36   : > { %1778 = vmatpush3.msra.mxu1 %v579_v53  ;;  %669 = vmatprep.mubr.f32.mxu1 %v2028_v5 }
  0x37   : > { %1779 = vmatprep.subr.mxu1 %v594_v54 }
  0x38   : > { %1780 = vmatpush3.msra.mxu1 %v578_v55 }
  0x39   : > { %1781 = vmatprep.subr.mxu1 %v593_v56 }
  0x3a   : > { %1782 = vmatpush3.msra.mxu1 %v577_v57 }
  0x3b   : > { %1783 = vmatprep.subr.mxu1 %v592_v58 }
  0x3c   : > { %1784 = vmatpush3.msra.mxu1 %v576_v59 }
  0x3d   : > { %1785 = vmatprep.subr.mxu1 %v591_v60 }
  0x3e   : > { %1786 = vmatpush3.msra.mxu1 %v575_v61 }
  0x3f   : > { %1787 = vmatprep.subr.mxu1 %v590_v62 }
  0x40   : > { %1788 = vmatpush3.msra.mxu1 %v574_v63 }
  0x41   : > { %1789 = vmatprep.subr.mxu1 %v589_v0 }
  0x42   : > { %1790 = vmatpush3.msra.mxu1 %v573_v1 }
  0x43   : > { %670 = vmatmul.mubr.f32.vlgmr.msra.gmra.mxu1 %v2036_v6  ;;  %719 = vmatprep.subr.mxu1 %v2022_v3 }
  0x44   : > { %674 = vmatprep.mubr.f32.mxu1 %v2022_v3  ;;  %720 = vmatpush1.msra.mxu1 %v2025_v4  ;;  %v763_v3 = vld [vmem:[%s2550_s3 + $0x8] sm:$0xff] }
  0x45   : > { %721 = vmatprep.subr.mxu1 %v2028_v5  ;;  %v762_v5 = vld [vmem:[%s2550_s3] sm:$0xff] }
  0x46   : > { %722 = vmatpush1.msra.mxu1 %v2036_v6  ;;  %v681_v6 = vld [vmem:[%s2553_s6] sm:$0x3] }
  0x47   : > { %675 = vmatmul.mubr.f32.gmra.mxu1 %v2025_v4  ;;  %1813 = vmatprep.subr.mxu1 %v763_v3  ;;  %v948_v4 = vld [vmem:[%s2554_s7] sm:$0x1] }
  0x48   : > { %755 = vmatprep.mubr.f32.mxu1 %v1934_v48  ;;  %1733 = vmatmul.mubr.msk.f32.vlgmr.msra.gmra.mxu0 %vm687_vm0, %v948_v4 }
  0x49   : > { %1157 = vmatprep.mubr.f32.mxu0 %v1934_v48  ;;  %684 = vperm.xlu0 %1852, %v681_v6  }
  0x4b   : > { %1717 = vmatmul.mubr.msk.f32.vlgmr.msra.gmra.mxu1 %vm687_vm0, %v680_v2 }
  0x4c   : > { %1814 = vmatpush3.msra.mxu1 %v763_v3 }
  0x4d   : > { %1815 = vmatprep.subr.mxu1 %v762_v5  ;;  %952 = vperm.xlu0 %1852, %v949_v8  }
  0x4e   : > { %1816 = vmatpush3.msra.mxu1 %v762_v5 }
  0xc4   : > { %v685_v43 = vpop.permute.xlu0 %684 }
  0xd9   : > { %v504_v9 = vpop.f32.mrf.mxu0  ;;  %v534_v10 = vpop.f32.mrf.mxu1 }
  0xda   : > { %1817 = vmatprep.mubr.msk.f32.mxu1 %vm687_vm0, %v504_v9 }
  0xdb   : > { %v506_v11 = vpop.f32.mrf.mxu0  ;;  %v536_v12 = vpop.f32.mrf.mxu1 }
  0xdd   : > { %v509_v13 = vpop.f32.mrf.mxu0  ;;  %v539_v14 = vpop.f32.mrf.mxu1 }
  0xde   : > { %1818 = vmatmul.mubr.msk.f32.vlgmr.msra.gmra.mxu1 %vm687_vm0, %v509_v13 }
  0xdf   : > { %v511_v15 = vpop.f32.mrf.mxu0  ;;  %v541_v16 = vpop.f32.mrf.mxu1 }
  0xe1   : > { %v514_v17 = vpop.f32.mrf.mxu0  ;;  %v544_v18 = vpop.f32.mrf.mxu1 }
  0xe2   : > { %1820 = vmatprep.mubr.msk.f32.mxu1 %vm687_vm0, %v514_v17 }
  0xe3   : > { %v516_v19 = vpop.f32.mrf.mxu0  ;;  %v546_v20 = vpop.f32.mrf.mxu1 }
  0xe5   : > { %v519_v21 = vpop.f32.mrf.mxu0  ;;  %v549_v22 = vpop.f32.mrf.mxu1 }
  0xe6   : > { %1821 = vmatmul.mubr.msk.f32.gmra.mxu1 %vm687_vm0, %v519_v21 }
  0xe7   : > { %v521_v23 = vpop.f32.mrf.mxu0  ;;  %v551_v24 = vpop.f32.mrf.mxu1 }
  0xe9   : > { %v524_v25 = vpop.f32.mrf.mxu0  ;;  %v554_v26 = vpop.f32.mrf.mxu1 }
  0xea   : > { %1823 = vmatprep.mubr.msk.f32.mxu1 %vm687_vm0, %v524_v25 }
  0xeb   : > { %v526_v27 = vpop.f32.mrf.mxu0  ;;  %v556_v28 = vpop.f32.mrf.mxu1 }
  0xed   : > { %v529_v29 = vpop.f32.mrf.mxu0  ;;  %v559_v30 = vpop.f32.mrf.mxu1 }
  0xee   : > { %1824 = vmatmul.mubr.msk.f32.gmra.mxu1 %vm687_vm0, %v529_v29 }
  0xef   : > { %v531_v31 = vpop.f32.mrf.mxu0  ;;  %1826 = vmatprep.mubr.msk.f32.mxu1 %vm687_vm0, %v534_v10  ;;  %v561_v32 = vpop.f32.mrf.mxu1 }
  0xf1   : > { %v564_v33 = vpop.f32.mrf.mxu1 }
  0xf2   : > { %1827 = vmatmul.mubr.msk.f32.gmra.mxu1 %vm687_vm0, %v539_v14 }
  0xf3   : > { %1829 = vmatprep.mubr.msk.f32.mxu1 %vm687_vm0, %v544_v18  ;;  %v566_v34 = vpop.f32.mrf.mxu1 }
  0xf5   : > { %v569_v35 = vpop.f32.mrf.mxu1 }
  0xf6   : > { %1830 = vmatmul.mubr.msk.f32.gmra.mxu1 %vm687_vm0, %v549_v22 }
  0xf7   : > { %1832 = vmatprep.mubr.msk.f32.mxu1 %vm687_vm0, %v554_v26  ;;  %v571_v36 = vpop.f32.mrf.mxu1 }
  0xfa   : > { %1833 = vmatmul.mubr.msk.f32.gmra.mxu1 %vm687_vm0, %v559_v30 }
  0xfb   : > { %1835 = vmatprep.mubr.msk.f32.mxu1 %vm687_vm0, %v564_v33 }
  0xfe   : > { %1836 = vmatmul.mubr.msk.f32.gmra.mxu1 %vm687_vm0, %v569_v35 }
  0xff   : > { %1514 = vmatprep.mubr.f32.mxu1 %v1934_v48 }
 0x103   : > { %v1791_v37 = vpop.f32.mrf.mxu1 }
 0x105   : > { %v1792_v38 = vpop.f32.mrf.mxu1 }
 0x106   : > { %v2262_v39 = vadd.f32 %v1792_v38, %v1791_v37 }
 0x107   : > { %v1794_v40 = vpop.f32.mrf.mxu1 }
 0x108   : > { %v2296_v14 = vpop.f32.mrf.mxu0 }
 0x109   : > { %v1795_v41 = vpop.f32.mrf.mxu1 }
 0x10a   : > { %v2264_v42 = vadd.f32 %v1795_v41, %v1794_v40  ;;  %v2298_v15 = vpop.f32.mrf.mxu0 }
 0x10b   : > { %v757_v44 = vpop.f32.mrf.mxu1 }
 0x10c   : > { %v758_v45 = vadd.f32 %v757_v44, %v685_v43 }
 0x10d   : > { %v759_v46 = vpop.f32.mrf.mxu1 }
 0x10e   : > { %v760_v47 = vadd.f32 %v759_v46, %v685_v43 }
 0x110   : > { %1734 = vmatprep.subr.msk.mxu0 %vm1086_vm1, %v760_v47 }
 0x111   : > { %1735 = vmatpush1.msk.msra.mxu0 %vm1086_vm1, %v758_v45 }
 0x19e   : > { %v1819_v49 = vpop.f32.mrf.mxu1 }
 0x19f   : > { %v885_v53 = vadd.f32 %v1819_v49, %v1718_v50 }
 0x1a0   : > { %v879_v51 = vpop.f32.mrf.mxu1 }
 0x1a1   : > { %v880_v52 = vadd.f32 %v1718_v50, %v879_v51 }
 0x1a3   : > { %1736 = vmatmul.mubr.msk.f32.vlgmr.msra.gmra.mxu0 %vm1043_vm2, %v880_v52 }
 0x1a4   : > { %1163 = vmatprep.mubr.f32.mxu0 %v1934_v48 }
 0x1a6   : > { %v1822_v54 = vpop.f32.mrf.mxu1 }
 0x1a7   : > { %1737 = vmatmul.mubr.msk.f32.gmra.mxu0 %vm1043_vm2, %v885_v53  ;;  %v895_v57 = vadd.f32 %v1822_v54, %v1718_v50 }
 0x1a8   : > { %v889_v55 = vpop.f32.mrf.mxu1  ;;  %1169 = vmatprep.mubr.f32.mxu0 %v1934_v48 }
 0x1a9   : > { %v890_v56 = vadd.f32 %v1718_v50, %v889_v55 }
 0x1ab   : > { %1738 = vmatmul.mubr.msk.f32.gmra.mxu0 %vm1043_vm2, %v890_v56 }
 0x1ac   : > { %1175 = vmatprep.mubr.f32.mxu0 %v1934_v48 }
 0x1ae   : > { %v1825_v58 = vpop.f32.mrf.mxu1 }
 0x1af   : > { %1739 = vmatmul.mubr.msk.f32.gmra.mxu0 %vm1043_vm2, %v895_v57  ;;  %v905_v62 = vadd.f32 %v1825_v58, %v1718_v50 }
 0x1b0   : > { %v899_v59 = vpop.f32.mrf.mxu1  ;;  %1181 = vmatprep.mubr.f32.mxu0 %v1934_v48 }
 0x1b1   : > { %v900_v60 = vadd.f32 %v1718_v50, %v899_v59 }
 0x1b2   : > { %v1828_v61 = vpop.f32.mrf.mxu1 }
 0x1b3   : > { %1740 = vmatmul.mubr.msk.f32.gmra.mxu0 %vm1043_vm2, %v900_v60  ;;  %v915_v2 = vadd.f32 %v1828_v61, %v1718_v50 }
 0x1b4   : > { %1187 = vmatprep.mubr.f32.mxu0 %v1934_v48  ;;  %v909_v63 = vpop.f32.mrf.mxu1 }
 0x1b5   : > { %v910_v0 = vadd.f32 %v1718_v50, %v909_v63 }
 0x1b6   : > { %v1831_v1 = vpop.f32.mrf.mxu1 }
 0x1b7   : > { %1741 = vmatmul.mubr.msk.f32.gmra.mxu0 %vm1043_vm2, %v905_v62  ;;  %v925_v6 = vadd.f32 %v1831_v1, %v1718_v50 }
 0x1b8   : > { %1193 = vmatprep.mubr.f32.mxu0 %v1934_v48  ;;  %v919_v3 = vpop.f32.mrf.mxu1 }
 0x1b9   : > { %v920_v5 = vadd.f32 %v1718_v50, %v919_v3 }
 0x1ba   : > { %v1834_v4 = vpop.f32.mrf.mxu1 }
 0x1bb   : > { %1742 = vmatmul.mubr.msk.f32.gmra.mxu0 %vm1043_vm2, %v910_v0  ;;  %v935_v10 = vadd.f32 %v1834_v4, %v1718_v50 }
 0x1bc   : > { %1199 = vmatprep.mubr.f32.mxu0 %v1934_v48  ;;  %v929_v7 = vpop.f32.mrf.mxu1 }
 0x1bd   : > { %v930_v8 = vadd.f32 %v1718_v50, %v929_v7 }
 0x1be   : > { %v1837_v9 = vpop.f32.mrf.mxu1 }
 0x1bf   : > { %1743 = vmatmul.mubr.msk.f32.gmra.mxu0 %vm1043_vm2, %v915_v2  ;;  %v945_v13 = vadd.f32 %v1837_v9, %v1718_v50 }
 0x1c0   : > { %1205 = vmatprep.mubr.f32.mxu0 %v1934_v48  ;;  %v939_v11 = vpop.f32.mrf.mxu1 }
 0x1c1   : > { %v940_v12 = vadd.f32 %v1718_v50, %v939_v11 }
 0x1c3   : > { %1744 = vmatmul.mubr.msk.f32.gmra.mxu0 %vm1043_vm2, %v920_v5 }
 0x1c4   : > { %1211 = vmatprep.mubr.f32.mxu0 %v1934_v48 }
 0x1c7   : > { %1745 = vmatmul.mubr.msk.f32.gmra.mxu0 %vm1043_vm2, %v925_v6 }
 0x1c8   : > { %1217 = vmatprep.mubr.f32.mxu0 %v1934_v48 }
 0x1cb   : > { %1746 = vmatmul.mubr.msk.f32.gmra.mxu0 %vm1043_vm2, %v930_v8 }
 0x1cc   : > { %1223 = vmatprep.mubr.f32.mxu0 %v1934_v48 }
 0x1cf   : > { %1747 = vmatmul.mubr.msk.f32.gmra.mxu0 %vm1043_vm2, %v935_v10 }
 0x1d0   : > { %1229 = vmatprep.mubr.f32.mxu0 %v1934_v48 }
 0x1d3   : > { %1748 = vmatmul.mubr.msk.f32.gmra.mxu0 %vm1043_vm2, %v940_v12 }
 0x1d4   : > { %1235 = vmatprep.mubr.f32.mxu0 %v1934_v48 }
 0x1d7   : > { %1749 = vmatmul.mubr.msk.f32.gmra.mxu0 %vm1043_vm2, %v945_v13 }
 0x263   : > { %v2300_v16 = vpop.f32.mrf.mxu0 }
 0x265   : > { %v2302_v17 = vpop.f32.mrf.mxu0 }
 0x267   : > { %v2304_v18 = vpop.f32.mrf.mxu0 }
 0x269   : > { %v2306_v19 = vpop.f32.mrf.mxu0 }
 0x26b   : > { %v2308_v20 = vpop.f32.mrf.mxu0 }
 0x26c   : > { %v1242_v38 = vmax.f32 %v2300_v16, %v2308_v20 }
 0x26d   : > { %v2310_v21 = vpop.f32.mrf.mxu0 }
 0x26e   : > { %v1263_v43 = vmax.f32 %v2302_v17, %v2310_v21 }
 0x26f   : > { %v2312_v22 = vpop.f32.mrf.mxu0 }
 0x270   : > { %v1243_v40 = vmax.f32 %v2304_v18, %v2312_v22 }
 0x271   : > { %v2314_v23 = vpop.f32.mrf.mxu0 }
 0x272   : > { %v1264_v44 = vmax.f32 %v2306_v19, %v2314_v23 }
 0x273   : > { %v2316_v24 = vpop.f32.mrf.mxu0 }
 0x274   : > { %v1244_v45 = vmax.f32 %v1242_v38, %v2316_v24 }
 0x275   : > { %v2318_v25 = vpop.f32.mrf.mxu0 }
 0x276   : > { %v1265_v49 = vmax.f32 %v1263_v43, %v2318_v25 }
 0x277   : > { %v2320_v26 = vpop.f32.mrf.mxu0 }
 0x278   : > { %v1245_v46 = vmax.f32 %v1243_v40, %v2320_v26 }
 0x279   : > { %v2322_v27 = vpop.f32.mrf.mxu0 }
 0x27a   : > { %v1266_v50 = vmax.f32 %v1264_v44, %v2322_v27 }
 0x27b   : > { %v2324_v28 = vpop.f32.mrf.mxu0 }
 0x27c   : > { %v1246_v51 = vmax.f32 %v1244_v45, %v2324_v28 }
 0x27d   : > { %v2326_v29 = vpop.f32.mrf.mxu0 }
 0x27e   : > { %v1267_v54 = vmax.f32 %v1265_v49, %v2326_v29 }
 0x27f   : > { %v2328_v30 = vpop.f32.mrf.mxu0 }
 0x280   : > { %v1247_v52 = vmax.f32 %v1245_v46, %v2328_v30 }
 0x281   : > { %v2330_v31 = vpop.f32.mrf.mxu0 }
 0x282   : > { %v1268_v55 = vmax.f32 %v1266_v50, %v2330_v31 }
 0x283   : > { %v2332_v32 = vpop.f32.mrf.mxu0 }
 0x284   : > { %v1248_v56 = vmax.f32 %v1246_v51, %v2332_v32 }
 0x285   : > { %v2334_v33 = vpop.f32.mrf.mxu0 }
 0x286   : > { %v1269_v59 = vmax.f32 %v1267_v54, %v2334_v33 }
 0x287   : > { %v2336_v34 = vpop.f32.mrf.mxu0 }
 0x288   : > { %v1249_v57 = vmax.f32 %v1247_v52, %v2336_v34 }
 0x289   : > { %v2338_v35 = vpop.f32.mrf.mxu0 }
 0x28a   : > { %v1270_v60 = vmax.f32 %v1268_v55, %v2338_v35 }
 0x28b   : > { %v2340_v36 = vpop.f32.mrf.mxu0 }
 0x28c   : > { %v1250_v61 = vmax.f32 %v1248_v56, %v2340_v36 }
 0x28d   : > { %v2342_v37 = vpop.f32.mrf.mxu0 }
 0x28e   : > { %v1271_v1 = vmax.f32 %v1269_v59, %v2342_v37 }
 0x28f   : > { %v2348_v41 = vpop.f32.mrf.mxu0 }
 0x290   : > { %v1251_v62 = vmax.f32 %v1249_v57, %v2348_v41 }
 0x291   : > { %v2356_v47 = vpop.f32.mrf.mxu0 }
 0x292   : > { %v1272_v2 = vmax.f32 %v1270_v60, %v2356_v47 }
 0x293   : > { %v2362_v53 = vpop.f32.mrf.mxu0 }
 0x294   : > { %v1252_v3 = vmax.f32 %v1250_v61, %v2362_v53 }
 0x295   : > { %v2368_v58 = vpop.f32.mrf.mxu0 }
 0x296   : > { %v1273_v7 = vmax.f32 %v1271_v1, %v2368_v58 }
 0x297   : > { %v2374_v63 = vpop.f32.mrf.mxu0 }
 0x298   : > { %v1254_v0 = vsel %vm1253_vm3, %v2374_v63, -inf }
 0x299   : > { %v1255_v5 = vmax.f32 %v1251_v62, %v1254_v0  ;;  %v2381_v4 = vpop.f32.mrf.mxu0 }
 0x29a   : > { %v1274_v6 = vsel %vm1253_vm3, %v2381_v4, -inf }
 0x29b   : > { %v1256_v8 = vmax.f32 %v1252_v3, %v1255_v5  ;;  %v1275_v9 = vmax.f32 %v1272_v2, %v1274_v6 }
 0x29d   : > { %v1257_v10 = vrot.slane %v1256_v8, 4  ;;  %v1276_v11 = vmax.f32 %v1273_v7, %v1275_v9 }
 0x29f   : > { %v1258_v12 = vmax.f32 %v1256_v8, %v1257_v10  ;;  %v1277_v13 = vrot.slane %v1276_v11, 4 }
 0x2a1   : > { %v1259_v38 = vrot.slane %v1258_v12, 2  ;;  %v1278_v40 = vmax.f32 %v1276_v11, %v1277_v13 }
 0x2a3   : > { %v1260_v43 = vmax.f32 %v1258_v12, %v1259_v38  ;;  %v1279_v44 = vrot.slane %v1278_v40, 2 }
 0x2a5   : > { %v1261_v45 = vrot.slane %v1260_v43, 1  ;;  %v1280_v49 = vmax.f32 %v1278_v40, %v1279_v44 }
 0x2a7   : > { %v2386_v46 = vmax.f32 %v1260_v43, %v1261_v45  ;;  %v1281_v57 = vrot.slane %v1280_v49, 1 }
 0x2a9   : > { %v1283_v50 = vsub.f32 %v2300_v16, %v2386_v46  ;;  %v1285_v51 = vsub.f32 %v2304_v18, %v2386_v46  ;;  %v1287_v52 = vsub.f32 %v2308_v20, %v2386_v46  ;;  %v1289_v54 = vsub.f32 %v2312_v22, %v2386_v46 }
 0x2aa   : > { %v1291_v59 = vsub.f32 %v2316_v24, %v2386_v46  ;;  %v1293_v16 = vsub.f32 %v2320_v26, %v2386_v46  ;;  %v1295_v18 = vsub.f32 %v2324_v28, %v2386_v46  ;;  %v2402_v20 = vmax.f32 %v1280_v49, %v1281_v57 }
 0x2ab   : > { %v1311_v55 = vmul.f32 1.442695, %v1283_v50  ;;  %v1315_v56 = vmul.f32 1.442695, %v1285_v51  ;;  %v1319_v60 = vmul.f32 1.442695, %v1287_v52  ;;  %v1297_v22 = vsub.f32 %v2328_v30, %v2386_v46 }
 0x2ac   : > { %v1323_v61 = vmul.f32 1.442695, %v1289_v54  ;;  %v1327_v62 = vmul.f32 1.442695, %v1291_v59  ;;  %v1299_v24 = vsub.f32 %v2332_v32, %v2386_v46  ;;  %v1301_v0 = vsub.f32 %v2336_v34, %v2386_v46 }
 0x2ad   : > { %1854 = vpow2.f32 %v1311_v55  ;;  %v1331_v26 = vmul.f32 1.442695, %v1293_v16  ;;  %v1335_v1 = vmul.f32 1.442695, %v1295_v18  ;;  %v1284_v2 = vsub.f32 %v2302_v17, %v2402_v20 }
 0x2ae   : > { %1856 = vpow2.f32 %v1315_v56  ;;  %v1339_v28 = vmul.f32 1.442695, %v1297_v22  ;;  %v1286_v3 = vsub.f32 %v2306_v19, %v2402_v20  ;;  %v1303_v30 = vsub.f32 %v2340_v36, %v2386_v46 }
 0x2af   : > { %1858 = vpow2.f32 %v1319_v60  ;;  %v1343_v5 = vmul.f32 1.442695, %v1299_v24  ;;  %v1347_v32 = vmul.f32 1.442695, %v1301_v0  ;;  %v1288_v34 = vsub.f32 %v2310_v21, %v2402_v20 }
 0x2b0   : > { %1860 = vpow2.f32 %v1323_v61  ;;  %v1305_v6 = vsub.f32 %v2348_v41, %v2386_v46  ;;  %v1313_v7 = vmul.f32 1.442695, %v1284_v2  ;;  %v1290_v17 = vsub.f32 %v2314_v23, %v2402_v20 }
 0x2b1   : > { %1862 = vpow2.f32 %v1327_v62  ;;  %v1317_v8 = vmul.f32 1.442695, %v1286_v3  ;;  %v1307_v19 = vsub.f32 %v2362_v53, %v2386_v46  ;;  %v1351_v36 = vmul.f32 1.442695, %v1303_v30 }
 0x2b2   : > { %1864 = vpow2.f32 %v1331_v26  ;;  %v1292_v21 = vsub.f32 %v2318_v25, %v2402_v20  ;;  %v1321_v10 = vmul.f32 1.442695, %v1288_v34  ;;  %v1309_v11 = vsub.f32 %v2374_v63, %v2386_v46 }
 0x2b3   : > { %1866 = vpow2.f32 %v1335_v1  ;;  %v1355_v12 = vmul.f32 1.442695, %v1305_v6  ;;  %v1294_v53 = vsub.f32 %v2322_v27, %v2402_v20  ;;  %v1325_v13 = vmul.f32 1.442695, %v1290_v17 }
 0x2b4   : > { %1868 = vpow2.f32 %v1339_v28  ;;  %v1359_v25 = vmul.f32 1.442695, %v1307_v19  ;;  %v1296_v43 = vsub.f32 %v2326_v29, %v2402_v20  ;;  %v1329_v63 = vmul.f32 1.442695, %v1292_v21 }
 0x2b5   : > { %1870 = vpow2.f32 %v1343_v5  ;;  %v1363_v45 = vmul.f32 1.442695, %v1309_v11  ;;  %v1298_v27 = vsub.f32 %v2330_v31, %v2402_v20  ;;  %v1333_v49 = vmul.f32 1.442695, %v1294_v53 }
 0x2b6   : > { %1872 = vpow2.f32 %v1347_v32  ;;  %v1300_v29 = vsub.f32 %v2334_v33, %v2402_v20  ;;  %v1337_v52 = vmul.f32 1.442695, %v1296_v43  ;;  %v1302_v31 = vsub.f32 %v2338_v35, %v2402_v20 }
 0x2b7   : > { %1874 = vpow2.f32 %v1313_v7  ;;  %v1341_v57 = vmul.f32 1.442695, %v1298_v27  ;;  %v1304_v16 = vsub.f32 %v2342_v37, %v2402_v20  ;;  %v1306_v35 = vsub.f32 %v2356_v47, %v2402_v20 }
 0x2b8   : > { %1876 = vpow2.f32 %v1317_v8  ;;  %v1345_v61 = vmul.f32 1.442695, %v1300_v29  ;;  %v1349_v24 = vmul.f32 1.442695, %v1302_v31  ;;  %v1308_v26 = vsub.f32 %v2368_v58, %v2402_v20 }
 0x2b9   : > { %1878 = vpow2.f32 %v1351_v36  ;;  %v1310_v37 = vsub.f32 %v2381_v4, %v2402_v20  ;;  %v1353_v28 = vmul.f32 1.442695, %v1304_v16  ;;  %v1357_v58 = vmul.f32 1.442695, %v1306_v35 }
 0x2ba   : > { %v2424_v9 = vpop.eup %1854  ;;  %1880 = vpow2.f32 %v1321_v10  ;;  %v1361_v7 = vmul.f32 1.442695, %v1308_v26 }
 0x2bb   : > { %v2428_v41 = vpop.eup %1856  ;;  %1882 = vpow2.f32 %v1355_v12  ;;  %v1365_v20 = vmul.f32 1.442695, %v1310_v37 }
 0x2bc   : > { %v1367_v23 = vadd.f32 %v2428_v41, %v2424_v9  ;;  %v2436_v38 = vpop.eup %1858  ;;  %1884 = vpow2.f32 %v1325_v13 }
 0x2bd   : > { %v2441_v44 = vpop.eup %1860  ;;  %1886 = vpow2.f32 %v1359_v25 }
 0x2be   : > { %v1368_v40 = vadd.f32 %v2436_v38, %v1367_v23  ;;  %v2446_v50 = vpop.eup %1862  ;;  %1888 = vpow2.f32 %v1329_v63 }
 0x2bf   : > { %v2451_v54 = vpop.eup %1864  ;;  %1890 = vpow2.f32 %v1363_v45 }
 0x2c0   : > { %v1369_v46 = vadd.f32 %v2441_v44, %v1368_v40  ;;  %v2453_v55 = vpop.eup %1866  ;;  %1892 = vpow2.f32 %v1333_v49 }
 0x2c1   : > { %v2458_v59 = vpop.eup %1868  ;;  %1894 = vpow2.f32 %v1337_v52 }
 0x2c2   : > { %v1370_v51 = vadd.f32 %v2446_v50, %v1369_v46  ;;  %v2460_v60 = vpop.eup %1870  ;;  %1896 = vpow2.f32 %v1341_v57 }
 0x2c3   : > { %v2465_v18 = vpop.eup %1872  ;;  %1898 = vpow2.f32 %v1345_v61 }
 0x2c4   : > { %v1371_v56 = vadd.f32 %v2451_v54, %v1370_v51  ;;  %v2467_v22 = vpop.eup %1874  ;;  %1900 = vpow2.f32 %v1349_v24 }
 0x2c5   : > { %v2472_v0 = vpop.eup %1876  ;;  %1902 = vpow2.f32 %v1353_v28 }
 0x2c6   : > { %v1372_v33 = vadd.f32 %v2453_v55, %v1371_v56  ;;  %v2478_v1 = vpop.eup %1878  ;;  %v1387_v3 = vadd.f32 %v2472_v0, %v2467_v22  ;;  %1904 = vpow2.f32 %v1357_v58 }
 0x2c7   : > { %v2483_v47 = vpop.eup %1880  ;;  %1906 = vpow2.f32 %v1365_v20 }
 0x2c8   : > { %v1373_v62 = vadd.f32 %v2458_v59, %v1372_v33  ;;  %v2485_v30 = vpop.eup %1882  ;;  %v1388_v32 = vadd.f32 %v2483_v47, %v1387_v3  ;;  %1908 = vpow2.f32 %v1361_v7 }
 0x2c9   : > { %v2489_v4 = vpop.eup %1884 }
 0x2ca   : > { %v1374_v2 = vadd.f32 %v2460_v60, %v1373_v62  ;;  %v2491_v34 = vpop.eup %1886  ;;  %v1389_v17 = vadd.f32 %v2489_v4, %v1388_v32 }
 0x2cb   : > { %v1889_v8 = vpop.eup %1888 }
 0x2cc   : > { %v1375_v5 = vadd.f32 %v2465_v18, %v1374_v2  ;;  %v1891_v19 = vpop.eup %1890  ;;  %v1390_v21 = vadd.f32 %v1889_v8, %v1389_v17 }
 0x2cd   : > { %v1893_v10 = vpop.eup %1892  ;;  %v1379_v53 = vsel %vm1253_vm3, %v1891_v19, 0.0 }
 0x2ce   : > { %v1376_v6 = vadd.f32 %v2478_v1, %v1375_v5  ;;  %v1391_v12 = vadd.f32 %v1893_v10, %v1390_v21  ;;  %v1895_v23 = vpop.eup %1894 }
 0x2cf   : > { %v1897_v40 = vpop.eup %1896 }
 0x2d0   : > { %v1377_v36 = vadd.f32 %v2485_v30, %v1376_v6  ;;  %v1392_v25 = vadd.f32 %v1895_v23, %v1391_v12  ;;  %v2498_v45 = vpop.eup %1898 }
 0x2d1   : > { %v1901_v49 = vpop.eup %1900 }
 0x2d2   : > { %v1378_v11 = vadd.f32 %v2491_v34, %v1377_v36  ;;  %v1393_v63 = vadd.f32 %v1897_v40, %v1392_v25  ;;  %v1903_v52 = vpop.eup %1902 }
 0x2d3   : > { %v1905_v57 = vpop.eup %1904 }
 0x2d4   : > { %v1380_v13 = vadd.f32 %v1379_v53, %v1378_v11  ;;  %v1394_v27 = vadd.f32 %v2498_v45, %v1393_v63  ;;  %v1907_v33 = vpop.eup %1906 }
 0x2d5   : > { %v1909_v62 = vpop.eup %1908  ;;  %v1399_v26 = vsel %vm1253_vm3, %v1907_v33, 0.0 }
 0x2d6   : > { %v1381_v43 = vrot.slane %v1380_v13, 4  ;;  %v1395_v29 = vadd.f32 %v1901_v49, %v1394_v27 }
 0x2d8   : > { %v1382_v46 = vadd.f32 %v1381_v43, %v1380_v13  ;;  %v1396_v31 = vadd.f32 %v1903_v52, %v1395_v29 }
 0x2da   : > { %v1383_v51 = vrot.slane %v1382_v46, 2  ;;  %v1397_v61 = vadd.f32 %v1905_v57, %v1396_v31 }
 0x2dc   : > { %v1384_v56 = vadd.f32 %v1383_v51, %v1382_v46  ;;  %v1398_v24 = vadd.f32 %v1909_v62, %v1397_v61 }
 0x2de   : > { %v1385_v16 = vrot.slane %v1384_v56, 1  ;;  %v1400_v37 = vadd.f32 %v1399_v26, %v1398_v24 }
 0x2e0   : > { %v1386_v35 = vadd.f32 %v1385_v16, %v1384_v56  ;;  %v1401_v2 = vrot.slane %v1400_v37, 4 }
 0x2e2   : > { %1910 = vrcp.f32 %v1386_v35  ;;  %v1402_v28 = vadd.f32 %v1401_v2, %v1400_v37 }
 0x2e4   : > { %v1403_v3 = vrot.slane %v1402_v28, 2 }
 0x2e6   : > { %v1404_v5 = vadd.f32 %v1403_v3, %v1402_v28 }
 0x2e8   : > { %v1405_v58 = vrot.slane %v1404_v5, 1 }
 0x2ea   : > { %v1406_v32 = vadd.f32 %v1405_v58, %v1404_v5  ;;  %v1922_v5 = vld [vmem:[%s2019_s27 + $0x18] sm:$0xff] }
 0x2ec   : > { %1912 = vrcp.f32 %v1406_v32 }
 0x2ef   : > { %v1911_v20 = vpop.eup %1910 }
 0x2f0   : > { %v1423_v6 = vmul.f32 %v1911_v20, %v2458_v59  ;;  %v1421_v7 = vmul.f32 %v1911_v20, %v2453_v55  ;;  %v1419_v17 = vmul.f32 %v1911_v20, %v2451_v54  ;;  %v1417_v36 = vmul.f32 %v1911_v20, %v2446_v50 }
 0x2f1   : > { %v1415_v21 = vmul.f32 %v1911_v20, %v2441_v44  ;;  %v1413_v11 = vmul.f32 %v1911_v20, %v2436_v38  ;;  %v1411_v12 = vmul.f32 %v1911_v20, %v2428_v41  ;;  %v1409_v53 = vmul.f32 %v1911_v20, %v2424_v9 }
 0x2f2   : > { %v1435_v43 = vmul.f32 %v1911_v20, %v1891_v19  ;;  %v1433_v41 = vmul.f32 %v1911_v20, %v2491_v34  ;;  %v953_v34 = vpop.permute.xlu0 %952 }
 0x2f9   : > { %v1913_v13 = vpop.eup %1912 }
 0x2fa   : > { %v1436_v25 = vmul.f32 %v1913_v13, %v1907_v33  ;;  %v1434_v63 = vmul.f32 %v1913_v13, %v1909_v62  ;;  %v1424_v46 = vmul.f32 %v1913_v13, %v1897_v40  ;;  %v1422_v59 = vmul.f32 %v1913_v13, %v1895_v23 }
 0x2fb   : > { %v1420_v55 = vmul.f32 %v1913_v13, %v1893_v10  ;;  %v1418_v54 = vmul.f32 %v1913_v13, %v1889_v8  ;;  %v1416_v50 = vmul.f32 %v1913_v13, %v2489_v4  ;;  %v1414_v44 = vmul.f32 %v1913_v13, %v2483_v47 }
 0x2fc   : > { %1750 = vmatprep.subr.msk.mxu1 %vm1253_vm3, %v1436_v25  ;;  %v1412_v9 = vmul.f32 %v1913_v13, %v2472_v0  ;;  %v1410_v38 = vmul.f32 %v1913_v13, %v2467_v22  ;;  %v1432_v19 = vmul.f32 %v1913_v13, %v1905_v57  ;;  %v1431_v23 = vmul.f32 %v1911_v20, %v2485_v30  ;;  %v1557_v25 = vld [vmem:[%s2556_s9] sm:$0xff] }
 0x2fd   : > { %1751 = vmatpush1.msk.msra.mxu1 %vm1253_vm3, %v1435_v43  ;;  %v1430_v10 = vmul.f32 %v1913_v13, %v1903_v52  ;;  %v1429_v4 = vmul.f32 %v1911_v20, %v2478_v1  ;;  %v1428_v47 = vmul.f32 %v1913_v13, %v1901_v49  ;;  %v1427_v8 = vmul.f32 %v1911_v20, %v2465_v18 }
 0x2fe   : > { %1456 = vmatprep.subr.mxu1 %v1434_v63  ;;  %v1426_v0 = vmul.f32 %v1913_v13, %v2498_v45  ;;  %v1425_v22 = vmul.f32 %v1911_v20, %v2460_v60  ;;  %v1558_v60 = vld [vmem:[%s400_s8] sm:$0xff]  ;;  %v955_v18 = vlaneseq  ;;  %v1923_v20 = vld [vmem:[%s2019_s27 + $0x10] sm:$0xff] }
 0x2ff   : > { %1457 = vmatpush1.msra.mxu1 %v1433_v41  ;;  %1561 = vperm.xlu1 %1853, %v1558_v60  }
 0x300   : > { %1458 = vmatprep.subr.mxu1 %v1432_v19  ;;  %v956_v1 = vshrl.u32 %v955_v18, 7 }
 0x301   : > { %1459 = vmatpush1.msra.mxu1 %v1431_v23 }
 0x302   : > { %1460 = vmatprep.subr.mxu1 %v1430_v10  ;;  %v957_v30 = vsub.s32 0, %v956_v1 }
 0x303   : > { %1461 = vmatpush1.msra.mxu1 %v1429_v4 }
 0x304   : > { %1462 = vmatprep.subr.mxu1 %v1428_v47  ;;  %v958_v40 = vrot.slane %v953_v34, %v957_v30 }
 0x305   : > { %1463 = vmatpush1.msra.mxu1 %v1427_v8 }
 0x306   : > { %1464 = vmatprep.subr.mxu1 %v1426_v0  ;;  %v1031_v45 = vadd.f32 %v2298_v15, %v958_v40 }
 0x307   : > { %1465 = vmatpush1.msra.mxu1 %v1425_v22 }
 0x308   : > { %1466 = vmatprep.subr.mxu1 %v1424_v46 }
 0x309   : > { %1467 = vmatpush1.msra.mxu1 %v1423_v6 }
 0x30a   : > { %1468 = vmatprep.subr.mxu1 %v1422_v59 }
 0x30b   : > { %1469 = vmatpush1.msra.mxu1 %v1421_v7  ;;  %v1924_v7 = vld [vmem:[%s2019_s27 + $0x8] sm:$0xff] }
 0x30c   : > { %1470 = vmatprep.subr.mxu1 %v1420_v55 }
 0x30d   : > { %1471 = vmatpush1.msra.mxu1 %v1419_v17 }
 0x30e   : > { %1472 = vmatprep.subr.mxu1 %v1418_v54 }
 0x30f   : > { %1473 = vmatpush1.msra.mxu1 %v1417_v36 }
 0x310   : > { %1474 = vmatprep.subr.mxu1 %v1416_v50 }
 0x311   : > { %1475 = vmatpush1.msra.mxu1 %v1415_v21  ;;  %v1925_v21 = vld [vmem:[%s2019_s27] sm:$0xff]  ;;  %s405_s27 = scalar_lea.vmem %s2558_s11, %s1758_s25 }
 0x312   : > { %1476 = vmatprep.subr.mxu1 %v1414_v44 }
 0x313   : > { %1477 = vmatpush1.msra.mxu1 %v1413_v11 }
 0x314   : > { %1478 = vmatprep.subr.mxu1 %v1412_v9 }
 0x315   : > { %1479 = vmatpush1.msra.mxu1 %v1411_v12 }
 0x316   : > { %1480 = vmatprep.subr.mxu1 %v1410_v38 }
 0x317   : > { %1481 = vmatpush1.msra.mxu1 %v1409_v53 }
 0x318   : > { %1752 = vmatmul.mubr.msk.f32.vlgmr.msra.gmra.mxu1 %vm1437_vm4, %v2262_v39  ;;  %v1029_v39 = vadd.f32 %v2296_v14, %v958_v40 }
 0x319   : > { %1520 = vmatprep.mubr.f32.mxu1 %v1934_v48 }
 0x31a   : > { %v1033_v27 = vsub.f32 0.0, %v1029_v39 }
 0x31c   : > { %1753 = vmatmul.mubr.msk.f32.gmra.mxu1 %vm1437_vm4, %v2264_v42  ;;  %v1034_v42 = vsub.f32 0.0, %v1031_v45  ;;  %v1035_v49 = vmul.f32 1.442695, %v1033_v27 }
 0x31d   : > { %1631 = vmatprep.mubr.f32.mxu1 %v1934_v48 }
 0x31e   : > { %v1037_v48 = vmul.f32 1.442695, %v1034_v42  ;;  %1914 = vpow2.f32 %v1035_v49 }
 0x320   : > { %1916 = vpow2.f32 %v1037_v48 }
 0x32b   : > { %v1915_v51 = vpop.eup %1914 }
 0x32c   : > { %v1039_v52 = vadd.f32 1.0, %v1915_v51 }
 0x32d   : > { %v1917_v29 = vpop.eup %1916 }
 0x32e   : > { %v1040_v56 = vadd.f32 1.0, %v1917_v29  ;;  %1918 = vrcp.f32 %v1039_v52 }
 0x330   : > { %1920 = vrcp.f32 %v1040_v56 }
 0x33b   : > { %v1919_v31 = vpop.eup %1918 }
 0x33c   : > { %v1527_v14 = vsub.f32 1.0, %v1919_v31  ;;  %v1544_v35 = vrot.slane %v1919_v31, %v957_v30 }
 0x33d   : > { %v1921_v57 = vpop.eup %1920 }
 0x33e   : > { %v1528_v16 = vsub.f32 1.0, %v1921_v57  ;;  %v1548_v61 = vrot.slane %v1921_v57, %v957_v30  ;;  %v1532_v62 = vrot.slane %v1527_v14, %v957_v30  ;;  %v1551_v6 = vmul.f32 %v1923_v20, %v1544_v35 }
 0x33f   : > { %v1549_v11 = vmul.f32 %v1925_v21, %v1544_v35 }
 0x340   : > { %v1536_v26 = vrot.slane %v1528_v16, %v957_v30  ;;  %v1552_v58 = vmul.f32 %v1922_v5, %v1548_v61  ;;  %v1550_v17 = vmul.f32 %v1924_v7, %v1548_v61 }
 0x37a   : > { %v1562_v43 = vpop.permute.xlu1 %1561 }
 0x3d8   : > { %v1516_v33 = vpop.f32.mrf.mxu1 }
 0x3d9   : > { %v1537_v32 = vmul.f32 %v1532_v62, %v1516_v33 }
 0x3da   : > { %v1518_v15 = vpop.f32.mrf.mxu1 }
 0x3db   : > { %v1538_v28 = vmul.f32 %v1536_v26, %v1518_v15  ;;  %v1553_v13 = vadd.f32 %v1549_v11, %v1537_v32 }
 0x3dc   : > { %v1522_v24 = vpop.f32.mrf.mxu1 }
 0x3dd   : > { %v1539_v37 = vmul.f32 %v1532_v62, %v1522_v24  ;;  %v1554_v53 = vadd.f32 %v1550_v17, %v1538_v28 }
 0x3de   : > { %v1524_v2 = vpop.f32.mrf.mxu1 }
 0x3df   : > { %v1540_v3 = vmul.f32 %v1536_v26, %v1524_v2  ;;  %v1555_v12 = vadd.f32 %v1551_v6, %v1539_v37 }
 0x3e1   : > { %v1556_v36 = vadd.f32 %v1552_v58, %v1540_v3 }
 0x3e3   : > { %1595 = vmatprep.subr.mxu1 %v1556_v36 }
 0x3e4   : > { %1596 = vmatpush1.msra.mxu1 %v1555_v12 }
 0x3e5   : > { %1597 = vmatprep.subr.mxu1 %v1554_v53 }
 0x3e6   : > { %1598 = vmatpush1.msra.mxu1 %v1553_v13 }
 0x3e7   : > { %1754 = vmatmul.mubr.msk.f32.vlgmr.msra.gmra.mxu1 %vm687_vm0, %v1557_v25 }
 0x4a7   : > { %v1633_v63 = vpop.f32.mrf.mxu1 }
 0x4a8   : > { %v1634_v46 = vadd.f32 %v1633_v63, %v1562_v43 }
 0x4a9   : > { %v1635_v59 = vpop.f32.mrf.mxu1 }
 0x4aa   : > { %1638 = vst [vmem:[%s405_s27] sm:$0xff] %v1634_v46  ;;  %v1636_v55 = vadd.f32 %v1635_v59, %v1562_v43 }
 0x4ac   : > { %1639 = vst [vmem:[%s405_s27 + $0x8] sm:$0xff] %v1636_v55 }
 0x4ad PF: > { %s23_s19 = sadd.s32 1, %s1932_s19  }
 0x4ae   : > { %p20_p4 = scmp.ge.s32.totalorder %s23_s19, 4  }
 0x4b0   :  { %22 = sbr.rel (!%p20_p4) target bundleno = 3 (0x3), region = 97 }

</bundles_post_ra>
